<compile_context>
chip_gen: v6e
topology: v6e:2x2x1
jax: 0.10.0
libtpu: 0.0.40
codegen_flags: <defaults>
</compile_context>

<pallas_src>
import numpy as np
import jax
import jax.numpy as jnp
from jax.experimental import pallas as pl
from jax.experimental.pallas import tpu as pltpu

NUM_CLASSES = 1
CONV_DEFS = [(3, 16), (16, 32), (32, 64), (64, 64), (64, 128), (128, 128)]


# ----------------------------------------------------------------------------
# Host-side constant: T[s] @ flat_img == "shift image by (dy-1, dx-1) with zero
# padding", for a flattened h*w image (s = dy*3 + dx).  Used for the 4x4 stage.
# ----------------------------------------------------------------------------
def _make_shift_mats(h, w):
    t = np.zeros((9, h * w, h * w), np.float32)
    for dy in range(3):
        for dx in range(3):
            for ho in range(h):
                for wo in range(w):
                    hi, wi = ho + dy - 1, wo + dx - 1
                    if 0 <= hi < h and 0 <= wi < w:
                        t[dy * 3 + dx, ho * w + wo, hi * w + wi] = 1.0
    return jnp.asarray(t)


# ----------------------------------------------------------------------------
# In-kernel helpers (traced Python, single image).
# ----------------------------------------------------------------------------
def _conv3x3_from_padded(pad_ref, w_ref, b_ref, H, W, Cin, Cout):
    """3x3 same-conv + ReLU from a zero-padded (H+2, W+2, Cin) VMEM scratch.
    Nine whole-image shifted matmuls with M = H*W; bias folded into the acc init."""
    acc = jnp.zeros((H * W, Cout), jnp.float32) + b_ref[...]
    for dy in range(3):
        for dx in range(3):
            xs = pad_ref[dy:dy + H, dx:dx + W, :]                     # (H, W, Cin)
            acc = acc + jnp.dot(xs.reshape(H * W, Cin),
                                w_ref[dy, dx].astype(jnp.float32),
                                preferred_element_type=jnp.float32)
    return jnp.maximum(acc, 0.0).reshape(H, W, Cout)


def _conv3x3_flat4x4(a, t_ref, w_ref, b_ref, Cout):
    """3x3 same-conv + ReLU on a row-major flattened 4x4 image a: (16, Cin).
    Zero-padded spatial shifts are expressed as 16x16 selection matmuls."""
    acc = jnp.zeros((a.shape[0], Cout), jnp.float32) + b_ref[...]
    for dy in range(3):
        for dx in range(3):
            shifted = jnp.dot(t_ref[dy * 3 + dx], a,
                              preferred_element_type=jnp.float32)     # (16, Cin)
            acc = acc + jnp.dot(shifted, w_ref[dy, dx].astype(jnp.float32),
                                preferred_element_type=jnp.float32)
    return jnp.maximum(acc, 0.0)


# ----------------------------------------------------------------------------
# The fused per-image kernel.
# ----------------------------------------------------------------------------
def small_cnn_kernel(xcol_ref, w1_ref, b1_ref, w2_ref, b2_ref, w3_ref, b3_ref,
                     w4_ref, b4_ref, w5_ref, b5_ref, w6_ref, b6_ref,
                     t_ref, wlt_ref, bl_ref, o_ref,
                     pad2, pad3, pad4, flat4):
    f32 = jnp.float32

    # conv1 (Cin=3): single im2col matmul (256, 27) @ (27, 16) + ReLU.
    a1 = jnp.maximum(
        jnp.dot(xcol_ref[...], w1_ref[...].astype(f32),
                preferred_element_type=f32) + b1_ref[...], 0.0)        # (256, 16)

    # conv2 over 16x16 via zero-padded VMEM scratch (M = 256 matmuls).
    pad2[...] = jnp.zeros_like(pad2)
    pad2[1:17, 1:17, :] = a1.reshape(16, 16, 16)
    a2 = _conv3x3_from_padded(pad2, w2_ref, b2_ref, 16, 16, 16, 32)    # (16, 16, 32)

    # maxpool 16x16 -> 8x8, fused: written straight into conv3's padded scratch.
    pad3[...] = jnp.zeros_like(pad3)
    for ho in range(8):
        r = jnp.maximum(a2[2 * ho], a2[2 * ho + 1])                    # (16, 32)
        for wo in range(8):
            pad3[1 + ho, 1 + wo:2 + wo, :] = jnp.maximum(
                r[2 * wo:2 * wo + 1, :], r[2 * wo + 1:2 * wo + 2, :])

    a3 = _conv3x3_from_padded(pad3, w3_ref, b3_ref, 8, 8, 32, 64)      # (8, 8, 64)

    pad4[...] = jnp.zeros_like(pad4)
    pad4[1:9, 1:9, :] = a3
    a4 = _conv3x3_from_padded(pad4, w4_ref, b4_ref, 8, 8, 64, 64)      # (8, 8, 64)

    # maxpool 8x8 -> 4x4, stored row-major flattened for the shift-matrix convs.
    for ho in range(4):
        r = jnp.maximum(a4[2 * ho], a4[2 * ho + 1])                    # (8, 64)
        for wo in range(4):
            i = ho * 4 + wo
            flat4[i:i + 1, :] = jnp.maximum(
                r[2 * wo:2 * wo + 1, :], r[2 * wo + 1:2 * wo + 2, :])

    a5 = _conv3x3_flat4x4(flat4[...], t_ref, w5_ref, b5_ref, 128)      # (16, 128)
    a6 = _conv3x3_flat4x4(a5, t_ref, w6_ref, b6_ref, 128)              # (16, 128)

    # AdaptiveAvgPool2d(1) (sublane reduce) + Linear(128 -> 1) (lane reduce).
    pooled = jnp.sum(a6, axis=0, keepdims=True) * (1.0 / 16.0)         # (1, 128)
    logit = jnp.sum(pooled * wlt_ref[...], axis=1, keepdims=True) + bl_ref[...]
    o_ref[0] = logit                                                   # (1, 1)


# ----------------------------------------------------------------------------
# Parameter init (deterministic synthetic) and forward pass wrapper.
# ----------------------------------------------------------------------------
def init_params(key):
    convs = []
    for i, (cin, cout) in enumerate(CONV_DEFS):
        kw, kb = jax.random.split(jax.random.fold_in(key, i))
        w = jax.random.normal(kw, (3, 3, cin, cout), jnp.float32) / jnp.sqrt(cin * 9.0)
        b = jax.random.normal(kb, (1, cout), jnp.float32) * 0.01
        convs.append((w, b))
    kw, kb = jax.random.split(jax.random.fold_in(key, 100))
    wl = jax.random.normal(kw, (128, NUM_CLASSES), jnp.float32) / jnp.sqrt(128.0)
    bl = jax.random.normal(kb, (1, NUM_CLASSES), jnp.float32) * 0.01
    return convs, (wl, bl)


def small_cnn_forward(x_nchw, convs, head):
    # PyTorch NCHW -> NHWC (C on the lane dim inside the kernel).
    x = jnp.transpose(x_nchw, (0, 2, 3, 1)).astype(jnp.float32)
    N, H, W, Cin = x.shape                                             # (2, 16, 16, 3)

    # im2col for the first conv: K = 9*Cin = 27 (much better lane/MXU fill than K=3).
    xp = jnp.pad(x, ((0, 0), (1, 1), (1, 1), (0, 0)))
    cols = [xp[:, dy:dy + H, dx:dx + W, :] for dy in range(3) for dx in range(3)]
    xcol = jnp.concatenate(cols, axis=-1).reshape(N * H * W, 9 * Cin)  # (512, 27)

    (w1, b1), (w2, b2), (w3, b3), (w4, b4), (w5, b5), (w6, b6) = convs
    wl, bl = head
    bf = jnp.bfloat16
    w1f = w1.reshape(9 * Cin, 16).astype(bf)        # matches im2col feature order
    w2b, w3b, w4b, w5b, w6b = (w.astype(bf) for w in (w2, w3, w4, w5, w6))
    wlt = wl.T                                      # (1, 128)  (num_classes == 1)
    tmats = _make_shift_mats(4, 4)                  # (9, 16, 16)

    hw = H * W
    out = pl.pallas_call(
        small_cnn_kernel,
        out_shape=jax.ShapeDtypeStruct((N, 1, 1), jnp.float32),
        grid=(N,),                                  # per-image; 'parallel' -> both v7x TCs
        in_specs=[
            pl.BlockSpec((hw, 9 * Cin), lambda n: (n, 0)),
            pl.BlockSpec((9 * Cin, 16), lambda n: (0, 0)),
            pl.BlockSpec((1, 16), lambda n: (0, 0)),
            pl.BlockSpec((3, 3, 16, 32), lambda n: (0, 0, 0, 0)),
            pl.BlockSpec((1, 32), lambda n: (0, 0)),
            pl.BlockSpec((3, 3, 32, 64), lambda n: (0, 0, 0, 0)),
            pl.BlockSpec((1, 64), lambda n: (0, 0)),
            pl.BlockSpec((3, 3, 64, 64), lambda n: (0, 0, 0, 0)),
            pl.BlockSpec((1, 64), lambda n: (0, 0)),
            pl.BlockSpec((3, 3, 64, 128), lambda n: (0, 0, 0, 0)),
            pl.BlockSpec((1, 128), lambda n: (0, 0)),
            pl.BlockSpec((3, 3, 128, 128), lambda n: (0, 0, 0, 0)),
            pl.BlockSpec((1, 128), lambda n: (0, 0)),
            pl.BlockSpec((9, 16, 16), lambda n: (0, 0, 0)),
            pl.BlockSpec((1, 128), lambda n: (0, 0)),
            pl.BlockSpec((1, NUM_CLASSES), lambda n: (0, 0)),
        ],
        out_specs=pl.BlockSpec((1, 1, 1), lambda n: (n, 0, 0)),
        scratch_shapes=[
            pltpu.VMEM((18, 18, 16), jnp.float32),   # padded conv2 input
            pltpu.VMEM((10, 10, 32), jnp.float32),   # padded conv3 input (pool1 target)
            pltpu.VMEM((10, 10, 64), jnp.float32),   # padded conv4 input
            pltpu.VMEM((16, 64), jnp.float32),       # flattened 4x4 conv5 input (pool2 target)
        ],
        compiler_params=pltpu.CompilerParams(dimension_semantics=("parallel",)),
    )(xcol, w1f, b1, w2b, b2, w3b, b3, w4b, b4, w5b, b5, w6b, b6, tmats, wlt, bl)
    return out.reshape(N, NUM_CLASSES)


if __name__ == "__main__":
    root = jax.random.PRNGKey(0)
    convs, head = init_params(jax.random.fold_in(root, 1))
    # PyTorch-convention input: NCHW, batch=2, channels=3, 16x16 spatial.
    x = jax.random.normal(jax.random.fold_in(root, 2), (2, 3, 16, 16), jnp.float32)

    out = jax.jit(small_cnn_forward)(x, convs, head)
    out = jax.block_until_ready(out)
    assert out.shape == (2, NUM_CLASSES)
    assert bool(jnp.all(jnp.isfinite(out)))
    print("KERNEL_OK")
</pallas_src>

<mosaic_0001>
module attributes {stable_mosaic.version = 11 : i64} {
  func.func @small_cnn_kernel(%arg0: i32, %arg1: memref<256x27xf32, #tpu.memory_space<vmem>>, %arg2: memref<27x16xbf16, #tpu.memory_space<vmem>>, %arg3: memref<1x16xf32, #tpu.memory_space<vmem>>, %arg4: memref<3x3x16x32xbf16, #tpu.memory_space<vmem>>, %arg5: memref<1x32xf32, #tpu.memory_space<vmem>>, %arg6: memref<3x3x32x64xbf16, #tpu.memory_space<vmem>>, %arg7: memref<1x64xf32, #tpu.memory_space<vmem>>, %arg8: memref<3x3x64x64xbf16, #tpu.memory_space<vmem>>, %arg9: memref<1x64xf32, #tpu.memory_space<vmem>>, %arg10: memref<3x3x64x128xbf16, #tpu.memory_space<vmem>>, %arg11: memref<1x128xf32, #tpu.memory_space<vmem>>, %arg12: memref<3x3x128x128xbf16, #tpu.memory_space<vmem>>, %arg13: memref<1x128xf32, #tpu.memory_space<vmem>>, %arg14: memref<9x16x16xf32, #tpu.memory_space<vmem>>, %arg15: memref<1x128xf32, #tpu.memory_space<vmem>>, %arg16: memref<1x1xf32, #tpu.memory_space<vmem>>, %arg17: memref<1x1x1xf32, #tpu.memory_space<vmem>>, %arg18: memref<18x18x16xf32, #tpu.memory_space<vmem>>, %arg19: memref<10x10x32xf32, #tpu.memory_space<vmem>>, %arg20: memref<10x10x64xf32, #tpu.memory_space<vmem>>, %arg21: memref<16x64xf32, #tpu.memory_space<vmem>>) attributes {dimension_semantics = [#tpu.dimension_semantics<parallel>], iteration_bounds = array<i64: 2>, scalar_prefetch = 0 : i64, scratch_operands = 4 : i64, tpu.core_type = #tpu.core_type<tc>, window_params = [{transform_indices = @transform_0, window_bounds = array<i64: 256, 27>}, {pipeline_mode = #tpu.pipeline_mode<synchronous>, transform_indices = @transform_1, window_bounds = array<i64: 27, 16>}, {pipeline_mode = #tpu.pipeline_mode<synchronous>, transform_indices = @transform_2, window_bounds = array<i64: 1, 16>}, {pipeline_mode = #tpu.pipeline_mode<synchronous>, transform_indices = @transform_3, window_bounds = array<i64: 3, 3, 16, 32>}, {pipeline_mode = #tpu.pipeline_mode<synchronous>, transform_indices = @transform_4, window_bounds = array<i64: 1, 32>}, {pipeline_mode = #tpu.pipeline_mode<synchronous>, transform_indices = @transform_5, window_bounds = array<i64: 3, 3, 32, 64>}, {pipeline_mode = #tpu.pipeline_mode<synchronous>, transform_indices = @transform_6, window_bounds = array<i64: 1, 64>}, {pipeline_mode = #tpu.pipeline_mode<synchronous>, transform_indices = @transform_7, window_bounds = array<i64: 3, 3, 64, 64>}, {pipeline_mode = #tpu.pipeline_mode<synchronous>, transform_indices = @transform_8, window_bounds = array<i64: 1, 64>}, {pipeline_mode = #tpu.pipeline_mode<synchronous>, transform_indices = @transform_9, window_bounds = array<i64: 3, 3, 64, 128>}, {pipeline_mode = #tpu.pipeline_mode<synchronous>, transform_indices = @transform_10, window_bounds = array<i64: 1, 128>}, {pipeline_mode = #tpu.pipeline_mode<synchronous>, transform_indices = @transform_11, window_bounds = array<i64: 3, 3, 128, 128>}, {pipeline_mode = #tpu.pipeline_mode<synchronous>, transform_indices = @transform_12, window_bounds = array<i64: 1, 128>}, {pipeline_mode = #tpu.pipeline_mode<synchronous>, transform_indices = @transform_13, window_bounds = array<i64: 9, 16, 16>}, {pipeline_mode = #tpu.pipeline_mode<synchronous>, transform_indices = @transform_14, window_bounds = array<i64: 1, 128>}, {pipeline_mode = #tpu.pipeline_mode<synchronous>, transform_indices = @transform_15, window_bounds = array<i64: 1, 1>}, {transform_indices = @transform_16, window_bounds = array<i64: 1, 1, 1>}]} {
    %c0 = arith.constant 0 : index
    %c0_0 = arith.constant 0 : index
    %0 = vector.load %arg1[%c0, %c0_0] : memref<256x27xf32, #tpu.memory_space<vmem>>, vector<256x27xf32>
    %c0_1 = arith.constant 0 : index
    %c0_2 = arith.constant 0 : index
    %1 = vector.load %arg2[%c0_1, %c0_2] : memref<27x16xbf16, #tpu.memory_space<vmem>>, vector<27x16xbf16>
    %2 = arith.extf %1 : vector<27x16xbf16> to vector<27x16xf32>
    %cst = arith.constant dense<0.000000e+00> : vector<256x16xf32>
    %3 = tpu.matmul %0, %2, %cst {dimension_numbers = #tpu.dot_dimension_numbers<[1], [0], [0], [1], [0, 0, 1, 1], [], []>} : vector<256x27xf32>, vector<27x16xf32>, vector<256x16xf32> -> vector<256x16xf32>
    %c0_3 = arith.constant 0 : index
    %c0_4 = arith.constant 0 : index
    %4 = vector.load %arg3[%c0_3, %c0_4] : memref<1x16xf32, #tpu.memory_space<vmem>>, vector<1x16xf32>
    %5 = vector.broadcast %4 : vector<1x16xf32> to vector<256x16xf32>
    %6 = arith.addf %3, %5 : vector<256x16xf32>
    %cst_5 = arith.constant 0.000000e+00 : f32
    %7 = vector.broadcast %cst_5 : f32 to vector<256x16xf32>
    %8 = arith.maximumf %6, %7 : vector<256x16xf32>
    %cst_6 = arith.constant 0.000000e+00 : f32
    %9 = vector.broadcast %cst_6 : f32 to vector<18x18x16xf32>
    %c0_7 = arith.constant 0 : index
    %c0_8 = arith.constant 0 : index
    %c0_9 = arith.constant 0 : index
    %10 = vector.load %arg18[%c0_7, %c0_8, %c0_9] : memref<18x18x16xf32, #tpu.memory_space<vmem>>, vector<18x18x16xf32>
    tpu.vector_store %arg18[%c0_7, %c0_8, %c0_9], %9 {strides = array<i32>} : memref<18x18x16xf32, #tpu.memory_space<vmem>>, vector<18x18x16xf32>,
    %11 = vector.shape_cast %8 : vector<256x16xf32> to vector<16x16x16xf32>
    %c1 = arith.constant 1 : index
    %c1_10 = arith.constant 1 : index
    %c0_11 = arith.constant 0 : index
    %12 = vector.load %arg18[%c1, %c1_10, %c0_11] : memref<18x18x16xf32, #tpu.memory_space<vmem>>, vector<16x16x16xf32>
    tpu.vector_store %arg18[%c1, %c1_10, %c0_11], %11 {strides = array<i32>} : memref<18x18x16xf32, #tpu.memory_space<vmem>>, vector<16x16x16xf32>,
    %cst_12 = arith.constant 0.000000e+00 : f32
    %13 = vector.broadcast %cst_12 : f32 to vector<256x32xf32>
    %c0_13 = arith.constant 0 : index
    %c0_14 = arith.constant 0 : index
    %14 = vector.load %arg5[%c0_13, %c0_14] : memref<1x32xf32, #tpu.memory_space<vmem>>, vector<1x32xf32>
    %15 = vector.broadcast %14 : vector<1x32xf32> to vector<256x32xf32>
    %16 = arith.addf %13, %15 : vector<256x32xf32>
    %c0_15 = arith.constant 0 : index
    %c0_16 = arith.constant 0 : index
    %c0_17 = arith.constant 0 : index
    %17 = vector.load %arg18[%c0_15, %c0_16, %c0_17] : memref<18x18x16xf32, #tpu.memory_space<vmem>>, vector<16x16x16xf32>
    %18 = vector.shape_cast %17 : vector<16x16x16xf32> to vector<256x16xf32>
    %c0_18 = arith.constant 0 : index
    %c0_19 = arith.constant 0 : index
    %c0_20 = arith.constant 0 : index
    %c0_21 = arith.constant 0 : index
    %19 = vector.load %arg4[%c0_18, %c0_19, %c0_20, %c0_21] : memref<3x3x16x32xbf16, #tpu.memory_space<vmem>>, vector<1x1x16x32xbf16>
    %20 = vector.shape_cast %19 : vector<1x1x16x32xbf16> to vector<16x32xbf16>
    %21 = arith.extf %20 : vector<16x32xbf16> to vector<16x32xf32>
    %cst_22 = arith.constant dense<0.000000e+00> : vector<256x32xf32>
    %22 = tpu.matmul %18, %21, %cst_22 {dimension_numbers = #tpu.dot_dimension_numbers<[1], [0], [0], [1], [0, 0, 1, 1], [], []>} : vector<256x16xf32>, vector<16x32xf32>, vector<256x32xf32> -> vector<256x32xf32>
    %23 = arith.addf %16, %22 : vector<256x32xf32>
    %c0_23 = arith.constant 0 : index
    %c1_24 = arith.constant 1 : index
    %c0_25 = arith.constant 0 : index
    %24 = vector.load %arg18[%c0_23, %c1_24, %c0_25] : memref<18x18x16xf32, #tpu.memory_space<vmem>>, vector<16x16x16xf32>
    %25 = vector.shape_cast %24 : vector<16x16x16xf32> to vector<256x16xf32>
    %c0_26 = arith.constant 0 : index
    %c1_27 = arith.constant 1 : index
    %c0_28 = arith.constant 0 : index
    %c0_29 = arith.constant 0 : index
    %26 = vector.load %arg4[%c0_26, %c1_27, %c0_28, %c0_29] : memref<3x3x16x32xbf16, #tpu.memory_space<vmem>>, vector<1x1x16x32xbf16>
    %27 = vector.shape_cast %26 : vector<1x1x16x32xbf16> to vector<16x32xbf16>
    %28 = arith.extf %27 : vector<16x32xbf16> to vector<16x32xf32>
    %cst_30 = arith.constant dense<0.000000e+00> : vector<256x32xf32>
    %29 = tpu.matmul %25, %28, %cst_30 {dimension_numbers = #tpu.dot_dimension_numbers<[1], [0], [0], [1], [0, 0, 1, 1], [], []>} : vector<256x16xf32>, vector<16x32xf32>, vector<256x32xf32> -> vector<256x32xf32>
    %30 = arith.addf %23, %29 : vector<256x32xf32>
    %c0_31 = arith.constant 0 : index
    %c2 = arith.constant 2 : index
    %c0_32 = arith.constant 0 : index
    %31 = vector.load %arg18[%c0_31, %c2, %c0_32] : memref<18x18x16xf32, #tpu.memory_space<vmem>>, vector<16x16x16xf32>
    %32 = vector.shape_cast %31 : vector<16x16x16xf32> to vector<256x16xf32>
    %c0_33 = arith.constant 0 : index
    %c2_34 = arith.constant 2 : index
    %c0_35 = arith.constant 0 : index
    %c0_36 = arith.constant 0 : index
    %33 = vector.load %arg4[%c0_33, %c2_34, %c0_35, %c0_36] : memref<3x3x16x32xbf16, #tpu.memory_space<vmem>>, vector<1x1x16x32xbf16>
    %34 = vector.shape_cast %33 : vector<1x1x16x32xbf16> to vector<16x32xbf16>
    %35 = arith.extf %34 : vector<16x32xbf16> to vector<16x32xf32>
    %cst_37 = arith.constant dense<0.000000e+00> : vector<256x32xf32>
    %36 = tpu.matmul %32, %35, %cst_37 {dimension_numbers = #tpu.dot_dimension_numbers<[1], [0], [0], [1], [0, 0, 1, 1], [], []>} : vector<256x16xf32>, vector<16x32xf32>, vector<256x32xf32> -> vector<256x32xf32>
    %37 = arith.addf %30, %36 : vector<256x32xf32>
    %c1_38 = arith.constant 1 : index
    %c0_39 = arith.constant 0 : index
    %c0_40 = arith.constant 0 : index
    %38 = vector.load %arg18[%c1_38, %c0_39, %c0_40] : memref<18x18x16xf32, #tpu.memory_space<vmem>>, vector<16x16x16xf32>
    %39 = vector.shape_cast %38 : vector<16x16x16xf32> to vector<256x16xf32>
    %c1_41 = arith.constant 1 : index
    %c0_42 = arith.constant 0 : index
    %c0_43 = arith.constant 0 : index
    %c0_44 = arith.constant 0 : index
    %40 = vector.load %arg4[%c1_41, %c0_42, %c0_43, %c0_44] : memref<3x3x16x32xbf16, #tpu.memory_space<vmem>>, vector<1x1x16x32xbf16>
    %41 = vector.shape_cast %40 : vector<1x1x16x32xbf16> to vector<16x32xbf16>
    %42 = arith.extf %41 : vector<16x32xbf16> to vector<16x32xf32>
    %cst_45 = arith.constant dense<0.000000e+00> : vector<256x32xf32>
    %43 = tpu.matmul %39, %42, %cst_45 {dimension_numbers = #tpu.dot_dimension_numbers<[1], [0], [0], [1], [0, 0, 1, 1], [], []>} : vector<256x16xf32>, vector<16x32xf32>, vector<256x32xf32> -> vector<256x32xf32>
    %44 = arith.addf %37, %43 : vector<256x32xf32>
    %c1_46 = arith.constant 1 : index
    %c1_47 = arith.constant 1 : index
    %c0_48 = arith.constant 0 : index
    %45 = vector.load %arg18[%c1_46, %c1_47, %c0_48] : memref<18x18x16xf32, #tpu.memory_space<vmem>>, vector<16x16x16xf32>
    %46 = vector.shape_cast %45 : vector<16x16x16xf32> to vector<256x16xf32>
    %c1_49 = arith.constant 1 : index
    %c1_50 = arith.constant 1 : index
    %c0_51 = arith.constant 0 : index
    %c0_52 = arith.constant 0 : index
    %47 = vector.load %arg4[%c1_49, %c1_50, %c0_51, %c0_52] : memref<3x3x16x32xbf16, #tpu.memory_space<vmem>>, vector<1x1x16x32xbf16>
    %48 = vector.shape_cast %47 : vector<1x1x16x32xbf16> to vector<16x32xbf16>
    %49 = arith.extf %48 : vector<16x32xbf16> to vector<16x32xf32>
    %cst_53 = arith.constant dense<0.000000e+00> : vector<256x32xf32>
    %50 = tpu.matmul %46, %49, %cst_53 {dimension_numbers = #tpu.dot_dimension_numbers<[1], [0], [0], [1], [0, 0, 1, 1], [], []>} : vector<256x16xf32>, vector<16x32xf32>, vector<256x32xf32> -> vector<256x32xf32>
    %51 = arith.addf %44, %50 : vector<256x32xf32>
    %c1_54 = arith.constant 1 : index
    %c2_55 = arith.constant 2 : index
    %c0_56 = arith.constant 0 : index
    %52 = vector.load %arg18[%c1_54, %c2_55, %c0_56] : memref<18x18x16xf32, #tpu.memory_space<vmem>>, vector<16x16x16xf32>
    %53 = vector.shape_cast %52 : vector<16x16x16xf32> to vector<256x16xf32>
    %c1_57 = arith.constant 1 : index
    %c2_58 = arith.constant 2 : index
    %c0_59 = arith.constant 0 : index
    %c0_60 = arith.constant 0 : index
    %54 = vector.load %arg4[%c1_57, %c2_58, %c0_59, %c0_60] : memref<3x3x16x32xbf16, #tpu.memory_space<vmem>>, vector<1x1x16x32xbf16>
    %55 = vector.shape_cast %54 : vector<1x1x16x32xbf16> to vector<16x32xbf16>
    %56 = arith.extf %55 : vector<16x32xbf16> to vector<16x32xf32>
    %cst_61 = arith.constant dense<0.000000e+00> : vector<256x32xf32>
    %57 = tpu.matmul %53, %56, %cst_61 {dimension_numbers = #tpu.dot_dimension_numbers<[1], [0], [0], [1], [0, 0, 1, 1], [], []>} : vector<256x16xf32>, vector<16x32xf32>, vector<256x32xf32> -> vector<256x32xf32>
    %58 = arith.addf %51, %57 : vector<256x32xf32>
    %c2_62 = arith.constant 2 : index
    %c0_63 = arith.constant 0 : index
    %c0_64 = arith.constant 0 : index
    %59 = vector.load %arg18[%c2_62, %c0_63, %c0_64] : memref<18x18x16xf32, #tpu.memory_space<vmem>>, vector<16x16x16xf32>
    %60 = vector.shape_cast %59 : vector<16x16x16xf32> to vector<256x16xf32>
    %c2_65 = arith.constant 2 : index
    %c0_66 = arith.constant 0 : index
    %c0_67 = arith.constant 0 : index
    %c0_68 = arith.constant 0 : index
    %61 = vector.load %arg4[%c2_65, %c0_66, %c0_67, %c0_68] : memref<3x3x16x32xbf16, #tpu.memory_space<vmem>>, vector<1x1x16x32xbf16>
    %62 = vector.shape_cast %61 : vector<1x1x16x32xbf16> to vector<16x32xbf16>
    %63 = arith.extf %62 : vector<16x32xbf16> to vector<16x32xf32>
    %cst_69 = arith.constant dense<0.000000e+00> : vector<256x32xf32>
    %64 = tpu.matmul %60, %63, %cst_69 {dimension_numbers = #tpu.dot_dimension_numbers<[1], [0], [0], [1], [0, 0, 1, 1], [], []>} : vector<256x16xf32>, vector<16x32xf32>, vector<256x32xf32> -> vector<256x32xf32>
    %65 = arith.addf %58, %64 : vector<256x32xf32>
    %c2_70 = arith.constant 2 : index
    %c1_71 = arith.constant 1 : index
    %c0_72 = arith.constant 0 : index
    %66 = vector.load %arg18[%c2_70, %c1_71, %c0_72] : memref<18x18x16xf32, #tpu.memory_space<vmem>>, vector<16x16x16xf32>
    %67 = vector.shape_cast %66 : vector<16x16x16xf32> to vector<256x16xf32>
    %c2_73 = arith.constant 2 : index
    %c1_74 = arith.constant 1 : index
    %c0_75 = arith.constant 0 : index
    %c0_76 = arith.constant 0 : index
    %68 = vector.load %arg4[%c2_73, %c1_74, %c0_75, %c0_76] : memref<3x3x16x32xbf16, #tpu.memory_space<vmem>>, vector<1x1x16x32xbf16>
    %69 = vector.shape_cast %68 : vector<1x1x16x32xbf16> to vector<16x32xbf16>
    %70 = arith.extf %69 : vector<16x32xbf16> to vector<16x32xf32>
    %cst_77 = arith.constant dense<0.000000e+00> : vector<256x32xf32>
    %71 = tpu.matmul %67, %70, %cst_77 {dimension_numbers = #tpu.dot_dimension_numbers<[1], [0], [0], [1], [0, 0, 1, 1], [], []>} : vector<256x16xf32>, vector<16x32xf32>, vector<256x32xf32> -> vector<256x32xf32>
    %72 = arith.addf %65, %71 : vector<256x32xf32>
    %c2_78 = arith.constant 2 : index
    %c2_79 = arith.constant 2 : index
    %c0_80 = arith.constant 0 : index
    %73 = vector.load %arg18[%c2_78, %c2_79, %c0_80] : memref<18x18x16xf32, #tpu.memory_space<vmem>>, vector<16x16x16xf32>
    %74 = vector.shape_cast %73 : vector<16x16x16xf32> to vector<256x16xf32>
    %c2_81 = arith.constant 2 : index
    %c2_82 = arith.constant 2 : index
    %c0_83 = arith.constant 0 : index
    %c0_84 = arith.constant 0 : index
    %75 = vector.load %arg4[%c2_81, %c2_82, %c0_83, %c0_84] : memref<3x3x16x32xbf16, #tpu.memory_space<vmem>>, vector<1x1x16x32xbf16>
    %76 = vector.shape_cast %75 : vector<1x1x16x32xbf16> to vector<16x32xbf16>
    %77 = arith.extf %76 : vector<16x32xbf16> to vector<16x32xf32>
    %cst_85 = arith.constant dense<0.000000e+00> : vector<256x32xf32>
    %78 = tpu.matmul %74, %77, %cst_85 {dimension_numbers = #tpu.dot_dimension_numbers<[1], [0], [0], [1], [0, 0, 1, 1], [], []>} : vector<256x16xf32>, vector<16x32xf32>, vector<256x32xf32> -> vector<256x32xf32>
    %79 = arith.addf %72, %78 : vector<256x32xf32>
    %cst_86 = arith.constant 0.000000e+00 : f32
    %80 = vector.broadcast %cst_86 : f32 to vector<256x32xf32>
    %81 = arith.maximumf %79, %80 : vector<256x32xf32>
    %82 = vector.shape_cast %81 : vector<256x32xf32> to vector<16x16x32xf32>
    %cst_87 = arith.constant 0.000000e+00 : f32
    %83 = vector.broadcast %cst_87 : f32 to vector<10x10x32xf32>
    %c0_88 = arith.constant 0 : index
    %c0_89 = arith.constant 0 : index
    %c0_90 = arith.constant 0 : index
    %84 = vector.load %arg19[%c0_88, %c0_89, %c0_90] : memref<10x10x32xf32, #tpu.memory_space<vmem>>, vector<10x10x32xf32>
    tpu.vector_store %arg19[%c0_88, %c0_89, %c0_90], %83 {strides = array<i32>} : memref<10x10x32xf32, #tpu.memory_space<vmem>>, vector<10x10x32xf32>,
    %85 = vector.extract_strided_slice %82 {offsets = [0, 0, 0], sizes = [1, 16, 32], strides = [1, 1, 1]} : vector<16x16x32xf32> to vector<1x16x32xf32>
    %86 = vector.shape_cast %85 : vector<1x16x32xf32> to vector<16x32xf32>
    %87 = vector.extract_strided_slice %82 {offsets = [1, 0, 0], sizes = [1, 16, 32], strides = [1, 1, 1]} : vector<16x16x32xf32> to vector<1x16x32xf32>
    %88 = vector.shape_cast %87 : vector<1x16x32xf32> to vector<16x32xf32>
    %89 = arith.maximumf %86, %88 : vector<16x32xf32>
    %90 = vector.extract_strided_slice %89 {offsets = [0, 0], sizes = [1, 32], strides = [1, 1]} : vector<16x32xf32> to vector<1x32xf32>
    %91 = vector.extract_strided_slice %89 {offsets = [1, 0], sizes = [1, 32], strides = [1, 1]} : vector<16x32xf32> to vector<1x32xf32>
    %92 = arith.maximumf %90, %91 : vector<1x32xf32>
    %c1_91 = arith.constant 1 : index
    %c1_92 = arith.constant 1 : index
    %c0_93 = arith.constant 0 : index
    %93 = vector.load %arg19[%c1_91, %c1_92, %c0_93] : memref<10x10x32xf32, #tpu.memory_space<vmem>>, vector<1x1x32xf32>
    %94 = vector.shape_cast %93 : vector<1x1x32xf32> to vector<1x32xf32>
    %95 = vector.shape_cast %92 : vector<1x32xf32> to vector<1x1x32xf32>
    tpu.vector_store %arg19[%c1_91, %c1_92, %c0_93], %95 {strides = array<i32>} : memref<10x10x32xf32, #tpu.memory_space<vmem>>, vector<1x1x32xf32>,
    %96 = vector.extract_strided_slice %89 {offsets = [2, 0], sizes = [1, 32], strides = [1, 1]} : vector<16x32xf32> to vector<1x32xf32>
    %97 = vector.extract_strided_slice %89 {offsets = [3, 0], sizes = [1, 32], strides = [1, 1]} : vector<16x32xf32> to vector<1x32xf32>
    %98 = arith.maximumf %96, %97 : vector<1x32xf32>
    %c1_94 = arith.constant 1 : index
    %c2_95 = arith.constant 2 : index
    %c0_96 = arith.constant 0 : index
    %99 = vector.load %arg19[%c1_94, %c2_95, %c0_96] : memref<10x10x32xf32, #tpu.memory_space<vmem>>, vector<1x1x32xf32>
    %100 = vector.shape_cast %99 : vector<1x1x32xf32> to vector<1x32xf32>
    %101 = vector.shape_cast %98 : vector<1x32xf32> to vector<1x1x32xf32>
    tpu.vector_store %arg19[%c1_94, %c2_95, %c0_96], %101 {strides = array<i32>} : memref<10x10x32xf32, #tpu.memory_space<vmem>>, vector<1x1x32xf32>,
    %102 = vector.extract_strided_slice %89 {offsets = [4, 0], sizes = [1, 32], strides = [1, 1]} : vector<16x32xf32> to vector<1x32xf32>
    %103 = vector.extract_strided_slice %89 {offsets = [5, 0], sizes = [1, 32], strides = [1, 1]} : vector<16x32xf32> to vector<1x32xf32>
    %104 = arith.maximumf %102, %103 : vector<1x32xf32>
    %c1_97 = arith.constant 1 : index
    %c3 = arith.constant 3 : index
    %c0_98 = arith.constant 0 : index
    %105 = vector.load %arg19[%c1_97, %c3, %c0_98] : memref<10x10x32xf32, #tpu.memory_space<vmem>>, vector<1x1x32xf32>
    %106 = vector.shape_cast %105 : vector<1x1x32xf32> to vector<1x32xf32>
    %107 = vector.shape_cast %104 : vector<1x32xf32> to vector<1x1x32xf32>
    tpu.vector_store %arg19[%c1_97, %c3, %c0_98], %107 {strides = array<i32>} : memref<10x10x32xf32, #tpu.memory_space<vmem>>, vector<1x1x32xf32>,
    %108 = vector.extract_strided_slice %89 {offsets = [6, 0], sizes = [1, 32], strides = [1, 1]} : vector<16x32xf32> to vector<1x32xf32>
    %109 = vector.extract_strided_slice %89 {offsets = [7, 0], sizes = [1, 32], strides = [1, 1]} : vector<16x32xf32> to vector<1x32xf32>
    %110 = arith.maximumf %108, %109 : vector<1x32xf32>
    %c1_99 = arith.constant 1 : index
    %c4 = arith.constant 4 : index
    %c0_100 = arith.constant 0 : index
    %111 = vector.load %arg19[%c1_99, %c4, %c0_100] : memref<10x10x32xf32, #tpu.memory_space<vmem>>, vector<1x1x32xf32>
    %112 = vector.shape_cast %111 : vector<1x1x32xf32> to vector<1x32xf32>
    %113 = vector.shape_cast %110 : vector<1x32xf32> to vector<1x1x32xf32>
    tpu.vector_store %arg19[%c1_99, %c4, %c0_100], %113 {strides = array<i32>} : memref<10x10x32xf32, #tpu.memory_space<vmem>>, vector<1x1x32xf32>,
    %114 = vector.extract_strided_slice %89 {offsets = [8, 0], sizes = [1, 32], strides = [1, 1]} : vector<16x32xf32> to vector<1x32xf32>
    %115 = vector.extract_strided_slice %89 {offsets = [9, 0], sizes = [1, 32], strides = [1, 1]} : vector<16x32xf32> to vector<1x32xf32>
    %116 = arith.maximumf %114, %115 : vector<1x32xf32>
    %c1_101 = arith.constant 1 : index
    %c5 = arith.constant 5 : index
    %c0_102 = arith.constant 0 : index
    %117 = vector.load %arg19[%c1_101, %c5, %c0_102] : memref<10x10x32xf32, #tpu.memory_space<vmem>>, vector<1x1x32xf32>
    %118 = vector.shape_cast %117 : vector<1x1x32xf32> to vector<1x32xf32>
    %119 = vector.shape_cast %116 : vector<1x32xf32> to vector<1x1x32xf32>
    tpu.vector_store %arg19[%c1_101, %c5, %c0_102], %119 {strides = array<i32>} : memref<10x10x32xf32, #tpu.memory_space<vmem>>, vector<1x1x32xf32>,
    %120 = vector.extract_strided_slice %89 {offsets = [10, 0], sizes = [1, 32], strides = [1, 1]} : vector<16x32xf32> to vector<1x32xf32>
    %121 = vector.extract_strided_slice %89 {offsets = [11, 0], sizes = [1, 32], strides = [1, 1]} : vector<16x32xf32> to vector<1x32xf32>
    %122 = arith.maximumf %120, %121 : vector<1x32xf32>
    %c1_103 = arith.constant 1 : index
    %c6 = arith.constant 6 : index
    %c0_104 = arith.constant 0 : index
    %123 = vector.load %arg19[%c1_103, %c6, %c0_104] : memref<10x10x32xf32, #tpu.memory_space<vmem>>, vector<1x1x32xf32>
    %124 = vector.shape_cast %123 : vector<1x1x32xf32> to vector<1x32xf32>
    %125 = vector.shape_cast %122 : vector<1x32xf32> to vector<1x1x32xf32>
    tpu.vector_store %arg19[%c1_103, %c6, %c0_104], %125 {strides = array<i32>} : memref<10x10x32xf32, #tpu.memory_space<vmem>>, vector<1x1x32xf32>,
    %126 = vector.extract_strided_slice %89 {offsets = [12, 0], sizes = [1, 32], strides = [1, 1]} : vector<16x32xf32> to vector<1x32xf32>
    %127 = vector.extract_strided_slice %89 {offsets = [13, 0], sizes = [1, 32], strides = [1, 1]} : vector<16x32xf32> to vector<1x32xf32>
    %128 = arith.maximumf %126, %127 : vector<1x32xf32>
    %c1_105 = arith.constant 1 : index
    %c7 = arith.constant 7 : index
    %c0_106 = arith.constant 0 : index
    %129 = vector.load %arg19[%c1_105, %c7, %c0_106] : memref<10x10x32xf32, #tpu.memory_space<vmem>>, vector<1x1x32xf32>
    %130 = vector.shape_cast %129 : vector<1x1x32xf32> to vector<1x32xf32>
    %131 = vector.shape_cast %128 : vector<1x32xf32> to vector<1x1x32xf32>
    tpu.vector_store %arg19[%c1_105, %c7, %c0_106], %131 {strides = array<i32>} : memref<10x10x32xf32, #tpu.memory_space<vmem>>, vector<1x1x32xf32>,
    %132 = vector.extract_strided_slice %89 {offsets = [14, 0], sizes = [1, 32], strides = [1, 1]} : vector<16x32xf32> to vector<1x32xf32>
    %133 = vector.extract_strided_slice %89 {offsets = [15, 0], sizes = [1, 32], strides = [1, 1]} : vector<16x32xf32> to vector<1x32xf32>
    %134 = arith.maximumf %132, %133 : vector<1x32xf32>
    %c1_107 = arith.constant 1 : index
    %c8 = arith.constant 8 : index
    %c0_108 = arith.constant 0 : index
    %135 = vector.load %arg19[%c1_107, %c8, %c0_108] : memref<10x10x32xf32, #tpu.memory_space<vmem>>, vector<1x1x32xf32>
    %136 = vector.shape_cast %135 : vector<1x1x32xf32> to vector<1x32xf32>
    %137 = vector.shape_cast %134 : vector<1x32xf32> to vector<1x1x32xf32>
    tpu.vector_store %arg19[%c1_107, %c8, %c0_108], %137 {strides = array<i32>} : memref<10x10x32xf32, #tpu.memory_space<vmem>>, vector<1x1x32xf32>,
    %138 = vector.extract_strided_slice %82 {offsets = [2, 0, 0], sizes = [1, 16, 32], strides = [1, 1, 1]} : vector<16x16x32xf32> to vector<1x16x32xf32>
    %139 = vector.shape_cast %138 : vector<1x16x32xf32> to vector<16x32xf32>
    %140 = vector.extract_strided_slice %82 {offsets = [3, 0, 0], sizes = [1, 16, 32], strides = [1, 1, 1]} : vector<16x16x32xf32> to vector<1x16x32xf32>
    %141 = vector.shape_cast %140 : vector<1x16x32xf32> to vector<16x32xf32>
    %142 = arith.maximumf %139, %141 : vector<16x32xf32>
    %143 = vector.extract_strided_slice %142 {offsets = [0, 0], sizes = [1, 32], strides = [1, 1]} : vector<16x32xf32> to vector<1x32xf32>
    %144 = vector.extract_strided_slice %142 {offsets = [1, 0], sizes = [1, 32], strides = [1, 1]} : vector<16x32xf32> to vector<1x32xf32>
    %145 = arith.maximumf %143, %144 : vector<1x32xf32>
    %c2_109 = arith.constant 2 : index
    %c1_110 = arith.constant 1 : index
    %c0_111 = arith.constant 0 : index
    %146 = vector.load %arg19[%c2_109, %c1_110, %c0_111] : memref<10x10x32xf32, #tpu.memory_space<vmem>>, vector<1x1x32xf32>
    %147 = vector.shape_cast %146 : vector<1x1x32xf32> to vector<1x32xf32>
    %148 = vector.shape_cast %145 : vector<1x32xf32> to vector<1x1x32xf32>
    tpu.vector_store %arg19[%c2_109, %c1_110, %c0_111], %148 {strides = array<i32>} : memref<10x10x32xf32, #tpu.memory_space<vmem>>, vector<1x1x32xf32>,
    %149 = vector.extract_strided_slice %142 {offsets = [2, 0], sizes = [1, 32], strides = [1, 1]} : vector<16x32xf32> to vector<1x32xf32>
    %150 = vector.extract_strided_slice %142 {offsets = [3, 0], sizes = [1, 32], strides = [1, 1]} : vector<16x32xf32> to vector<1x32xf32>
    %151 = arith.maximumf %149, %150 : vector<1x32xf32>
    %c2_112 = arith.constant 2 : index
    %c2_113 = arith.constant 2 : index
    %c0_114 = arith.constant 0 : index
    %152 = vector.load %arg19[%c2_112, %c2_113, %c0_114] : memref<10x10x32xf32, #tpu.memory_space<vmem>>, vector<1x1x32xf32>
    %153 = vector.shape_cast %152 : vector<1x1x32xf32> to vector<1x32xf32>
    %154 = vector.shape_cast %151 : vector<1x32xf32> to vector<1x1x32xf32>
    tpu.vector_store %arg19[%c2_112, %c2_113, %c0_114], %154 {strides = array<i32>} : memref<10x10x32xf32, #tpu.memory_space<vmem>>, vector<1x1x32xf32>,
    %155 = vector.extract_strided_slice %142 {offsets = [4, 0], sizes = [1, 32], strides = [1, 1]} : vector<16x32xf32> to vector<1x32xf32>
    %156 = vector.extract_strided_slice %142 {offsets = [5, 0], sizes = [1, 32], strides = [1, 1]} : vector<16x32xf32> to vector<1x32xf32>
    %157 = arith.maximumf %155, %156 : vector<1x32xf32>
    %c2_115 = arith.constant 2 : index
    %c3_116 = arith.constant 3 : index
    %c0_117 = arith.constant 0 : index
    %158 = vector.load %arg19[%c2_115, %c3_116, %c0_117] : memref<10x10x32xf32, #tpu.memory_space<vmem>>, vector<1x1x32xf32>
    %159 = vector.shape_cast %158 : vector<1x1x32xf32> to vector<1x32xf32>
    %160 = vector.shape_cast %157 : vector<1x32xf32> to vector<1x1x32xf32>
    tpu.vector_store %arg19[%c2_115, %c3_116, %c0_117], %160 {strides = array<i32>} : memref<10x10x32xf32, #tpu.memory_space<vmem>>, vector<1x1x32xf32>,
    %161 = vector.extract_strided_slice %142 {offsets = [6, 0], sizes = [1, 32], strides = [1, 1]} : vector<16x32xf32> to vector<1x32xf32>
    %162 = vector.extract_strided_slice %142 {offsets = [7, 0], sizes = [1, 32], strides = [1, 1]} : vector<16x32xf32> to vector<1x32xf32>
    %163 = arith.maximumf %161, %162 : vector<1x32xf32>
    %c2_118 = arith.constant 2 : index
    %c4_119 = arith.constant 4 : index
    %c0_120 = arith.constant 0 : index
    %164 = vector.load %arg19[%c2_118, %c4_119, %c0_120] : memref<10x10x32xf32, #tpu.memory_space<vmem>>, vector<1x1x32xf32>
    %165 = vector.shape_cast %164 : vector<1x1x32xf32> to vector<1x32xf32>
    %166 = vector.shape_cast %163 : vector<1x32xf32> to vector<1x1x32xf32>
    tpu.vector_store %arg19[%c2_118, %c4_119, %c0_120], %166 {strides = array<i32>} : memref<10x10x32xf32, #tpu.memory_space<vmem>>, vector<1x1x32xf32>,
    %167 = vector.extract_strided_slice %142 {offsets = [8, 0], sizes = [1, 32], strides = [1, 1]} : vector<16x32xf32> to vector<1x32xf32>
    %168 = vector.extract_strided_slice %142 {offsets = [9, 0], sizes = [1, 32], strides = [1, 1]} : vector<16x32xf32> to vector<1x32xf32>
    %169 = arith.maximumf %167, %168 : vector<1x32xf32>
    %c2_121 = arith.constant 2 : index
    %c5_122 = arith.constant 5 : index
    %c0_123 = arith.constant 0 : index
    %170 = vector.load %arg19[%c2_121, %c5_122, %c0_123] : memref<10x10x32xf32, #tpu.memory_space<vmem>>, vector<1x1x32xf32>
    %171 = vector.shape_cast %170 : vector<1x1x32xf32> to vector<1x32xf32>
    %172 = vector.shape_cast %169 : vector<1x32xf32> to vector<1x1x32xf32>
    tpu.vector_store %arg19[%c2_121, %c5_122, %c0_123], %172 {strides = array<i32>} : memref<10x10x32xf32, #tpu.memory_space<vmem>>, vector<1x1x32xf32>,
    %173 = vector.extract_strided_slice %142 {offsets = [10, 0], sizes = [1, 32], strides = [1, 1]} : vector<16x32xf32> to vector<1x32xf32>
    %174 = vector.extract_strided_slice %142 {offsets = [11, 0], sizes = [1, 32], strides = [1, 1]} : vector<16x32xf32> to vector<1x32xf32>
    %175 = arith.maximumf %173, %174 : vector<1x32xf32>
    %c2_124 = arith.constant 2 : index
    %c6_125 = arith.constant 6 : index
    %c0_126 = arith.constant 0 : index
    %176 = vector.load %arg19[%c2_124, %c6_125, %c0_126] : memref<10x10x32xf32, #tpu.memory_space<vmem>>, vector<1x1x32xf32>
    %177 = vector.shape_cast %176 : vector<1x1x32xf32> to vector<1x32xf32>
    %178 = vector.shape_cast %175 : vector<1x32xf32> to vector<1x1x32xf32>
    tpu.vector_store %arg19[%c2_124, %c6_125, %c0_126], %178 {strides = array<i32>} : memref<10x10x32xf32, #tpu.memory_space<vmem>>, vector<1x1x32xf32>,
    %179 = vector.extract_strided_slice %142 {offsets = [12, 0], sizes = [1, 32], strides = [1, 1]} : vector<16x32xf32> to vector<1x32xf32>
    %180 = vector.extract_strided_slice %142 {offsets = [13, 0], sizes = [1, 32], strides = [1, 1]} : vector<16x32xf32> to vector<1x32xf32>
    %181 = arith.maximumf %179, %180 : vector<1x32xf32>
    %c2_127 = arith.constant 2 : index
    %c7_128 = arith.constant 7 : index
    %c0_129 = arith.constant 0 : index
    %182 = vector.load %arg19[%c2_127, %c7_128, %c0_129] : memref<10x10x32xf32, #tpu.memory_space<vmem>>, vector<1x1x32xf32>
    %183 = vector.shape_cast %182 : vector<1x1x32xf32> to vector<1x32xf32>
    %184 = vector.shape_cast %181 : vector<1x32xf32> to vector<1x1x32xf32>
    tpu.vector_store %arg19[%c2_127, %c7_128, %c0_129], %184 {strides = array<i32>} : memref<10x10x32xf32, #tpu.memory_space<vmem>>, vector<1x1x32xf32>,
    %185 = vector.extract_strided_slice %142 {offsets = [14, 0], sizes = [1, 32], strides = [1, 1]} : vector<16x32xf32> to vector<1x32xf32>
    %186 = vector.extract_strided_slice %142 {offsets = [15, 0], sizes = [1, 32], strides = [1, 1]} : vector<16x32xf32> to vector<1x32xf32>
    %187 = arith.maximumf %185, %186 : vector<1x32xf32>
    %c2_130 = arith.constant 2 : index
    %c8_131 = arith.constant 8 : index
    %c0_132 = arith.constant 0 : index
    %188 = vector.load %arg19[%c2_130, %c8_131, %c0_132] : memref<10x10x32xf32, #tpu.memory_space<vmem>>, vector<1x1x32xf32>
    %189 = vector.shape_cast %188 : vector<1x1x32xf32> to vector<1x32xf32>
    %190 = vector.shape_cast %187 : vector<1x32xf32> to vector<1x1x32xf32>
    tpu.vector_store %arg19[%c2_130, %c8_131, %c0_132], %190 {strides = array<i32>} : memref<10x10x32xf32, #tpu.memory_space<vmem>>, vector<1x1x32xf32>,
    %191 = vector.extract_strided_slice %82 {offsets = [4, 0, 0], sizes = [1, 16, 32], strides = [1, 1, 1]} : vector<16x16x32xf32> to vector<1x16x32xf32>
    %192 = vector.shape_cast %191 : vector<1x16x32xf32> to vector<16x32xf32>
    %193 = vector.extract_strided_slice %82 {offsets = [5, 0, 0], sizes = [1, 16, 32], strides = [1, 1, 1]} : vector<16x16x32xf32> to vector<1x16x32xf32>
    %194 = vector.shape_cast %193 : vector<1x16x32xf32> to vector<16x32xf32>
    %195 = arith.maximumf %192, %194 : vector<16x32xf32>
    %196 = vector.extract_strided_slice %195 {offsets = [0, 0], sizes = [1, 32], strides = [1, 1]} : vector<16x32xf32> to vector<1x32xf32>
    %197 = vector.extract_strided_slice %195 {offsets = [1, 0], sizes = [1, 32], strides = [1, 1]} : vector<16x32xf32> to vector<1x32xf32>
    %198 = arith.maximumf %196, %197 : vector<1x32xf32>
    %c3_133 = arith.constant 3 : index
    %c1_134 = arith.constant 1 : index
    %c0_135 = arith.constant 0 : index
    %199 = vector.load %arg19[%c3_133, %c1_134, %c0_135] : memref<10x10x32xf32, #tpu.memory_space<vmem>>, vector<1x1x32xf32>
    %200 = vector.shape_cast %199 : vector<1x1x32xf32> to vector<1x32xf32>
    %201 = vector.shape_cast %198 : vector<1x32xf32> to vector<1x1x32xf32>
    tpu.vector_store %arg19[%c3_133, %c1_134, %c0_135], %201 {strides = array<i32>} : memref<10x10x32xf32, #tpu.memory_space<vmem>>, vector<1x1x32xf32>,
    %202 = vector.extract_strided_slice %195 {offsets = [2, 0], sizes = [1, 32], strides = [1, 1]} : vector<16x32xf32> to vector<1x32xf32>
    %203 = vector.extract_strided_slice %195 {offsets = [3, 0], sizes = [1, 32], strides = [1, 1]} : vector<16x32xf32> to vector<1x32xf32>
    %204 = arith.maximumf %202, %203 : vector<1x32xf32>
    %c3_136 = arith.constant 3 : index
    %c2_137 = arith.constant 2 : index
    %c0_138 = arith.constant 0 : index
    %205 = vector.load %arg19[%c3_136, %c2_137, %c0_138] : memref<10x10x32xf32, #tpu.memory_space<vmem>>, vector<1x1x32xf32>
    %206 = vector.shape_cast %205 : vector<1x1x32xf32> to vector<1x32xf32>
    %207 = vector.shape_cast %204 : vector<1x32xf32> to vector<1x1x32xf32>
    tpu.vector_store %arg19[%c3_136, %c2_137, %c0_138], %207 {strides = array<i32>} : memref<10x10x32xf32, #tpu.memory_space<vmem>>, vector<1x1x32xf32>,
    %208 = vector.extract_strided_slice %195 {offsets = [4, 0], sizes = [1, 32], strides = [1, 1]} : vector<16x32xf32> to vector<1x32xf32>
    %209 = vector.extract_strided_slice %195 {offsets = [5, 0], sizes = [1, 32], strides = [1, 1]} : vector<16x32xf32> to vector<1x32xf32>
    %210 = arith.maximumf %208, %209 : vector<1x32xf32>
    %c3_139 = arith.constant 3 : index
    %c3_140 = arith.constant 3 : index
    %c0_141 = arith.constant 0 : index
    %211 = vector.load %arg19[%c3_139, %c3_140, %c0_141] : memref<10x10x32xf32, #tpu.memory_space<vmem>>, vector<1x1x32xf32>
    %212 = vector.shape_cast %211 : vector<1x1x32xf32> to vector<1x32xf32>
    %213 = vector.shape_cast %210 : vector<1x32xf32> to vector<1x1x32xf32>
    tpu.vector_store %arg19[%c3_139, %c3_140, %c0_141], %213 {strides = array<i32>} : memref<10x10x32xf32, #tpu.memory_space<vmem>>, vector<1x1x32xf32>,
    %214 = vector.extract_strided_slice %195 {offsets = [6, 0], sizes = [1, 32], strides = [1, 1]} : vector<16x32xf32> to vector<1x32xf32>
    %215 = vector.extract_strided_slice %195 {offsets = [7, 0], sizes = [1, 32], strides = [1, 1]} : vector<16x32xf32> to vector<1x32xf32>
    %216 = arith.maximumf %214, %215 : vector<1x32xf32>
    %c3_142 = arith.constant 3 : index
    %c4_143 = arith.constant 4 : index
    %c0_144 = arith.constant 0 : index
    %217 = vector.load %arg19[%c3_142, %c4_143, %c0_144] : memref<10x10x32xf32, #tpu.memory_space<vmem>>, vector<1x1x32xf32>
    %218 = vector.shape_cast %217 : vector<1x1x32xf32> to vector<1x32xf32>
    %219 = vector.shape_cast %216 : vector<1x32xf32> to vector<1x1x32xf32>
    tpu.vector_store %arg19[%c3_142, %c4_143, %c0_144], %219 {strides = array<i32>} : memref<10x10x32xf32, #tpu.memory_space<vmem>>, vector<1x1x32xf32>,
    %220 = vector.extract_strided_slice %195 {offsets = [8, 0], sizes = [1, 32], strides = [1, 1]} : vector<16x32xf32> to vector<1x32xf32>
    %221 = vector.extract_strided_slice %195 {offsets = [9, 0], sizes = [1, 32], strides = [1, 1]} : vector<16x32xf32> to vector<1x32xf32>
    %222 = arith.maximumf %220, %221 : vector<1x32xf32>
    %c3_145 = arith.constant 3 : index
    %c5_146 = arith.constant 5 : index
    %c0_147 = arith.constant 0 : index
    %223 = vector.load %arg19[%c3_145, %c5_146, %c0_147] : memref<10x10x32xf32, #tpu.memory_space<vmem>>, vector<1x1x32xf32>
    %224 = vector.shape_cast %223 : vector<1x1x32xf32> to vector<1x32xf32>
    %225 = vector.shape_cast %222 : vector<1x32xf32> to vector<1x1x32xf32>
    tpu.vector_store %arg19[%c3_145, %c5_146, %c0_147], %225 {strides = array<i32>} : memref<10x10x32xf32, #tpu.memory_space<vmem>>, vector<1x1x32xf32>,
    %226 = vector.extract_strided_slice %195 {offsets = [10, 0], sizes = [1, 32], strides = [1, 1]} : vector<16x32xf32> to vector<1x32xf32>
    %227 = vector.extract_strided_slice %195 {offsets = [11, 0], sizes = [1, 32], strides = [1, 1]} : vector<16x32xf32> to vector<1x32xf32>
    %228 = arith.maximumf %226, %227 : vector<1x32xf32>
    %c3_148 = arith.constant 3 : index
    %c6_149 = arith.constant 6 : index
    %c0_150 = arith.constant 0 : index
    %229 = vector.load %arg19[%c3_148, %c6_149, %c0_150] : memref<10x10x32xf32, #tpu.memory_space<vmem>>, vector<1x1x32xf32>
    %230 = vector.shape_cast %229 : vector<1x1x32xf32> to vector<1x32xf32>
    %231 = vector.shape_cast %228 : vector<1x32xf32> to vector<1x1x32xf32>
    tpu.vector_store %arg19[%c3_148, %c6_149, %c0_150], %231 {strides = array<i32>} : memref<10x10x32xf32, #tpu.memory_space<vmem>>, vector<1x1x32xf32>,
    %232 = vector.extract_strided_slice %195 {offsets = [12, 0], sizes = [1, 32], strides = [1, 1]} : vector<16x32xf32> to vector<1x32xf32>
    %233 = vector.extract_strided_slice %195 {offsets = [13, 0], sizes = [1, 32], strides = [1, 1]} : vector<16x32xf32> to vector<1x32xf32>
    %234 = arith.maximumf %232, %233 : vector<1x32xf32>
    %c3_151 = arith.constant 3 : index
    %c7_152 = arith.constant 7 : index
    %c0_153 = arith.constant 0 : index
    %235 = vector.load %arg19[%c3_151, %c7_152, %c0_153] : memref<10x10x32xf32, #tpu.memory_space<vmem>>, vector<1x1x32xf32>
    %236 = vector.shape_cast %235 : vector<1x1x32xf32> to vector<1x32xf32>
    %237 = vector.shape_cast %234 : vector<1x32xf32> to vector<1x1x32xf32>
    tpu.vector_store %arg19[%c3_151, %c7_152, %c0_153], %237 {strides = array<i32>} : memref<10x10x32xf32, #tpu.memory_space<vmem>>, vector<1x1x32xf32>,
    %238 = vector.extract_strided_slice %195 {offsets = [14, 0], sizes = [1, 32], strides = [1, 1]} : vector<16x32xf32> to vector<1x32xf32>
    %239 = vector.extract_strided_slice %195 {offsets = [15, 0], sizes = [1, 32], strides = [1, 1]} : vector<16x32xf32> to vector<1x32xf32>
    %240 = arith.maximumf %238, %239 : vector<1x32xf32>
    %c3_154 = arith.constant 3 : index
    %c8_155 = arith.constant 8 : index
    %c0_156 = arith.constant 0 : index
    %241 = vector.load %arg19[%c3_154, %c8_155, %c0_156] : memref<10x10x32xf32, #tpu.memory_space<vmem>>, vector<1x1x32xf32>
    %242 = vector.shape_cast %241 : vector<1x1x32xf32> to vector<1x32xf32>
    %243 = vector.shape_cast %240 : vector<1x32xf32> to vector<1x1x32xf32>
    tpu.vector_store %arg19[%c3_154, %c8_155, %c0_156], %243 {strides = array<i32>} : memref<10x10x32xf32, #tpu.memory_space<vmem>>, vector<1x1x32xf32>,
    %244 = vector.extract_strided_slice %82 {offsets = [6, 0, 0], sizes = [1, 16, 32], strides = [1, 1, 1]} : vector<16x16x32xf32> to vector<1x16x32xf32>
    %245 = vector.shape_cast %244 : vector<1x16x32xf32> to vector<16x32xf32>
    %246 = vector.extract_strided_slice %82 {offsets = [7, 0, 0], sizes = [1, 16, 32], strides = [1, 1, 1]} : vector<16x16x32xf32> to vector<1x16x32xf32>
    %247 = vector.shape_cast %246 : vector<1x16x32xf32> to vector<16x32xf32>
    %248 = arith.maximumf %245, %247 : vector<16x32xf32>
    %249 = vector.extract_strided_slice %248 {offsets = [0, 0], sizes = [1, 32], strides = [1, 1]} : vector<16x32xf32> to vector<1x32xf32>
    %250 = vector.extract_strided_slice %248 {offsets = [1, 0], sizes = [1, 32], strides = [1, 1]} : vector<16x32xf32> to vector<1x32xf32>
    %251 = arith.maximumf %249, %250 : vector<1x32xf32>
    %c4_157 = arith.constant 4 : index
    %c1_158 = arith.constant 1 : index
    %c0_159 = arith.constant 0 : index
    %252 = vector.load %arg19[%c4_157, %c1_158, %c0_159] : memref<10x10x32xf32, #tpu.memory_space<vmem>>, vector<1x1x32xf32>
    %253 = vector.shape_cast %252 : vector<1x1x32xf32> to vector<1x32xf32>
    %254 = vector.shape_cast %251 : vector<1x32xf32> to vector<1x1x32xf32>
    tpu.vector_store %arg19[%c4_157, %c1_158, %c0_159], %254 {strides = array<i32>} : memref<10x10x32xf32, #tpu.memory_space<vmem>>, vector<1x1x32xf32>,
    %255 = vector.extract_strided_slice %248 {offsets = [2, 0], sizes = [1, 32], strides = [1, 1]} : vector<16x32xf32> to vector<1x32xf32>
    %256 = vector.extract_strided_slice %248 {offsets = [3, 0], sizes = [1, 32], strides = [1, 1]} : vector<16x32xf32> to vector<1x32xf32>
    %257 = arith.maximumf %255, %256 : vector<1x32xf32>
    %c4_160 = arith.constant 4 : index
    %c2_161 = arith.constant 2 : index
    %c0_162 = arith.constant 0 : index
    %258 = vector.load %arg19[%c4_160, %c2_161, %c0_162] : memref<10x10x32xf32, #tpu.memory_space<vmem>>, vector<1x1x32xf32>
    %259 = vector.shape_cast %258 : vector<1x1x32xf32> to vector<1x32xf32>
    %260 = vector.shape_cast %257 : vector<1x32xf32> to vector<1x1x32xf32>
    tpu.vector_store %arg19[%c4_160, %c2_161, %c0_162], %260 {strides = array<i32>} : memref<10x10x32xf32, #tpu.memory_space<vmem>>, vector<1x1x32xf32>,
    %261 = vector.extract_strided_slice %248 {offsets = [4, 0], sizes = [1, 32], strides = [1, 1]} : vector<16x32xf32> to vector<1x32xf32>
    %262 = vector.extract_strided_slice %248 {offsets = [5, 0], sizes = [1, 32], strides = [1, 1]} : vector<16x32xf32> to vector<1x32xf32>
    %263 = arith.maximumf %261, %262 : vector<1x32xf32>
    %c4_163 = arith.constant 4 : index
    %c3_164 = arith.constant 3 : index
    %c0_165 = arith.constant 0 : index
    %264 = vector.load %arg19[%c4_163, %c3_164, %c0_165] : memref<10x10x32xf32, #tpu.memory_space<vmem>>, vector<1x1x32xf32>
    %265 = vector.shape_cast %264 : vector<1x1x32xf32> to vector<1x32xf32>
    %266 = vector.shape_cast %263 : vector<1x32xf32> to vector<1x1x32xf32>
    tpu.vector_store %arg19[%c4_163, %c3_164, %c0_165], %266 {strides = array<i32>} : memref<10x10x32xf32, #tpu.memory_space<vmem>>, vector<1x1x32xf32>,
    %267 = vector.extract_strided_slice %248 {offsets = [6, 0], sizes = [1, 32], strides = [1, 1]} : vector<16x32xf32> to vector<1x32xf32>
    %268 = vector.extract_strided_slice %248 {offsets = [7, 0], sizes = [1, 32], strides = [1, 1]} : vector<16x32xf32> to vector<1x32xf32>
    %269 = arith.maximumf %267, %268 : vector<1x32xf32>
    %c4_166 = arith.constant 4 : index
    %c4_167 = arith.constant 4 : index
    %c0_168 = arith.constant 0 : index
    %270 = vector.load %arg19[%c4_166, %c4_167, %c0_168] : memref<10x10x32xf32, #tpu.memory_space<vmem>>, vector<1x1x32xf32>
    %271 = vector.shape_cast %270 : vector<1x1x32xf32> to vector<1x32xf32>
    %272 = vector.shape_cast %269 : vector<1x32xf32> to vector<1x1x32xf32>
    tpu.vector_store %arg19[%c4_166, %c4_167, %c0_168], %272 {strides = array<i32>} : memref<10x10x32xf32, #tpu.memory_space<vmem>>, vector<1x1x32xf32>,
    %273 = vector.extract_strided_slice %248 {offsets = [8, 0], sizes = [1, 32], strides = [1, 1]} : vector<16x32xf32> to vector<1x32xf32>
    %274 = vector.extract_strided_slice %248 {offsets = [9, 0], sizes = [1, 32], strides = [1, 1]} : vector<16x32xf32> to vector<1x32xf32>
    %275 = arith.maximumf %273, %274 : vector<1x32xf32>
    %c4_169 = arith.constant 4 : index
    %c5_170 = arith.constant 5 : index
    %c0_171 = arith.constant 0 : index
    %276 = vector.load %arg19[%c4_169, %c5_170, %c0_171] : memref<10x10x32xf32, #tpu.memory_space<vmem>>, vector<1x1x32xf32>
    %277 = vector.shape_cast %276 : vector<1x1x32xf32> to vector<1x32xf32>
    %278 = vector.shape_cast %275 : vector<1x32xf32> to vector<1x1x32xf32>
    tpu.vector_store %arg19[%c4_169, %c5_170, %c0_171], %278 {strides = array<i32>} : memref<10x10x32xf32, #tpu.memory_space<vmem>>, vector<1x1x32xf32>,
    %279 = vector.extract_strided_slice %248 {offsets = [10, 0], sizes = [1, 32], strides = [1, 1]} : vector<16x32xf32> to vector<1x32xf32>
    %280 = vector.extract_strided_slice %248 {offsets = [11, 0], sizes = [1, 32], strides = [1, 1]} : vector<16x32xf32> to vector<1x32xf32>
    %281 = arith.maximumf %279, %280 : vector<1x32xf32>
    %c4_172 = arith.constant 4 : index
    %c6_173 = arith.constant 6 : index
    %c0_174 = arith.constant 0 : index
    %282 = vector.load %arg19[%c4_172, %c6_173, %c0_174] : memref<10x10x32xf32, #tpu.memory_space<vmem>>, vector<1x1x32xf32>
    %283 = vector.shape_cast %282 : vector<1x1x32xf32> to vector<1x32xf32>
    %284 = vector.shape_cast %281 : vector<1x32xf32> to vector<1x1x32xf32>
    tpu.vector_store %arg19[%c4_172, %c6_173, %c0_174], %284 {strides = array<i32>} : memref<10x10x32xf32, #tpu.memory_space<vmem>>, vector<1x1x32xf32>,
    %285 = vector.extract_strided_slice %248 {offsets = [12, 0], sizes = [1, 32], strides = [1, 1]} : vector<16x32xf32> to vector<1x32xf32>
    %286 = vector.extract_strided_slice %248 {offsets = [13, 0], sizes = [1, 32], strides = [1, 1]} : vector<16x32xf32> to vector<1x32xf32>
    %287 = arith.maximumf %285, %286 : vector<1x32xf32>
    %c4_175 = arith.constant 4 : index
    %c7_176 = arith.constant 7 : index
    %c0_177 = arith.constant 0 : index
    %288 = vector.load %arg19[%c4_175, %c7_176, %c0_177] : memref<10x10x32xf32, #tpu.memory_space<vmem>>, vector<1x1x32xf32>
    %289 = vector.shape_cast %288 : vector<1x1x32xf32> to vector<1x32xf32>
    %290 = vector.shape_cast %287 : vector<1x32xf32> to vector<1x1x32xf32>
    tpu.vector_store %arg19[%c4_175, %c7_176, %c0_177], %290 {strides = array<i32>} : memref<10x10x32xf32, #tpu.memory_space<vmem>>, vector<1x1x32xf32>,
    %291 = vector.extract_strided_slice %248 {offsets = [14, 0], sizes = [1, 32], strides = [1, 1]} : vector<16x32xf32> to vector<1x32xf32>
    %292 = vector.extract_strided_slice %248 {offsets = [15, 0], sizes = [1, 32], strides = [1, 1]} : vector<16x32xf32> to vector<1x32xf32>
    %293 = arith.maximumf %291, %292 : vector<1x32xf32>
    %c4_178 = arith.constant 4 : index
    %c8_179 = arith.constant 8 : index
    %c0_180 = arith.constant 0 : index
    %294 = vector.load %arg19[%c4_178, %c8_179, %c0_180] : memref<10x10x32xf32, #tpu.memory_space<vmem>>, vector<1x1x32xf32>
    %295 = vector.shape_cast %294 : vector<1x1x32xf32> to vector<1x32xf32>
    %296 = vector.shape_cast %293 : vector<1x32xf32> to vector<1x1x32xf32>
    tpu.vector_store %arg19[%c4_178, %c8_179, %c0_180], %296 {strides = array<i32>} : memref<10x10x32xf32, #tpu.memory_space<vmem>>, vector<1x1x32xf32>,
    %297 = vector.extract_strided_slice %82 {offsets = [8, 0, 0], sizes = [1, 16, 32], strides = [1, 1, 1]} : vector<16x16x32xf32> to vector<1x16x32xf32>
    %298 = vector.shape_cast %297 : vector<1x16x32xf32> to vector<16x32xf32>
    %299 = vector.extract_strided_slice %82 {offsets = [9, 0, 0], sizes = [1, 16, 32], strides = [1, 1, 1]} : vector<16x16x32xf32> to vector<1x16x32xf32>
    %300 = vector.shape_cast %299 : vector<1x16x32xf32> to vector<16x32xf32>
    %301 = arith.maximumf %298, %300 : vector<16x32xf32>
    %302 = vector.extract_strided_slice %301 {offsets = [0, 0], sizes = [1, 32], strides = [1, 1]} : vector<16x32xf32> to vector<1x32xf32>
    %303 = vector.extract_strided_slice %301 {offsets = [1, 0], sizes = [1, 32], strides = [1, 1]} : vector<16x32xf32> to vector<1x32xf32>
    %304 = arith.maximumf %302, %303 : vector<1x32xf32>
    %c5_181 = arith.constant 5 : index
    %c1_182 = arith.constant 1 : index
    %c0_183 = arith.constant 0 : index
    %305 = vector.load %arg19[%c5_181, %c1_182, %c0_183] : memref<10x10x32xf32, #tpu.memory_space<vmem>>, vector<1x1x32xf32>
    %306 = vector.shape_cast %305 : vector<1x1x32xf32> to vector<1x32xf32>
    %307 = vector.shape_cast %304 : vector<1x32xf32> to vector<1x1x32xf32>
    tpu.vector_store %arg19[%c5_181, %c1_182, %c0_183], %307 {strides = array<i32>} : memref<10x10x32xf32, #tpu.memory_space<vmem>>, vector<1x1x32xf32>,
    %308 = vector.extract_strided_slice %301 {offsets = [2, 0], sizes = [1, 32], strides = [1, 1]} : vector<16x32xf32> to vector<1x32xf32>
    %309 = vector.extract_strided_slice %301 {offsets = [3, 0], sizes = [1, 32], strides = [1, 1]} : vector<16x32xf32> to vector<1x32xf32>
    %310 = arith.maximumf %308, %309 : vector<1x32xf32>
    %c5_184 = arith.constant 5 : index
    %c2_185 = arith.constant 2 : index
    %c0_186 = arith.constant 0 : index
    %311 = vector.load %arg19[%c5_184, %c2_185, %c0_186] : memref<10x10x32xf32, #tpu.memory_space<vmem>>, vector<1x1x32xf32>
    %312 = vector.shape_cast %311 : vector<1x1x32xf32> to vector<1x32xf32>
    %313 = vector.shape_cast %310 : vector<1x32xf32> to vector<1x1x32xf32>
    tpu.vector_store %arg19[%c5_184, %c2_185, %c0_186], %313 {strides = array<i32>} : memref<10x10x32xf32, #tpu.memory_space<vmem>>, vector<1x1x32xf32>,
    %314 = vector.extract_strided_slice %301 {offsets = [4, 0], sizes = [1, 32], strides = [1, 1]} : vector<16x32xf32> to vector<1x32xf32>
    %315 = vector.extract_strided_slice %301 {offsets = [5, 0], sizes = [1, 32], strides = [1, 1]} : vector<16x32xf32> to vector<1x32xf32>
    %316 = arith.maximumf %314, %315 : vector<1x32xf32>
    %c5_187 = arith.constant 5 : index
    %c3_188 = arith.constant 3 : index
    %c0_189 = arith.constant 0 : index
    %317 = vector.load %arg19[%c5_187, %c3_188, %c0_189] : memref<10x10x32xf32, #tpu.memory_space<vmem>>, vector<1x1x32xf32>
    %318 = vector.shape_cast %317 : vector<1x1x32xf32> to vector<1x32xf32>
    %319 = vector.shape_cast %316 : vector<1x32xf32> to vector<1x1x32xf32>
    tpu.vector_store %arg19[%c5_187, %c3_188, %c0_189], %319 {strides = array<i32>} : memref<10x10x32xf32, #tpu.memory_space<vmem>>, vector<1x1x32xf32>,
    %320 = vector.extract_strided_slice %301 {offsets = [6, 0], sizes = [1, 32], strides = [1, 1]} : vector<16x32xf32> to vector<1x32xf32>
    %321 = vector.extract_strided_slice %301 {offsets = [7, 0], sizes = [1, 32], strides = [1, 1]} : vector<16x32xf32> to vector<1x32xf32>
    %322 = arith.maximumf %320, %321 : vector<1x32xf32>
    %c5_190 = arith.constant 5 : index
    %c4_191 = arith.constant 4 : index
    %c0_192 = arith.constant 0 : index
    %323 = vector.load %arg19[%c5_190, %c4_191, %c0_192] : memref<10x10x32xf32, #tpu.memory_space<vmem>>, vector<1x1x32xf32>
    %324 = vector.shape_cast %323 : vector<1x1x32xf32> to vector<1x32xf32>
    %325 = vector.shape_cast %322 : vector<1x32xf32> to vector<1x1x32xf32>
    tpu.vector_store %arg19[%c5_190, %c4_191, %c0_192], %325 {strides = array<i32>} : memref<10x10x32xf32, #tpu.memory_space<vmem>>, vector<1x1x32xf32>,
    %326 = vector.extract_strided_slice %301 {offsets = [8, 0], sizes = [1, 32], strides = [1, 1]} : vector<16x32xf32> to vector<1x32xf32>
    %327 = vector.extract_strided_slice %301 {offsets = [9, 0], sizes = [1, 32], strides = [1, 1]} : vector<16x32xf32> to vector<1x32xf32>
    %328 = arith.maximumf %326, %327 : vector<1x32xf32>
    %c5_193 = arith.constant 5 : index
    %c5_194 = arith.constant 5 : index
    %c0_195 = arith.constant 0 : index
    %329 = vector.load %arg19[%c5_193, %c5_194, %c0_195] : memref<10x10x32xf32, #tpu.memory_space<vmem>>, vector<1x1x32xf32>
    %330 = vector.shape_cast %329 : vector<1x1x32xf32> to vector<1x32xf32>
    %331 = vector.shape_cast %328 : vector<1x32xf32> to vector<1x1x32xf32>
    tpu.vector_store %arg19[%c5_193, %c5_194, %c0_195], %331 {strides = array<i32>} : memref<10x10x32xf32, #tpu.memory_space<vmem>>, vector<1x1x32xf32>,
    %332 = vector.extract_strided_slice %301 {offsets = [10, 0], sizes = [1, 32], strides = [1, 1]} : vector<16x32xf32> to vector<1x32xf32>
    %333 = vector.extract_strided_slice %301 {offsets = [11, 0], sizes = [1, 32], strides = [1, 1]} : vector<16x32xf32> to vector<1x32xf32>
    %334 = arith.maximumf %332, %333 : vector<1x32xf32>
    %c5_196 = arith.constant 5 : index
    %c6_197 = arith.constant 6 : index
    %c0_198 = arith.constant 0 : index
    %335 = vector.load %arg19[%c5_196, %c6_197, %c0_198] : memref<10x10x32xf32, #tpu.memory_space<vmem>>, vector<1x1x32xf32>
    %336 = vector.shape_cast %335 : vector<1x1x32xf32> to vector<1x32xf32>
    %337 = vector.shape_cast %334 : vector<1x32xf32> to vector<1x1x32xf32>
    tpu.vector_store %arg19[%c5_196, %c6_197, %c0_198], %337 {strides = array<i32>} : memref<10x10x32xf32, #tpu.memory_space<vmem>>, vector<1x1x32xf32>,
    %338 = vector.extract_strided_slice %301 {offsets = [12, 0], sizes = [1, 32], strides = [1, 1]} : vector<16x32xf32> to vector<1x32xf32>
    %339 = vector.extract_strided_slice %301 {offsets = [13, 0], sizes = [1, 32], strides = [1, 1]} : vector<16x32xf32> to vector<1x32xf32>
    %340 = arith.maximumf %338, %339 : vector<1x32xf32>
    %c5_199 = arith.constant 5 : index
    %c7_200 = arith.constant 7 : index
    %c0_201 = arith.constant 0 : index
    %341 = vector.load %arg19[%c5_199, %c7_200, %c0_201] : memref<10x10x32xf32, #tpu.memory_space<vmem>>, vector<1x1x32xf32>
    %342 = vector.shape_cast %341 : vector<1x1x32xf32> to vector<1x32xf32>
    %343 = vector.shape_cast %340 : vector<1x32xf32> to vector<1x1x32xf32>
    tpu.vector_store %arg19[%c5_199, %c7_200, %c0_201], %343 {strides = array<i32>} : memref<10x10x32xf32, #tpu.memory_space<vmem>>, vector<1x1x32xf32>,
    %344 = vector.extract_strided_slice %301 {offsets = [14, 0], sizes = [1, 32], strides = [1, 1]} : vector<16x32xf32> to vector<1x32xf32>
    %345 = vector.extract_strided_slice %301 {offsets = [15, 0], sizes = [1, 32], strides = [1, 1]} : vector<16x32xf32> to vector<1x32xf32>
    %346 = arith.maximumf %344, %345 : vector<1x32xf32>
    %c5_202 = arith.constant 5 : index
    %c8_203 = arith.constant 8 : index
    %c0_204 = arith.constant 0 : index
    %347 = vector.load %arg19[%c5_202, %c8_203, %c0_204] : memref<10x10x32xf32, #tpu.memory_space<vmem>>, vector<1x1x32xf32>
    %348 = vector.shape_cast %347 : vector<1x1x32xf32> to vector<1x32xf32>
    %349 = vector.shape_cast %346 : vector<1x32xf32> to vector<1x1x32xf32>
    tpu.vector_store %arg19[%c5_202, %c8_203, %c0_204], %349 {strides = array<i32>} : memref<10x10x32xf32, #tpu.memory_space<vmem>>, vector<1x1x32xf32>,
    %350 = vector.extract_strided_slice %82 {offsets = [10, 0, 0], sizes = [1, 16, 32], strides = [1, 1, 1]} : vector<16x16x32xf32> to vector<1x16x32xf32>
    %351 = vector.shape_cast %350 : vector<1x16x32xf32> to vector<16x32xf32>
    %352 = vector.extract_strided_slice %82 {offsets = [11, 0, 0], sizes = [1, 16, 32], strides = [1, 1, 1]} : vector<16x16x32xf32> to vector<1x16x32xf32>
    %353 = vector.shape_cast %352 : vector<1x16x32xf32> to vector<16x32xf32>
    %354 = arith.maximumf %351, %353 : vector<16x32xf32>
    %355 = vector.extract_strided_slice %354 {offsets = [0, 0], sizes = [1, 32], strides = [1, 1]} : vector<16x32xf32> to vector<1x32xf32>
    %356 = vector.extract_strided_slice %354 {offsets = [1, 0], sizes = [1, 32], strides = [1, 1]} : vector<16x32xf32> to vector<1x32xf32>
    %357 = arith.maximumf %355, %356 : vector<1x32xf32>
    %c6_205 = arith.constant 6 : index
    %c1_206 = arith.constant 1 : index
    %c0_207 = arith.constant 0 : index
    %358 = vector.load %arg19[%c6_205, %c1_206, %c0_207] : memref<10x10x32xf32, #tpu.memory_space<vmem>>, vector<1x1x32xf32>
    %359 = vector.shape_cast %358 : vector<1x1x32xf32> to vector<1x32xf32>
    %360 = vector.shape_cast %357 : vector<1x32xf32> to vector<1x1x32xf32>
    tpu.vector_store %arg19[%c6_205, %c1_206, %c0_207], %360 {strides = array<i32>} : memref<10x10x32xf32, #tpu.memory_space<vmem>>, vector<1x1x32xf32>,
    %361 = vector.extract_strided_slice %354 {offsets = [2, 0], sizes = [1, 32], strides = [1, 1]} : vector<16x32xf32> to vector<1x32xf32>
    %362 = vector.extract_strided_slice %354 {offsets = [3, 0], sizes = [1, 32], strides = [1, 1]} : vector<16x32xf32> to vector<1x32xf32>
    %363 = arith.maximumf %361, %362 : vector<1x32xf32>
    %c6_208 = arith.constant 6 : index
    %c2_209 = arith.constant 2 : index
    %c0_210 = arith.constant 0 : index
    %364 = vector.load %arg19[%c6_208, %c2_209, %c0_210] : memref<10x10x32xf32, #tpu.memory_space<vmem>>, vector<1x1x32xf32>
    %365 = vector.shape_cast %364 : vector<1x1x32xf32> to vector<1x32xf32>
    %366 = vector.shape_cast %363 : vector<1x32xf32> to vector<1x1x32xf32>
    tpu.vector_store %arg19[%c6_208, %c2_209, %c0_210], %366 {strides = array<i32>} : memref<10x10x32xf32, #tpu.memory_space<vmem>>, vector<1x1x32xf32>,
    %367 = vector.extract_strided_slice %354 {offsets = [4, 0], sizes = [1, 32], strides = [1, 1]} : vector<16x32xf32> to vector<1x32xf32>
    %368 = vector.extract_strided_slice %354 {offsets = [5, 0], sizes = [1, 32], strides = [1, 1]} : vector<16x32xf32> to vector<1x32xf32>
    %369 = arith.maximumf %367, %368 : vector<1x32xf32>
    %c6_211 = arith.constant 6 : index
    %c3_212 = arith.constant 3 : index
    %c0_213 = arith.constant 0 : index
    %370 = vector.load %arg19[%c6_211, %c3_212, %c0_213] : memref<10x10x32xf32, #tpu.memory_space<vmem>>, vector<1x1x32xf32>
    %371 = vector.shape_cast %370 : vector<1x1x32xf32> to vector<1x32xf32>
    %372 = vector.shape_cast %369 : vector<1x32xf32> to vector<1x1x32xf32>
    tpu.vector_store %arg19[%c6_211, %c3_212, %c0_213], %372 {strides = array<i32>} : memref<10x10x32xf32, #tpu.memory_space<vmem>>, vector<1x1x32xf32>,
    %373 = vector.extract_strided_slice %354 {offsets = [6, 0], sizes = [1, 32], strides = [1, 1]} : vector<16x32xf32> to vector<1x32xf32>
    %374 = vector.extract_strided_slice %354 {offsets = [7, 0], sizes = [1, 32], strides = [1, 1]} : vector<16x32xf32> to vector<1x32xf32>
    %375 = arith.maximumf %373, %374 : vector<1x32xf32>
    %c6_214 = arith.constant 6 : index
    %c4_215 = arith.constant 4 : index
    %c0_216 = arith.constant 0 : index
    %376 = vector.load %arg19[%c6_214, %c4_215, %c0_216] : memref<10x10x32xf32, #tpu.memory_space<vmem>>, vector<1x1x32xf32>
    %377 = vector.shape_cast %376 : vector<1x1x32xf32> to vector<1x32xf32>
    %378 = vector.shape_cast %375 : vector<1x32xf32> to vector<1x1x32xf32>
    tpu.vector_store %arg19[%c6_214, %c4_215, %c0_216], %378 {strides = array<i32>} : memref<10x10x32xf32, #tpu.memory_space<vmem>>, vector<1x1x32xf32>,
    %379 = vector.extract_strided_slice %354 {offsets = [8, 0], sizes = [1, 32], strides = [1, 1]} : vector<16x32xf32> to vector<1x32xf32>
    %380 = vector.extract_strided_slice %354 {offsets = [9, 0], sizes = [1, 32], strides = [1, 1]} : vector<16x32xf32> to vector<1x32xf32>
    %381 = arith.maximumf %379, %380 : vector<1x32xf32>
    %c6_217 = arith.constant 6 : index
    %c5_218 = arith.constant 5 : index
    %c0_219 = arith.constant 0 : index
    %382 = vector.load %arg19[%c6_217, %c5_218, %c0_219] : memref<10x10x32xf32, #tpu.memory_space<vmem>>, vector<1x1x32xf32>
    %383 = vector.shape_cast %382 : vector<1x1x32xf32> to vector<1x32xf32>
    %384 = vector.shape_cast %381 : vector<1x32xf32> to vector<1x1x32xf32>
    tpu.vector_store %arg19[%c6_217, %c5_218, %c0_219], %384 {strides = array<i32>} : memref<10x10x32xf32, #tpu.memory_space<vmem>>, vector<1x1x32xf32>,
    %385 = vector.extract_strided_slice %354 {offsets = [10, 0], sizes = [1, 32], strides = [1, 1]} : vector<16x32xf32> to vector<1x32xf32>
    %386 = vector.extract_strided_slice %354 {offsets = [11, 0], sizes = [1, 32], strides = [1, 1]} : vector<16x32xf32> to vector<1x32xf32>
    %387 = arith.maximumf %385, %386 : vector<1x32xf32>
    %c6_220 = arith.constant 6 : index
    %c6_221 = arith.constant 6 : index
    %c0_222 = arith.constant 0 : index
    %388 = vector.load %arg19[%c6_220, %c6_221, %c0_222] : memref<10x10x32xf32, #tpu.memory_space<vmem>>, vector<1x1x32xf32>
    %389 = vector.shape_cast %388 : vector<1x1x32xf32> to vector<1x32xf32>
    %390 = vector.shape_cast %387 : vector<1x32xf32> to vector<1x1x32xf32>
    tpu.vector_store %arg19[%c6_220, %c6_221, %c0_222], %390 {strides = array<i32>} : memref<10x10x32xf32, #tpu.memory_space<vmem>>, vector<1x1x32xf32>,
    %391 = vector.extract_strided_slice %354 {offsets = [12, 0], sizes = [1, 32], strides = [1, 1]} : vector<16x32xf32> to vector<1x32xf32>
    %392 = vector.extract_strided_slice %354 {offsets = [13, 0], sizes = [1, 32], strides = [1, 1]} : vector<16x32xf32> to vector<1x32xf32>
    %393 = arith.maximumf %391, %392 : vector<1x32xf32>
    %c6_223 = arith.constant 6 : index
    %c7_224 = arith.constant 7 : index
    %c0_225 = arith.constant 0 : index
    %394 = vector.load %arg19[%c6_223, %c7_224, %c0_225] : memref<10x10x32xf32, #tpu.memory_space<vmem>>, vector<1x1x32xf32>
    %395 = vector.shape_cast %394 : vector<1x1x32xf32> to vector<1x32xf32>
    %396 = vector.shape_cast %393 : vector<1x32xf32> to vector<1x1x32xf32>
    tpu.vector_store %arg19[%c6_223, %c7_224, %c0_225], %396 {strides = array<i32>} : memref<10x10x32xf32, #tpu.memory_space<vmem>>, vector<1x1x32xf32>,
    %397 = vector.extract_strided_slice %354 {offsets = [14, 0], sizes = [1, 32], strides = [1, 1]} : vector<16x32xf32> to vector<1x32xf32>
    %398 = vector.extract_strided_slice %354 {offsets = [15, 0], sizes = [1, 32], strides = [1, 1]} : vector<16x32xf32> to vector<1x32xf32>
    %399 = arith.maximumf %397, %398 : vector<1x32xf32>
    %c6_226 = arith.constant 6 : index
    %c8_227 = arith.constant 8 : index
    %c0_228 = arith.constant 0 : index
    %400 = vector.load %arg19[%c6_226, %c8_227, %c0_228] : memref<10x10x32xf32, #tpu.memory_space<vmem>>, vector<1x1x32xf32>
    %401 = vector.shape_cast %400 : vector<1x1x32xf32> to vector<1x32xf32>
    %402 = vector.shape_cast %399 : vector<1x32xf32> to vector<1x1x32xf32>
    tpu.vector_store %arg19[%c6_226, %c8_227, %c0_228], %402 {strides = array<i32>} : memref<10x10x32xf32, #tpu.memory_space<vmem>>, vector<1x1x32xf32>,
    %403 = vector.extract_strided_slice %82 {offsets = [12, 0, 0], sizes = [1, 16, 32], strides = [1, 1, 1]} : vector<16x16x32xf32> to vector<1x16x32xf32>
    %404 = vector.shape_cast %403 : vector<1x16x32xf32> to vector<16x32xf32>
    %405 = vector.extract_strided_slice %82 {offsets = [13, 0, 0], sizes = [1, 16, 32], strides = [1, 1, 1]} : vector<16x16x32xf32> to vector<1x16x32xf32>
    %406 = vector.shape_cast %405 : vector<1x16x32xf32> to vector<16x32xf32>
    %407 = arith.maximumf %404, %406 : vector<16x32xf32>
    %408 = vector.extract_strided_slice %407 {offsets = [0, 0], sizes = [1, 32], strides = [1, 1]} : vector<16x32xf32> to vector<1x32xf32>
    %409 = vector.extract_strided_slice %407 {offsets = [1, 0], sizes = [1, 32], strides = [1, 1]} : vector<16x32xf32> to vector<1x32xf32>
    %410 = arith.maximumf %408, %409 : vector<1x32xf32>
    %c7_229 = arith.constant 7 : index
    %c1_230 = arith.constant 1 : index
    %c0_231 = arith.constant 0 : index
    %411 = vector.load %arg19[%c7_229, %c1_230, %c0_231] : memref<10x10x32xf32, #tpu.memory_space<vmem>>, vector<1x1x32xf32>
    %412 = vector.shape_cast %411 : vector<1x1x32xf32> to vector<1x32xf32>
    %413 = vector.shape_cast %410 : vector<1x32xf32> to vector<1x1x32xf32>
    tpu.vector_store %arg19[%c7_229, %c1_230, %c0_231], %413 {strides = array<i32>} : memref<10x10x32xf32, #tpu.memory_space<vmem>>, vector<1x1x32xf32>,
    %414 = vector.extract_strided_slice %407 {offsets = [2, 0], sizes = [1, 32], strides = [1, 1]} : vector<16x32xf32> to vector<1x32xf32>
    %415 = vector.extract_strided_slice %407 {offsets = [3, 0], sizes = [1, 32], strides = [1, 1]} : vector<16x32xf32> to vector<1x32xf32>
    %416 = arith.maximumf %414, %415 : vector<1x32xf32>
    %c7_232 = arith.constant 7 : index
    %c2_233 = arith.constant 2 : index
    %c0_234 = arith.constant 0 : index
    %417 = vector.load %arg19[%c7_232, %c2_233, %c0_234] : memref<10x10x32xf32, #tpu.memory_space<vmem>>, vector<1x1x32xf32>
    %418 = vector.shape_cast %417 : vector<1x1x32xf32> to vector<1x32xf32>
    %419 = vector.shape_cast %416 : vector<1x32xf32> to vector<1x1x32xf32>
    tpu.vector_store %arg19[%c7_232, %c2_233, %c0_234], %419 {strides = array<i32>} : memref<10x10x32xf32, #tpu.memory_space<vmem>>, vector<1x1x32xf32>,
    %420 = vector.extract_strided_slice %407 {offsets = [4, 0], sizes = [1, 32], strides = [1, 1]} : vector<16x32xf32> to vector<1x32xf32>
    %421 = vector.extract_strided_slice %407 {offsets = [5, 0], sizes = [1, 32], strides = [1, 1]} : vector<16x32xf32> to vector<1x32xf32>
    %422 = arith.maximumf %420, %421 : vector<1x32xf32>
    %c7_235 = arith.constant 7 : index
    %c3_236 = arith.constant 3 : index
    %c0_237 = arith.constant 0 : index
    %423 = vector.load %arg19[%c7_235, %c3_236, %c0_237] : memref<10x10x32xf32, #tpu.memory_space<vmem>>, vector<1x1x32xf32>
    %424 = vector.shape_cast %423 : vector<1x1x32xf32> to vector<1x32xf32>
    %425 = vector.shape_cast %422 : vector<1x32xf32> to vector<1x1x32xf32>
    tpu.vector_store %arg19[%c7_235, %c3_236, %c0_237], %425 {strides = array<i32>} : memref<10x10x32xf32, #tpu.memory_space<vmem>>, vector<1x1x32xf32>,
    %426 = vector.extract_strided_slice %407 {offsets = [6, 0], sizes = [1, 32], strides = [1, 1]} : vector<16x32xf32> to vector<1x32xf32>
    %427 = vector.extract_strided_slice %407 {offsets = [7, 0], sizes = [1, 32], strides = [1, 1]} : vector<16x32xf32> to vector<1x32xf32>
    %428 = arith.maximumf %426, %427 : vector<1x32xf32>
    %c7_238 = arith.constant 7 : index
    %c4_239 = arith.constant 4 : index
    %c0_240 = arith.constant 0 : index
    %429 = vector.load %arg19[%c7_238, %c4_239, %c0_240] : memref<10x10x32xf32, #tpu.memory_space<vmem>>, vector<1x1x32xf32>
    %430 = vector.shape_cast %429 : vector<1x1x32xf32> to vector<1x32xf32>
    %431 = vector.shape_cast %428 : vector<1x32xf32> to vector<1x1x32xf32>
    tpu.vector_store %arg19[%c7_238, %c4_239, %c0_240], %431 {strides = array<i32>} : memref<10x10x32xf32, #tpu.memory_space<vmem>>, vector<1x1x32xf32>,
    %432 = vector.extract_strided_slice %407 {offsets = [8, 0], sizes = [1, 32], strides = [1, 1]} : vector<16x32xf32> to vector<1x32xf32>
    %433 = vector.extract_strided_slice %407 {offsets = [9, 0], sizes = [1, 32], strides = [1, 1]} : vector<16x32xf32> to vector<1x32xf32>
    %434 = arith.maximumf %432, %433 : vector<1x32xf32>
    %c7_241 = arith.constant 7 : index
    %c5_242 = arith.constant 5 : index
    %c0_243 = arith.constant 0 : index
    %435 = vector.load %arg19[%c7_241, %c5_242, %c0_243] : memref<10x10x32xf32, #tpu.memory_space<vmem>>, vector<1x1x32xf32>
    %436 = vector.shape_cast %435 : vector<1x1x32xf32> to vector<1x32xf32>
    %437 = vector.shape_cast %434 : vector<1x32xf32> to vector<1x1x32xf32>
    tpu.vector_store %arg19[%c7_241, %c5_242, %c0_243], %437 {strides = array<i32>} : memref<10x10x32xf32, #tpu.memory_space<vmem>>, vector<1x1x32xf32>,
    %438 = vector.extract_strided_slice %407 {offsets = [10, 0], sizes = [1, 32], strides = [1, 1]} : vector<16x32xf32> to vector<1x32xf32>
    %439 = vector.extract_strided_slice %407 {offsets = [11, 0], sizes = [1, 32], strides = [1, 1]} : vector<16x32xf32> to vector<1x32xf32>
    %440 = arith.maximumf %438, %439 : vector<1x32xf32>
    %c7_244 = arith.constant 7 : index
    %c6_245 = arith.constant 6 : index
    %c0_246 = arith.constant 0 : index
    %441 = vector.load %arg19[%c7_244, %c6_245, %c0_246] : memref<10x10x32xf32, #tpu.memory_space<vmem>>, vector<1x1x32xf32>
    %442 = vector.shape_cast %441 : vector<1x1x32xf32> to vector<1x32xf32>
    %443 = vector.shape_cast %440 : vector<1x32xf32> to vector<1x1x32xf32>
    tpu.vector_store %arg19[%c7_244, %c6_245, %c0_246], %443 {strides = array<i32>} : memref<10x10x32xf32, #tpu.memory_space<vmem>>, vector<1x1x32xf32>,
    %444 = vector.extract_strided_slice %407 {offsets = [12, 0], sizes = [1, 32], strides = [1, 1]} : vector<16x32xf32> to vector<1x32xf32>
    %445 = vector.extract_strided_slice %407 {offsets = [13, 0], sizes = [1, 32], strides = [1, 1]} : vector<16x32xf32> to vector<1x32xf32>
    %446 = arith.maximumf %444, %445 : vector<1x32xf32>
    %c7_247 = arith.constant 7 : index
    %c7_248 = arith.constant 7 : index
    %c0_249 = arith.constant 0 : index
    %447 = vector.load %arg19[%c7_247, %c7_248, %c0_249] : memref<10x10x32xf32, #tpu.memory_space<vmem>>, vector<1x1x32xf32>
    %448 = vector.shape_cast %447 : vector<1x1x32xf32> to vector<1x32xf32>
    %449 = vector.shape_cast %446 : vector<1x32xf32> to vector<1x1x32xf32>
    tpu.vector_store %arg19[%c7_247, %c7_248, %c0_249], %449 {strides = array<i32>} : memref<10x10x32xf32, #tpu.memory_space<vmem>>, vector<1x1x32xf32>,
    %450 = vector.extract_strided_slice %407 {offsets = [14, 0], sizes = [1, 32], strides = [1, 1]} : vector<16x32xf32> to vector<1x32xf32>
    %451 = vector.extract_strided_slice %407 {offsets = [15, 0], sizes = [1, 32], strides = [1, 1]} : vector<16x32xf32> to vector<1x32xf32>
    %452 = arith.maximumf %450, %451 : vector<1x32xf32>
    %c7_250 = arith.constant 7 : index
    %c8_251 = arith.constant 8 : index
    %c0_252 = arith.constant 0 : index
    %453 = vector.load %arg19[%c7_250, %c8_251, %c0_252] : memref<10x10x32xf32, #tpu.memory_space<vmem>>, vector<1x1x32xf32>
    %454 = vector.shape_cast %453 : vector<1x1x32xf32> to vector<1x32xf32>
    %455 = vector.shape_cast %452 : vector<1x32xf32> to vector<1x1x32xf32>
    tpu.vector_store %arg19[%c7_250, %c8_251, %c0_252], %455 {strides = array<i32>} : memref<10x10x32xf32, #tpu.memory_space<vmem>>, vector<1x1x32xf32>,
    %456 = vector.extract_strided_slice %82 {offsets = [14, 0, 0], sizes = [1, 16, 32], strides = [1, 1, 1]} : vector<16x16x32xf32> to vector<1x16x32xf32>
    %457 = vector.shape_cast %456 : vector<1x16x32xf32> to vector<16x32xf32>
    %458 = vector.extract_strided_slice %82 {offsets = [15, 0, 0], sizes = [1, 16, 32], strides = [1, 1, 1]} : vector<16x16x32xf32> to vector<1x16x32xf32>
    %459 = vector.shape_cast %458 : vector<1x16x32xf32> to vector<16x32xf32>
    %460 = arith.maximumf %457, %459 : vector<16x32xf32>
    %461 = vector.extract_strided_slice %460 {offsets = [0, 0], sizes = [1, 32], strides = [1, 1]} : vector<16x32xf32> to vector<1x32xf32>
    %462 = vector.extract_strided_slice %460 {offsets = [1, 0], sizes = [1, 32], strides = [1, 1]} : vector<16x32xf32> to vector<1x32xf32>
    %463 = arith.maximumf %461, %462 : vector<1x32xf32>
    %c8_253 = arith.constant 8 : index
    %c1_254 = arith.constant 1 : index
    %c0_255 = arith.constant 0 : index
    %464 = vector.load %arg19[%c8_253, %c1_254, %c0_255] : memref<10x10x32xf32, #tpu.memory_space<vmem>>, vector<1x1x32xf32>
    %465 = vector.shape_cast %464 : vector<1x1x32xf32> to vector<1x32xf32>
    %466 = vector.shape_cast %463 : vector<1x32xf32> to vector<1x1x32xf32>
    tpu.vector_store %arg19[%c8_253, %c1_254, %c0_255], %466 {strides = array<i32>} : memref<10x10x32xf32, #tpu.memory_space<vmem>>, vector<1x1x32xf32>,
    %467 = vector.extract_strided_slice %460 {offsets = [2, 0], sizes = [1, 32], strides = [1, 1]} : vector<16x32xf32> to vector<1x32xf32>
    %468 = vector.extract_strided_slice %460 {offsets = [3, 0], sizes = [1, 32], strides = [1, 1]} : vector<16x32xf32> to vector<1x32xf32>
    %469 = arith.maximumf %467, %468 : vector<1x32xf32>
    %c8_256 = arith.constant 8 : index
    %c2_257 = arith.constant 2 : index
    %c0_258 = arith.constant 0 : index
    %470 = vector.load %arg19[%c8_256, %c2_257, %c0_258] : memref<10x10x32xf32, #tpu.memory_space<vmem>>, vector<1x1x32xf32>
    %471 = vector.shape_cast %470 : vector<1x1x32xf32> to vector<1x32xf32>
    %472 = vector.shape_cast %469 : vector<1x32xf32> to vector<1x1x32xf32>
    tpu.vector_store %arg19[%c8_256, %c2_257, %c0_258], %472 {strides = array<i32>} : memref<10x10x32xf32, #tpu.memory_space<vmem>>, vector<1x1x32xf32>,
    %473 = vector.extract_strided_slice %460 {offsets = [4, 0], sizes = [1, 32], strides = [1, 1]} : vector<16x32xf32> to vector<1x32xf32>
    %474 = vector.extract_strided_slice %460 {offsets = [5, 0], sizes = [1, 32], strides = [1, 1]} : vector<16x32xf32> to vector<1x32xf32>
    %475 = arith.maximumf %473, %474 : vector<1x32xf32>
    %c8_259 = arith.constant 8 : index
    %c3_260 = arith.constant 3 : index
    %c0_261 = arith.constant 0 : index
    %476 = vector.load %arg19[%c8_259, %c3_260, %c0_261] : memref<10x10x32xf32, #tpu.memory_space<vmem>>, vector<1x1x32xf32>
    %477 = vector.shape_cast %476 : vector<1x1x32xf32> to vector<1x32xf32>
    %478 = vector.shape_cast %475 : vector<1x32xf32> to vector<1x1x32xf32>
    tpu.vector_store %arg19[%c8_259, %c3_260, %c0_261], %478 {strides = array<i32>} : memref<10x10x32xf32, #tpu.memory_space<vmem>>, vector<1x1x32xf32>,
    %479 = vector.extract_strided_slice %460 {offsets = [6, 0], sizes = [1, 32], strides = [1, 1]} : vector<16x32xf32> to vector<1x32xf32>
    %480 = vector.extract_strided_slice %460 {offsets = [7, 0], sizes = [1, 32], strides = [1, 1]} : vector<16x32xf32> to vector<1x32xf32>
    %481 = arith.maximumf %479, %480 : vector<1x32xf32>
    %c8_262 = arith.constant 8 : index
    %c4_263 = arith.constant 4 : index
    %c0_264 = arith.constant 0 : index
    %482 = vector.load %arg19[%c8_262, %c4_263, %c0_264] : memref<10x10x32xf32, #tpu.memory_space<vmem>>, vector<1x1x32xf32>
    %483 = vector.shape_cast %482 : vector<1x1x32xf32> to vector<1x32xf32>
    %484 = vector.shape_cast %481 : vector<1x32xf32> to vector<1x1x32xf32>
    tpu.vector_store %arg19[%c8_262, %c4_263, %c0_264], %484 {strides = array<i32>} : memref<10x10x32xf32, #tpu.memory_space<vmem>>, vector<1x1x32xf32>,
    %485 = vector.extract_strided_slice %460 {offsets = [8, 0], sizes = [1, 32], strides = [1, 1]} : vector<16x32xf32> to vector<1x32xf32>
    %486 = vector.extract_strided_slice %460 {offsets = [9, 0], sizes = [1, 32], strides = [1, 1]} : vector<16x32xf32> to vector<1x32xf32>
    %487 = arith.maximumf %485, %486 : vector<1x32xf32>
    %c8_265 = arith.constant 8 : index
    %c5_266 = arith.constant 5 : index
    %c0_267 = arith.constant 0 : index
    %488 = vector.load %arg19[%c8_265, %c5_266, %c0_267] : memref<10x10x32xf32, #tpu.memory_space<vmem>>, vector<1x1x32xf32>
    %489 = vector.shape_cast %488 : vector<1x1x32xf32> to vector<1x32xf32>
    %490 = vector.shape_cast %487 : vector<1x32xf32> to vector<1x1x32xf32>
    tpu.vector_store %arg19[%c8_265, %c5_266, %c0_267], %490 {strides = array<i32>} : memref<10x10x32xf32, #tpu.memory_space<vmem>>, vector<1x1x32xf32>,
    %491 = vector.extract_strided_slice %460 {offsets = [10, 0], sizes = [1, 32], strides = [1, 1]} : vector<16x32xf32> to vector<1x32xf32>
    %492 = vector.extract_strided_slice %460 {offsets = [11, 0], sizes = [1, 32], strides = [1, 1]} : vector<16x32xf32> to vector<1x32xf32>
    %493 = arith.maximumf %491, %492 : vector<1x32xf32>
    %c8_268 = arith.constant 8 : index
    %c6_269 = arith.constant 6 : index
    %c0_270 = arith.constant 0 : index
    %494 = vector.load %arg19[%c8_268, %c6_269, %c0_270] : memref<10x10x32xf32, #tpu.memory_space<vmem>>, vector<1x1x32xf32>
    %495 = vector.shape_cast %494 : vector<1x1x32xf32> to vector<1x32xf32>
    %496 = vector.shape_cast %493 : vector<1x32xf32> to vector<1x1x32xf32>
    tpu.vector_store %arg19[%c8_268, %c6_269, %c0_270], %496 {strides = array<i32>} : memref<10x10x32xf32, #tpu.memory_space<vmem>>, vector<1x1x32xf32>,
    %497 = vector.extract_strided_slice %460 {offsets = [12, 0], sizes = [1, 32], strides = [1, 1]} : vector<16x32xf32> to vector<1x32xf32>
    %498 = vector.extract_strided_slice %460 {offsets = [13, 0], sizes = [1, 32], strides = [1, 1]} : vector<16x32xf32> to vector<1x32xf32>
    %499 = arith.maximumf %497, %498 : vector<1x32xf32>
    %c8_271 = arith.constant 8 : index
    %c7_272 = arith.constant 7 : index
    %c0_273 = arith.constant 0 : index
    %500 = vector.load %arg19[%c8_271, %c7_272, %c0_273] : memref<10x10x32xf32, #tpu.memory_space<vmem>>, vector<1x1x32xf32>
    %501 = vector.shape_cast %500 : vector<1x1x32xf32> to vector<1x32xf32>
    %502 = vector.shape_cast %499 : vector<1x32xf32> to vector<1x1x32xf32>
    tpu.vector_store %arg19[%c8_271, %c7_272, %c0_273], %502 {strides = array<i32>} : memref<10x10x32xf32, #tpu.memory_space<vmem>>, vector<1x1x32xf32>,
    %503 = vector.extract_strided_slice %460 {offsets = [14, 0], sizes = [1, 32], strides = [1, 1]} : vector<16x32xf32> to vector<1x32xf32>
    %504 = vector.extract_strided_slice %460 {offsets = [15, 0], sizes = [1, 32], strides = [1, 1]} : vector<16x32xf32> to vector<1x32xf32>
    %505 = arith.maximumf %503, %504 : vector<1x32xf32>
    %c8_274 = arith.constant 8 : index
    %c8_275 = arith.constant 8 : index
    %c0_276 = arith.constant 0 : index
    %506 = vector.load %arg19[%c8_274, %c8_275, %c0_276] : memref<10x10x32xf32, #tpu.memory_space<vmem>>, vector<1x1x32xf32>
    %507 = vector.shape_cast %506 : vector<1x1x32xf32> to vector<1x32xf32>
    %508 = vector.shape_cast %505 : vector<1x32xf32> to vector<1x1x32xf32>
    tpu.vector_store %arg19[%c8_274, %c8_275, %c0_276], %508 {strides = array<i32>} : memref<10x10x32xf32, #tpu.memory_space<vmem>>, vector<1x1x32xf32>,
    %cst_277 = arith.constant 0.000000e+00 : f32
    %509 = vector.broadcast %cst_277 : f32 to vector<64x64xf32>
    %c0_278 = arith.constant 0 : index
    %c0_279 = arith.constant 0 : index
    %510 = vector.load %arg7[%c0_278, %c0_279] : memref<1x64xf32, #tpu.memory_space<vmem>>, vector<1x64xf32>
    %511 = vector.broadcast %510 : vector<1x64xf32> to vector<64x64xf32>
    %512 = arith.addf %509, %511 : vector<64x64xf32>
    %c0_280 = arith.constant 0 : index
    %c0_281 = arith.constant 0 : index
    %c0_282 = arith.constant 0 : index
    %513 = vector.load %arg19[%c0_280, %c0_281, %c0_282] : memref<10x10x32xf32, #tpu.memory_space<vmem>>, vector<8x8x32xf32>
    %514 = vector.shape_cast %513 : vector<8x8x32xf32> to vector<64x32xf32>
    %c0_283 = arith.constant 0 : index
    %c0_284 = arith.constant 0 : index
    %c0_285 = arith.constant 0 : index
    %c0_286 = arith.constant 0 : index
    %515 = vector.load %arg6[%c0_283, %c0_284, %c0_285, %c0_286] : memref<3x3x32x64xbf16, #tpu.memory_space<vmem>>, vector<1x1x32x64xbf16>
    %516 = vector.shape_cast %515 : vector<1x1x32x64xbf16> to vector<32x64xbf16>
    %517 = arith.extf %516 : vector<32x64xbf16> to vector<32x64xf32>
    %cst_287 = arith.constant dense<0.000000e+00> : vector<64x64xf32>
    %518 = tpu.matmul %514, %517, %cst_287 {dimension_numbers = #tpu.dot_dimension_numbers<[1], [0], [0], [1], [0, 0, 1, 1], [], []>} : vector<64x32xf32>, vector<32x64xf32>, vector<64x64xf32> -> vector<64x64xf32>
    %519 = arith.addf %512, %518 : vector<64x64xf32>
    %c0_288 = arith.constant 0 : index
    %c1_289 = arith.constant 1 : index
    %c0_290 = arith.constant 0 : index
    %520 = vector.load %arg19[%c0_288, %c1_289, %c0_290] : memref<10x10x32xf32, #tpu.memory_space<vmem>>, vector<8x8x32xf32>
    %521 = vector.shape_cast %520 : vector<8x8x32xf32> to vector<64x32xf32>
    %c0_291 = arith.constant 0 : index
    %c1_292 = arith.constant 1 : index
    %c0_293 = arith.constant 0 : index
    %c0_294 = arith.constant 0 : index
    %522 = vector.load %arg6[%c0_291, %c1_292, %c0_293, %c0_294] : memref<3x3x32x64xbf16, #tpu.memory_space<vmem>>, vector<1x1x32x64xbf16>
    %523 = vector.shape_cast %522 : vector<1x1x32x64xbf16> to vector<32x64xbf16>
    %524 = arith.extf %523 : vector<32x64xbf16> to vector<32x64xf32>
    %cst_295 = arith.constant dense<0.000000e+00> : vector<64x64xf32>
    %525 = tpu.matmul %521, %524, %cst_295 {dimension_numbers = #tpu.dot_dimension_numbers<[1], [0], [0], [1], [0, 0, 1, 1], [], []>} : vector<64x32xf32>, vector<32x64xf32>, vector<64x64xf32> -> vector<64x64xf32>
    %526 = arith.addf %519, %525 : vector<64x64xf32>
    %c0_296 = arith.constant 0 : index
    %c2_297 = arith.constant 2 : index
    %c0_298 = arith.constant 0 : index
    %527 = vector.load %arg19[%c0_296, %c2_297, %c0_298] : memref<10x10x32xf32, #tpu.memory_space<vmem>>, vector<8x8x32xf32>
    %528 = vector.shape_cast %527 : vector<8x8x32xf32> to vector<64x32xf32>
    %c0_299 = arith.constant 0 : index
    %c2_300 = arith.constant 2 : index
    %c0_301 = arith.constant 0 : index
    %c0_302 = arith.constant 0 : index
    %529 = vector.load %arg6[%c0_299, %c2_300, %c0_301, %c0_302] : memref<3x3x32x64xbf16, #tpu.memory_space<vmem>>, vector<1x1x32x64xbf16>
    %530 = vector.shape_cast %529 : vector<1x1x32x64xbf16> to vector<32x64xbf16>
    %531 = arith.extf %530 : vector<32x64xbf16> to vector<32x64xf32>
    %cst_303 = arith.constant dense<0.000000e+00> : vector<64x64xf32>
    %532 = tpu.matmul %528, %531, %cst_303 {dimension_numbers = #tpu.dot_dimension_numbers<[1], [0], [0], [1], [0, 0, 1, 1], [], []>} : vector<64x32xf32>, vector<32x64xf32>, vector<64x64xf32> -> vector<64x64xf32>
    %533 = arith.addf %526, %532 : vector<64x64xf32>
    %c1_304 = arith.constant 1 : index
    %c0_305 = arith.constant 0 : index
    %c0_306 = arith.constant 0 : index
    %534 = vector.load %arg19[%c1_304, %c0_305, %c0_306] : memref<10x10x32xf32, #tpu.memory_space<vmem>>, vector<8x8x32xf32>
    %535 = vector.shape_cast %534 : vector<8x8x32xf32> to vector<64x32xf32>
    %c1_307 = arith.constant 1 : index
    %c0_308 = arith.constant 0 : index
    %c0_309 = arith.constant 0 : index
    %c0_310 = arith.constant 0 : index
    %536 = vector.load %arg6[%c1_307, %c0_308, %c0_309, %c0_310] : memref<3x3x32x64xbf16, #tpu.memory_space<vmem>>, vector<1x1x32x64xbf16>
    %537 = vector.shape_cast %536 : vector<1x1x32x64xbf16> to vector<32x64xbf16>
    %538 = arith.extf %537 : vector<32x64xbf16> to vector<32x64xf32>
    %cst_311 = arith.constant dense<0.000000e+00> : vector<64x64xf32>
    %539 = tpu.matmul %535, %538, %cst_311 {dimension_numbers = #tpu.dot_dimension_numbers<[1], [0], [0], [1], [0, 0, 1, 1], [], []>} : vector<64x32xf32>, vector<32x64xf32>, vector<64x64xf32> -> vector<64x64xf32>
    %540 = arith.addf %533, %539 : vector<64x64xf32>
    %c1_312 = arith.constant 1 : index
    %c1_313 = arith.constant 1 : index
    %c0_314 = arith.constant 0 : index
    %541 = vector.load %arg19[%c1_312, %c1_313, %c0_314] : memref<10x10x32xf32, #tpu.memory_space<vmem>>, vector<8x8x32xf32>
    %542 = vector.shape_cast %541 : vector<8x8x32xf32> to vector<64x32xf32>
    %c1_315 = arith.constant 1 : index
    %c1_316 = arith.constant 1 : index
    %c0_317 = arith.constant 0 : index
    %c0_318 = arith.constant 0 : index
    %543 = vector.load %arg6[%c1_315, %c1_316, %c0_317, %c0_318] : memref<3x3x32x64xbf16, #tpu.memory_space<vmem>>, vector<1x1x32x64xbf16>
    %544 = vector.shape_cast %543 : vector<1x1x32x64xbf16> to vector<32x64xbf16>
    %545 = arith.extf %544 : vector<32x64xbf16> to vector<32x64xf32>
    %cst_319 = arith.constant dense<0.000000e+00> : vector<64x64xf32>
    %546 = tpu.matmul %542, %545, %cst_319 {dimension_numbers = #tpu.dot_dimension_numbers<[1], [0], [0], [1], [0, 0, 1, 1], [], []>} : vector<64x32xf32>, vector<32x64xf32>, vector<64x64xf32> -> vector<64x64xf32>
    %547 = arith.addf %540, %546 : vector<64x64xf32>
    %c1_320 = arith.constant 1 : index
    %c2_321 = arith.constant 2 : index
    %c0_322 = arith.constant 0 : index
    %548 = vector.load %arg19[%c1_320, %c2_321, %c0_322] : memref<10x10x32xf32, #tpu.memory_space<vmem>>, vector<8x8x32xf32>
    %549 = vector.shape_cast %548 : vector<8x8x32xf32> to vector<64x32xf32>
    %c1_323 = arith.constant 1 : index
    %c2_324 = arith.constant 2 : index
    %c0_325 = arith.constant 0 : index
    %c0_326 = arith.constant 0 : index
    %550 = vector.load %arg6[%c1_323, %c2_324, %c0_325, %c0_326] : memref<3x3x32x64xbf16, #tpu.memory_space<vmem>>, vector<1x1x32x64xbf16>
    %551 = vector.shape_cast %550 : vector<1x1x32x64xbf16> to vector<32x64xbf16>
    %552 = arith.extf %551 : vector<32x64xbf16> to vector<32x64xf32>
    %cst_327 = arith.constant dense<0.000000e+00> : vector<64x64xf32>
    %553 = tpu.matmul %549, %552, %cst_327 {dimension_numbers = #tpu.dot_dimension_numbers<[1], [0], [0], [1], [0, 0, 1, 1], [], []>} : vector<64x32xf32>, vector<32x64xf32>, vector<64x64xf32> -> vector<64x64xf32>
    %554 = arith.addf %547, %553 : vector<64x64xf32>
    %c2_328 = arith.constant 2 : index
    %c0_329 = arith.constant 0 : index
    %c0_330 = arith.constant 0 : index
    %555 = vector.load %arg19[%c2_328, %c0_329, %c0_330] : memref<10x10x32xf32, #tpu.memory_space<vmem>>, vector<8x8x32xf32>
    %556 = vector.shape_cast %555 : vector<8x8x32xf32> to vector<64x32xf32>
    %c2_331 = arith.constant 2 : index
    %c0_332 = arith.constant 0 : index
    %c0_333 = arith.constant 0 : index
    %c0_334 = arith.constant 0 : index
    %557 = vector.load %arg6[%c2_331, %c0_332, %c0_333, %c0_334] : memref<3x3x32x64xbf16, #tpu.memory_space<vmem>>, vector<1x1x32x64xbf16>
    %558 = vector.shape_cast %557 : vector<1x1x32x64xbf16> to vector<32x64xbf16>
    %559 = arith.extf %558 : vector<32x64xbf16> to vector<32x64xf32>
    %cst_335 = arith.constant dense<0.000000e+00> : vector<64x64xf32>
    %560 = tpu.matmul %556, %559, %cst_335 {dimension_numbers = #tpu.dot_dimension_numbers<[1], [0], [0], [1], [0, 0, 1, 1], [], []>} : vector<64x32xf32>, vector<32x64xf32>, vector<64x64xf32> -> vector<64x64xf32>
    %561 = arith.addf %554, %560 : vector<64x64xf32>
    %c2_336 = arith.constant 2 : index
    %c1_337 = arith.constant 1 : index
    %c0_338 = arith.constant 0 : index
    %562 = vector.load %arg19[%c2_336, %c1_337, %c0_338] : memref<10x10x32xf32, #tpu.memory_space<vmem>>, vector<8x8x32xf32>
    %563 = vector.shape_cast %562 : vector<8x8x32xf32> to vector<64x32xf32>
    %c2_339 = arith.constant 2 : index
    %c1_340 = arith.constant 1 : index
    %c0_341 = arith.constant 0 : index
    %c0_342 = arith.constant 0 : index
    %564 = vector.load %arg6[%c2_339, %c1_340, %c0_341, %c0_342] : memref<3x3x32x64xbf16, #tpu.memory_space<vmem>>, vector<1x1x32x64xbf16>
    %565 = vector.shape_cast %564 : vector<1x1x32x64xbf16> to vector<32x64xbf16>
    %566 = arith.extf %565 : vector<32x64xbf16> to vector<32x64xf32>
    %cst_343 = arith.constant dense<0.000000e+00> : vector<64x64xf32>
    %567 = tpu.matmul %563, %566, %cst_343 {dimension_numbers = #tpu.dot_dimension_numbers<[1], [0], [0], [1], [0, 0, 1, 1], [], []>} : vector<64x32xf32>, vector<32x64xf32>, vector<64x64xf32> -> vector<64x64xf32>
    %568 = arith.addf %561, %567 : vector<64x64xf32>
    %c2_344 = arith.constant 2 : index
    %c2_345 = arith.constant 2 : index
    %c0_346 = arith.constant 0 : index
    %569 = vector.load %arg19[%c2_344, %c2_345, %c0_346] : memref<10x10x32xf32, #tpu.memory_space<vmem>>, vector<8x8x32xf32>
    %570 = vector.shape_cast %569 : vector<8x8x32xf32> to vector<64x32xf32>
    %c2_347 = arith.constant 2 : index
    %c2_348 = arith.constant 2 : index
    %c0_349 = arith.constant 0 : index
    %c0_350 = arith.constant 0 : index
    %571 = vector.load %arg6[%c2_347, %c2_348, %c0_349, %c0_350] : memref<3x3x32x64xbf16, #tpu.memory_space<vmem>>, vector<1x1x32x64xbf16>
    %572 = vector.shape_cast %571 : vector<1x1x32x64xbf16> to vector<32x64xbf16>
    %573 = arith.extf %572 : vector<32x64xbf16> to vector<32x64xf32>
    %cst_351 = arith.constant dense<0.000000e+00> : vector<64x64xf32>
    %574 = tpu.matmul %570, %573, %cst_351 {dimension_numbers = #tpu.dot_dimension_numbers<[1], [0], [0], [1], [0, 0, 1, 1], [], []>} : vector<64x32xf32>, vector<32x64xf32>, vector<64x64xf32> -> vector<64x64xf32>
    %575 = arith.addf %568, %574 : vector<64x64xf32>
    %cst_352 = arith.constant 0.000000e+00 : f32
    %576 = vector.broadcast %cst_352 : f32 to vector<64x64xf32>
    %577 = arith.maximumf %575, %576 : vector<64x64xf32>
    %578 = vector.shape_cast %577 : vector<64x64xf32> to vector<8x8x64xf32>
    %cst_353 = arith.constant 0.000000e+00 : f32
    %579 = vector.broadcast %cst_353 : f32 to vector<10x10x64xf32>
    %c0_354 = arith.constant 0 : index
    %c0_355 = arith.constant 0 : index
    %c0_356 = arith.constant 0 : index
    %580 = vector.load %arg20[%c0_354, %c0_355, %c0_356] : memref<10x10x64xf32, #tpu.memory_space<vmem>>, vector<10x10x64xf32>
    tpu.vector_store %arg20[%c0_354, %c0_355, %c0_356], %579 {strides = array<i32>} : memref<10x10x64xf32, #tpu.memory_space<vmem>>, vector<10x10x64xf32>,
    %c1_357 = arith.constant 1 : index
    %c1_358 = arith.constant 1 : index
    %c0_359 = arith.constant 0 : index
    %581 = vector.load %arg20[%c1_357, %c1_358, %c0_359] : memref<10x10x64xf32, #tpu.memory_space<vmem>>, vector<8x8x64xf32>
    tpu.vector_store %arg20[%c1_357, %c1_358, %c0_359], %578 {strides = array<i32>} : memref<10x10x64xf32, #tpu.memory_space<vmem>>, vector<8x8x64xf32>,
    %cst_360 = arith.constant 0.000000e+00 : f32
    %582 = vector.broadcast %cst_360 : f32 to vector<64x64xf32>
    %c0_361 = arith.constant 0 : index
    %c0_362 = arith.constant 0 : index
    %583 = vector.load %arg9[%c0_361, %c0_362] : memref<1x64xf32, #tpu.memory_space<vmem>>, vector<1x64xf32>
    %584 = vector.broadcast %583 : vector<1x64xf32> to vector<64x64xf32>
    %585 = arith.addf %582, %584 : vector<64x64xf32>
    %c0_363 = arith.constant 0 : index
    %c0_364 = arith.constant 0 : index
    %c0_365 = arith.constant 0 : index
    %586 = vector.load %arg20[%c0_363, %c0_364, %c0_365] : memref<10x10x64xf32, #tpu.memory_space<vmem>>, vector<8x8x64xf32>
    %587 = vector.shape_cast %586 : vector<8x8x64xf32> to vector<64x64xf32>
    %c0_366 = arith.constant 0 : index
    %c0_367 = arith.constant 0 : index
    %c0_368 = arith.constant 0 : index
    %c0_369 = arith.constant 0 : index
    %588 = vector.load %arg8[%c0_366, %c0_367, %c0_368, %c0_369] : memref<3x3x64x64xbf16, #tpu.memory_space<vmem>>, vector<1x1x64x64xbf16>
    %589 = vector.shape_cast %588 : vector<1x1x64x64xbf16> to vector<64x64xbf16>
    %590 = arith.extf %589 : vector<64x64xbf16> to vector<64x64xf32>
    %cst_370 = arith.constant dense<0.000000e+00> : vector<64x64xf32>
    %591 = tpu.matmul %587, %590, %cst_370 {dimension_numbers = #tpu.dot_dimension_numbers<[1], [0], [0], [1], [0, 0, 1, 1], [], []>} : vector<64x64xf32>, vector<64x64xf32>, vector<64x64xf32> -> vector<64x64xf32>
    %592 = arith.addf %585, %591 : vector<64x64xf32>
    %c0_371 = arith.constant 0 : index
    %c1_372 = arith.constant 1 : index
    %c0_373 = arith.constant 0 : index
    %593 = vector.load %arg20[%c0_371, %c1_372, %c0_373] : memref<10x10x64xf32, #tpu.memory_space<vmem>>, vector<8x8x64xf32>
    %594 = vector.shape_cast %593 : vector<8x8x64xf32> to vector<64x64xf32>
    %c0_374 = arith.constant 0 : index
    %c1_375 = arith.constant 1 : index
    %c0_376 = arith.constant 0 : index
    %c0_377 = arith.constant 0 : index
    %595 = vector.load %arg8[%c0_374, %c1_375, %c0_376, %c0_377] : memref<3x3x64x64xbf16, #tpu.memory_space<vmem>>, vector<1x1x64x64xbf16>
    %596 = vector.shape_cast %595 : vector<1x1x64x64xbf16> to vector<64x64xbf16>
    %597 = arith.extf %596 : vector<64x64xbf16> to vector<64x64xf32>
    %cst_378 = arith.constant dense<0.000000e+00> : vector<64x64xf32>
    %598 = tpu.matmul %594, %597, %cst_378 {dimension_numbers = #tpu.dot_dimension_numbers<[1], [0], [0], [1], [0, 0, 1, 1], [], []>} : vector<64x64xf32>, vector<64x64xf32>, vector<64x64xf32> -> vector<64x64xf32>
    %599 = arith.addf %592, %598 : vector<64x64xf32>
    %c0_379 = arith.constant 0 : index
    %c2_380 = arith.constant 2 : index
    %c0_381 = arith.constant 0 : index
    %600 = vector.load %arg20[%c0_379, %c2_380, %c0_381] : memref<10x10x64xf32, #tpu.memory_space<vmem>>, vector<8x8x64xf32>
    %601 = vector.shape_cast %600 : vector<8x8x64xf32> to vector<64x64xf32>
    %c0_382 = arith.constant 0 : index
    %c2_383 = arith.constant 2 : index
    %c0_384 = arith.constant 0 : index
    %c0_385 = arith.constant 0 : index
    %602 = vector.load %arg8[%c0_382, %c2_383, %c0_384, %c0_385] : memref<3x3x64x64xbf16, #tpu.memory_space<vmem>>, vector<1x1x64x64xbf16>
    %603 = vector.shape_cast %602 : vector<1x1x64x64xbf16> to vector<64x64xbf16>
    %604 = arith.extf %603 : vector<64x64xbf16> to vector<64x64xf32>
    %cst_386 = arith.constant dense<0.000000e+00> : vector<64x64xf32>
    %605 = tpu.matmul %601, %604, %cst_386 {dimension_numbers = #tpu.dot_dimension_numbers<[1], [0], [0], [1], [0, 0, 1, 1], [], []>} : vector<64x64xf32>, vector<64x64xf32>, vector<64x64xf32> -> vector<64x64xf32>
    %606 = arith.addf %599, %605 : vector<64x64xf32>
    %c1_387 = arith.constant 1 : index
    %c0_388 = arith.constant 0 : index
    %c0_389 = arith.constant 0 : index
    %607 = vector.load %arg20[%c1_387, %c0_388, %c0_389] : memref<10x10x64xf32, #tpu.memory_space<vmem>>, vector<8x8x64xf32>
    %608 = vector.shape_cast %607 : vector<8x8x64xf32> to vector<64x64xf32>
    %c1_390 = arith.constant 1 : index
    %c0_391 = arith.constant 0 : index
    %c0_392 = arith.constant 0 : index
    %c0_393 = arith.constant 0 : index
    %609 = vector.load %arg8[%c1_390, %c0_391, %c0_392, %c0_393] : memref<3x3x64x64xbf16, #tpu.memory_space<vmem>>, vector<1x1x64x64xbf16>
    %610 = vector.shape_cast %609 : vector<1x1x64x64xbf16> to vector<64x64xbf16>
    %611 = arith.extf %610 : vector<64x64xbf16> to vector<64x64xf32>
    %cst_394 = arith.constant dense<0.000000e+00> : vector<64x64xf32>
    %612 = tpu.matmul %608, %611, %cst_394 {dimension_numbers = #tpu.dot_dimension_numbers<[1], [0], [0], [1], [0, 0, 1, 1], [], []>} : vector<64x64xf32>, vector<64x64xf32>, vector<64x64xf32> -> vector<64x64xf32>
    %613 = arith.addf %606, %612 : vector<64x64xf32>
    %c1_395 = arith.constant 1 : index
    %c1_396 = arith.constant 1 : index
    %c0_397 = arith.constant 0 : index
    %614 = vector.load %arg20[%c1_395, %c1_396, %c0_397] : memref<10x10x64xf32, #tpu.memory_space<vmem>>, vector<8x8x64xf32>
    %615 = vector.shape_cast %614 : vector<8x8x64xf32> to vector<64x64xf32>
    %c1_398 = arith.constant 1 : index
    %c1_399 = arith.constant 1 : index
    %c0_400 = arith.constant 0 : index
    %c0_401 = arith.constant 0 : index
    %616 = vector.load %arg8[%c1_398, %c1_399, %c0_400, %c0_401] : memref<3x3x64x64xbf16, #tpu.memory_space<vmem>>, vector<1x1x64x64xbf16>
    %617 = vector.shape_cast %616 : vector<1x1x64x64xbf16> to vector<64x64xbf16>
    %618 = arith.extf %617 : vector<64x64xbf16> to vector<64x64xf32>
    %cst_402 = arith.constant dense<0.000000e+00> : vector<64x64xf32>
    %619 = tpu.matmul %615, %618, %cst_402 {dimension_numbers = #tpu.dot_dimension_numbers<[1], [0], [0], [1], [0, 0, 1, 1], [], []>} : vector<64x64xf32>, vector<64x64xf32>, vector<64x64xf32> -> vector<64x64xf32>
    %620 = arith.addf %613, %619 : vector<64x64xf32>
    %c1_403 = arith.constant 1 : index
    %c2_404 = arith.constant 2 : index
    %c0_405 = arith.constant 0 : index
    %621 = vector.load %arg20[%c1_403, %c2_404, %c0_405] : memref<10x10x64xf32, #tpu.memory_space<vmem>>, vector<8x8x64xf32>
    %622 = vector.shape_cast %621 : vector<8x8x64xf32> to vector<64x64xf32>
    %c1_406 = arith.constant 1 : index
    %c2_407 = arith.constant 2 : index
    %c0_408 = arith.constant 0 : index
    %c0_409 = arith.constant 0 : index
    %623 = vector.load %arg8[%c1_406, %c2_407, %c0_408, %c0_409] : memref<3x3x64x64xbf16, #tpu.memory_space<vmem>>, vector<1x1x64x64xbf16>
    %624 = vector.shape_cast %623 : vector<1x1x64x64xbf16> to vector<64x64xbf16>
    %625 = arith.extf %624 : vector<64x64xbf16> to vector<64x64xf32>
    %cst_410 = arith.constant dense<0.000000e+00> : vector<64x64xf32>
    %626 = tpu.matmul %622, %625, %cst_410 {dimension_numbers = #tpu.dot_dimension_numbers<[1], [0], [0], [1], [0, 0, 1, 1], [], []>} : vector<64x64xf32>, vector<64x64xf32>, vector<64x64xf32> -> vector<64x64xf32>
    %627 = arith.addf %620, %626 : vector<64x64xf32>
    %c2_411 = arith.constant 2 : index
    %c0_412 = arith.constant 0 : index
    %c0_413 = arith.constant 0 : index
    %628 = vector.load %arg20[%c2_411, %c0_412, %c0_413] : memref<10x10x64xf32, #tpu.memory_space<vmem>>, vector<8x8x64xf32>
    %629 = vector.shape_cast %628 : vector<8x8x64xf32> to vector<64x64xf32>
    %c2_414 = arith.constant 2 : index
    %c0_415 = arith.constant 0 : index
    %c0_416 = arith.constant 0 : index
    %c0_417 = arith.constant 0 : index
    %630 = vector.load %arg8[%c2_414, %c0_415, %c0_416, %c0_417] : memref<3x3x64x64xbf16, #tpu.memory_space<vmem>>, vector<1x1x64x64xbf16>
    %631 = vector.shape_cast %630 : vector<1x1x64x64xbf16> to vector<64x64xbf16>
    %632 = arith.extf %631 : vector<64x64xbf16> to vector<64x64xf32>
    %cst_418 = arith.constant dense<0.000000e+00> : vector<64x64xf32>
    %633 = tpu.matmul %629, %632, %cst_418 {dimension_numbers = #tpu.dot_dimension_numbers<[1], [0], [0], [1], [0, 0, 1, 1], [], []>} : vector<64x64xf32>, vector<64x64xf32>, vector<64x64xf32> -> vector<64x64xf32>
    %634 = arith.addf %627, %633 : vector<64x64xf32>
    %c2_419 = arith.constant 2 : index
    %c1_420 = arith.constant 1 : index
    %c0_421 = arith.constant 0 : index
    %635 = vector.load %arg20[%c2_419, %c1_420, %c0_421] : memref<10x10x64xf32, #tpu.memory_space<vmem>>, vector<8x8x64xf32>
    %636 = vector.shape_cast %635 : vector<8x8x64xf32> to vector<64x64xf32>
    %c2_422 = arith.constant 2 : index
    %c1_423 = arith.constant 1 : index
    %c0_424 = arith.constant 0 : index
    %c0_425 = arith.constant 0 : index
    %637 = vector.load %arg8[%c2_422, %c1_423, %c0_424, %c0_425] : memref<3x3x64x64xbf16, #tpu.memory_space<vmem>>, vector<1x1x64x64xbf16>
    %638 = vector.shape_cast %637 : vector<1x1x64x64xbf16> to vector<64x64xbf16>
    %639 = arith.extf %638 : vector<64x64xbf16> to vector<64x64xf32>
    %cst_426 = arith.constant dense<0.000000e+00> : vector<64x64xf32>
    %640 = tpu.matmul %636, %639, %cst_426 {dimension_numbers = #tpu.dot_dimension_numbers<[1], [0], [0], [1], [0, 0, 1, 1], [], []>} : vector<64x64xf32>, vector<64x64xf32>, vector<64x64xf32> -> vector<64x64xf32>
    %641 = arith.addf %634, %640 : vector<64x64xf32>
    %c2_427 = arith.constant 2 : index
    %c2_428 = arith.constant 2 : index
    %c0_429 = arith.constant 0 : index
    %642 = vector.load %arg20[%c2_427, %c2_428, %c0_429] : memref<10x10x64xf32, #tpu.memory_space<vmem>>, vector<8x8x64xf32>
    %643 = vector.shape_cast %642 : vector<8x8x64xf32> to vector<64x64xf32>
    %c2_430 = arith.constant 2 : index
    %c2_431 = arith.constant 2 : index
    %c0_432 = arith.constant 0 : index
    %c0_433 = arith.constant 0 : index
    %644 = vector.load %arg8[%c2_430, %c2_431, %c0_432, %c0_433] : memref<3x3x64x64xbf16, #tpu.memory_space<vmem>>, vector<1x1x64x64xbf16>
    %645 = vector.shape_cast %644 : vector<1x1x64x64xbf16> to vector<64x64xbf16>
    %646 = arith.extf %645 : vector<64x64xbf16> to vector<64x64xf32>
    %cst_434 = arith.constant dense<0.000000e+00> : vector<64x64xf32>
    %647 = tpu.matmul %643, %646, %cst_434 {dimension_numbers = #tpu.dot_dimension_numbers<[1], [0], [0], [1], [0, 0, 1, 1], [], []>} : vector<64x64xf32>, vector<64x64xf32>, vector<64x64xf32> -> vector<64x64xf32>
    %648 = arith.addf %641, %647 : vector<64x64xf32>
    %cst_435 = arith.constant 0.000000e+00 : f32
    %649 = vector.broadcast %cst_435 : f32 to vector<64x64xf32>
    %650 = arith.maximumf %648, %649 : vector<64x64xf32>
    %651 = vector.shape_cast %650 : vector<64x64xf32> to vector<8x8x64xf32>
    %652 = vector.extract_strided_slice %651 {offsets = [0, 0, 0], sizes = [1, 8, 64], strides = [1, 1, 1]} : vector<8x8x64xf32> to vector<1x8x64xf32>
    %653 = vector.shape_cast %652 : vector<1x8x64xf32> to vector<8x64xf32>
    %654 = vector.extract_strided_slice %651 {offsets = [1, 0, 0], sizes = [1, 8, 64], strides = [1, 1, 1]} : vector<8x8x64xf32> to vector<1x8x64xf32>
    %655 = vector.shape_cast %654 : vector<1x8x64xf32> to vector<8x64xf32>
    %656 = arith.maximumf %653, %655 : vector<8x64xf32>
    %657 = vector.extract_strided_slice %656 {offsets = [0, 0], sizes = [1, 64], strides = [1, 1]} : vector<8x64xf32> to vector<1x64xf32>
    %658 = vector.extract_strided_slice %656 {offsets = [1, 0], sizes = [1, 64], strides = [1, 1]} : vector<8x64xf32> to vector<1x64xf32>
    %659 = arith.maximumf %657, %658 : vector<1x64xf32>
    %c0_436 = arith.constant 0 : index
    %c0_437 = arith.constant 0 : index
    %660 = vector.load %arg21[%c0_436, %c0_437] : memref<16x64xf32, #tpu.memory_space<vmem>>, vector<1x64xf32>
    tpu.vector_store %arg21[%c0_436, %c0_437], %659 {strides = array<i32>} : memref<16x64xf32, #tpu.memory_space<vmem>>, vector<1x64xf32>,
    %661 = vector.extract_strided_slice %656 {offsets = [2, 0], sizes = [1, 64], strides = [1, 1]} : vector<8x64xf32> to vector<1x64xf32>
    %662 = vector.extract_strided_slice %656 {offsets = [3, 0], sizes = [1, 64], strides = [1, 1]} : vector<8x64xf32> to vector<1x64xf32>
    %663 = arith.maximumf %661, %662 : vector<1x64xf32>
    %c1_438 = arith.constant 1 : index
    %c0_439 = arith.constant 0 : index
    %664 = vector.load %arg21[%c1_438, %c0_439] : memref<16x64xf32, #tpu.memory_space<vmem>>, vector<1x64xf32>
    tpu.vector_store %arg21[%c1_438, %c0_439], %663 {strides = array<i32>} : memref<16x64xf32, #tpu.memory_space<vmem>>, vector<1x64xf32>,
    %665 = vector.extract_strided_slice %656 {offsets = [4, 0], sizes = [1, 64], strides = [1, 1]} : vector<8x64xf32> to vector<1x64xf32>
    %666 = vector.extract_strided_slice %656 {offsets = [5, 0], sizes = [1, 64], strides = [1, 1]} : vector<8x64xf32> to vector<1x64xf32>
    %667 = arith.maximumf %665, %666 : vector<1x64xf32>
    %c2_440 = arith.constant 2 : index
    %c0_441 = arith.constant 0 : index
    %668 = vector.load %arg21[%c2_440, %c0_441] : memref<16x64xf32, #tpu.memory_space<vmem>>, vector<1x64xf32>
    tpu.vector_store %arg21[%c2_440, %c0_441], %667 {strides = array<i32>} : memref<16x64xf32, #tpu.memory_space<vmem>>, vector<1x64xf32>,
    %669 = vector.extract_strided_slice %656 {offsets = [6, 0], sizes = [1, 64], strides = [1, 1]} : vector<8x64xf32> to vector<1x64xf32>
    %670 = vector.extract_strided_slice %656 {offsets = [7, 0], sizes = [1, 64], strides = [1, 1]} : vector<8x64xf32> to vector<1x64xf32>
    %671 = arith.maximumf %669, %670 : vector<1x64xf32>
    %c3_442 = arith.constant 3 : index
    %c0_443 = arith.constant 0 : index
    %672 = vector.load %arg21[%c3_442, %c0_443] : memref<16x64xf32, #tpu.memory_space<vmem>>, vector<1x64xf32>
    tpu.vector_store %arg21[%c3_442, %c0_443], %671 {strides = array<i32>} : memref<16x64xf32, #tpu.memory_space<vmem>>, vector<1x64xf32>,
    %673 = vector.extract_strided_slice %651 {offsets = [2, 0, 0], sizes = [1, 8, 64], strides = [1, 1, 1]} : vector<8x8x64xf32> to vector<1x8x64xf32>
    %674 = vector.shape_cast %673 : vector<1x8x64xf32> to vector<8x64xf32>
    %675 = vector.extract_strided_slice %651 {offsets = [3, 0, 0], sizes = [1, 8, 64], strides = [1, 1, 1]} : vector<8x8x64xf32> to vector<1x8x64xf32>
    %676 = vector.shape_cast %675 : vector<1x8x64xf32> to vector<8x64xf32>
    %677 = arith.maximumf %674, %676 : vector<8x64xf32>
    %678 = vector.extract_strided_slice %677 {offsets = [0, 0], sizes = [1, 64], strides = [1, 1]} : vector<8x64xf32> to vector<1x64xf32>
    %679 = vector.extract_strided_slice %677 {offsets = [1, 0], sizes = [1, 64], strides = [1, 1]} : vector<8x64xf32> to vector<1x64xf32>
    %680 = arith.maximumf %678, %679 : vector<1x64xf32>
    %c4_444 = arith.constant 4 : index
    %c0_445 = arith.constant 0 : index
    %681 = vector.load %arg21[%c4_444, %c0_445] : memref<16x64xf32, #tpu.memory_space<vmem>>, vector<1x64xf32>
    tpu.vector_store %arg21[%c4_444, %c0_445], %680 {strides = array<i32>} : memref<16x64xf32, #tpu.memory_space<vmem>>, vector<1x64xf32>,
    %682 = vector.extract_strided_slice %677 {offsets = [2, 0], sizes = [1, 64], strides = [1, 1]} : vector<8x64xf32> to vector<1x64xf32>
    %683 = vector.extract_strided_slice %677 {offsets = [3, 0], sizes = [1, 64], strides = [1, 1]} : vector<8x64xf32> to vector<1x64xf32>
    %684 = arith.maximumf %682, %683 : vector<1x64xf32>
    %c5_446 = arith.constant 5 : index
    %c0_447 = arith.constant 0 : index
    %685 = vector.load %arg21[%c5_446, %c0_447] : memref<16x64xf32, #tpu.memory_space<vmem>>, vector<1x64xf32>
    tpu.vector_store %arg21[%c5_446, %c0_447], %684 {strides = array<i32>} : memref<16x64xf32, #tpu.memory_space<vmem>>, vector<1x64xf32>,
    %686 = vector.extract_strided_slice %677 {offsets = [4, 0], sizes = [1, 64], strides = [1, 1]} : vector<8x64xf32> to vector<1x64xf32>
    %687 = vector.extract_strided_slice %677 {offsets = [5, 0], sizes = [1, 64], strides = [1, 1]} : vector<8x64xf32> to vector<1x64xf32>
    %688 = arith.maximumf %686, %687 : vector<1x64xf32>
    %c6_448 = arith.constant 6 : index
    %c0_449 = arith.constant 0 : index
    %689 = vector.load %arg21[%c6_448, %c0_449] : memref<16x64xf32, #tpu.memory_space<vmem>>, vector<1x64xf32>
    tpu.vector_store %arg21[%c6_448, %c0_449], %688 {strides = array<i32>} : memref<16x64xf32, #tpu.memory_space<vmem>>, vector<1x64xf32>,
    %690 = vector.extract_strided_slice %677 {offsets = [6, 0], sizes = [1, 64], strides = [1, 1]} : vector<8x64xf32> to vector<1x64xf32>
    %691 = vector.extract_strided_slice %677 {offsets = [7, 0], sizes = [1, 64], strides = [1, 1]} : vector<8x64xf32> to vector<1x64xf32>
    %692 = arith.maximumf %690, %691 : vector<1x64xf32>
    %c7_450 = arith.constant 7 : index
    %c0_451 = arith.constant 0 : index
    %693 = vector.load %arg21[%c7_450, %c0_451] : memref<16x64xf32, #tpu.memory_space<vmem>>, vector<1x64xf32>
    tpu.vector_store %arg21[%c7_450, %c0_451], %692 {strides = array<i32>} : memref<16x64xf32, #tpu.memory_space<vmem>>, vector<1x64xf32>,
    %694 = vector.extract_strided_slice %651 {offsets = [4, 0, 0], sizes = [1, 8, 64], strides = [1, 1, 1]} : vector<8x8x64xf32> to vector<1x8x64xf32>
    %695 = vector.shape_cast %694 : vector<1x8x64xf32> to vector<8x64xf32>
    %696 = vector.extract_strided_slice %651 {offsets = [5, 0, 0], sizes = [1, 8, 64], strides = [1, 1, 1]} : vector<8x8x64xf32> to vector<1x8x64xf32>
    %697 = vector.shape_cast %696 : vector<1x8x64xf32> to vector<8x64xf32>
    %698 = arith.maximumf %695, %697 : vector<8x64xf32>
    %699 = vector.extract_strided_slice %698 {offsets = [0, 0], sizes = [1, 64], strides = [1, 1]} : vector<8x64xf32> to vector<1x64xf32>
    %700 = vector.extract_strided_slice %698 {offsets = [1, 0], sizes = [1, 64], strides = [1, 1]} : vector<8x64xf32> to vector<1x64xf32>
    %701 = arith.maximumf %699, %700 : vector<1x64xf32>
    %c8_452 = arith.constant 8 : index
    %c0_453 = arith.constant 0 : index
    %702 = vector.load %arg21[%c8_452, %c0_453] : memref<16x64xf32, #tpu.memory_space<vmem>>, vector<1x64xf32>
    tpu.vector_store %arg21[%c8_452, %c0_453], %701 {strides = array<i32>} : memref<16x64xf32, #tpu.memory_space<vmem>>, vector<1x64xf32>,
    %703 = vector.extract_strided_slice %698 {offsets = [2, 0], sizes = [1, 64], strides = [1, 1]} : vector<8x64xf32> to vector<1x64xf32>
    %704 = vector.extract_strided_slice %698 {offsets = [3, 0], sizes = [1, 64], strides = [1, 1]} : vector<8x64xf32> to vector<1x64xf32>
    %705 = arith.maximumf %703, %704 : vector<1x64xf32>
    %c9 = arith.constant 9 : index
    %c0_454 = arith.constant 0 : index
    %706 = vector.load %arg21[%c9, %c0_454] : memref<16x64xf32, #tpu.memory_space<vmem>>, vector<1x64xf32>
    tpu.vector_store %arg21[%c9, %c0_454], %705 {strides = array<i32>} : memref<16x64xf32, #tpu.memory_space<vmem>>, vector<1x64xf32>,
    %707 = vector.extract_strided_slice %698 {offsets = [4, 0], sizes = [1, 64], strides = [1, 1]} : vector<8x64xf32> to vector<1x64xf32>
    %708 = vector.extract_strided_slice %698 {offsets = [5, 0], sizes = [1, 64], strides = [1, 1]} : vector<8x64xf32> to vector<1x64xf32>
    %709 = arith.maximumf %707, %708 : vector<1x64xf32>
    %c10 = arith.constant 10 : index
    %c0_455 = arith.constant 0 : index
    %710 = vector.load %arg21[%c10, %c0_455] : memref<16x64xf32, #tpu.memory_space<vmem>>, vector<1x64xf32>
    tpu.vector_store %arg21[%c10, %c0_455], %709 {strides = array<i32>} : memref<16x64xf32, #tpu.memory_space<vmem>>, vector<1x64xf32>,
    %711 = vector.extract_strided_slice %698 {offsets = [6, 0], sizes = [1, 64], strides = [1, 1]} : vector<8x64xf32> to vector<1x64xf32>
    %712 = vector.extract_strided_slice %698 {offsets = [7, 0], sizes = [1, 64], strides = [1, 1]} : vector<8x64xf32> to vector<1x64xf32>
    %713 = arith.maximumf %711, %712 : vector<1x64xf32>
    %c11 = arith.constant 11 : index
    %c0_456 = arith.constant 0 : index
    %714 = vector.load %arg21[%c11, %c0_456] : memref<16x64xf32, #tpu.memory_space<vmem>>, vector<1x64xf32>
    tpu.vector_store %arg21[%c11, %c0_456], %713 {strides = array<i32>} : memref<16x64xf32, #tpu.memory_space<vmem>>, vector<1x64xf32>,
    %715 = vector.extract_strided_slice %651 {offsets = [6, 0, 0], sizes = [1, 8, 64], strides = [1, 1, 1]} : vector<8x8x64xf32> to vector<1x8x64xf32>
    %716 = vector.shape_cast %715 : vector<1x8x64xf32> to vector<8x64xf32>
    %717 = vector.extract_strided_slice %651 {offsets = [7, 0, 0], sizes = [1, 8, 64], strides = [1, 1, 1]} : vector<8x8x64xf32> to vector<1x8x64xf32>
    %718 = vector.shape_cast %717 : vector<1x8x64xf32> to vector<8x64xf32>
    %719 = arith.maximumf %716, %718 : vector<8x64xf32>
    %720 = vector.extract_strided_slice %719 {offsets = [0, 0], sizes = [1, 64], strides = [1, 1]} : vector<8x64xf32> to vector<1x64xf32>
    %721 = vector.extract_strided_slice %719 {offsets = [1, 0], sizes = [1, 64], strides = [1, 1]} : vector<8x64xf32> to vector<1x64xf32>
    %722 = arith.maximumf %720, %721 : vector<1x64xf32>
    %c12 = arith.constant 12 : index
    %c0_457 = arith.constant 0 : index
    %723 = vector.load %arg21[%c12, %c0_457] : memref<16x64xf32, #tpu.memory_space<vmem>>, vector<1x64xf32>
    tpu.vector_store %arg21[%c12, %c0_457], %722 {strides = array<i32>} : memref<16x64xf32, #tpu.memory_space<vmem>>, vector<1x64xf32>,
    %724 = vector.extract_strided_slice %719 {offsets = [2, 0], sizes = [1, 64], strides = [1, 1]} : vector<8x64xf32> to vector<1x64xf32>
    %725 = vector.extract_strided_slice %719 {offsets = [3, 0], sizes = [1, 64], strides = [1, 1]} : vector<8x64xf32> to vector<1x64xf32>
    %726 = arith.maximumf %724, %725 : vector<1x64xf32>
    %c13 = arith.constant 13 : index
    %c0_458 = arith.constant 0 : index
    %727 = vector.load %arg21[%c13, %c0_458] : memref<16x64xf32, #tpu.memory_space<vmem>>, vector<1x64xf32>
    tpu.vector_store %arg21[%c13, %c0_458], %726 {strides = array<i32>} : memref<16x64xf32, #tpu.memory_space<vmem>>, vector<1x64xf32>,
    %728 = vector.extract_strided_slice %719 {offsets = [4, 0], sizes = [1, 64], strides = [1, 1]} : vector<8x64xf32> to vector<1x64xf32>
    %729 = vector.extract_strided_slice %719 {offsets = [5, 0], sizes = [1, 64], strides = [1, 1]} : vector<8x64xf32> to vector<1x64xf32>
    %730 = arith.maximumf %728, %729 : vector<1x64xf32>
    %c14 = arith.constant 14 : index
    %c0_459 = arith.constant 0 : index
    %731 = vector.load %arg21[%c14, %c0_459] : memref<16x64xf32, #tpu.memory_space<vmem>>, vector<1x64xf32>
    tpu.vector_store %arg21[%c14, %c0_459], %730 {strides = array<i32>} : memref<16x64xf32, #tpu.memory_space<vmem>>, vector<1x64xf32>,
    %732 = vector.extract_strided_slice %719 {offsets = [6, 0], sizes = [1, 64], strides = [1, 1]} : vector<8x64xf32> to vector<1x64xf32>
    %733 = vector.extract_strided_slice %719 {offsets = [7, 0], sizes = [1, 64], strides = [1, 1]} : vector<8x64xf32> to vector<1x64xf32>
    %734 = arith.maximumf %732, %733 : vector<1x64xf32>
    %c15 = arith.constant 15 : index
    %c0_460 = arith.constant 0 : index
    %735 = vector.load %arg21[%c15, %c0_460] : memref<16x64xf32, #tpu.memory_space<vmem>>, vector<1x64xf32>
    tpu.vector_store %arg21[%c15, %c0_460], %734 {strides = array<i32>} : memref<16x64xf32, #tpu.memory_space<vmem>>, vector<1x64xf32>,
    %c0_461 = arith.constant 0 : index
    %c0_462 = arith.constant 0 : index
    %736 = vector.load %arg21[%c0_461, %c0_462] : memref<16x64xf32, #tpu.memory_space<vmem>>, vector<16x64xf32>
    %cst_463 = arith.constant 0.000000e+00 : f32
    %737 = vector.broadcast %cst_463 : f32 to vector<16x128xf32>
    %c0_464 = arith.constant 0 : index
    %c0_465 = arith.constant 0 : index
    %738 = vector.load %arg11[%c0_464, %c0_465] : memref<1x128xf32, #tpu.memory_space<vmem>>, vector<1x128xf32>
    %739 = vector.broadcast %738 : vector<1x128xf32> to vector<16x128xf32>
    %740 = arith.addf %737, %739 : vector<16x128xf32>
    %c0_466 = arith.constant 0 : index
    %c0_467 = arith.constant 0 : index
    %c0_468 = arith.constant 0 : index
    %741 = vector.load %arg14[%c0_466, %c0_467, %c0_468] : memref<9x16x16xf32, #tpu.memory_space<vmem>>, vector<1x16x16xf32>
    %742 = vector.shape_cast %741 : vector<1x16x16xf32> to vector<16x16xf32>
    %cst_469 = arith.constant dense<0.000000e+00> : vector<16x64xf32>
    %743 = tpu.matmul %742, %736, %cst_469 {dimension_numbers = #tpu.dot_dimension_numbers<[1], [0], [0], [1], [0, 0, 1, 1], [], []>} : vector<16x16xf32>, vector<16x64xf32>, vector<16x64xf32> -> vector<16x64xf32>
    %c0_470 = arith.constant 0 : index
    %c0_471 = arith.constant 0 : index
    %c0_472 = arith.constant 0 : index
    %c0_473 = arith.constant 0 : index
    %744 = vector.load %arg10[%c0_470, %c0_471, %c0_472, %c0_473] : memref<3x3x64x128xbf16, #tpu.memory_space<vmem>>, vector<1x1x64x128xbf16>
    %745 = vector.shape_cast %744 : vector<1x1x64x128xbf16> to vector<64x128xbf16>
    %746 = arith.extf %745 : vector<64x128xbf16> to vector<64x128xf32>
    %cst_474 = arith.constant dense<0.000000e+00> : vector<16x128xf32>
    %747 = tpu.matmul %743, %746, %cst_474 {dimension_numbers = #tpu.dot_dimension_numbers<[1], [0], [0], [1], [0, 0, 1, 1], [], []>} : vector<16x64xf32>, vector<64x128xf32>, vector<16x128xf32> -> vector<16x128xf32>
    %748 = arith.addf %740, %747 : vector<16x128xf32>
    %c1_475 = arith.constant 1 : index
    %c0_476 = arith.constant 0 : index
    %c0_477 = arith.constant 0 : index
    %749 = vector.load %arg14[%c1_475, %c0_476, %c0_477] : memref<9x16x16xf32, #tpu.memory_space<vmem>>, vector<1x16x16xf32>
    %750 = vector.shape_cast %749 : vector<1x16x16xf32> to vector<16x16xf32>
    %cst_478 = arith.constant dense<0.000000e+00> : vector<16x64xf32>
    %751 = tpu.matmul %750, %736, %cst_478 {dimension_numbers = #tpu.dot_dimension_numbers<[1], [0], [0], [1], [0, 0, 1, 1], [], []>} : vector<16x16xf32>, vector<16x64xf32>, vector<16x64xf32> -> vector<16x64xf32>
    %c0_479 = arith.constant 0 : index
    %c1_480 = arith.constant 1 : index
    %c0_481 = arith.constant 0 : index
    %c0_482 = arith.constant 0 : index
    %752 = vector.load %arg10[%c0_479, %c1_480, %c0_481, %c0_482] : memref<3x3x64x128xbf16, #tpu.memory_space<vmem>>, vector<1x1x64x128xbf16>
    %753 = vector.shape_cast %752 : vector<1x1x64x128xbf16> to vector<64x128xbf16>
    %754 = arith.extf %753 : vector<64x128xbf16> to vector<64x128xf32>
    %cst_483 = arith.constant dense<0.000000e+00> : vector<16x128xf32>
    %755 = tpu.matmul %751, %754, %cst_483 {dimension_numbers = #tpu.dot_dimension_numbers<[1], [0], [0], [1], [0, 0, 1, 1], [], []>} : vector<16x64xf32>, vector<64x128xf32>, vector<16x128xf32> -> vector<16x128xf32>
    %756 = arith.addf %748, %755 : vector<16x128xf32>
    %c2_484 = arith.constant 2 : index
    %c0_485 = arith.constant 0 : index
    %c0_486 = arith.constant 0 : index
    %757 = vector.load %arg14[%c2_484, %c0_485, %c0_486] : memref<9x16x16xf32, #tpu.memory_space<vmem>>, vector<1x16x16xf32>
    %758 = vector.shape_cast %757 : vector<1x16x16xf32> to vector<16x16xf32>
    %cst_487 = arith.constant dense<0.000000e+00> : vector<16x64xf32>
    %759 = tpu.matmul %758, %736, %cst_487 {dimension_numbers = #tpu.dot_dimension_numbers<[1], [0], [0], [1], [0, 0, 1, 1], [], []>} : vector<16x16xf32>, vector<16x64xf32>, vector<16x64xf32> -> vector<16x64xf32>
    %c0_488 = arith.constant 0 : index
    %c2_489 = arith.constant 2 : index
    %c0_490 = arith.constant 0 : index
    %c0_491 = arith.constant 0 : index
    %760 = vector.load %arg10[%c0_488, %c2_489, %c0_490, %c0_491] : memref<3x3x64x128xbf16, #tpu.memory_space<vmem>>, vector<1x1x64x128xbf16>
    %761 = vector.shape_cast %760 : vector<1x1x64x128xbf16> to vector<64x128xbf16>
    %762 = arith.extf %761 : vector<64x128xbf16> to vector<64x128xf32>
    %cst_492 = arith.constant dense<0.000000e+00> : vector<16x128xf32>
    %763 = tpu.matmul %759, %762, %cst_492 {dimension_numbers = #tpu.dot_dimension_numbers<[1], [0], [0], [1], [0, 0, 1, 1], [], []>} : vector<16x64xf32>, vector<64x128xf32>, vector<16x128xf32> -> vector<16x128xf32>
    %764 = arith.addf %756, %763 : vector<16x128xf32>
    %c3_493 = arith.constant 3 : index
    %c0_494 = arith.constant 0 : index
    %c0_495 = arith.constant 0 : index
    %765 = vector.load %arg14[%c3_493, %c0_494, %c0_495] : memref<9x16x16xf32, #tpu.memory_space<vmem>>, vector<1x16x16xf32>
    %766 = vector.shape_cast %765 : vector<1x16x16xf32> to vector<16x16xf32>
    %cst_496 = arith.constant dense<0.000000e+00> : vector<16x64xf32>
    %767 = tpu.matmul %766, %736, %cst_496 {dimension_numbers = #tpu.dot_dimension_numbers<[1], [0], [0], [1], [0, 0, 1, 1], [], []>} : vector<16x16xf32>, vector<16x64xf32>, vector<16x64xf32> -> vector<16x64xf32>
    %c1_497 = arith.constant 1 : index
    %c0_498 = arith.constant 0 : index
    %c0_499 = arith.constant 0 : index
    %c0_500 = arith.constant 0 : index
    %768 = vector.load %arg10[%c1_497, %c0_498, %c0_499, %c0_500] : memref<3x3x64x128xbf16, #tpu.memory_space<vmem>>, vector<1x1x64x128xbf16>
    %769 = vector.shape_cast %768 : vector<1x1x64x128xbf16> to vector<64x128xbf16>
    %770 = arith.extf %769 : vector<64x128xbf16> to vector<64x128xf32>
    %cst_501 = arith.constant dense<0.000000e+00> : vector<16x128xf32>
    %771 = tpu.matmul %767, %770, %cst_501 {dimension_numbers = #tpu.dot_dimension_numbers<[1], [0], [0], [1], [0, 0, 1, 1], [], []>} : vector<16x64xf32>, vector<64x128xf32>, vector<16x128xf32> -> vector<16x128xf32>
    %772 = arith.addf %764, %771 : vector<16x128xf32>
    %c4_502 = arith.constant 4 : index
    %c0_503 = arith.constant 0 : index
    %c0_504 = arith.constant 0 : index
    %773 = vector.load %arg14[%c4_502, %c0_503, %c0_504] : memref<9x16x16xf32, #tpu.memory_space<vmem>>, vector<1x16x16xf32>
    %774 = vector.shape_cast %773 : vector<1x16x16xf32> to vector<16x16xf32>
    %cst_505 = arith.constant dense<0.000000e+00> : vector<16x64xf32>
    %775 = tpu.matmul %774, %736, %cst_505 {dimension_numbers = #tpu.dot_dimension_numbers<[1], [0], [0], [1], [0, 0, 1, 1], [], []>} : vector<16x16xf32>, vector<16x64xf32>, vector<16x64xf32> -> vector<16x64xf32>
    %c1_506 = arith.constant 1 : index
    %c1_507 = arith.constant 1 : index
    %c0_508 = arith.constant 0 : index
    %c0_509 = arith.constant 0 : index
    %776 = vector.load %arg10[%c1_506, %c1_507, %c0_508, %c0_509] : memref<3x3x64x128xbf16, #tpu.memory_space<vmem>>, vector<1x1x64x128xbf16>
    %777 = vector.shape_cast %776 : vector<1x1x64x128xbf16> to vector<64x128xbf16>
    %778 = arith.extf %777 : vector<64x128xbf16> to vector<64x128xf32>
    %cst_510 = arith.constant dense<0.000000e+00> : vector<16x128xf32>
    %779 = tpu.matmul %775, %778, %cst_510 {dimension_numbers = #tpu.dot_dimension_numbers<[1], [0], [0], [1], [0, 0, 1, 1], [], []>} : vector<16x64xf32>, vector<64x128xf32>, vector<16x128xf32> -> vector<16x128xf32>
    %780 = arith.addf %772, %779 : vector<16x128xf32>
    %c5_511 = arith.constant 5 : index
    %c0_512 = arith.constant 0 : index
    %c0_513 = arith.constant 0 : index
    %781 = vector.load %arg14[%c5_511, %c0_512, %c0_513] : memref<9x16x16xf32, #tpu.memory_space<vmem>>, vector<1x16x16xf32>
    %782 = vector.shape_cast %781 : vector<1x16x16xf32> to vector<16x16xf32>
    %cst_514 = arith.constant dense<0.000000e+00> : vector<16x64xf32>
    %783 = tpu.matmul %782, %736, %cst_514 {dimension_numbers = #tpu.dot_dimension_numbers<[1], [0], [0], [1], [0, 0, 1, 1], [], []>} : vector<16x16xf32>, vector<16x64xf32>, vector<16x64xf32> -> vector<16x64xf32>
    %c1_515 = arith.constant 1 : index
    %c2_516 = arith.constant 2 : index
    %c0_517 = arith.constant 0 : index
    %c0_518 = arith.constant 0 : index
    %784 = vector.load %arg10[%c1_515, %c2_516, %c0_517, %c0_518] : memref<3x3x64x128xbf16, #tpu.memory_space<vmem>>, vector<1x1x64x128xbf16>
    %785 = vector.shape_cast %784 : vector<1x1x64x128xbf16> to vector<64x128xbf16>
    %786 = arith.extf %785 : vector<64x128xbf16> to vector<64x128xf32>
    %cst_519 = arith.constant dense<0.000000e+00> : vector<16x128xf32>
    %787 = tpu.matmul %783, %786, %cst_519 {dimension_numbers = #tpu.dot_dimension_numbers<[1], [0], [0], [1], [0, 0, 1, 1], [], []>} : vector<16x64xf32>, vector<64x128xf32>, vector<16x128xf32> -> vector<16x128xf32>
    %788 = arith.addf %780, %787 : vector<16x128xf32>
    %c6_520 = arith.constant 6 : index
    %c0_521 = arith.constant 0 : index
    %c0_522 = arith.constant 0 : index
    %789 = vector.load %arg14[%c6_520, %c0_521, %c0_522] : memref<9x16x16xf32, #tpu.memory_space<vmem>>, vector<1x16x16xf32>
    %790 = vector.shape_cast %789 : vector<1x16x16xf32> to vector<16x16xf32>
    %cst_523 = arith.constant dense<0.000000e+00> : vector<16x64xf32>
    %791 = tpu.matmul %790, %736, %cst_523 {dimension_numbers = #tpu.dot_dimension_numbers<[1], [0], [0], [1], [0, 0, 1, 1], [], []>} : vector<16x16xf32>, vector<16x64xf32>, vector<16x64xf32> -> vector<16x64xf32>
    %c2_524 = arith.constant 2 : index
    %c0_525 = arith.constant 0 : index
    %c0_526 = arith.constant 0 : index
    %c0_527 = arith.constant 0 : index
    %792 = vector.load %arg10[%c2_524, %c0_525, %c0_526, %c0_527] : memref<3x3x64x128xbf16, #tpu.memory_space<vmem>>, vector<1x1x64x128xbf16>
    %793 = vector.shape_cast %792 : vector<1x1x64x128xbf16> to vector<64x128xbf16>
    %794 = arith.extf %793 : vector<64x128xbf16> to vector<64x128xf32>
    %cst_528 = arith.constant dense<0.000000e+00> : vector<16x128xf32>
    %795 = tpu.matmul %791, %794, %cst_528 {dimension_numbers = #tpu.dot_dimension_numbers<[1], [0], [0], [1], [0, 0, 1, 1], [], []>} : vector<16x64xf32>, vector<64x128xf32>, vector<16x128xf32> -> vector<16x128xf32>
    %796 = arith.addf %788, %795 : vector<16x128xf32>
    %c7_529 = arith.constant 7 : index
    %c0_530 = arith.constant 0 : index
    %c0_531 = arith.constant 0 : index
    %797 = vector.load %arg14[%c7_529, %c0_530, %c0_531] : memref<9x16x16xf32, #tpu.memory_space<vmem>>, vector<1x16x16xf32>
    %798 = vector.shape_cast %797 : vector<1x16x16xf32> to vector<16x16xf32>
    %cst_532 = arith.constant dense<0.000000e+00> : vector<16x64xf32>
    %799 = tpu.matmul %798, %736, %cst_532 {dimension_numbers = #tpu.dot_dimension_numbers<[1], [0], [0], [1], [0, 0, 1, 1], [], []>} : vector<16x16xf32>, vector<16x64xf32>, vector<16x64xf32> -> vector<16x64xf32>
    %c2_533 = arith.constant 2 : index
    %c1_534 = arith.constant 1 : index
    %c0_535 = arith.constant 0 : index
    %c0_536 = arith.constant 0 : index
    %800 = vector.load %arg10[%c2_533, %c1_534, %c0_535, %c0_536] : memref<3x3x64x128xbf16, #tpu.memory_space<vmem>>, vector<1x1x64x128xbf16>
    %801 = vector.shape_cast %800 : vector<1x1x64x128xbf16> to vector<64x128xbf16>
    %802 = arith.extf %801 : vector<64x128xbf16> to vector<64x128xf32>
    %cst_537 = arith.constant dense<0.000000e+00> : vector<16x128xf32>
    %803 = tpu.matmul %799, %802, %cst_537 {dimension_numbers = #tpu.dot_dimension_numbers<[1], [0], [0], [1], [0, 0, 1, 1], [], []>} : vector<16x64xf32>, vector<64x128xf32>, vector<16x128xf32> -> vector<16x128xf32>
    %804 = arith.addf %796, %803 : vector<16x128xf32>
    %c8_538 = arith.constant 8 : index
    %c0_539 = arith.constant 0 : index
    %c0_540 = arith.constant 0 : index
    %805 = vector.load %arg14[%c8_538, %c0_539, %c0_540] : memref<9x16x16xf32, #tpu.memory_space<vmem>>, vector<1x16x16xf32>
    %806 = vector.shape_cast %805 : vector<1x16x16xf32> to vector<16x16xf32>
    %cst_541 = arith.constant dense<0.000000e+00> : vector<16x64xf32>
    %807 = tpu.matmul %806, %736, %cst_541 {dimension_numbers = #tpu.dot_dimension_numbers<[1], [0], [0], [1], [0, 0, 1, 1], [], []>} : vector<16x16xf32>, vector<16x64xf32>, vector<16x64xf32> -> vector<16x64xf32>
    %c2_542 = arith.constant 2 : index
    %c2_543 = arith.constant 2 : index
    %c0_544 = arith.constant 0 : index
    %c0_545 = arith.constant 0 : index
    %808 = vector.load %arg10[%c2_542, %c2_543, %c0_544, %c0_545] : memref<3x3x64x128xbf16, #tpu.memory_space<vmem>>, vector<1x1x64x128xbf16>
    %809 = vector.shape_cast %808 : vector<1x1x64x128xbf16> to vector<64x128xbf16>
    %810 = arith.extf %809 : vector<64x128xbf16> to vector<64x128xf32>
    %cst_546 = arith.constant dense<0.000000e+00> : vector<16x128xf32>
    %811 = tpu.matmul %807, %810, %cst_546 {dimension_numbers = #tpu.dot_dimension_numbers<[1], [0], [0], [1], [0, 0, 1, 1], [], []>} : vector<16x64xf32>, vector<64x128xf32>, vector<16x128xf32> -> vector<16x128xf32>
    %812 = arith.addf %804, %811 : vector<16x128xf32>
    %cst_547 = arith.constant 0.000000e+00 : f32
    %813 = vector.broadcast %cst_547 : f32 to vector<16x128xf32>
    %814 = arith.maximumf %812, %813 : vector<16x128xf32>
    %cst_548 = arith.constant 0.000000e+00 : f32
    %815 = vector.broadcast %cst_548 : f32 to vector<16x128xf32>
    %c0_549 = arith.constant 0 : index
    %c0_550 = arith.constant 0 : index
    %816 = vector.load %arg13[%c0_549, %c0_550] : memref<1x128xf32, #tpu.memory_space<vmem>>, vector<1x128xf32>
    %817 = vector.broadcast %816 : vector<1x128xf32> to vector<16x128xf32>
    %818 = arith.addf %815, %817 : vector<16x128xf32>
    %c0_551 = arith.constant 0 : index
    %c0_552 = arith.constant 0 : index
    %c0_553 = arith.constant 0 : index
    %819 = vector.load %arg14[%c0_551, %c0_552, %c0_553] : memref<9x16x16xf32, #tpu.memory_space<vmem>>, vector<1x16x16xf32>
    %820 = vector.shape_cast %819 : vector<1x16x16xf32> to vector<16x16xf32>
    %cst_554 = arith.constant dense<0.000000e+00> : vector<16x128xf32>
    %821 = tpu.matmul %820, %814, %cst_554 {dimension_numbers = #tpu.dot_dimension_numbers<[1], [0], [0], [1], [0, 0, 1, 1], [], []>} : vector<16x16xf32>, vector<16x128xf32>, vector<16x128xf32> -> vector<16x128xf32>
    %c0_555 = arith.constant 0 : index
    %c0_556 = arith.constant 0 : index
    %c0_557 = arith.constant 0 : index
    %c0_558 = arith.constant 0 : index
    %822 = vector.load %arg12[%c0_555, %c0_556, %c0_557, %c0_558] : memref<3x3x128x128xbf16, #tpu.memory_space<vmem>>, vector<1x1x128x128xbf16>
    %823 = vector.shape_cast %822 : vector<1x1x128x128xbf16> to vector<128x128xbf16>
    %824 = arith.extf %823 : vector<128x128xbf16> to vector<128x128xf32>
    %cst_559 = arith.constant dense<0.000000e+00> : vector<16x128xf32>
    %825 = tpu.matmul %821, %824, %cst_559 {dimension_numbers = #tpu.dot_dimension_numbers<[1], [0], [0], [1], [0, 0, 1, 1], [], []>} : vector<16x128xf32>, vector<128x128xf32>, vector<16x128xf32> -> vector<16x128xf32>
    %826 = arith.addf %818, %825 : vector<16x128xf32>
    %c1_560 = arith.constant 1 : index
    %c0_561 = arith.constant 0 : index
    %c0_562 = arith.constant 0 : index
    %827 = vector.load %arg14[%c1_560, %c0_561, %c0_562] : memref<9x16x16xf32, #tpu.memory_space<vmem>>, vector<1x16x16xf32>
    %828 = vector.shape_cast %827 : vector<1x16x16xf32> to vector<16x16xf32>
    %cst_563 = arith.constant dense<0.000000e+00> : vector<16x128xf32>
    %829 = tpu.matmul %828, %814, %cst_563 {dimension_numbers = #tpu.dot_dimension_numbers<[1], [0], [0], [1], [0, 0, 1, 1], [], []>} : vector<16x16xf32>, vector<16x128xf32>, vector<16x128xf32> -> vector<16x128xf32>
    %c0_564 = arith.constant 0 : index
    %c1_565 = arith.constant 1 : index
    %c0_566 = arith.constant 0 : index
    %c0_567 = arith.constant 0 : index
    %830 = vector.load %arg12[%c0_564, %c1_565, %c0_566, %c0_567] : memref<3x3x128x128xbf16, #tpu.memory_space<vmem>>, vector<1x1x128x128xbf16>
    %831 = vector.shape_cast %830 : vector<1x1x128x128xbf16> to vector<128x128xbf16>
    %832 = arith.extf %831 : vector<128x128xbf16> to vector<128x128xf32>
    %cst_568 = arith.constant dense<0.000000e+00> : vector<16x128xf32>
    %833 = tpu.matmul %829, %832, %cst_568 {dimension_numbers = #tpu.dot_dimension_numbers<[1], [0], [0], [1], [0, 0, 1, 1], [], []>} : vector<16x128xf32>, vector<128x128xf32>, vector<16x128xf32> -> vector<16x128xf32>
    %834 = arith.addf %826, %833 : vector<16x128xf32>
    %c2_569 = arith.constant 2 : index
    %c0_570 = arith.constant 0 : index
    %c0_571 = arith.constant 0 : index
    %835 = vector.load %arg14[%c2_569, %c0_570, %c0_571] : memref<9x16x16xf32, #tpu.memory_space<vmem>>, vector<1x16x16xf32>
    %836 = vector.shape_cast %835 : vector<1x16x16xf32> to vector<16x16xf32>
    %cst_572 = arith.constant dense<0.000000e+00> : vector<16x128xf32>
    %837 = tpu.matmul %836, %814, %cst_572 {dimension_numbers = #tpu.dot_dimension_numbers<[1], [0], [0], [1], [0, 0, 1, 1], [], []>} : vector<16x16xf32>, vector<16x128xf32>, vector<16x128xf32> -> vector<16x128xf32>
    %c0_573 = arith.constant 0 : index
    %c2_574 = arith.constant 2 : index
    %c0_575 = arith.constant 0 : index
    %c0_576 = arith.constant 0 : index
    %838 = vector.load %arg12[%c0_573, %c2_574, %c0_575, %c0_576] : memref<3x3x128x128xbf16, #tpu.memory_space<vmem>>, vector<1x1x128x128xbf16>
    %839 = vector.shape_cast %838 : vector<1x1x128x128xbf16> to vector<128x128xbf16>
    %840 = arith.extf %839 : vector<128x128xbf16> to vector<128x128xf32>
    %cst_577 = arith.constant dense<0.000000e+00> : vector<16x128xf32>
    %841 = tpu.matmul %837, %840, %cst_577 {dimension_numbers = #tpu.dot_dimension_numbers<[1], [0], [0], [1], [0, 0, 1, 1], [], []>} : vector<16x128xf32>, vector<128x128xf32>, vector<16x128xf32> -> vector<16x128xf32>
    %842 = arith.addf %834, %841 : vector<16x128xf32>
    %c3_578 = arith.constant 3 : index
    %c0_579 = arith.constant 0 : index
    %c0_580 = arith.constant 0 : index
    %843 = vector.load %arg14[%c3_578, %c0_579, %c0_580] : memref<9x16x16xf32, #tpu.memory_space<vmem>>, vector<1x16x16xf32>
    %844 = vector.shape_cast %843 : vector<1x16x16xf32> to vector<16x16xf32>
    %cst_581 = arith.constant dense<0.000000e+00> : vector<16x128xf32>
    %845 = tpu.matmul %844, %814, %cst_581 {dimension_numbers = #tpu.dot_dimension_numbers<[1], [0], [0], [1], [0, 0, 1, 1], [], []>} : vector<16x16xf32>, vector<16x128xf32>, vector<16x128xf32> -> vector<16x128xf32>
    %c1_582 = arith.constant 1 : index
    %c0_583 = arith.constant 0 : index
    %c0_584 = arith.constant 0 : index
    %c0_585 = arith.constant 0 : index
    %846 = vector.load %arg12[%c1_582, %c0_583, %c0_584, %c0_585] : memref<3x3x128x128xbf16, #tpu.memory_space<vmem>>, vector<1x1x128x128xbf16>
    %847 = vector.shape_cast %846 : vector<1x1x128x128xbf16> to vector<128x128xbf16>
    %848 = arith.extf %847 : vector<128x128xbf16> to vector<128x128xf32>
    %cst_586 = arith.constant dense<0.000000e+00> : vector<16x128xf32>
    %849 = tpu.matmul %845, %848, %cst_586 {dimension_numbers = #tpu.dot_dimension_numbers<[1], [0], [0], [1], [0, 0, 1, 1], [], []>} : vector<16x128xf32>, vector<128x128xf32>, vector<16x128xf32> -> vector<16x128xf32>
    %850 = arith.addf %842, %849 : vector<16x128xf32>
    %c4_587 = arith.constant 4 : index
    %c0_588 = arith.constant 0 : index
    %c0_589 = arith.constant 0 : index
    %851 = vector.load %arg14[%c4_587, %c0_588, %c0_589] : memref<9x16x16xf32, #tpu.memory_space<vmem>>, vector<1x16x16xf32>
    %852 = vector.shape_cast %851 : vector<1x16x16xf32> to vector<16x16xf32>
    %cst_590 = arith.constant dense<0.000000e+00> : vector<16x128xf32>
    %853 = tpu.matmul %852, %814, %cst_590 {dimension_numbers = #tpu.dot_dimension_numbers<[1], [0], [0], [1], [0, 0, 1, 1], [], []>} : vector<16x16xf32>, vector<16x128xf32>, vector<16x128xf32> -> vector<16x128xf32>
    %c1_591 = arith.constant 1 : index
    %c1_592 = arith.constant 1 : index
    %c0_593 = arith.constant 0 : index
    %c0_594 = arith.constant 0 : index
    %854 = vector.load %arg12[%c1_591, %c1_592, %c0_593, %c0_594] : memref<3x3x128x128xbf16, #tpu.memory_space<vmem>>, vector<1x1x128x128xbf16>
    %855 = vector.shape_cast %854 : vector<1x1x128x128xbf16> to vector<128x128xbf16>
    %856 = arith.extf %855 : vector<128x128xbf16> to vector<128x128xf32>
    %cst_595 = arith.constant dense<0.000000e+00> : vector<16x128xf32>
    %857 = tpu.matmul %853, %856, %cst_595 {dimension_numbers = #tpu.dot_dimension_numbers<[1], [0], [0], [1], [0, 0, 1, 1], [], []>} : vector<16x128xf32>, vector<128x128xf32>, vector<16x128xf32> -> vector<16x128xf32>
    %858 = arith.addf %850, %857 : vector<16x128xf32>
    %c5_596 = arith.constant 5 : index
    %c0_597 = arith.constant 0 : index
    %c0_598 = arith.constant 0 : index
    %859 = vector.load %arg14[%c5_596, %c0_597, %c0_598] : memref<9x16x16xf32, #tpu.memory_space<vmem>>, vector<1x16x16xf32>
    %860 = vector.shape_cast %859 : vector<1x16x16xf32> to vector<16x16xf32>
    %cst_599 = arith.constant dense<0.000000e+00> : vector<16x128xf32>
    %861 = tpu.matmul %860, %814, %cst_599 {dimension_numbers = #tpu.dot_dimension_numbers<[1], [0], [0], [1], [0, 0, 1, 1], [], []>} : vector<16x16xf32>, vector<16x128xf32>, vector<16x128xf32> -> vector<16x128xf32>
    %c1_600 = arith.constant 1 : index
    %c2_601 = arith.constant 2 : index
    %c0_602 = arith.constant 0 : index
    %c0_603 = arith.constant 0 : index
    %862 = vector.load %arg12[%c1_600, %c2_601, %c0_602, %c0_603] : memref<3x3x128x128xbf16, #tpu.memory_space<vmem>>, vector<1x1x128x128xbf16>
    %863 = vector.shape_cast %862 : vector<1x1x128x128xbf16> to vector<128x128xbf16>
    %864 = arith.extf %863 : vector<128x128xbf16> to vector<128x128xf32>
    %cst_604 = arith.constant dense<0.000000e+00> : vector<16x128xf32>
    %865 = tpu.matmul %861, %864, %cst_604 {dimension_numbers = #tpu.dot_dimension_numbers<[1], [0], [0], [1], [0, 0, 1, 1], [], []>} : vector<16x128xf32>, vector<128x128xf32>, vector<16x128xf32> -> vector<16x128xf32>
    %866 = arith.addf %858, %865 : vector<16x128xf32>
    %c6_605 = arith.constant 6 : index
    %c0_606 = arith.constant 0 : index
    %c0_607 = arith.constant 0 : index
    %867 = vector.load %arg14[%c6_605, %c0_606, %c0_607] : memref<9x16x16xf32, #tpu.memory_space<vmem>>, vector<1x16x16xf32>
    %868 = vector.shape_cast %867 : vector<1x16x16xf32> to vector<16x16xf32>
    %cst_608 = arith.constant dense<0.000000e+00> : vector<16x128xf32>
    %869 = tpu.matmul %868, %814, %cst_608 {dimension_numbers = #tpu.dot_dimension_numbers<[1], [0], [0], [1], [0, 0, 1, 1], [], []>} : vector<16x16xf32>, vector<16x128xf32>, vector<16x128xf32> -> vector<16x128xf32>
    %c2_609 = arith.constant 2 : index
    %c0_610 = arith.constant 0 : index
    %c0_611 = arith.constant 0 : index
    %c0_612 = arith.constant 0 : index
    %870 = vector.load %arg12[%c2_609, %c0_610, %c0_611, %c0_612] : memref<3x3x128x128xbf16, #tpu.memory_space<vmem>>, vector<1x1x128x128xbf16>
    %871 = vector.shape_cast %870 : vector<1x1x128x128xbf16> to vector<128x128xbf16>
    %872 = arith.extf %871 : vector<128x128xbf16> to vector<128x128xf32>
    %cst_613 = arith.constant dense<0.000000e+00> : vector<16x128xf32>
    %873 = tpu.matmul %869, %872, %cst_613 {dimension_numbers = #tpu.dot_dimension_numbers<[1], [0], [0], [1], [0, 0, 1, 1], [], []>} : vector<16x128xf32>, vector<128x128xf32>, vector<16x128xf32> -> vector<16x128xf32>
    %874 = arith.addf %866, %873 : vector<16x128xf32>
    %c7_614 = arith.constant 7 : index
    %c0_615 = arith.constant 0 : index
    %c0_616 = arith.constant 0 : index
    %875 = vector.load %arg14[%c7_614, %c0_615, %c0_616] : memref<9x16x16xf32, #tpu.memory_space<vmem>>, vector<1x16x16xf32>
    %876 = vector.shape_cast %875 : vector<1x16x16xf32> to vector<16x16xf32>
    %cst_617 = arith.constant dense<0.000000e+00> : vector<16x128xf32>
    %877 = tpu.matmul %876, %814, %cst_617 {dimension_numbers = #tpu.dot_dimension_numbers<[1], [0], [0], [1], [0, 0, 1, 1], [], []>} : vector<16x16xf32>, vector<16x128xf32>, vector<16x128xf32> -> vector<16x128xf32>
    %c2_618 = arith.constant 2 : index
    %c1_619 = arith.constant 1 : index
    %c0_620 = arith.constant 0 : index
    %c0_621 = arith.constant 0 : index
    %878 = vector.load %arg12[%c2_618, %c1_619, %c0_620, %c0_621] : memref<3x3x128x128xbf16, #tpu.memory_space<vmem>>, vector<1x1x128x128xbf16>
    %879 = vector.shape_cast %878 : vector<1x1x128x128xbf16> to vector<128x128xbf16>
    %880 = arith.extf %879 : vector<128x128xbf16> to vector<128x128xf32>
    %cst_622 = arith.constant dense<0.000000e+00> : vector<16x128xf32>
    %881 = tpu.matmul %877, %880, %cst_622 {dimension_numbers = #tpu.dot_dimension_numbers<[1], [0], [0], [1], [0, 0, 1, 1], [], []>} : vector<16x128xf32>, vector<128x128xf32>, vector<16x128xf32> -> vector<16x128xf32>
    %882 = arith.addf %874, %881 : vector<16x128xf32>
    %c8_623 = arith.constant 8 : index
    %c0_624 = arith.constant 0 : index
    %c0_625 = arith.constant 0 : index
    %883 = vector.load %arg14[%c8_623, %c0_624, %c0_625] : memref<9x16x16xf32, #tpu.memory_space<vmem>>, vector<1x16x16xf32>
    %884 = vector.shape_cast %883 : vector<1x16x16xf32> to vector<16x16xf32>
    %cst_626 = arith.constant dense<0.000000e+00> : vector<16x128xf32>
    %885 = tpu.matmul %884, %814, %cst_626 {dimension_numbers = #tpu.dot_dimension_numbers<[1], [0], [0], [1], [0, 0, 1, 1], [], []>} : vector<16x16xf32>, vector<16x128xf32>, vector<16x128xf32> -> vector<16x128xf32>
    %c2_627 = arith.constant 2 : index
    %c2_628 = arith.constant 2 : index
    %c0_629 = arith.constant 0 : index
    %c0_630 = arith.constant 0 : index
    %886 = vector.load %arg12[%c2_627, %c2_628, %c0_629, %c0_630] : memref<3x3x128x128xbf16, #tpu.memory_space<vmem>>, vector<1x1x128x128xbf16>
    %887 = vector.shape_cast %886 : vector<1x1x128x128xbf16> to vector<128x128xbf16>
    %888 = arith.extf %887 : vector<128x128xbf16> to vector<128x128xf32>
    %cst_631 = arith.constant dense<0.000000e+00> : vector<16x128xf32>
    %889 = tpu.matmul %885, %888, %cst_631 {dimension_numbers = #tpu.dot_dimension_numbers<[1], [0], [0], [1], [0, 0, 1, 1], [], []>} : vector<16x128xf32>, vector<128x128xf32>, vector<16x128xf32> -> vector<16x128xf32>
    %890 = arith.addf %882, %889 : vector<16x128xf32>
    %cst_632 = arith.constant 0.000000e+00 : f32
    %891 = vector.broadcast %cst_632 : f32 to vector<16x128xf32>
    %892 = arith.maximumf %890, %891 : vector<16x128xf32>
    %cst_633 = arith.constant dense<0.000000e+00> : vector<128xf32>
    %893 = vector.multi_reduction <add>, %892, %cst_633 [0] : vector<16x128xf32> to vector<128xf32>
    %894 = vector.shape_cast %893 : vector<128xf32> to vector<1x128xf32>
    %cst_634 = arith.constant 6.250000e-02 : f32
    %895 = vector.broadcast %cst_634 : f32 to vector<1x128xf32>
    %896 = arith.mulf %894, %895 : vector<1x128xf32>
    %c0_635 = arith.constant 0 : index
    %c0_636 = arith.constant 0 : index
    %897 = vector.load %arg15[%c0_635, %c0_636] : memref<1x128xf32, #tpu.memory_space<vmem>>, vector<1x128xf32>
    %898 = arith.mulf %896, %897 : vector<1x128xf32>
    %cst_637 = arith.constant dense<0.000000e+00> : vector<1xf32>
    %899 = vector.multi_reduction <add>, %898, %cst_637 [1] : vector<1x128xf32> to vector<1xf32>
    %900 = vector.shape_cast %899 : vector<1xf32> to vector<1x1xf32>
    %c0_638 = arith.constant 0 : index
    %c0_639 = arith.constant 0 : index
    %901 = vector.load %arg16[%c0_638, %c0_639] : memref<1x1xf32, #tpu.memory_space<vmem>>, vector<1x1xf32>
    %902 = arith.addf %900, %901 : vector<1x1xf32>
    %c0_640 = arith.constant 0 : index
    %c0_641 = arith.constant 0 : index
    %c0_642 = arith.constant 0 : index
    %903 = vector.load %arg17[%c0_640, %c0_641, %c0_642] : memref<1x1x1xf32, #tpu.memory_space<vmem>>, vector<1x1x1xf32>
    %904 = vector.shape_cast %903 : vector<1x1x1xf32> to vector<1x1xf32>
    %905 = vector.shape_cast %902 : vector<1x1xf32> to vector<1x1x1xf32>
    tpu.vector_store %arg17[%c0_640, %c0_641, %c0_642], %905 {strides = array<i32>} : memref<1x1x1xf32, #tpu.memory_space<vmem>>, vector<1x1x1xf32>,
    return
  }
  func.func @transform_0(%arg0: i32) -> (i32, i32) {
    %c0_i32 = arith.constant 0 : i32
    %c0_i32_0 = arith.constant 0 : i32
    return %arg0, %c0_i32 : i32, i32
  }
  func.func @transform_1(%arg0: i32) -> (i32, i32) {
    %c0_i32 = arith.constant 0 : i32
    %c0_i32_0 = arith.constant 0 : i32
    %c0_i32_1 = arith.constant 0 : i32
    return %c0_i32, %c0_i32_0 : i32, i32
  }
  func.func @transform_2(%arg0: i32) -> (i32, i32) {
    %c0_i32 = arith.constant 0 : i32
    %c0_i32_0 = arith.constant 0 : i32
    %c0_i32_1 = arith.constant 0 : i32
    return %c0_i32, %c0_i32_0 : i32, i32
  }
  func.func @transform_3(%arg0: i32) -> (i32, i32, i32, i32) {
    %c0_i32 = arith.constant 0 : i32
    %c0_i32_0 = arith.constant 0 : i32
    %c0_i32_1 = arith.constant 0 : i32
    %c0_i32_2 = arith.constant 0 : i32
    %c0_i32_3 = arith.constant 0 : i32
    return %c0_i32, %c0_i32_0, %c0_i32_1, %c0_i32_2 : i32, i32, i32, i32
  }
  func.func @transform_4(%arg0: i32) -> (i32, i32) {
    %c0_i32 = arith.constant 0 : i32
    %c0_i32_0 = arith.constant 0 : i32
    %c0_i32_1 = arith.constant 0 : i32
    return %c0_i32, %c0_i32_0 : i32, i32
  }
  func.func @transform_5(%arg0: i32) -> (i32, i32, i32, i32) {
    %c0_i32 = arith.constant 0 : i32
    %c0_i32_0 = arith.constant 0 : i32
    %c0_i32_1 = arith.constant 0 : i32
    %c0_i32_2 = arith.constant 0 : i32
    %c0_i32_3 = arith.constant 0 : i32
    return %c0_i32, %c0_i32_0, %c0_i32_1, %c0_i32_2 : i32, i32, i32, i32
  }
  func.func @transform_6(%arg0: i32) -> (i32, i32) {
    %c0_i32 = arith.constant 0 : i32
    %c0_i32_0 = arith.constant 0 : i32
    %c0_i32_1 = arith.constant 0 : i32
    return %c0_i32, %c0_i32_0 : i32, i32
  }
  func.func @transform_7(%arg0: i32) -> (i32, i32, i32, i32) {
    %c0_i32 = arith.constant 0 : i32
    %c0_i32_0 = arith.constant 0 : i32
    %c0_i32_1 = arith.constant 0 : i32
    %c0_i32_2 = arith.constant 0 : i32
    %c0_i32_3 = arith.constant 0 : i32
    return %c0_i32, %c0_i32_0, %c0_i32_1, %c0_i32_2 : i32, i32, i32, i32
  }
  func.func @transform_8(%arg0: i32) -> (i32, i32) {
    %c0_i32 = arith.constant 0 : i32
    %c0_i32_0 = arith.constant 0 : i32
    %c0_i32_1 = arith.constant 0 : i32
    return %c0_i32, %c0_i32_0 : i32, i32
  }
  func.func @transform_9(%arg0: i32) -> (i32, i32, i32, i32) {
    %c0_i32 = arith.constant 0 : i32
    %c0_i32_0 = arith.constant 0 : i32
    %c0_i32_1 = arith.constant 0 : i32
    %c0_i32_2 = arith.constant 0 : i32
    %c0_i32_3 = arith.constant 0 : i32
    return %c0_i32, %c0_i32_0, %c0_i32_1, %c0_i32_2 : i32, i32, i32, i32
  }
  func.func @transform_10(%arg0: i32) -> (i32, i32) {
    %c0_i32 = arith.constant 0 : i32
    %c0_i32_0 = arith.constant 0 : i32
    %c0_i32_1 = arith.constant 0 : i32
    return %c0_i32, %c0_i32_0 : i32, i32
  }
  func.func @transform_11(%arg0: i32) -> (i32, i32, i32, i32) {
    %c0_i32 = arith.constant 0 : i32
    %c0_i32_0 = arith.constant 0 : i32
    %c0_i32_1 = arith.constant 0 : i32
    %c0_i32_2 = arith.constant 0 : i32
    %c0_i32_3 = arith.constant 0 : i32
    return %c0_i32, %c0_i32_0, %c0_i32_1, %c0_i32_2 : i32, i32, i32, i32
  }
  func.func @transform_12(%arg0: i32) -> (i32, i32) {
    %c0_i32 = arith.constant 0 : i32
    %c0_i32_0 = arith.constant 0 : i32
    %c0_i32_1 = arith.constant 0 : i32
    return %c0_i32, %c0_i32_0 : i32, i32
  }
  func.func @transform_13(%arg0: i32) -> (i32, i32, i32) {
    %c0_i32 = arith.constant 0 : i32
    %c0_i32_0 = arith.constant 0 : i32
    %c0_i32_1 = arith.constant 0 : i32
    %c0_i32_2 = arith.constant 0 : i32
    return %c0_i32, %c0_i32_0, %c0_i32_1 : i32, i32, i32
  }
  func.func @transform_14(%arg0: i32) -> (i32, i32) {
    %c0_i32 = arith.constant 0 : i32
    %c0_i32_0 = arith.constant 0 : i32
    %c0_i32_1 = arith.constant 0 : i32
    return %c0_i32, %c0_i32_0 : i32, i32
  }
  func.func @transform_15(%arg0: i32) -> (i32, i32) {
    %c0_i32 = arith.constant 0 : i32
    %c0_i32_0 = arith.constant 0 : i32
    %c0_i32_1 = arith.constant 0 : i32
    return %c0_i32, %c0_i32_0 : i32, i32
  }
  func.func @transform_16(%arg0: i32) -> (i32, i32, i32) {
    %c0_i32 = arith.constant 0 : i32
    %c0_i32_0 = arith.constant 0 : i32
    %c0_i32_1 = arith.constant 0 : i32
    return %arg0, %c0_i32, %c0_i32_0 : i32, i32, i32
  }
}

</mosaic_0001>

<bundles_post_ra>
// kernel: small_cnn_forward.1
= control target key start
LH: loop header
LB: loop body
LE: loop exit
PB: predicated region body
PF: predicated region fallthrough
CT: control target
= control target key end

     0   :  { %s15407_s23 = smov 0   ;;  %s18627_s0 = inlined_call_operand.vmem [shape: f32[512,27], index: 0, kind: input, shape index: {}]   ;;  %s18628_s1 = inlined_call_operand.vmem [shape: bf16[27,16], index: 1, kind: input, shape index: {}]   ;;  %s18629_s2 = inlined_call_operand.vmem [shape: f32[1,16], index: 2, kind: input, shape index: {}]   ;;  %s18630_s3 = inlined_call_operand.vmem [shape: bf16[3,3,16,32], index: 3, kind: input, shape index: {}]   ;;  %s18631_s4 = inlined_call_operand.vmem [shape: f32[1,32], index: 4, kind: input, shape index: {}]   ;;  %s18632_s5 = inlined_call_operand.vmem [shape: bf16[3,3,32,64], index: 5, kind: input, shape index: {}]   ;;  %s18633_s6 = inlined_call_operand.vmem [shape: f32[1,64], index: 6, kind: input, shape index: {}]   ;;  %s18634_s7 = inlined_call_operand.vmem [shape: bf16[3,3,64,64], index: 7, kind: input, shape index: {}]   ;;  %s18635_s8 = inlined_call_operand.vmem [shape: f32[1,64], index: 8, kind: input, shape index: {}]   ;;  %s18636_s9 = inlined_call_operand.vmem [shape: bf16[3,3,64,128], index: 9, kind: input, shape index: {}]   ;;  %s18637_s10 = inlined_call_operand.vmem [shape: f32[1,128], index: 10, kind: input, shape index: {}]   ;;  %s18638_s11 = inlined_call_operand.vmem [shape: bf16[3,3,128,128], index: 11, kind: input, shape index: {}]   ;;  %s18639_s12 = inlined_call_operand.vmem [shape: f32[1,128], index: 12, kind: input, shape index: {}]   ;;  %s18640_s13 = inlined_call_operand.vmem [shape: f32[9,16,16], index: 13, kind: input, shape index: {}]   ;;  %s18641_s14 = inlined_call_operand.vmem [shape: f32[1,128], index: 14, kind: input, shape index: {}]   ;;  %s18642_s15 = inlined_call_operand.<no memory space> [shape: f32[1,1], index: 15, kind: input, shape index: {}]   ;;  %s18643_s16 = inlined_call_operand.vmem [shape: f32[2,1,1], index: 16, kind: output, shape index: {}]  }
   0x1   :  { %18665 = sst [smem:[#allocation114_spill]] %s18627_s0  ;;  %v21_v0 = vstv %s18642_s15 }
   0x2   :  { %22 = vst [vmem:[#allocation6] sm:$0x1] %v21_v0 }
   0x3 LB: > { %s15413_s24 = sadd.s32 4294967295, %s15316_s23   ;;  %p11099_p0 = scmp.ge.s32.totalorder %s15316_s23, 1  ;;  %s15316_s23 = sphi %s15407_s23, %s28_s23  }
   0x4   : > { %p465_p1 = scmp.lt.s32.totalorder %s15316_s23, 3 }
   0x6   : > { %p466_p2 = pnand %p11099_p0, %p465_p1 }
   0x8   : > { %469 = sbr.rel (%p466_p2) target bundleno = 3729 (0xe91), region = 84 }
   0xd   : > { %v557_v1 = vld [vmem:[%s18628_s1 + $0xc] sm:$0x3]  ;;  %vm666_vm0 = vcmask 1042432   ;;  %v556_v2 = vld [vmem:[%s18628_s1 + $0x8] sm:$0xf]  ;;  %v11950_v3 = vld [vmem:[%s18628_s1] sm:$0xff]  }
   0xe   : > { %v561_v4 = vunpack.c.l.bf16 %v557_v1  ;;  %v560_v5 = vunpack.c.l.bf16 %v556_v2  ;;  %s11100_s30 = sshll.u32 %s15413_s24, 5  ;;  %v11952_v6 = vunpack.c.h.bf16 %v11950_v3  ;;  %v11951_v7 = vunpack.c.l.bf16 %v11950_v3  ;;  %s18666_s19 = sld [smem:[#allocation114_spill]]  ;;  %v11954_v41 = vld [vmem:[%s18630_s3] sm:$0xff]   ;;  %v12638_v43 = vld [vmem:[%s18630_s3 + $0x10] sm:$0xff]   ;;  %v12637_v51 = vld [vmem:[%s18630_s3 + $0x8] sm:$0xff]  }
   0xf   : > { %p514_p3 = scmp.lt.s32.totalorder %s11100_s30, 63  ;;  %vm569_vm1 = vcmask 220160   ;;  %vm927_vm2 = vcmask 130048   ;;  %v18644_v40 = vmov 0.0   ;;  %vm930_vm3 = vcmask 123904   ;;  %v12640_v53 = vld [vmem:[%s18630_s3 + $0x20] sm:$0xff]  }
  0x10   : > { %13721 = vmatprep.subr.msk.mxu0 %vm666_vm0, %v561_v4  ;;  %933 = vst.msk [vmem:[#allocation2 + $0x20] sm:$0xff] %vm927_vm2, %v18644_v40  ;;  %928 = vst.msk [vmem:[#allocation2] sm:$0xff] %vm927_vm2, %v18644_v40  ;;  %v11956_v42 = vunpack.c.h.bf16 %v11954_v41  ;;  %v11955_v44 = vunpack.c.l.bf16 %v11954_v41  ;;  %v15610_v45 = vunpack.c.h.bf16 %v12638_v43  ;;  %v15613_v47 = vunpack.c.l.bf16 %v12638_v43  ;;  %v15632_v57 = vld [vmem:[%s18630_s3 + $0x30] sm:$0xff]   ;;  %v15640_v59 = vld [vmem:[%s18629_s2] ss:$0 sm:$0xff]  ;;  %p519_p4 = scmp.lt.s32.totalorder %s15413_s24, 1 }
  0x11   : > { %13722 = vmatpush3.msk.msra.mxu0 %vm666_vm0, %v561_v4  ;;  %s18916_s30 = smov (!%p514_p3, %s11100_s30), 63  ;;  %929 = vst.msk [vmem:[#allocation2 + $0x8] sm:$0xff] %vm927_vm2, %v18644_v40  ;;  %932 = vst.msk [vmem:[#allocation2 + $0x18] sm:$0xff] %vm927_vm2, %v18644_v40  ;;  %v11960_v52 = vunpack.c.h.bf16 %v12637_v51  ;;  %v11972_v54 = vunpack.c.h.bf16 %v12640_v53  ;;  %v11971_v55 = vunpack.c.l.bf16 %v12640_v53  ;;  %v11959_v56 = vunpack.c.l.bf16 %v12637_v51 }
  0x12   : > { %13723 = vmatprep.subr.mxu0 %v560_v5  ;;  %s11101_s0 = sshll.u32 %s18916_s30, 3  ;;  %935 = vst.msk [vmem:[#allocation2 + $0x30] sm:$0xff] %vm927_vm2, %v18644_v40  ;;  %936 = vst.msk [vmem:[#allocation2 + $0x38] sm:$0xff] %vm927_vm2, %v18644_v40  ;;  %13777 = vmatprep.subr.mxu1 %v11956_v42  ;;  %v11980_v58 = vunpack.c.h.bf16 %v15632_v57  ;;  %vm4566_vm4 = vcmask 261120   ;;  %vm4568_vm5 = vcmask 254976   ;;  %vm4595_vm6 = vcmask 253952  }
  0x13   : > { %13724 = vmatpush3.msra.mxu0 %v560_v5  ;;  %938 = vst.msk [vmem:[#allocation2 + $0x48] sm:$0xff] %vm927_vm2, %v18644_v40  ;;  %939 = vst.msk [vmem:[#allocation2 + $0x50] sm:$0xff] %vm927_vm2, %v18644_v40  ;;  %13778 = vmatpush3.msra.mxu1 %v11956_v42  ;;  %vm4597_vm7 = vcmask 256002   ;;  %vm4599_vm8 = vcmask 258052   ;;  %vm4601_vm9 = vcmask 260102   ;;  %vm6145_vm10 = vcmask 523264  }
  0x14   : > { %13725 = vmatprep.subr.mxu0 %v11952_v6  ;;  %s15430_s20 = scalar_lea.vmem %s18666_s19, %s11101_s0  ;;  %941 = vst.msk [vmem:[#allocation2 + $0x60] sm:$0xff] %vm927_vm2, %v18644_v40  ;;  %942 = vst.msk [vmem:[#allocation2 + $0x68] sm:$0xff] %vm927_vm2, %v18644_v40  ;;  %13779 = vmatprep.subr.mxu1 %v11955_v44  ;;  %vm6147_vm11 = vcmask 517120   ;;  %vm7655_vm12 = vcmask 516096   ;;  %vm7657_vm13 = vcmask 518146   ;;  %vm7659_vm14 = vcmask 520196  }
  0x15   : > { %13726 = vmatpush3.msra.mxu0 %v11952_v6  ;;  %v522_v8 = vld [vmem:[%s15430_s20] sm:$0xff]  ;;  %v523_v9 = vld [vmem:[%s15430_s20 + $0x8] sm:$0xff]  ;;  %v524_v10 = vld [vmem:[%s15430_s20 + $0x10] sm:$0xff]  ;;  %944 = vst.msk [vmem:[#allocation2 + $0x78] sm:$0xff] %vm927_vm2, %v18644_v40  ;;  %13780 = vmatpush3.msra.mxu1 %v11955_v44  ;;  %vm7661_vm15 = vcmask 522246   ;;  %vm11040_vm0 = vcmask 1040384  }
  0x16   : > { %13727 = vmatprep.subr.mxu0 %v11951_v7  ;;  %13729 = vmatprep.mubr.msk.f32.mxu0 %vm569_vm1, %v522_v8  ;;  %v525_v11 = vld [vmem:[%s15430_s20 + $0x18] sm:$0xff]  ;;  %v526_v12 = vld [vmem:[%s15430_s20 + $0x20] sm:$0xff]  ;;  %v527_v13 = vld [vmem:[%s15430_s20 + $0x28] sm:$0xff]  ;;  %945 = vst.msk [vmem:[#allocation2 + $0x80] sm:$0xff] %vm927_vm2, %v18644_v40  ;;  %s18918_s24 = smov (!%p519_p4, %s15413_s24), 1 }
  0x17   : > { %13728 = vmatpush3.msra.mxu0 %v11951_v7  ;;  %v528_v14 = vld [vmem:[%s15430_s20 + $0x30] sm:$0xff]  ;;  %v529_v15 = vld [vmem:[%s15430_s20 + $0x38] sm:$0xff]  ;;  %v530_v16 = vld [vmem:[%s15430_s20 + $0x40] sm:$0xff]  ;;  %947 = vst.msk [vmem:[#allocation2 + $0x90] sm:$0xff] %vm927_vm2, %v18644_v40  ;;  %13829 = vmatprep.subr.mxu1 %v11960_v52  ;;  %s521_s15 = scalar_lea.vmem %s18643_s16, %s18918_s24 }
  0x18   : > { %13730 = vmatmul.mubr.msk.f32.vlgmr.msra.gmra.mxu0 %vm569_vm1, %v523_v9  ;;  %v531_v17 = vld [vmem:[%s15430_s20 + $0x48] sm:$0xff]  ;;  %v532_v18 = vld [vmem:[%s15430_s20 + $0x50] sm:$0xff]  ;;  %v533_v19 = vld [vmem:[%s15430_s20 + $0x58] sm:$0xff]  ;;  %948 = vst.msk [vmem:[#allocation2 + $0x98] sm:$0xff] %vm927_vm2, %v18644_v40  ;;  %13881 = vmatprep.subr.mxu0 %v15610_v45 }
  0x19   : > { %13732 = vmatprep.mubr.msk.f32.mxu0 %vm569_vm1, %v524_v10  ;;  %v534_v20 = vld [vmem:[%s15430_s20 + $0x60] sm:$0xff]  ;;  %v535_v21 = vld [vmem:[%s15430_s20 + $0x68] sm:$0xff]  ;;  %v536_v22 = vld [vmem:[%s15430_s20 + $0x70] sm:$0xff]  ;;  %950 = vst.msk [vmem:[#allocation2 + $0xa8] sm:$0xff] %vm927_vm2, %v18644_v40  ;;  %13882 = vmatpush3.msra.mxu0 %v15610_v45 }
  0x1a   : > { %v537_v23 = vld [vmem:[%s15430_s20 + $0x78] sm:$0xff]  ;;  %v538_v24 = vld [vmem:[%s15430_s20 + $0x80] sm:$0xff]  ;;  %v539_v25 = vld [vmem:[%s15430_s20 + $0x88] sm:$0xff]  ;;  %951 = vst.msk [vmem:[#allocation2 + $0xb0] sm:$0xff] %vm927_vm2, %v18644_v40  ;;  %13883 = vmatprep.subr.mxu0 %v15613_v47 }
  0x1b   : > { %v540_v26 = vld [vmem:[%s15430_s20 + $0x90] sm:$0xff]  ;;  %v541_v27 = vld [vmem:[%s15430_s20 + $0x98] sm:$0xff]  ;;  %v542_v28 = vld [vmem:[%s15430_s20 + $0xa0] sm:$0xff]  ;;  %953 = vst.msk [vmem:[#allocation2 + $0xc0] sm:$0xff] %vm927_vm2, %v18644_v40  ;;  %13884 = vmatpush3.msra.mxu0 %v15613_v47 }
  0x1c   : > { %13733 = vmatmul.mubr.msk.f32.gmra.mxu0 %vm569_vm1, %v525_v11  ;;  %v543_v29 = vld [vmem:[%s15430_s20 + $0xa8] sm:$0xff]  ;;  %v544_v30 = vld [vmem:[%s15430_s20 + $0xb0] sm:$0xff]  ;;  %v545_v31 = vld [vmem:[%s15430_s20 + $0xb8] sm:$0xff]  ;;  %954 = vst.msk [vmem:[#allocation2 + $0xc8] sm:$0xff] %vm927_vm2, %v18644_v40  ;;  %13985 = vmatprep.subr.mxu0 %v11972_v54 }
  0x1d   : > { %13735 = vmatprep.mubr.msk.f32.mxu0 %vm569_vm1, %v526_v12  ;;  %v546_v32 = vld [vmem:[%s15430_s20 + $0xc0] sm:$0xff]  ;;  %v547_v33 = vld [vmem:[%s15430_s20 + $0xc8] sm:$0xff]  ;;  %v548_v34 = vld [vmem:[%s15430_s20 + $0xd0] sm:$0xff]  ;;  %956 = vst.msk [vmem:[#allocation2 + $0xd8] sm:$0xff] %vm927_vm2, %v18644_v40 }
  0x1e   : > { %v549_v35 = vld [vmem:[%s15430_s20 + $0xd8] sm:$0xff]  ;;  %v550_v36 = vld [vmem:[%s15430_s20 + $0xe0] sm:$0xff]  ;;  %v551_v37 = vld [vmem:[%s15430_s20 + $0xe8] sm:$0xff]  ;;  %957 = vst.msk [vmem:[#allocation2 + $0xe0] sm:$0xff] %vm927_vm2, %v18644_v40 }
  0x1f   : > { %v552_v38 = vld [vmem:[%s15430_s20 + $0xf0] sm:$0xff]  ;;  %v553_v39 = vld [vmem:[%s15430_s20 + $0xf8] sm:$0xff]  ;;  %959 = vst.msk [vmem:[#allocation2 + $0xf0] sm:$0xff] %vm927_vm2, %v18644_v40  ;;  %960 = vst.msk [vmem:[#allocation2 + $0xf8] sm:$0xff] %vm927_vm2, %v18644_v40 }
  0x20   : > { %13736 = vmatmul.mubr.msk.f32.gmra.mxu0 %vm569_vm1, %v527_v13  ;;  %962 = vst.msk [vmem:[#allocation2 + $0x108] sm:$0xff] %vm927_vm2, %v18644_v40  ;;  %963 = vst.msk [vmem:[#allocation2 + $0x110] sm:$0xff] %vm927_vm2, %v18644_v40  ;;  %v1024_v46 = vld [vmem:[#allocation2] sm:$0xff]  ;;  %v1025_v48 = vld [vmem:[#allocation2 + $0x8] sm:$0xff] }
  0x21   : > { %13738 = vmatprep.mubr.msk.f32.mxu0 %vm569_vm1, %v528_v14  ;;  %965 = vst.msk [vmem:[#allocation2 + $0x120] sm:$0xff] %vm927_vm2, %v18644_v40  ;;  %966 = vst.msk [vmem:[#allocation2 + $0x128] sm:$0xff] %vm927_vm2, %v18644_v40  ;;  %13781 = vmatprep.mubr.msk.f32.mxu1 %vm927_vm2, %v1024_v46  ;;  %v1803_v49 = vld [vmem:[#allocation2 + $0x2] sm:$0xff] }
  0x22   : > { %968 = vst.msk [vmem:[#allocation2 + $0x138] sm:$0xff] %vm927_vm2, %v18644_v40  ;;  %969 = vst.msk [vmem:[#allocation2 + $0x140] sm:$0xff] %vm927_vm2, %v18644_v40  ;;  %13782 = vmatmul.mubr.msk.f32.vlgmr.msra.gmra.mxu1 %vm927_vm2, %v1025_v48 }
  0x23   : > { %971 = vst.msk [vmem:[#allocation2 + $0x150] sm:$0xff] %vm927_vm2, %v18644_v40  ;;  %972 = vst.msk [vmem:[#allocation2 + $0x158] sm:$0xff] %vm927_vm2, %v18644_v40  ;;  %13830 = vmatpush3.msra.mxu1 %v11960_v52 }
  0x24   : > { %13739 = vmatmul.mubr.msk.f32.gmra.mxu0 %vm569_vm1, %v529_v15  ;;  %974 = vst.msk [vmem:[#allocation2 + $0x168] sm:$0xff] %vm927_vm2, %v18644_v40  ;;  %975 = vst.msk [vmem:[#allocation2 + $0x170] sm:$0xff] %vm927_vm2, %v18644_v40  ;;  %13831 = vmatprep.subr.mxu1 %v11959_v56 }
  0x25   : > { %13741 = vmatprep.mubr.msk.f32.mxu0 %vm569_vm1, %v530_v16  ;;  %977 = vst.msk [vmem:[#allocation2 + $0x180] sm:$0xff] %vm927_vm2, %v18644_v40  ;;  %978 = vst.msk [vmem:[#allocation2 + $0x188] sm:$0xff] %vm927_vm2, %v18644_v40  ;;  %13832 = vmatpush3.msra.mxu1 %v11959_v56 }
  0x26   : > { %980 = vst.msk [vmem:[#allocation2 + $0x198] sm:$0xff] %vm927_vm2, %v18644_v40  ;;  %981 = vst.msk [vmem:[#allocation2 + $0x1a0] sm:$0xff] %vm927_vm2, %v18644_v40  ;;  %15289 = vmatprep.subr.mxu1 %v15610_v45 }
  0x27   : > { %934 = vst.msk [vmem:[#allocation2 + $0x28] sm:$0x3] %vm930_vm3, %v18644_v40  ;;  %931 = vst.msk [vmem:[#allocation2 + $0x10] sm:$0x3] %vm930_vm3, %v18644_v40 }
  0x28   : > { %13742 = vmatmul.mubr.msk.f32.gmra.mxu0 %vm569_vm1, %v531_v17  ;;  %937 = vst.msk [vmem:[#allocation2 + $0x40] sm:$0x3] %vm930_vm3, %v18644_v40  ;;  %940 = vst.msk [vmem:[#allocation2 + $0x58] sm:$0x3] %vm930_vm3, %v18644_v40 }
  0x29   : > { %13744 = vmatprep.mubr.msk.f32.mxu0 %vm569_vm1, %v532_v18  ;;  %943 = vst.msk [vmem:[#allocation2 + $0x70] sm:$0x3] %vm930_vm3, %v18644_v40  ;;  %946 = vst.msk [vmem:[#allocation2 + $0x88] sm:$0x3] %vm930_vm3, %v18644_v40 }
  0x2a   : > { %949 = vst.msk [vmem:[#allocation2 + $0xa0] sm:$0x3] %vm930_vm3, %v18644_v40  ;;  %952 = vst.msk [vmem:[#allocation2 + $0xb8] sm:$0x3] %vm930_vm3, %v18644_v40 }
  0x2b   : > { %955 = vst.msk [vmem:[#allocation2 + $0xd0] sm:$0x3] %vm930_vm3, %v18644_v40  ;;  %958 = vst.msk [vmem:[#allocation2 + $0xe8] sm:$0x3] %vm930_vm3, %v18644_v40 }
  0x2c   : > { %13745 = vmatmul.mubr.msk.f32.gmra.mxu0 %vm569_vm1, %v533_v19  ;;  %961 = vst.msk [vmem:[#allocation2 + $0x100] sm:$0x3] %vm930_vm3, %v18644_v40  ;;  %964 = vst.msk [vmem:[#allocation2 + $0x118] sm:$0x3] %vm930_vm3, %v18644_v40 }
  0x2d   : > { %13747 = vmatprep.mubr.msk.f32.mxu0 %vm569_vm1, %v534_v20  ;;  %967 = vst.msk [vmem:[#allocation2 + $0x130] sm:$0x3] %vm930_vm3, %v18644_v40  ;;  %970 = vst.msk [vmem:[#allocation2 + $0x148] sm:$0x3] %vm930_vm3, %v18644_v40 }
  0x2e   : > { %973 = vst.msk [vmem:[#allocation2 + $0x160] sm:$0x3] %vm930_vm3, %v18644_v40  ;;  %976 = vst.msk [vmem:[#allocation2 + $0x178] sm:$0x3] %vm930_vm3, %v18644_v40  ;;  %v1804_v50 = vld [vmem:[#allocation2 + $0xa] sm:$0xff] }
  0x2f   : > { %979 = vst.msk [vmem:[#allocation2 + $0x190] sm:$0x3] %vm930_vm3, %v18644_v40  ;;  %982 = vst.msk [vmem:[#allocation2 + $0x1a8] sm:$0x3] %vm930_vm3, %v18644_v40 }
  0x30   : > { %13748 = vmatmul.mubr.msk.f32.gmra.mxu0 %vm569_vm1, %v535_v21 }
  0x31   : > { %13750 = vmatprep.mubr.msk.f32.mxu0 %vm569_vm1, %v536_v22 }
  0x34   : > { %13751 = vmatmul.mubr.msk.f32.gmra.mxu0 %vm569_vm1, %v537_v23 }
  0x35   : > { %13753 = vmatprep.mubr.msk.f32.mxu0 %vm569_vm1, %v538_v24 }
  0x38   : > { %13754 = vmatmul.mubr.msk.f32.gmra.mxu0 %vm569_vm1, %v539_v25 }
  0x39   : > { %13756 = vmatprep.mubr.msk.f32.mxu0 %vm569_vm1, %v540_v26 }
  0x3c   : > { %13757 = vmatmul.mubr.msk.f32.gmra.mxu0 %vm569_vm1, %v541_v27 }
  0x3d   : > { %13759 = vmatprep.mubr.msk.f32.mxu0 %vm569_vm1, %v542_v28 }
  0x40   : > { %13760 = vmatmul.mubr.msk.f32.gmra.mxu0 %vm569_vm1, %v543_v29 }
  0x41   : > { %13762 = vmatprep.mubr.msk.f32.mxu0 %vm569_vm1, %v544_v30 }
  0x44   : > { %13763 = vmatmul.mubr.msk.f32.gmra.mxu0 %vm569_vm1, %v545_v31 }
  0x45   : > { %13765 = vmatprep.mubr.msk.f32.mxu0 %vm569_vm1, %v546_v32 }
  0x48   : > { %13766 = vmatmul.mubr.msk.f32.gmra.mxu0 %vm569_vm1, %v547_v33 }
  0x49   : > { %13768 = vmatprep.mubr.msk.f32.mxu0 %vm569_vm1, %v548_v34 }
  0x4c   : > { %13769 = vmatmul.mubr.msk.f32.gmra.mxu0 %vm569_vm1, %v549_v35 }
  0x4d   : > { %13771 = vmatprep.mubr.msk.f32.mxu0 %vm569_vm1, %v550_v36 }
  0x50   : > { %13772 = vmatmul.mubr.msk.f32.gmra.mxu0 %vm569_vm1, %v551_v37 }
  0x51   : > { %13774 = vmatprep.mubr.msk.f32.mxu0 %vm569_vm1, %v552_v38 }
  0x54   : > { %13775 = vmatmul.mubr.msk.f32.gmra.mxu0 %vm569_vm1, %v553_v39  ;;  %vm11046_vm1 = vcmask 0  }
  0x55   : > { %13885 = vmatprep.mubr.msk.f32.mxu0 %vm927_vm2, %v1803_v49 }
  0x58   : > { %13886 = vmatmul.mubr.msk.f32.vlgmr.msra.gmra.mxu0 %vm927_vm2, %v1804_v50 }
  0x59   : > { %13986 = vmatpush3.msra.mxu0 %v11972_v54 }
  0x5a   : > { %13987 = vmatprep.subr.mxu0 %v11971_v55 }
  0x5b   : > { %13988 = vmatpush3.msra.mxu0 %v11971_v55 }
  0x5c   : > { %14089 = vmatprep.subr.mxu0 %v11980_v58 }
  0xd8   : > { %v13731_v60 = vpop.f32.mrf.mxu0 }
  0xd9   : > { %v742_v61 = vadd.f32 %v13731_v60, %v15640_v59 }
  0xda   : > { %v736_v62 = vpop.f32.mrf.mxu0 }
  0xdb   : > { %v896_v63 = vmax.f32 %v742_v61, 0.0  ;;  %v737_v0 = vadd.f32 %v15640_v59, %v736_v62 }
  0xdc   : > { %v13734_v1 = vpop.f32.mrf.mxu0 }
  0xdd   : > { %985 = vst.msk [vmem:[#allocation2 + $0x21] sm:$0xff] %vm927_vm2, %v896_v63  ;;  %v895_v2 = vmax.f32 %v737_v0, 0.0  ;;  %v752_v3 = vadd.f32 %v13734_v1, %v15640_v59 }
  0xde   : > { %v746_v4 = vpop.f32.mrf.mxu0 }
  0xdf   : > { %984 = vst.msk [vmem:[#allocation2 + $0x19] sm:$0xff] %vm927_vm2, %v895_v2  ;;  %v898_v5 = vmax.f32 %v752_v3, 0.0  ;;  %v747_v6 = vadd.f32 %v15640_v59, %v746_v4 }
  0xe0   : > { %v13737_v7 = vpop.f32.mrf.mxu0 }
  0xe1   : > { %987 = vst.msk [vmem:[#allocation2 + $0x39] sm:$0xff] %vm927_vm2, %v898_v5  ;;  %v897_v8 = vmax.f32 %v747_v6, 0.0  ;;  %v762_v9 = vadd.f32 %v13737_v7, %v15640_v59 }
  0xe2   : > { %v756_v10 = vpop.f32.mrf.mxu0 }
  0xe3   : > { %986 = vst.msk [vmem:[#allocation2 + $0x31] sm:$0xff] %vm927_vm2, %v897_v8  ;;  %v900_v11 = vmax.f32 %v762_v9, 0.0  ;;  %v757_v12 = vadd.f32 %v15640_v59, %v756_v10 }
  0xe4   : > { %v13740_v13 = vpop.f32.mrf.mxu0  ;;  %v1806_v22 = vld [vmem:[#allocation2 + $0x22] sm:$0xff] }
  0xe5   : > { %989 = vst.msk [vmem:[#allocation2 + $0x51] sm:$0xff] %vm927_vm2, %v900_v11  ;;  %v899_v14 = vmax.f32 %v757_v12, 0.0  ;;  %v772_v15 = vadd.f32 %v13740_v13, %v15640_v59 }
  0xe6   : > { %v766_v16 = vpop.f32.mrf.mxu0  ;;  %v15654_v17 = vld [vmem:[#allocation2 + $0x18] sm:$0xff]  ;;  %v15656_v19 = vld [vmem:[#allocation2 + $0x20] sm:$0xff] }
  0xe7   : > { %v1805_v18 = vld [vmem:[#allocation2 + $0x1a] sm:$0xff]  ;;  %988 = vst.msk [vmem:[#allocation2 + $0x49] sm:$0xff] %vm927_vm2, %v899_v14  ;;  %v902_v20 = vmax.f32 %v772_v15, 0.0  ;;  %v767_v21 = vadd.f32 %v15640_v59, %v766_v16  ;;  %13784 = vmatprep.mubr.msk.f32.mxu1 %vm927_vm2, %v15654_v17 }
  0xe8   : > { %13888 = vmatprep.mubr.msk.f32.mxu0 %vm927_vm2, %v1805_v18  ;;  %v13743_v23 = vpop.f32.mrf.mxu0  ;;  %13785 = vmatmul.mubr.msk.f32.gmra.mxu1 %vm927_vm2, %v15656_v19  ;;  %v15680_v32 = vld [vmem:[#allocation2 + $0x3a] sm:$0xff] }
  0xe9   : > { %13889 = vmatmul.mubr.msk.f32.gmra.mxu0 %vm927_vm2, %v1806_v22  ;;  %991 = vst.msk [vmem:[#allocation2 + $0x69] sm:$0xff] %vm927_vm2, %v902_v20  ;;  %v901_v24 = vmax.f32 %v767_v21, 0.0  ;;  %v782_v25 = vadd.f32 %v13743_v23, %v15640_v59 }
  0xea   : > { %v776_v26 = vpop.f32.mrf.mxu0  ;;  %v15668_v27 = vld [vmem:[#allocation2 + $0x30] sm:$0xff]  ;;  %v15672_v29 = vld [vmem:[#allocation2 + $0x38] sm:$0xff] }
  0xeb   : > { %v15670_v28 = vld [vmem:[#allocation2 + $0x32] sm:$0xff]  ;;  %990 = vst.msk [vmem:[#allocation2 + $0x61] sm:$0xff] %vm927_vm2, %v901_v24  ;;  %v904_v30 = vmax.f32 %v782_v25, 0.0  ;;  %v777_v31 = vadd.f32 %v15640_v59, %v776_v26  ;;  %13787 = vmatprep.mubr.msk.f32.mxu1 %vm927_vm2, %v15668_v27 }
  0xec   : > { %13891 = vmatprep.mubr.msk.f32.mxu0 %vm927_vm2, %v15670_v28  ;;  %v13746_v33 = vpop.f32.mrf.mxu0  ;;  %13788 = vmatmul.mubr.msk.f32.gmra.mxu1 %vm927_vm2, %v15672_v29  ;;  %v15700_v43 = vld [vmem:[#allocation2 + $0x52] sm:$0xff] }
  0xed   : > { %13892 = vmatmul.mubr.msk.f32.gmra.mxu0 %vm927_vm2, %v15680_v32  ;;  %993 = vst.msk [vmem:[#allocation2 + $0x81] sm:$0xff] %vm927_vm2, %v904_v30  ;;  %v903_v34 = vmax.f32 %v777_v31, 0.0  ;;  %v792_v35 = vadd.f32 %v13746_v33, %v15640_v59 }
  0xee   : > { %v786_v36 = vpop.f32.mrf.mxu0  ;;  %v15688_v37 = vld [vmem:[#allocation2 + $0x48] sm:$0xff]  ;;  %v15692_v39 = vld [vmem:[#allocation2 + $0x50] sm:$0xff] }
  0xef   : > { %v15690_v38 = vld [vmem:[#allocation2 + $0x4a] sm:$0xff]  ;;  %992 = vst.msk [vmem:[#allocation2 + $0x79] sm:$0xff] %vm927_vm2, %v903_v34  ;;  %v906_v41 = vmax.f32 %v792_v35, 0.0  ;;  %v787_v42 = vadd.f32 %v15640_v59, %v786_v36  ;;  %13790 = vmatprep.mubr.msk.f32.mxu1 %vm927_vm2, %v15688_v37 }
  0xf0   : > { %13894 = vmatprep.mubr.msk.f32.mxu0 %vm927_vm2, %v15690_v38  ;;  %v13749_v44 = vpop.f32.mrf.mxu0  ;;  %13791 = vmatmul.mubr.msk.f32.gmra.mxu1 %vm927_vm2, %v15692_v39  ;;  %v15720_v55 = vld [vmem:[#allocation2 + $0x6a] sm:$0xff] }
  0xf1   : > { %13895 = vmatmul.mubr.msk.f32.gmra.mxu0 %vm927_vm2, %v15700_v43  ;;  %995 = vst.msk [vmem:[#allocation2 + $0x99] sm:$0xff] %vm927_vm2, %v906_v41  ;;  %v905_v46 = vmax.f32 %v787_v42, 0.0  ;;  %v802_v48 = vadd.f32 %v13749_v44, %v15640_v59  ;;  %v2590_v40 = vld [vmem:[#allocation2 + $0x69] sm:$0xff] }
  0xf2   : > { %v796_v49 = vpop.f32.mrf.mxu0  ;;  %v15708_v50 = vld [vmem:[#allocation2 + $0x60] sm:$0xff]  ;;  %v15712_v52 = vld [vmem:[#allocation2 + $0x68] sm:$0xff] }
  0xf3   : > { %v15710_v51 = vld [vmem:[#allocation2 + $0x62] sm:$0xff]  ;;  %994 = vst.msk [vmem:[#allocation2 + $0x91] sm:$0xff] %vm927_vm2, %v905_v46  ;;  %v908_v53 = vmax.f32 %v802_v48, 0.0  ;;  %v797_v54 = vadd.f32 %v15640_v59, %v796_v49  ;;  %13793 = vmatprep.mubr.msk.f32.mxu1 %vm927_vm2, %v15708_v50 }
  0xf4   : > { %13897 = vmatprep.mubr.msk.f32.mxu0 %vm927_vm2, %v15710_v51  ;;  %v13752_v56 = vpop.f32.mrf.mxu0  ;;  %13794 = vmatmul.mubr.msk.f32.gmra.mxu1 %vm927_vm2, %v15712_v52  ;;  %v15740_v4 = vld [vmem:[#allocation2 + $0x82] sm:$0xff] }
  0xf5   : > { %13898 = vmatmul.mubr.msk.f32.gmra.mxu0 %vm927_vm2, %v15720_v55  ;;  %997 = vst.msk [vmem:[#allocation2 + $0xb1] sm:$0xff] %vm927_vm2, %v908_v53  ;;  %v907_v60 = vmax.f32 %v797_v54, 0.0  ;;  %v812_v61 = vadd.f32 %v13752_v56, %v15640_v59 }
  0xf6   : > { %v806_v62 = vpop.f32.mrf.mxu0  ;;  %v15728_v63 = vld [vmem:[#allocation2 + $0x78] sm:$0xff]  ;;  %v15732_v1 = vld [vmem:[#allocation2 + $0x80] sm:$0xff] }
  0xf7   : > { %v15730_v0 = vld [vmem:[#allocation2 + $0x7a] sm:$0xff]  ;;  %996 = vst.msk [vmem:[#allocation2 + $0xa9] sm:$0xff] %vm927_vm2, %v907_v60  ;;  %v910_v2 = vmax.f32 %v812_v61, 0.0  ;;  %v807_v3 = vadd.f32 %v15640_v59, %v806_v62  ;;  %13796 = vmatprep.mubr.msk.f32.mxu1 %vm927_vm2, %v15728_v63 }
  0xf8   : > { %13900 = vmatprep.mubr.msk.f32.mxu0 %vm927_vm2, %v15730_v0  ;;  %v13755_v5 = vpop.f32.mrf.mxu0  ;;  %13797 = vmatmul.mubr.msk.f32.gmra.mxu1 %vm927_vm2, %v15732_v1  ;;  %v15760_v14 = vld [vmem:[#allocation2 + $0x9a] sm:$0xff] }
  0xf9   : > { %13901 = vmatmul.mubr.msk.f32.gmra.mxu0 %vm927_vm2, %v15740_v4  ;;  %999 = vst.msk [vmem:[#allocation2 + $0xc9] sm:$0xff] %vm927_vm2, %v910_v2  ;;  %v909_v6 = vmax.f32 %v807_v3, 0.0  ;;  %v822_v7 = vadd.f32 %v13755_v5, %v15640_v59 }
  0xfa   : > { %v816_v8 = vpop.f32.mrf.mxu0  ;;  %v15748_v9 = vld [vmem:[#allocation2 + $0x90] sm:$0xff]  ;;  %v15752_v11 = vld [vmem:[#allocation2 + $0x98] sm:$0xff] }
  0xfb   : > { %v15750_v10 = vld [vmem:[#allocation2 + $0x92] sm:$0xff]  ;;  %998 = vst.msk [vmem:[#allocation2 + $0xc1] sm:$0xff] %vm927_vm2, %v909_v6  ;;  %v912_v12 = vmax.f32 %v822_v7, 0.0  ;;  %v817_v13 = vadd.f32 %v15640_v59, %v816_v8  ;;  %13799 = vmatprep.mubr.msk.f32.mxu1 %vm927_vm2, %v15748_v9 }
  0xfc   : > { %13903 = vmatprep.mubr.msk.f32.mxu0 %vm927_vm2, %v15750_v10  ;;  %v13758_v15 = vpop.f32.mrf.mxu0  ;;  %13800 = vmatmul.mubr.msk.f32.gmra.mxu1 %vm927_vm2, %v15752_v11  ;;  %v15780_v26 = vld [vmem:[#allocation2 + $0xb2] sm:$0xff] }
  0xfd   : > { %13904 = vmatmul.mubr.msk.f32.gmra.mxu0 %vm927_vm2, %v15760_v14  ;;  %1001 = vst.msk [vmem:[#allocation2 + $0xe1] sm:$0xff] %vm927_vm2, %v912_v12  ;;  %v911_v16 = vmax.f32 %v817_v13, 0.0  ;;  %v832_v18 = vadd.f32 %v13758_v15, %v15640_v59 }
  0xfe   : > { %v826_v20 = vpop.f32.mrf.mxu0  ;;  %v15768_v21 = vld [vmem:[#allocation2 + $0xa8] sm:$0xff]  ;;  %v15772_v23 = vld [vmem:[#allocation2 + $0xb0] sm:$0xff] }
  0xff   : > { %v15770_v22 = vld [vmem:[#allocation2 + $0xaa] sm:$0xff]  ;;  %1000 = vst.msk [vmem:[#allocation2 + $0xd9] sm:$0xff] %vm927_vm2, %v911_v16  ;;  %v914_v24 = vmax.f32 %v832_v18, 0.0  ;;  %v827_v25 = vadd.f32 %v15640_v59, %v826_v20  ;;  %13802 = vmatprep.mubr.msk.f32.mxu1 %vm927_vm2, %v15768_v21 }
 0x100   : > { %13906 = vmatprep.mubr.msk.f32.mxu0 %vm927_vm2, %v15770_v22  ;;  %v13761_v30 = vpop.f32.mrf.mxu0  ;;  %13803 = vmatmul.mubr.msk.f32.gmra.mxu1 %vm927_vm2, %v15772_v23  ;;  %v15800_v46 = vld [vmem:[#allocation2 + $0xca] sm:$0xff] }
 0x101   : > { %13907 = vmatmul.mubr.msk.f32.gmra.mxu0 %vm927_vm2, %v15780_v26  ;;  %1003 = vst.msk [vmem:[#allocation2 + $0xf9] sm:$0xff] %vm927_vm2, %v914_v24  ;;  %v913_v31 = vmax.f32 %v827_v25, 0.0  ;;  %v842_v33 = vadd.f32 %v13761_v30, %v15640_v59 }
 0x102   : > { %v836_v34 = vpop.f32.mrf.mxu0  ;;  %v15788_v35 = vld [vmem:[#allocation2 + $0xc0] sm:$0xff]  ;;  %v15792_v41 = vld [vmem:[#allocation2 + $0xc8] sm:$0xff] }
 0x103   : > { %v15790_v36 = vld [vmem:[#allocation2 + $0xc2] sm:$0xff]  ;;  %1002 = vst.msk [vmem:[#allocation2 + $0xf1] sm:$0xff] %vm927_vm2, %v913_v31  ;;  %v916_v42 = vmax.f32 %v842_v33, 0.0  ;;  %v837_v44 = vadd.f32 %v15640_v59, %v836_v34  ;;  %13805 = vmatprep.mubr.msk.f32.mxu1 %vm927_vm2, %v15788_v35 }
 0x104   : > { %13909 = vmatprep.mubr.msk.f32.mxu0 %vm927_vm2, %v15790_v36  ;;  %v13764_v48 = vpop.f32.mrf.mxu0  ;;  %13806 = vmatmul.mubr.msk.f32.gmra.mxu1 %vm927_vm2, %v15792_v41  ;;  %v15820_v3 = vld [vmem:[#allocation2 + $0xe2] sm:$0xff] }
 0x105   : > { %13910 = vmatmul.mubr.msk.f32.gmra.mxu0 %vm927_vm2, %v15800_v46  ;;  %1005 = vst.msk [vmem:[#allocation2 + $0x111] sm:$0xff] %vm927_vm2, %v916_v42  ;;  %v915_v49 = vmax.f32 %v837_v44, 0.0  ;;  %v852_v53 = vadd.f32 %v13764_v48, %v15640_v59 }
 0x106   : > { %v846_v54 = vpop.f32.mrf.mxu0  ;;  %v15808_v56 = vld [vmem:[#allocation2 + $0xd8] sm:$0xff]  ;;  %v15812_v61 = vld [vmem:[#allocation2 + $0xe0] sm:$0xff] }
 0x107   : > { %v15810_v60 = vld [vmem:[#allocation2 + $0xda] sm:$0xff]  ;;  %1004 = vst.msk [vmem:[#allocation2 + $0x109] sm:$0xff] %vm927_vm2, %v915_v49  ;;  %v918_v62 = vmax.f32 %v852_v53, 0.0  ;;  %v847_v2 = vadd.f32 %v15640_v59, %v846_v54  ;;  %13808 = vmatprep.mubr.msk.f32.mxu1 %vm927_vm2, %v15808_v56 }
 0x108   : > { %13912 = vmatprep.mubr.msk.f32.mxu0 %vm927_vm2, %v15810_v60  ;;  %v13767_v5 = vpop.f32.mrf.mxu0  ;;  %13809 = vmatmul.mubr.msk.f32.gmra.mxu1 %vm927_vm2, %v15812_v61  ;;  %v15840_v20 = vld [vmem:[#allocation2 + $0xfa] sm:$0xff] }
 0x109   : > { %13913 = vmatmul.mubr.msk.f32.gmra.mxu0 %vm927_vm2, %v15820_v3  ;;  %1007 = vst.msk [vmem:[#allocation2 + $0x129] sm:$0xff] %vm927_vm2, %v918_v62  ;;  %v917_v6 = vmax.f32 %v847_v2, 0.0  ;;  %v862_v7 = vadd.f32 %v13767_v5, %v15640_v59  ;;  %18668 = vst [vmem:[#allocation8_spill] sm:$0xff] %v15840_v20  ;;  %v15866_v54 = vld [vmem:[#allocation2 + $0x19] sm:$0xff] }
 0x10a   : > { %v856_v8 = vpop.f32.mrf.mxu0  ;;  %v15828_v12 = vld [vmem:[#allocation2 + $0xf0] sm:$0xff]  ;;  %v15832_v15 = vld [vmem:[#allocation2 + $0xf8] sm:$0xff] }
 0x10b   : > { %v15830_v13 = vld [vmem:[#allocation2 + $0xf2] sm:$0xff]  ;;  %1006 = vst.msk [vmem:[#allocation2 + $0x121] sm:$0xff] %vm927_vm2, %v917_v6  ;;  %v920_v16 = vmax.f32 %v862_v7, 0.0  ;;  %v857_v18 = vadd.f32 %v15640_v59, %v856_v8  ;;  %13811 = vmatprep.mubr.msk.f32.mxu1 %vm927_vm2, %v15828_v12  ;;  %v11979_v8 = vunpack.c.l.bf16 %v15632_v57  ;;  %v2587_v57 = vld [vmem:[#allocation2 + $0x49] sm:$0xff] }
 0x10c   : > { %18667 = vst [vmem:[#allocation7_spill] sm:$0xff] %v15830_v13  ;;  %13915 = vmatprep.mubr.msk.f32.mxu0 %vm927_vm2, %v15830_v13  ;;  %v13770_v24 = vpop.f32.mrf.mxu0  ;;  %13812 = vmatmul.mubr.msk.f32.gmra.mxu1 %vm927_vm2, %v15832_v15  ;;  %v15860_v49 = vld [vmem:[#allocation2 + $0x112] sm:$0xff]  ;;  %v2595_v13 = vld [vmem:[#allocation2 + $0xa9] sm:$0xff] }
 0x10d   : > { %13916 = vmatmul.mubr.msk.f32.gmra.mxu0 %vm927_vm2, %v15840_v20  ;;  %1009 = vst.msk [vmem:[#allocation2 + $0x141] sm:$0xff] %vm927_vm2, %v920_v16  ;;  %v919_v25 = vmax.f32 %v857_v18, 0.0  ;;  %v872_v30 = vadd.f32 %v13770_v24, %v15640_v59  ;;  %18670 = vst [vmem:[#allocation10_spill] sm:$0xff] %v15860_v49  ;;  %v15880_v16 = vld [vmem:[%s18630_s3 + $0x40] sm:$0xff]   ;;  %v15937_v20 = vld [vmem:[%s18630_s3 + $0x18] sm:$0xff]  }
 0x10e   : > { %v866_v31 = vpop.f32.mrf.mxu0  ;;  %v15848_v33 = vld [vmem:[#allocation2 + $0x108] sm:$0xff]  ;;  %v15852_v42 = vld [vmem:[#allocation2 + $0x110] sm:$0xff] }
 0x10f   : > { %v15850_v34 = vld [vmem:[#allocation2 + $0x10a] sm:$0xff]  ;;  %1008 = vst.msk [vmem:[#allocation2 + $0x139] sm:$0xff] %vm927_vm2, %v919_v25  ;;  %v922_v44 = vmax.f32 %v872_v30, 0.0  ;;  %v867_v48 = vadd.f32 %v15640_v59, %v866_v31  ;;  %13814 = vmatprep.mubr.msk.f32.mxu1 %vm927_vm2, %v15848_v33  ;;  %v2584_v25 = vld [vmem:[#allocation2 + $0x21] sm:$0xff] }
 0x110   : > { %18669 = vst [vmem:[#allocation9_spill] sm:$0xff] %v15850_v34  ;;  %13918 = vmatprep.mubr.msk.f32.mxu0 %vm927_vm2, %v15850_v34  ;;  %v13773_v53 = vpop.f32.mrf.mxu0  ;;  %13815 = vmatmul.mubr.msk.f32.gmra.mxu1 %vm927_vm2, %v15852_v42  ;;  %v2585_v30 = vld [vmem:[#allocation2 + $0x31] sm:$0xff] }
 0x111   : > { %13919 = vmatmul.mubr.msk.f32.gmra.mxu0 %vm927_vm2, %v15860_v49  ;;  %1011 = vst.msk [vmem:[#allocation2 + $0x159] sm:$0xff] %vm927_vm2, %v922_v44  ;;  %v921_v62 = vmax.f32 %v867_v48, 0.0  ;;  %v882_v2 = vadd.f32 %v13773_v53, %v15640_v59  ;;  %v18646_v53 = vunpack.c.h.bf16 %v15880_v16  ;;  %v2592_v49 = vld [vmem:[#allocation2 + $0x81] sm:$0xff]  ;;  %v2593_v34 = vld [vmem:[#allocation2 + $0x91] sm:$0xff] }
 0x112   : > { %13989 = vmatprep.mubr.msk.f32.mxu0 %vm927_vm2, %v15866_v54  ;;  %v876_v5 = vpop.f32.mrf.mxu0  ;;  %v15872_v6 = vld [vmem:[#allocation2 + $0x120] sm:$0xff]  ;;  %v15874_v7 = vld [vmem:[#allocation2 + $0x128] sm:$0xff] }
 0x113   : > { %1010 = vst.msk [vmem:[#allocation2 + $0x151] sm:$0xff] %vm927_vm2, %v921_v62  ;;  %v924_v18 = vmax.f32 %v882_v2, 0.0  ;;  %v877_v24 = vadd.f32 %v15640_v59, %v876_v5  ;;  %13817 = vmatprep.mubr.msk.f32.mxu1 %vm927_vm2, %v15872_v6 }
 0x114   : > { %13818 = vmatmul.mubr.msk.f32.gmra.mxu1 %vm927_vm2, %v15874_v7  ;;  %v13776_v31 = vpop.f32.mrf.mxu0 }
 0x115   : > { %13990 = vmatmul.mubr.msk.f32.vlgmr.msra.gmra.mxu0 %vm927_vm2, %v2584_v25  ;;  %1013 = vst.msk [vmem:[#allocation2 + $0x171] sm:$0xff] %vm927_vm2, %v924_v18  ;;  %v923_v44 = vmax.f32 %v877_v24, 0.0  ;;  %v892_v48 = vadd.f32 %v13776_v31, %v15640_v59  ;;  %v2586_v18 = vld [vmem:[#allocation2 + $0x39] sm:$0xff] }
 0x116   : > { %13992 = vmatprep.mubr.msk.f32.mxu0 %vm927_vm2, %v2585_v30  ;;  %14090 = vmatpush3.msra.mxu0 %v11980_v58  ;;  %v15895_v62 = vld [vmem:[#allocation2 + $0x138] sm:$0xff]  ;;  %v15897_v2 = vld [vmem:[#allocation2 + $0x140] sm:$0xff]  ;;  %v886_v5 = vpop.f32.mrf.mxu0 }
 0x117   : > { %14091 = vmatprep.subr.mxu0 %v11979_v8  ;;  %1012 = vst.msk [vmem:[#allocation2 + $0x169] sm:$0xff] %vm927_vm2, %v923_v44  ;;  %13820 = vmatprep.mubr.msk.f32.mxu1 %vm927_vm2, %v15895_v62  ;;  %v926_v24 = vmax.f32 %v892_v48, 0.0  ;;  %v887_v31 = vadd.f32 %v15640_v59, %v886_v5  ;;  %v2588_v59 = vld [vmem:[#allocation2 + $0x51] sm:$0xff] }
 0x118   : > { %14092 = vmatpush3.msra.mxu0 %v11979_v8  ;;  %13821 = vmatmul.mubr.msk.f32.gmra.mxu1 %vm927_vm2, %v15897_v2  ;;  %v2589_v8 = vld [vmem:[#allocation2 + $0x61] sm:$0xff] }
 0x119   : > { %13993 = vmatmul.mubr.msk.f32.gmra.mxu0 %vm927_vm2, %v2586_v18  ;;  %1015 = vst.msk [vmem:[#allocation2 + $0x189] sm:$0xff] %vm927_vm2, %v926_v24  ;;  %v925_v58 = vmax.f32 %v887_v31, 0.0  ;;  %14193 = vmatprep.subr.mxu0 %v18646_v53  ;;  %v1413_v31 = vld [vmem:[#allocation2 + $0x1] sm:$0xff]  ;;  %v1414_v53 = vld [vmem:[#allocation2 + $0x9] sm:$0xff] }
 0x11a   : > { %13995 = vmatprep.mubr.msk.f32.mxu0 %vm927_vm2, %v2587_v57  ;;  %v15910_v44 = vld [vmem:[#allocation2 + $0x150] sm:$0xff]  ;;  %v15912_v48 = vld [vmem:[#allocation2 + $0x158] sm:$0xff] }
 0x11b   : > { %13823 = vmatprep.mubr.msk.f32.mxu1 %vm927_vm2, %v15910_v44  ;;  %1014 = vst.msk [vmem:[#allocation2 + $0x181] sm:$0xff] %vm927_vm2, %v925_v58  ;;  %v2591_v58 = vld [vmem:[#allocation2 + $0x79] sm:$0xff] }
 0x11c   : > { %13824 = vmatmul.mubr.msk.f32.gmra.mxu1 %vm927_vm2, %v15912_v48 }
 0x11d   : > { %13996 = vmatmul.mubr.msk.f32.gmra.mxu0 %vm927_vm2, %v2588_v59 }
 0x11e   : > { %13998 = vmatprep.mubr.msk.f32.mxu0 %vm927_vm2, %v2589_v8  ;;  %v15921_v5 = vld [vmem:[#allocation2 + $0x168] sm:$0xff]  ;;  %v15923_v24 = vld [vmem:[#allocation2 + $0x170] sm:$0xff] }
 0x11f   : > { %13826 = vmatprep.mubr.msk.f32.mxu1 %vm927_vm2, %v15921_v5 }
 0x120   : > { %13827 = vmatmul.mubr.msk.f32.gmra.mxu1 %vm927_vm2, %v15923_v24 }
 0x121   : > { %13999 = vmatmul.mubr.msk.f32.gmra.mxu0 %vm927_vm2, %v2590_v40  ;;  %13833 = vmatprep.mubr.msk.f32.mxu1 %vm927_vm2, %v1413_v31  ;;  %v2594_v31 = vld [vmem:[#allocation2 + $0x99] sm:$0xff] }
 0x122   : > { %14001 = vmatprep.mubr.msk.f32.mxu0 %vm927_vm2, %v2591_v58 }
 0x124   : > { %13834 = vmatmul.mubr.msk.f32.vlgmr.msra.gmra.mxu1 %vm927_vm2, %v1414_v53  ;;  %v18651_v53 = vunpack.c.h.bf16 %v15937_v20 }
 0x125   : > { %14002 = vmatmul.mubr.msk.f32.gmra.mxu0 %vm927_vm2, %v2592_v49  ;;  %13836 = vmatprep.mubr.msk.f32.mxu1 %vm927_vm2, %v15866_v54  ;;  %v2596_v54 = vld [vmem:[#allocation2 + $0xb1] sm:$0xff] }
 0x126   : > { %14004 = vmatprep.mubr.msk.f32.mxu0 %vm927_vm2, %v2593_v34  ;;  %15291 = vmatpush3.msra.mxu1 %v15610_v45  ;;  %v2597_v45 = vld [vmem:[#allocation2 + $0xc1] sm:$0xff] }
 0x127   : > { %15290 = vmatprep.subr.mxu1 %v15613_v47 }
 0x128   : > { %13837 = vmatmul.mubr.msk.f32.gmra.mxu1 %vm927_vm2, %v2584_v25  ;;  %v2598_v25 = vld [vmem:[#allocation2 + $0xc9] sm:$0xff] }
 0x129   : > { %14005 = vmatmul.mubr.msk.f32.gmra.mxu0 %vm927_vm2, %v2594_v31  ;;  %13839 = vmatprep.mubr.msk.f32.mxu1 %vm927_vm2, %v2585_v30  ;;  %v2599_v30 = vld [vmem:[#allocation2 + $0xd9] sm:$0xff] }
 0x12a   : > { %14007 = vmatprep.mubr.msk.f32.mxu0 %vm927_vm2, %v2595_v13  ;;  %15292 = vmatpush3.msra.mxu1 %v15613_v47  ;;  %v2600_v47 = vld [vmem:[#allocation2 + $0xe1] sm:$0xff] }
 0x12b   : > { %13933 = vmatprep.subr.mxu1 %v18651_v53  ;;  %v2612_v53 = vld [vmem:[#allocation2 + $0x171] sm:$0xff] }
 0x12c   : > { %13840 = vmatmul.mubr.msk.f32.gmra.mxu1 %vm927_vm2, %v2586_v18  ;;  %v2601_v18 = vld [vmem:[#allocation2 + $0xf1] sm:$0xff] }
 0x12d   : > { %14008 = vmatmul.mubr.msk.f32.gmra.mxu0 %vm927_vm2, %v2596_v54  ;;  %13842 = vmatprep.mubr.msk.f32.mxu1 %vm927_vm2, %v2587_v57  ;;  %v2602_v57 = vld [vmem:[#allocation2 + $0xf9] sm:$0xff] }
 0x12e   : > { %14010 = vmatprep.mubr.msk.f32.mxu0 %vm927_vm2, %v2597_v45 }
 0x130   : > { %13843 = vmatmul.mubr.msk.f32.gmra.mxu1 %vm927_vm2, %v2588_v59  ;;  %v2603_v59 = vld [vmem:[#allocation2 + $0x109] sm:$0xff] }
 0x131   : > { %14011 = vmatmul.mubr.msk.f32.gmra.mxu0 %vm927_vm2, %v2598_v25  ;;  %13845 = vmatprep.mubr.msk.f32.mxu1 %vm927_vm2, %v2589_v8  ;;  %v2604_v8 = vld [vmem:[#allocation2 + $0x111] sm:$0xff] }
 0x132   : > { %14013 = vmatprep.mubr.msk.f32.mxu0 %vm927_vm2, %v2599_v30 }
 0x134   : > { %13846 = vmatmul.mubr.msk.f32.gmra.mxu1 %vm927_vm2, %v2590_v40  ;;  %v2605_v40 = vld [vmem:[#allocation2 + $0x121] sm:$0xff] }
 0x135   : > { %14014 = vmatmul.mubr.msk.f32.gmra.mxu0 %vm927_vm2, %v2600_v47  ;;  %13848 = vmatprep.mubr.msk.f32.mxu1 %vm927_vm2, %v2591_v58  ;;  %v2606_v58 = vld [vmem:[#allocation2 + $0x129] sm:$0xff] }
 0x136   : > { %14016 = vmatprep.mubr.msk.f32.mxu0 %vm927_vm2, %v2601_v18 }
 0x138   : > { %13849 = vmatmul.mubr.msk.f32.gmra.mxu1 %vm927_vm2, %v2592_v49  ;;  %v2607_v49 = vld [vmem:[#allocation2 + $0x139] sm:$0xff] }
 0x139   : > { %14017 = vmatmul.mubr.msk.f32.gmra.mxu0 %vm927_vm2, %v2602_v57  ;;  %13851 = vmatprep.mubr.msk.f32.mxu1 %vm927_vm2, %v2593_v34  ;;  %v2608_v34 = vld [vmem:[#allocation2 + $0x141] sm:$0xff] }
 0x13a   : > { %14019 = vmatprep.mubr.msk.f32.mxu0 %vm927_vm2, %v2603_v59 }
 0x13c   : > { %13852 = vmatmul.mubr.msk.f32.gmra.mxu1 %vm927_vm2, %v2594_v31  ;;  %v2609_v31 = vld [vmem:[#allocation2 + $0x151] sm:$0xff] }
 0x13d   : > { %14020 = vmatmul.mubr.msk.f32.gmra.mxu0 %vm927_vm2, %v2604_v8  ;;  %13854 = vmatprep.mubr.msk.f32.mxu1 %vm927_vm2, %v2595_v13  ;;  %v2610_v13 = vld [vmem:[#allocation2 + $0x159] sm:$0xff] }
 0x13e   : > { %14022 = vmatprep.mubr.msk.f32.mxu0 %vm927_vm2, %v2605_v40 }
 0x140   : > { %13855 = vmatmul.mubr.msk.f32.gmra.mxu1 %vm927_vm2, %v2596_v54  ;;  %v2611_v54 = vld [vmem:[#allocation2 + $0x169] sm:$0xff] }
 0x141   : > { %14023 = vmatmul.mubr.msk.f32.gmra.mxu0 %vm927_vm2, %v2606_v58  ;;  %13857 = vmatprep.mubr.msk.f32.mxu1 %vm927_vm2, %v2597_v45  ;;  %v2613_v45 = vld [vmem:[#allocation2 + $0x181] sm:$0xff] }
 0x142   : > { %14025 = vmatprep.mubr.msk.f32.mxu0 %vm927_vm2, %v2607_v49 }
 0x144   : > { %13858 = vmatmul.mubr.msk.f32.gmra.mxu1 %vm927_vm2, %v2598_v25  ;;  %v2614_v25 = vld [vmem:[#allocation2 + $0x189] sm:$0xff] }
 0x145   : > { %14026 = vmatmul.mubr.msk.f32.gmra.mxu0 %vm927_vm2, %v2608_v34  ;;  %13860 = vmatprep.mubr.msk.f32.mxu1 %vm927_vm2, %v2599_v30  ;;  %v11987_v30 = vunpack.c.l.bf16 %v15880_v16 }
 0x146   : > { %14028 = vmatprep.mubr.msk.f32.mxu0 %vm927_vm2, %v2609_v31 }
 0x148   : > { %13861 = vmatmul.mubr.msk.f32.gmra.mxu1 %vm927_vm2, %v2600_v47  ;;  %v18671_v47 = vunpack.c.h.bf16 %v15880_v16  ;;  %v16017_v16 = vld [vmem:[#allocation2 + $0x122] sm:$0xff] }
 0x149   : > { %14029 = vmatmul.mubr.msk.f32.gmra.mxu0 %vm927_vm2, %v2610_v13  ;;  %13863 = vmatprep.mubr.msk.f32.mxu1 %vm927_vm2, %v2601_v18  ;;  %v16023_v18 = vld [vmem:[#allocation2 + $0x12a] sm:$0xff] }
 0x14a   : > { %14031 = vmatprep.mubr.msk.f32.mxu0 %vm927_vm2, %v2611_v54 }
 0x14c   : > { %13864 = vmatmul.mubr.msk.f32.gmra.mxu1 %vm927_vm2, %v2602_v57  ;;  %v11967_v57 = vunpack.c.l.bf16 %v15937_v20 }
 0x14d   : > { %14032 = vmatmul.mubr.msk.f32.gmra.mxu0 %vm927_vm2, %v2612_v53  ;;  %13866 = vmatprep.mubr.msk.f32.mxu1 %vm927_vm2, %v2603_v59  ;;  %v12641_v59 = vld [vmem:[%s18630_s3 + $0x28] sm:$0xff]  }
 0x14e   : > { %14034 = vmatprep.mubr.msk.f32.mxu0 %vm927_vm2, %v2613_v45 }
 0x150   : > { %13867 = vmatmul.mubr.msk.f32.gmra.mxu1 %vm927_vm2, %v2604_v8  ;;  %v18672_v8 = vunpack.c.h.bf16 %v15937_v20  ;;  %v16053_v20 = vld [vmem:[#allocation2 + $0x15a] sm:$0xff] }
 0x151   : > { %14035 = vmatmul.mubr.msk.f32.gmra.mxu0 %vm927_vm2, %v2614_v25  ;;  %13869 = vmatprep.mubr.msk.f32.mxu1 %vm927_vm2, %v2605_v40  ;;  %v16041_v40 = vld [vmem:[#allocation2 + $0x142] sm:$0xff] }
 0x152   : > { %14093 = vmatprep.mubr.msk.f32.mxu0 %vm927_vm2, %v15668_v27 }
 0x154   : > { %13870 = vmatmul.mubr.msk.f32.gmra.mxu1 %vm927_vm2, %v2606_v58  ;;  %v11976_v58 = vunpack.c.h.bf16 %v12641_v59 }
 0x155   : > { %14094 = vmatmul.mubr.msk.f32.vlgmr.msra.gmra.mxu0 %vm927_vm2, %v15672_v29  ;;  %13872 = vmatprep.mubr.msk.f32.mxu1 %vm927_vm2, %v2607_v49  ;;  %v16047_v49 = vld [vmem:[#allocation2 + $0x152] sm:$0xff] }
 0x156   : > { %14096 = vmatprep.mubr.msk.f32.mxu0 %vm927_vm2, %v15688_v37  ;;  %14194 = vmatpush3.msra.mxu0 %v18671_v47 }
 0x157   : > { %14195 = vmatprep.subr.mxu0 %v11987_v30 }
 0x158   : > { %13873 = vmatmul.mubr.msk.f32.gmra.mxu1 %vm927_vm2, %v2608_v34  ;;  %14196 = vmatpush3.msra.mxu0 %v11987_v30  ;;  %v16059_v34 = vld [vmem:[#allocation2 + $0x16a] sm:$0xff]  ;;  %v2981_v30 = vld [vmem:[#allocation2 + $0x7a] sm:$0xff] }
 0x159   : > { %14097 = vmatmul.mubr.msk.f32.gmra.mxu0 %vm927_vm2, %v15692_v39  ;;  %13875 = vmatprep.mubr.msk.f32.mxu1 %vm927_vm2, %v2609_v31  ;;  %v16065_v31 = vld [vmem:[#allocation2 + $0x172] sm:$0xff] }
 0x15a   : > { %14099 = vmatprep.mubr.msk.f32.mxu0 %vm927_vm2, %v15708_v50 }
 0x15c   : > { %13876 = vmatmul.mubr.msk.f32.gmra.mxu1 %vm927_vm2, %v2610_v13  ;;  %v11975_v13 = vunpack.c.l.bf16 %v12641_v59  ;;  %v2982_v59 = vld [vmem:[#allocation2 + $0x82] sm:$0xff] }
 0x15d   : > { %14100 = vmatmul.mubr.msk.f32.gmra.mxu0 %vm927_vm2, %v15712_v52  ;;  %13878 = vmatprep.mubr.msk.f32.mxu1 %vm927_vm2, %v2611_v54  ;;  %v16082_v54 = vld [vmem:[%s18630_s3 + $0x38] sm:$0xff]  }
 0x15e   : > { %14102 = vmatprep.mubr.msk.f32.mxu0 %vm927_vm2, %v15728_v63 }
 0x160   : > { %13879 = vmatmul.mubr.msk.f32.gmra.mxu1 %vm927_vm2, %v2612_v53  ;;  %v16030_v53 = vld [vmem:[#allocation2 + $0x13a] sm:$0xff] }
 0x161   : > { %14103 = vmatmul.mubr.msk.f32.gmra.mxu0 %vm927_vm2, %v15732_v1  ;;  %13921 = vmatprep.mubr.msk.f32.mxu1 %vm927_vm2, %v16017_v16 }
 0x162   : > { %14105 = vmatprep.mubr.msk.f32.mxu0 %vm927_vm2, %v15748_v9 }
 0x164   : > { %13922 = vmatmul.mubr.msk.f32.vlgmr.msra.gmra.mxu1 %vm927_vm2, %v16023_v18 }
 0x165   : > { %14106 = vmatmul.mubr.msk.f32.gmra.mxu0 %vm927_vm2, %v15752_v11  ;;  %13924 = vmatprep.mubr.msk.f32.mxu1 %vm927_vm2, %v16030_v53 }
 0x166   : > { %14108 = vmatprep.mubr.msk.f32.mxu0 %vm927_vm2, %v15768_v21  ;;  %13934 = vmatpush3.msra.mxu1 %v18672_v8 }
 0x167   : > { %13935 = vmatprep.subr.mxu1 %v11967_v57 }
 0x168   : > { %13925 = vmatmul.mubr.msk.f32.gmra.mxu1 %vm927_vm2, %v16041_v40 }
 0x169   : > { %14109 = vmatmul.mubr.msk.f32.gmra.mxu0 %vm927_vm2, %v15772_v23  ;;  %13927 = vmatprep.mubr.msk.f32.mxu1 %vm927_vm2, %v16047_v49 }
 0x16a   : > { %14111 = vmatprep.mubr.msk.f32.mxu0 %vm927_vm2, %v15788_v35  ;;  %13936 = vmatpush3.msra.mxu1 %v11967_v57 }
 0x16b   : > { %14037 = vmatprep.subr.mxu1 %v11976_v58 }
 0x16c   : > { %13928 = vmatmul.mubr.msk.f32.gmra.mxu1 %vm927_vm2, %v16053_v20 }
 0x16d   : > { %14112 = vmatmul.mubr.msk.f32.gmra.mxu0 %vm927_vm2, %v15792_v41  ;;  %13930 = vmatprep.mubr.msk.f32.mxu1 %vm927_vm2, %v16059_v34 }
 0x16e   : > { %14114 = vmatprep.mubr.msk.f32.mxu0 %vm927_vm2, %v15808_v56 }
 0x170   : > { %13931 = vmatmul.mubr.msk.f32.gmra.mxu1 %vm927_vm2, %v16065_v31 }
 0x171   : > { %14115 = vmatmul.mubr.msk.f32.gmra.mxu0 %vm927_vm2, %v15812_v61  ;;  %13937 = vmatprep.mubr.msk.f32.mxu1 %vm927_vm2, %v15654_v17  ;;  %v11984_v17 = vunpack.c.h.bf16 %v16082_v54 }
 0x172   : > { %14117 = vmatprep.mubr.msk.f32.mxu0 %vm927_vm2, %v15828_v12 }
 0x174   : > { %13938 = vmatmul.mubr.msk.f32.vlgmr.msra.gmra.mxu1 %vm927_vm2, %v15656_v19  ;;  %v3392_v19 = vld [vmem:[#allocation2 + $0x180] sm:$0xff] }
 0x175   : > { %14118 = vmatmul.mubr.msk.f32.gmra.mxu0 %vm927_vm2, %v15832_v15  ;;  %13940 = vmatprep.mubr.msk.f32.mxu1 %vm927_vm2, %v15668_v27  ;;  %v3393_v27 = vld [vmem:[#allocation2 + $0x188] sm:$0xff] }
 0x176   : > { %14120 = vmatprep.mubr.msk.f32.mxu0 %vm927_vm2, %v15848_v33  ;;  %14038 = vmatpush3.msra.mxu1 %v11976_v58 }
 0x177   : > { %14039 = vmatprep.subr.mxu1 %v11975_v13 }
 0x178   : > { %13941 = vmatmul.mubr.msk.f32.gmra.mxu1 %vm927_vm2, %v15672_v29  ;;  %v3394_v29 = vld [vmem:[#allocation2 + $0x198] sm:$0xff] }
 0x179   : > { %14121 = vmatmul.mubr.msk.f32.gmra.mxu0 %vm927_vm2, %v15852_v42  ;;  %13943 = vmatprep.mubr.msk.f32.mxu1 %vm927_vm2, %v15688_v37  ;;  %v3395_v37 = vld [vmem:[#allocation2 + $0x1a0] sm:$0xff] }
 0x17a   : > { %14123 = vmatprep.mubr.msk.f32.mxu0 %vm927_vm2, %v15872_v6  ;;  %14040 = vmatpush3.msra.mxu1 %v11975_v13  ;;  %v2983_v13 = vld [vmem:[#allocation2 + $0x92] sm:$0xff] }
 0x17b   : > { %14141 = vmatprep.subr.mxu1 %v11984_v17 }
 0x17c   : > { %13944 = vmatmul.mubr.msk.f32.gmra.mxu1 %vm927_vm2, %v15692_v39 }
 0x17d   : > { %14124 = vmatmul.mubr.msk.f32.gmra.mxu0 %vm927_vm2, %v15874_v7  ;;  %13946 = vmatprep.mubr.msk.f32.mxu1 %vm927_vm2, %v15708_v50 }
 0x17e   : > { %14126 = vmatprep.mubr.msk.f32.mxu0 %vm927_vm2, %v15895_v62 }
 0x180   : > { %13947 = vmatmul.mubr.msk.f32.gmra.mxu1 %vm927_vm2, %v15712_v52 }
 0x181   : > { %14127 = vmatmul.mubr.msk.f32.gmra.mxu0 %vm927_vm2, %v15897_v2  ;;  %13949 = vmatprep.mubr.msk.f32.mxu1 %vm927_vm2, %v15728_v63 }
 0x182   : > { %14129 = vmatprep.mubr.msk.f32.mxu0 %vm927_vm2, %v15910_v44 }
 0x184   : > { %13950 = vmatmul.mubr.msk.f32.gmra.mxu1 %vm927_vm2, %v15732_v1 }
 0x185   : > { %14130 = vmatmul.mubr.msk.f32.gmra.mxu0 %vm927_vm2, %v15912_v48  ;;  %13952 = vmatprep.mubr.msk.f32.mxu1 %vm927_vm2, %v15748_v9 }
 0x186   : > { %14132 = vmatprep.mubr.msk.f32.mxu0 %vm927_vm2, %v15921_v5 }
 0x188   : > { %13953 = vmatmul.mubr.msk.f32.gmra.mxu1 %vm927_vm2, %v15752_v11  ;;  %v18673_v11 = vld [vmem:[#allocation7_spill] sm:$0xff] }
 0x189   : > { %14133 = vmatmul.mubr.msk.f32.gmra.mxu0 %vm927_vm2, %v15923_v24  ;;  %13955 = vmatprep.mubr.msk.f32.mxu1 %vm927_vm2, %v15768_v21 }
 0x18a   : > { %14135 = vmatprep.mubr.msk.f32.mxu0 %vm927_vm2, %v3392_v19 }
 0x18c   : > { %13956 = vmatmul.mubr.msk.f32.gmra.mxu1 %vm927_vm2, %v15772_v23  ;;  %v11983_v23 = vunpack.c.l.bf16 %v16082_v54 }
 0x18d   : > { %14136 = vmatmul.mubr.msk.f32.gmra.mxu0 %vm927_vm2, %v3393_v27  ;;  %13958 = vmatprep.mubr.msk.f32.mxu1 %vm927_vm2, %v15788_v35 }
 0x18e   : > { %14138 = vmatprep.mubr.msk.f32.mxu0 %vm927_vm2, %v3394_v29 }
 0x190   : > { %13959 = vmatmul.mubr.msk.f32.gmra.mxu1 %vm927_vm2, %v15792_v41  ;;  %v2975_v41 = vld [vmem:[#allocation2 + $0x32] sm:$0xff] }
 0x191   : > { %14139 = vmatmul.mubr.msk.f32.gmra.mxu0 %vm927_vm2, %v3395_v37  ;;  %13961 = vmatprep.mubr.msk.f32.mxu1 %vm927_vm2, %v15808_v56  ;;  %v2985_v37 = vld [vmem:[#allocation2 + $0xaa] sm:$0xff] }
 0x192   : > { %14197 = vmatprep.mubr.msk.f32.mxu0 %vm927_vm2, %v15670_v28  ;;  %v16171_v28 = vpop.f32.mrf.mxu0 }
 0x194   : > { %13962 = vmatmul.mubr.msk.f32.gmra.mxu1 %vm927_vm2, %v15812_v61  ;;  %v2976_v61 = vld [vmem:[#allocation2 + $0x3a] sm:$0xff] }
 0x195   : > { %14198 = vmatmul.mubr.msk.f32.vlgmr.msra.gmra.mxu0 %vm927_vm2, %v15680_v32  ;;  %13964 = vmatprep.mubr.msk.f32.mxu1 %vm927_vm2, %v15828_v12  ;;  %v16177_v32 = vpop.f32.mrf.mxu1 }
 0x196   : > { %14200 = vmatprep.mubr.msk.f32.mxu0 %vm927_vm2, %v15690_v38  ;;  %v16183_v38 = vpop.f32.mrf.mxu0 }
 0x197   : > { %v16189_v39 = vpop.f32.mrf.mxu1 }
 0x198   : > { %13965 = vmatmul.mubr.msk.f32.gmra.mxu1 %vm927_vm2, %v15832_v15  ;;  %v18678_v15 = vld [vmem:[#allocation10_spill] sm:$0xff] }
 0x199   : > { %14201 = vmatmul.mubr.msk.f32.gmra.mxu0 %vm927_vm2, %v15700_v43  ;;  %13967 = vmatprep.mubr.msk.f32.mxu1 %vm927_vm2, %v15848_v33  ;;  %v2977_v33 = vld [vmem:[#allocation2 + $0x4a] sm:$0xff] }
 0x19a   : > { %14203 = vmatprep.mubr.msk.f32.mxu0 %vm927_vm2, %v15710_v51 }
 0x19c   : > { %13968 = vmatmul.mubr.msk.f32.gmra.mxu1 %vm927_vm2, %v15852_v42 }
 0x19d   : > { %14204 = vmatmul.mubr.msk.f32.gmra.mxu0 %vm927_vm2, %v15720_v55  ;;  %13970 = vmatprep.mubr.msk.f32.mxu1 %vm927_vm2, %v15872_v6 }
 0x19e   : > { %14206 = vmatprep.mubr.msk.f32.mxu0 %vm927_vm2, %v15730_v0 }
 0x1a0   : > { %13971 = vmatmul.mubr.msk.f32.gmra.mxu1 %vm927_vm2, %v15874_v7  ;;  %v2978_v7 = vld [vmem:[#allocation2 + $0x52] sm:$0xff] }
 0x1a1   : > { %14207 = vmatmul.mubr.msk.f32.gmra.mxu0 %vm927_vm2, %v15740_v4  ;;  %13973 = vmatprep.mubr.msk.f32.mxu1 %vm927_vm2, %v15895_v62 }
 0x1a2   : > { %14209 = vmatprep.mubr.msk.f32.mxu0 %vm927_vm2, %v15750_v10  ;;  %v2973_v10 = vld [vmem:[#allocation2 + $0x1a] sm:$0xff] }
 0x1a4   : > { %13974 = vmatmul.mubr.msk.f32.gmra.mxu1 %vm927_vm2, %v15897_v2 }
 0x1a5   : > { %14210 = vmatmul.mubr.msk.f32.gmra.mxu0 %vm927_vm2, %v15760_v14  ;;  %13976 = vmatprep.mubr.msk.f32.mxu1 %vm927_vm2, %v15910_v44  ;;  %v2979_v44 = vld [vmem:[#allocation2 + $0x62] sm:$0xff] }
 0x1a6   : > { %14212 = vmatprep.mubr.msk.f32.mxu0 %vm927_vm2, %v15770_v22  ;;  %v2974_v22 = vld [vmem:[#allocation2 + $0x22] sm:$0xff] }
 0x1a8   : > { %v16191_v43 = vpop.f32.mrf.mxu1  ;;  %13977 = vmatmul.mubr.msk.f32.gmra.mxu1 %vm927_vm2, %v15912_v48 }
 0x1a9   : > { %v16193_v50 = vpop.f32.mrf.mxu0  ;;  %14213 = vmatmul.mubr.msk.f32.gmra.mxu0 %vm927_vm2, %v15780_v26  ;;  %13979 = vmatprep.mubr.msk.f32.mxu1 %vm927_vm2, %v15921_v5 }
 0x1aa   : > { %14215 = vmatprep.mubr.msk.f32.mxu0 %vm927_vm2, %v15790_v36  ;;  %v16203_v51 = vpop.f32.mrf.mxu1  ;;  %v18675_v36 = vld [vmem:[#allocation8_spill] sm:$0xff] }
 0x1ab   : > { %v16205_v52 = vpop.f32.mrf.mxu0 }
 0x1ac   : > { %v16207_v55 = vpop.f32.mrf.mxu1  ;;  %13980 = vmatmul.mubr.msk.f32.gmra.mxu1 %vm927_vm2, %v15923_v24  ;;  %v2980_v24 = vld [vmem:[#allocation2 + $0x6a] sm:$0xff] }
 0x1ad   : > { %v16209_v63 = vpop.f32.mrf.mxu0  ;;  %14216 = vmatmul.mubr.msk.f32.gmra.mxu0 %vm927_vm2, %v15800_v46  ;;  %13982 = vmatprep.mubr.msk.f32.mxu1 %vm927_vm2, %v3392_v19  ;;  %v18676_v46 = vld [vmem:[#allocation9_spill] sm:$0xff]  ;;  %v2984_v19 = vld [vmem:[#allocation2 + $0x9a] sm:$0xff] }
 0x1ae   : > { %14218 = vmatprep.mubr.msk.f32.mxu0 %vm927_vm2, %v15810_v60  ;;  %v16218_v0 = vpop.f32.mrf.mxu1 }
 0x1af   : > { %v16220_v1 = vpop.f32.mrf.mxu0 }
 0x1b0   : > { %v16222_v4 = vpop.f32.mrf.mxu1  ;;  %13983 = vmatmul.mubr.msk.f32.gmra.mxu1 %vm927_vm2, %v3393_v27 }
 0x1b1   : > { %v16224_v9 = vpop.f32.mrf.mxu0  ;;  %14219 = vmatmul.mubr.msk.f32.gmra.mxu0 %vm927_vm2, %v15820_v3  ;;  %14041 = vmatprep.mubr.msk.f32.mxu1 %vm927_vm2, %v2973_v10  ;;  %v16316_v10 = vld [vmem:[#allocation2 + $0x182] sm:$0xff] }
 0x1b2   : > { %14221 = vmatprep.mubr.msk.f32.mxu0 %vm927_vm2, %v18673_v11  ;;  %v16232_v14 = vpop.f32.mrf.mxu1 }
 0x1b3   : > { %v16234_v21 = vpop.f32.mrf.mxu0 }
 0x1b4   : > { %18674 = vst [vmem:[#allocation7_spill] sm:$0xff] %v16234_v21  ;;  %v16237_v26 = vpop.f32.mrf.mxu1  ;;  %14042 = vmatmul.mubr.msk.f32.vlgmr.msra.gmra.mxu1 %vm927_vm2, %v2974_v22 }
 0x1b5   : > { %v16239_v35 = vpop.f32.mrf.mxu0  ;;  %14222 = vmatmul.mubr.msk.f32.gmra.mxu0 %vm927_vm2, %v18675_v36  ;;  %14044 = vmatprep.mubr.msk.f32.mxu1 %vm927_vm2, %v2975_v41  ;;  %v2986_v36 = vld [vmem:[#allocation2 + $0xb2] sm:$0xff]  ;;  %v16325_v41 = vld [vmem:[#allocation2 + $0x18a] sm:$0xff] }
 0x1b6   : > { %14224 = vmatprep.mubr.msk.f32.mxu0 %vm927_vm2, %v18676_v46  ;;  %v16247_v56 = vpop.f32.mrf.mxu1  ;;  %14142 = vmatpush3.msra.mxu1 %v11984_v17 }
 0x1b7   : > { %v16249_v60 = vpop.f32.mrf.mxu0  ;;  %14143 = vmatprep.subr.mxu1 %v11983_v23 }
 0x1b8   : > { %18677 = vst [vmem:[#allocation8_spill] sm:$0xff] %v16249_v60  ;;  %v16253_v3 = vpop.f32.mrf.mxu1  ;;  %14045 = vmatmul.mubr.msk.f32.gmra.mxu1 %vm927_vm2, %v2976_v61 }
 0x1b9   : > { %v16255_v12 = vpop.f32.mrf.mxu0  ;;  %14225 = vmatmul.mubr.msk.f32.gmra.mxu0 %vm927_vm2, %v18678_v15  ;;  %14047 = vmatprep.mubr.msk.f32.mxu1 %vm927_vm2, %v2977_v33  ;;  %v2987_v15 = vld [vmem:[#allocation2 + $0xc2] sm:$0xff] }
 0x1ba   : > { %14227 = vmatprep.mubr.msk.f32.mxu0 %vm927_vm2, %v16017_v16  ;;  %v16263_v42 = vpop.f32.mrf.mxu1  ;;  %14144 = vmatpush3.msra.mxu1 %v11983_v23  ;;  %v4174_v23 = vld [vmem:[#allocation2 + $0x19a] sm:$0xff]  ;;  %v4175_v33 = vld [vmem:[#allocation2 + $0x1a2] sm:$0xff] }
 0x1bb   : > { %v16265_v6 = vpop.f32.mrf.mxu0 }
 0x1bc   : > { %18679 = vst [vmem:[#allocation9_spill] sm:$0xff] %v16265_v6  ;;  %v16267_v62 = vpop.f32.mrf.mxu1  ;;  %14048 = vmatmul.mubr.msk.f32.gmra.mxu1 %vm927_vm2, %v2978_v7 }
 0x1bd   : > { %v16269_v2 = vpop.f32.mrf.mxu0  ;;  %14228 = vmatmul.mubr.msk.f32.gmra.mxu0 %vm927_vm2, %v16023_v18  ;;  %14050 = vmatprep.mubr.msk.f32.mxu1 %vm927_vm2, %v2979_v44 }
 0x1be   : > { %14230 = vmatprep.mubr.msk.f32.mxu0 %vm927_vm2, %v16030_v53  ;;  %v16277_v48 = vpop.f32.mrf.mxu1 }
 0x1bf   : > { %v16279_v5 = vpop.f32.mrf.mxu0 }
 0x1c0   : > { %18680 = vst [vmem:[#allocation10_spill] sm:$0xff] %v16279_v5  ;;  %v16281_v45 = vpop.f32.mrf.mxu1  ;;  %14051 = vmatmul.mubr.msk.f32.gmra.mxu1 %vm927_vm2, %v2980_v24  ;;  %v2988_v24 = vld [vmem:[#allocation2 + $0xca] sm:$0xff]  ;;  %v2994_v5 = vld [vmem:[#allocation2 + $0x112] sm:$0xff] }
 0x1c1   : > { %v16283_v25 = vpop.f32.mrf.mxu0  ;;  %14231 = vmatmul.mubr.msk.f32.gmra.mxu0 %vm927_vm2, %v16041_v40  ;;  %14053 = vmatprep.mubr.msk.f32.mxu1 %vm927_vm2, %v2981_v30 }
 0x1c2   : > { %14233 = vmatprep.mubr.msk.f32.mxu0 %vm927_vm2, %v16047_v49  ;;  %v16291_v47 = vpop.f32.mrf.mxu1 }
 0x1c3   : > { %v16293_v57 = vpop.f32.mrf.mxu0 }
 0x1c4   : > { %18681 = vst [vmem:[#allocation11_spill] sm:$0xff] %v16293_v57  ;;  %v16295_v8 = vpop.f32.mrf.mxu1  ;;  %14054 = vmatmul.mubr.msk.f32.gmra.mxu1 %vm927_vm2, %v2982_v59 }
 0x1c5   : > { %v16297_v58 = vpop.f32.mrf.mxu0  ;;  %14234 = vmatmul.mubr.msk.f32.gmra.mxu0 %vm927_vm2, %v16053_v20  ;;  %14056 = vmatprep.mubr.msk.f32.mxu1 %vm927_vm2, %v2983_v13  ;;  %v2989_v13 = vld [vmem:[#allocation2 + $0xda] sm:$0xff] }
 0x1c6   : > { %14236 = vmatprep.mubr.msk.f32.mxu0 %vm927_vm2, %v16059_v34  ;;  %v16305_v54 = vpop.f32.mrf.mxu1 }
 0x1c7   : > { %v16307_v17 = vpop.f32.mrf.mxu0 }
 0x1c8   : > { %18682 = vst [vmem:[#allocation12_spill] sm:$0xff] %v16307_v17  ;;  %v16309_v27 = vpop.f32.mrf.mxu1  ;;  %14057 = vmatmul.mubr.msk.f32.gmra.mxu1 %vm927_vm2, %v2984_v19 }
 0x1c9   : > { %v16311_v29 = vpop.f32.mrf.mxu0  ;;  %14237 = vmatmul.mubr.msk.f32.gmra.mxu0 %vm927_vm2, %v16065_v31  ;;  %14059 = vmatprep.mubr.msk.f32.mxu1 %vm927_vm2, %v2985_v37 }
 0x1ca   : > { %14239 = vmatprep.mubr.msk.f32.mxu0 %vm927_vm2, %v16316_v10  ;;  %v16321_v11 = vpop.f32.mrf.mxu1 }
 0x1cb   : > { %v16323_v22 = vpop.f32.mrf.mxu0 }
 0x1cc   : > { %18683 = vst [vmem:[#allocation13_spill] sm:$0xff] %v16323_v22  ;;  %v16327_v46 = vpop.f32.mrf.mxu1  ;;  %14060 = vmatmul.mubr.msk.f32.gmra.mxu1 %vm927_vm2, %v2986_v36 }
 0x1cd   : > { %v16329_v61 = vpop.f32.mrf.mxu0  ;;  %14240 = vmatmul.mubr.msk.f32.gmra.mxu0 %vm927_vm2, %v16325_v41  ;;  %14062 = vmatprep.mubr.msk.f32.mxu1 %vm927_vm2, %v2987_v15 }
 0x1ce   : > { %14242 = vmatprep.mubr.msk.f32.mxu0 %vm927_vm2, %v4174_v23  ;;  %v16336_v7 = vpop.f32.mrf.mxu1  ;;  %v2990_v23 = vld [vmem:[#allocation2 + $0xe2] sm:$0xff] }
 0x1cf   : > { %v16338_v44 = vpop.f32.mrf.mxu0 }
 0x1d0   : > { %18684 = vst [vmem:[#allocation14_spill] sm:$0xff] %v16338_v44  ;;  %v16340_v30 = vpop.f32.mrf.mxu1  ;;  %14063 = vmatmul.mubr.msk.f32.gmra.mxu1 %vm927_vm2, %v2988_v24  ;;  %v2991_v44 = vld [vmem:[#allocation2 + $0xf2] sm:$0xff] }
 0x1d1   : > { %v16342_v59 = vpop.f32.mrf.mxu0  ;;  %14243 = vmatmul.mubr.msk.f32.gmra.mxu0 %vm927_vm2, %v4175_v33  ;;  %14065 = vmatprep.mubr.msk.f32.mxu1 %vm927_vm2, %v2989_v13  ;;  %v2992_v33 = vld [vmem:[#allocation2 + $0xfa] sm:$0xff] }
 0x1d2   : > { %v16347_v19 = vpop.f32.mrf.mxu1 }
 0x1d3   : > { %v16349_v37 = vpop.f32.mrf.mxu0 }
 0x1d4   : > { %18685 = vst [vmem:[#allocation15_spill] sm:$0xff] %v16349_v37  ;;  %v16351_v36 = vpop.f32.mrf.mxu1  ;;  %14066 = vmatmul.mubr.msk.f32.gmra.mxu1 %vm927_vm2, %v2990_v23  ;;  %v2993_v37 = vld [vmem:[#allocation2 + $0x10a] sm:$0xff] }
 0x1d5   : > { %v16353_v15 = vpop.f32.mrf.mxu0  ;;  %14068 = vmatprep.mubr.msk.f32.mxu1 %vm927_vm2, %v2991_v44 }
 0x1d6   : > { %v16357_v24 = vpop.f32.mrf.mxu1 }
 0x1d7   : > { %18686 = vst [vmem:[#allocation16_spill] sm:$0xff] %v16357_v24  ;;  %v16359_v22 = vpop.f32.mrf.mxu0 }
 0x1d8   : > { %v16361_v13 = vpop.f32.mrf.mxu1  ;;  %14069 = vmatmul.mubr.msk.f32.gmra.mxu1 %vm927_vm2, %v2992_v33 }
 0x1d9   : > { %v16363_v17 = vpop.f32.mrf.mxu0  ;;  %14071 = vmatprep.mubr.msk.f32.mxu1 %vm927_vm2, %v2993_v37  ;;  %v16385_v37 = vld [vmem:[%s18631_s4] ss:$0 sm:$0xff] }
 0x1da   : > { %v16367_v57 = vpop.f32.mrf.mxu1 }
 0x1db   : > { %18687 = vst [vmem:[#allocation17_spill] sm:$0xff] %v16367_v57  ;;  %v16369_v23 = vpop.f32.mrf.mxu0 }
 0x1dc   : > { %18688 = vst [vmem:[#allocation18_spill] sm:$0xff] %v16369_v23  ;;  %v16371_v44 = vpop.f32.mrf.mxu1  ;;  %14072 = vmatmul.mubr.msk.f32.gmra.mxu1 %vm927_vm2, %v2994_v5 }
 0x1dd   : > { %v16373_v6 = vpop.f32.mrf.mxu0  ;;  %14074 = vmatprep.mubr.msk.f32.mxu1 %vm927_vm2, %v16017_v16 }
 0x1de   : > { %v16378_v60 = vpop.f32.mrf.mxu1 }
 0x1df   : > { %18689 = vst [vmem:[#allocation19_spill] sm:$0xff] %v16378_v60  ;;  %v16380_v33 = vpop.f32.mrf.mxu0 }
 0x1e0   : > { %18690 = vst [vmem:[#allocation20_spill] sm:$0xff] %v16380_v33  ;;  %v16387_v21 = vpop.f32.mrf.mxu1  ;;  %14075 = vmatmul.mubr.msk.f32.gmra.mxu1 %vm927_vm2, %v16023_v18  ;;  %v1382_v33 = vadd.f32 %v16177_v32, %v16385_v37 }
 0x1e1   : > { %v16389_v23 = vpop.f32.mrf.mxu0  ;;  %14077 = vmatprep.mubr.msk.f32.mxu1 %vm927_vm2, %v16030_v53 }
 0x1e2   : > { %18691 = vst [vmem:[#allocation21_spill] sm:$0xff] %v16389_v23  ;;  %v16395_v16 = vpop.f32.mrf.mxu1 }
 0x1e3   : > { %18692 = vst [vmem:[#allocation22_spill] sm:$0xff] %v16395_v16  ;;  %v16397_v5 = vpop.f32.mrf.mxu0 }
 0x1e4   : > { %18693 = vst [vmem:[#allocation23_spill] sm:$0xff] %v16397_v5  ;;  %v13835_v60 = vpop.f32.mrf.mxu1  ;;  %14078 = vmatmul.mubr.msk.f32.gmra.mxu1 %vm927_vm2, %v16041_v40  ;;  %v1384_v5 = vadd.f32 %v16191_v43, %v16385_v37  ;;  %v1383_v40 = vadd.f32 %v16385_v37, %v16203_v51  ;;  %v1386_v43 = vadd.f32 %v16207_v55, %v16385_v37 }
 0x1e5   : > { %v16401_v57 = vpop.f32.mrf.mxu0  ;;  %v16405_v23 = vadd.f32 %v13835_v60, %v1382_v33  ;;  %14080 = vmatprep.mubr.msk.f32.mxu1 %vm927_vm2, %v16047_v49  ;;  %v1388_v55 = vadd.f32 %v16222_v4, %v16385_v37  ;;  %v1390_v4 = vadd.f32 %v16237_v26, %v16385_v37  ;;  %v1392_v26 = vadd.f32 %v16253_v3, %v16385_v37 }
 0x1e6   : > { %v16409_v18 = vpop.f32.mrf.mxu1  ;;  %v1394_v3 = vadd.f32 %v16267_v62, %v16385_v37  ;;  %v1396_v62 = vadd.f32 %v16281_v45, %v16385_v37  ;;  %v1398_v45 = vadd.f32 %v16295_v8, %v16385_v37  ;;  %v1400_v8 = vadd.f32 %v16309_v27, %v16385_v37 }
 0x1e7   : > { %v16411_v53 = vpop.f32.mrf.mxu0  ;;  %v1402_v27 = vadd.f32 %v16327_v46, %v16385_v37  ;;  %v1404_v46 = vadd.f32 %v16340_v30, %v16385_v37  ;;  %v1406_v30 = vadd.f32 %v16351_v36, %v16385_v37  ;;  %v3773_v36 = vld [vmem:[#allocation2 + $0x111] sm:$0xff] }
 0x1e8   : > { %18694 = vst [vmem:[#allocation24_spill] sm:$0xff] %v16411_v53  ;;  %v13838_v16 = vpop.f32.mrf.mxu1  ;;  %14081 = vmatmul.mubr.msk.f32.gmra.mxu1 %vm927_vm2, %v16053_v20  ;;  %v1385_v20 = vadd.f32 %v16385_v37, %v16218_v0  ;;  %v1387_v0 = vadd.f32 %v16385_v37, %v16232_v14  ;;  %v1389_v14 = vadd.f32 %v16385_v37, %v16247_v56 }
 0x1e9   : > { %v16415_v32 = vpop.f32.mrf.mxu0  ;;  %v16421_v60 = vadd.f32 %v13838_v16, %v1384_v5  ;;  %14083 = vmatprep.mubr.msk.f32.mxu1 %vm927_vm2, %v16059_v34  ;;  %v1391_v56 = vadd.f32 %v16385_v37, %v16263_v42  ;;  %v1393_v42 = vadd.f32 %v16385_v37, %v16277_v48  ;;  %v1395_v48 = vadd.f32 %v16385_v37, %v16291_v47 }
 0x1ea   : > { %18695 = vst [vmem:[#allocation25_spill] sm:$0xff] %v16415_v32  ;;  %v1622_v49 = vpop.f32.mrf.mxu1  ;;  %v1397_v47 = vadd.f32 %v16385_v37, %v16305_v54  ;;  %v1399_v54 = vadd.f32 %v16385_v37, %v16321_v11  ;;  %v1401_v11 = vadd.f32 %v16385_v37, %v16336_v7  ;;  %v1403_v7 = vadd.f32 %v16385_v37, %v16347_v19 }
 0x1eb   : > { %v16425_v33 = vpop.f32.mrf.mxu0  ;;  %v16429_v53 = vadd.f32 %v1622_v49, %v1383_v40 }
 0x1ec   : > { %18696 = vst [vmem:[#allocation26_spill] sm:$0xff] %v16425_v33  ;;  %v13841_v32 = vpop.f32.mrf.mxu1  ;;  %14084 = vmatmul.mubr.msk.f32.gmra.mxu1 %vm927_vm2, %v16065_v31  ;;  %v3754_v31 = vld [vmem:[#allocation2 + $0x31] sm:$0xff] }
 0x1ed   : > { %v16431_v24 = vpop.f32.mrf.mxu0  ;;  %v16437_v51 = vadd.f32 %v13841_v32, %v1386_v43  ;;  %14086 = vmatprep.mubr.msk.f32.mxu1 %vm927_vm2, %v16316_v10 }
 0x1ee   : > { %v1632_v34 = vpop.f32.mrf.mxu1 }
 0x1ef   : > { %v16441_v16 = vpop.f32.mrf.mxu0  ;;  %v16445_v5 = vadd.f32 %v1632_v34, %v1385_v20  ;;  %v3755_v34 = vld [vmem:[#allocation2 + $0x39] sm:$0xff] }
 0x1f0   : > { %18697 = vst [vmem:[#allocation27_spill] sm:$0xff] %v16441_v16  ;;  %v13844_v40 = vpop.f32.mrf.mxu1  ;;  %14087 = vmatmul.mubr.msk.f32.gmra.mxu1 %vm927_vm2, %v16325_v41  ;;  %v3756_v41 = vld [vmem:[#allocation2 + $0x49] sm:$0xff] }
 0x1f1   : > { %v16447_v49 = vpop.f32.mrf.mxu0  ;;  %v16453_v32 = vadd.f32 %v13844_v40, %v1388_v55  ;;  %14145 = vmatprep.mubr.msk.f32.mxu1 %vm927_vm2, %v3754_v31 }
 0x1f2   : > { %18698 = vst [vmem:[#allocation28_spill] sm:$0xff] %v16447_v49  ;;  %v1642_v10 = vpop.f32.mrf.mxu1 }
 0x1f3   : > { %v16456_v43 = vpop.f32.mrf.mxu0  ;;  %v16460_v20 = vadd.f32 %v1642_v10, %v1387_v0  ;;  %v3757_v10 = vld [vmem:[#allocation2 + $0x51] sm:$0xff] }
 0x1f4   : > { %18699 = vst [vmem:[#allocation29_spill] sm:$0xff] %v16456_v43  ;;  %v13847_v49 = vpop.f32.mrf.mxu1  ;;  %14146 = vmatmul.mubr.msk.f32.vlgmr.msra.gmra.mxu1 %vm927_vm2, %v3755_v34  ;;  %v3758_v34 = vld [vmem:[#allocation2 + $0x61] sm:$0xff] }
 0x1f5   : > { %v16462_v16 = vpop.f32.mrf.mxu0  ;;  %v16467_v55 = vadd.f32 %v13847_v49, %v1390_v4  ;;  %14148 = vmatprep.mubr.msk.f32.mxu1 %vm927_vm2, %v3756_v41 }
 0x1f6   : > { %v1652_v40 = vpop.f32.mrf.mxu1 }
 0x1f7   : > { %v16470_v31 = vpop.f32.mrf.mxu0  ;;  %v16474_v0 = vadd.f32 %v1652_v40, %v1389_v14  ;;  %v3759_v40 = vld [vmem:[#allocation2 + $0x69] sm:$0xff] }
 0x1f8   : > { %18700 = vst [vmem:[#allocation30_spill] sm:$0xff] %v16470_v31  ;;  %v13850_v43 = vpop.f32.mrf.mxu1  ;;  %14149 = vmatmul.mubr.msk.f32.gmra.mxu1 %vm927_vm2, %v3757_v10  ;;  %v3760_v10 = vld [vmem:[#allocation2 + $0x79] sm:$0xff] }
 0x1f9   : > { %v16476_v33 = vpop.f32.mrf.mxu0  ;;  %v16481_v49 = vadd.f32 %v13850_v43, %v1392_v26  ;;  %14151 = vmatprep.mubr.msk.f32.mxu1 %vm927_vm2, %v3758_v34 }
 0x1fa   : > { %18701 = vst [vmem:[#allocation31_spill] sm:$0xff] %v16476_v33  ;;  %v1662_v4 = vpop.f32.mrf.mxu1 }
 0x1fb   : > { %v16484_v41 = vpop.f32.mrf.mxu0  ;;  %v16488_v14 = vadd.f32 %v1662_v4, %v1391_v56  ;;  %v3761_v4 = vld [vmem:[#allocation2 + $0x81] sm:$0xff] }
 0x1fc   : > { %18702 = vst [vmem:[#allocation32_spill] sm:$0xff] %v16484_v41  ;;  %v13853_v33 = vpop.f32.mrf.mxu1  ;;  %14152 = vmatmul.mubr.msk.f32.gmra.mxu1 %vm927_vm2, %v3759_v40  ;;  %v3762_v40 = vld [vmem:[#allocation2 + $0x91] sm:$0xff] }
 0x1fd   : > { %18703 = vst [vmem:[#allocation33_spill] sm:$0xff] %v16488_v14  ;;  %v16490_v31 = vpop.f32.mrf.mxu0  ;;  %v16495_v43 = vadd.f32 %v13853_v33, %v1394_v3  ;;  %14154 = vmatprep.mubr.msk.f32.mxu1 %vm927_vm2, %v3760_v10 }
 0x1fe   : > { %v1672_v26 = vpop.f32.mrf.mxu1 }
 0x1ff   : > { %v16498_v34 = vpop.f32.mrf.mxu0  ;;  %v16502_v56 = vadd.f32 %v1672_v26, %v1393_v42  ;;  %v3763_v26 = vld [vmem:[#allocation2 + $0x99] sm:$0xff] }
 0x200   : > { %18704 = vst [vmem:[#allocation34_spill] sm:$0xff] %v16498_v34  ;;  %v13856_v41 = vpop.f32.mrf.mxu1  ;;  %14155 = vmatmul.mubr.msk.f32.gmra.mxu1 %vm927_vm2, %v3761_v4  ;;  %v3764_v4 = vld [vmem:[#allocation2 + $0xa9] sm:$0xff] }
 0x201   : > { %18705 = vst [vmem:[#allocation35_spill] sm:$0xff] %v16502_v56  ;;  %v16504_v14 = vpop.f32.mrf.mxu0  ;;  %v16509_v33 = vadd.f32 %v13856_v41, %v1396_v62  ;;  %14157 = vmatprep.mubr.msk.f32.mxu1 %vm927_vm2, %v3762_v40 }
 0x202   : > { %18706 = vst [vmem:[#allocation36_spill] sm:$0xff] %v16504_v14  ;;  %v1682_v3 = vpop.f32.mrf.mxu1 }
 0x203   : > { %v16512_v10 = vpop.f32.mrf.mxu0  ;;  %v16516_v42 = vadd.f32 %v1682_v3, %v1395_v48  ;;  %v3765_v3 = vld [vmem:[#allocation2 + $0xb1] sm:$0xff] }
 0x204   : > { %18707 = vst [vmem:[#allocation37_spill] sm:$0xff] %v16512_v10  ;;  %v13859_v14 = vpop.f32.mrf.mxu1  ;;  %14158 = vmatmul.mubr.msk.f32.gmra.mxu1 %vm927_vm2, %v3763_v26  ;;  %v3766_v26 = vld [vmem:[#allocation2 + $0xc1] sm:$0xff] }
 0x205   : > { %18708 = vst [vmem:[#allocation38_spill] sm:$0xff] %v16516_v42  ;;  %v16518_v34 = vpop.f32.mrf.mxu0  ;;  %v16523_v41 = vadd.f32 %v13859_v14, %v1398_v45  ;;  %14160 = vmatprep.mubr.msk.f32.mxu1 %vm927_vm2, %v3764_v4 }
 0x206   : > { %v1692_v62 = vpop.f32.mrf.mxu1 }
 0x207   : > { %v16526_v40 = vpop.f32.mrf.mxu0  ;;  %v16530_v48 = vadd.f32 %v1692_v62, %v1397_v47  ;;  %v3767_v62 = vld [vmem:[#allocation2 + $0xc9] sm:$0xff] }
 0x208   : > { %18709 = vst [vmem:[#allocation39_spill] sm:$0xff] %v16526_v40  ;;  %v13862_v10 = vpop.f32.mrf.mxu1  ;;  %14161 = vmatmul.mubr.msk.f32.gmra.mxu1 %vm927_vm2, %v3765_v3  ;;  %v3768_v3 = vld [vmem:[#allocation2 + $0xd9] sm:$0xff] }
 0x209   : > { %18710 = vst [vmem:[#allocation40_spill] sm:$0xff] %v16530_v48  ;;  %v16532_v42 = vpop.f32.mrf.mxu0  ;;  %v16537_v14 = vadd.f32 %v13862_v10, %v1400_v8  ;;  %14163 = vmatprep.mubr.msk.f32.mxu1 %vm927_vm2, %v3766_v26 }
 0x20a   : > { %18711 = vst [vmem:[#allocation41_spill] sm:$0xff] %v16532_v42  ;;  %v1702_v45 = vpop.f32.mrf.mxu1 }
 0x20b   : > { %v16540_v4 = vpop.f32.mrf.mxu0  ;;  %v16544_v47 = vadd.f32 %v1702_v45, %v1399_v54  ;;  %v3769_v45 = vld [vmem:[#allocation2 + $0xe1] sm:$0xff] }
 0x20c   : > { %18712 = vst [vmem:[#allocation42_spill] sm:$0xff] %v16540_v4  ;;  %v13865_v42 = vpop.f32.mrf.mxu1  ;;  %14164 = vmatmul.mubr.msk.f32.gmra.mxu1 %vm927_vm2, %v3767_v62  ;;  %v3770_v62 = vld [vmem:[#allocation2 + $0xf1] sm:$0xff] }
 0x20d   : > { %18713 = vst [vmem:[#allocation43_spill] sm:$0xff] %v16544_v47  ;;  %v16546_v40 = vpop.f32.mrf.mxu0  ;;  %v16551_v10 = vadd.f32 %v13865_v42, %v1402_v27  ;;  %14166 = vmatprep.mubr.msk.f32.mxu1 %vm927_vm2, %v3768_v3 }
 0x20e   : > { %v1712_v8 = vpop.f32.mrf.mxu1 }
 0x20f   : > { %v16554_v26 = vpop.f32.mrf.mxu0  ;;  %v16558_v54 = vadd.f32 %v1712_v8, %v1401_v11  ;;  %v3771_v8 = vld [vmem:[#allocation2 + $0xf9] sm:$0xff] }
 0x210   : > { %18714 = vst [vmem:[#allocation44_spill] sm:$0xff] %v16554_v26  ;;  %v13868_v4 = vpop.f32.mrf.mxu1  ;;  %14167 = vmatmul.mubr.msk.f32.gmra.mxu1 %vm927_vm2, %v3769_v45  ;;  %v3772_v45 = vld [vmem:[#allocation2 + $0x109] sm:$0xff] }
 0x211   : > { %18715 = vst [vmem:[#allocation45_spill] sm:$0xff] %v16558_v54  ;;  %v16560_v47 = vpop.f32.mrf.mxu0  ;;  %v16565_v42 = vadd.f32 %v13868_v4, %v1404_v46  ;;  %14169 = vmatprep.mubr.msk.f32.mxu1 %vm927_vm2, %v3770_v62  ;;  %v1408_v62 = vadd.f32 %v16361_v13, %v16385_v37 }
 0x212   : > { %18716 = vst [vmem:[#allocation46_spill] sm:$0xff] %v16560_v47  ;;  %v1722_v27 = vpop.f32.mrf.mxu1 }
 0x213   : > { %v16568_v3 = vpop.f32.mrf.mxu0  ;;  %v16572_v11 = vadd.f32 %v1722_v27, %v1403_v7 }
 0x214   : > { %18717 = vst [vmem:[#allocation47_spill] sm:$0xff] %v16568_v3  ;;  %v13871_v47 = vpop.f32.mrf.mxu1  ;;  %14170 = vmatmul.mubr.msk.f32.gmra.mxu1 %vm927_vm2, %v3771_v8  ;;  %v3774_v3 = vld [vmem:[#allocation2 + $0x121] sm:$0xff]  ;;  %v1410_v8 = vadd.f32 %v16371_v44, %v16385_v37 }
 0x215   : > { %18718 = vst [vmem:[#allocation48_spill] sm:$0xff] %v16572_v11  ;;  %v16574_v26 = vpop.f32.mrf.mxu0  ;;  %v1796_v19 = vadd.f32 %v13871_v47, %v1406_v30  ;;  %14172 = vmatprep.mubr.msk.f32.mxu1 %vm927_vm2, %v3772_v45  ;;  %v3775_v45 = vld [vmem:[#allocation2 + $0x129] sm:$0xff] }
 0x216   : > { %v16578_v4 = vpop.f32.mrf.mxu1 }
 0x217   : > { %18719 = vst [vmem:[#allocation49_spill] sm:$0xff] %v16578_v4  ;;  %v16580_v46 = vpop.f32.mrf.mxu0 }
 0x218   : > { %18720 = vst [vmem:[#allocation50_spill] sm:$0xff] %v16580_v46  ;;  %v13874_v7 = vpop.f32.mrf.mxu1  ;;  %14173 = vmatmul.mubr.msk.f32.gmra.mxu1 %vm927_vm2, %v3773_v36  ;;  %v1412_v36 = vadd.f32 %v16387_v21, %v16385_v37  ;;  %v3780_v21 = vld [vmem:[#allocation2 + $0x169] sm:$0xff] }
 0x219   : > { %v16584_v27 = vpop.f32.mrf.mxu0  ;;  %v1798_v11 = vadd.f32 %v13874_v7, %v1408_v62  ;;  %14175 = vmatprep.mubr.msk.f32.mxu1 %vm927_vm2, %v3774_v3  ;;  %v3777_v7 = vld [vmem:[#allocation2 + $0x141] sm:$0xff] }
 0x21a   : > { %18721 = vst [vmem:[#allocation51_spill] sm:$0xff] %v16584_v27  ;;  %v16588_v47 = vpop.f32.mrf.mxu1  ;;  %v3776_v27 = vld [vmem:[#allocation2 + $0x139] sm:$0xff] }
 0x21b   : > { %18722 = vst [vmem:[#allocation52_spill] sm:$0xff] %v16588_v47  ;;  %v16590_v30 = vpop.f32.mrf.mxu0  ;;  %v3778_v47 = vld [vmem:[#allocation2 + $0x151] sm:$0xff] }
 0x21c   : > { %18723 = vst [vmem:[#allocation53_spill] sm:$0xff] %v16590_v30  ;;  %v13877_v54 = vpop.f32.mrf.mxu1  ;;  %14176 = vmatmul.mubr.msk.f32.gmra.mxu1 %vm927_vm2, %v3775_v45 }
 0x21d   : > { %v16594_v13 = vpop.f32.mrf.mxu0  ;;  %v1800_v4 = vadd.f32 %v13877_v54, %v1410_v8  ;;  %14178 = vmatprep.mubr.msk.f32.mxu1 %vm927_vm2, %v3776_v27  ;;  %v3779_v8 = vld [vmem:[#allocation2 + $0x159] sm:$0xff] }
 0x21e   : > { %v16598_v62 = vpop.f32.mrf.mxu1 }
 0x21f   : > { %18724 = vst [vmem:[#allocation54_spill] sm:$0xff] %v16598_v62  ;;  %v16600_v3 = vpop.f32.mrf.mxu0 }
 0x220   : > { %18725 = vst [vmem:[#allocation55_spill] sm:$0xff] %v16600_v3  ;;  %v13880_v30 = vpop.f32.mrf.mxu1  ;;  %14179 = vmatmul.mubr.msk.f32.gmra.mxu1 %vm927_vm2, %v3777_v7 }
 0x221   : > { %v16604_v44 = vpop.f32.mrf.mxu0  ;;  %v1802_v48 = vadd.f32 %v13880_v30, %v1412_v36  ;;  %14181 = vmatprep.mubr.msk.f32.mxu1 %vm927_vm2, %v3778_v47  ;;  %v3781_v47 = vld [vmem:[#allocation2 + $0x171] sm:$0xff] }
 0x222   : > { %18726 = vst [vmem:[#allocation56_spill] sm:$0xff] %v16604_v44  ;;  %v16608_v54 = vpop.f32.mrf.mxu1 }
 0x223   : > { %18727 = vst [vmem:[#allocation57_spill] sm:$0xff] %v16608_v54  ;;  %v16610_v27 = vpop.f32.mrf.mxu0 }
 0x224   : > { %18728 = vst [vmem:[#allocation58_spill] sm:$0xff] %v16610_v27  ;;  %v13923_v45 = vpop.f32.mrf.mxu1  ;;  %14182 = vmatmul.mubr.msk.f32.gmra.mxu1 %vm927_vm2, %v3779_v8  ;;  %v3782_v27 = vld [vmem:[#allocation2 + $0x181] sm:$0xff] }
 0x225   : > { %v16612_v62 = vpop.f32.mrf.mxu0  ;;  %v16615_v3 = vadd.f32 %v13923_v45, %v1796_v19  ;;  %14184 = vmatprep.mubr.msk.f32.mxu1 %vm927_vm2, %v3780_v21  ;;  %v3784_v45 = vld [vmem:[#allocation2 + $0x199] sm:$0xff]  ;;  %v3783_v21 = vld [vmem:[#allocation2 + $0x189] sm:$0xff] }
 0x226   : > { %v16618_v7 = vpop.f32.mrf.mxu1 }
 0x227   : > { %18729 = vst [vmem:[#allocation59_spill] sm:$0xff] %v16618_v7  ;;  %v16620_v30 = vpop.f32.mrf.mxu0 }
 0x228   : > { %18730 = vst [vmem:[#allocation60_spill] sm:$0xff] %v16620_v30  ;;  %v13926_v36 = vpop.f32.mrf.mxu1  ;;  %14185 = vmatmul.mubr.msk.f32.gmra.mxu1 %vm927_vm2, %v3781_v47  ;;  %v3785_v47 = vld [vmem:[#allocation2 + $0x1a1] sm:$0xff] }
 0x229   : > { %v16622_v54 = vpop.f32.mrf.mxu0  ;;  %v16625_v44 = vadd.f32 %v13926_v36, %v1798_v11  ;;  %14187 = vmatprep.mubr.msk.f32.mxu1 %vm927_vm2, %v3782_v27 }
 0x22a   : > { %18731 = vst [vmem:[#allocation61_spill] sm:$0xff] %v16622_v54  ;;  %v16628_v8 = vpop.f32.mrf.mxu1 }
 0x22b   : > { %18732 = vst [vmem:[#allocation62_spill] sm:$0xff] %v16628_v8  ;;  %v16630_v19 = vpop.f32.mrf.mxu0 }
 0x22c   : > { %18733 = vst [vmem:[#allocation63_spill] sm:$0xff] %v16630_v19  ;;  %v13929_v7 = vpop.f32.mrf.mxu1  ;;  %14188 = vmatmul.mubr.msk.f32.gmra.mxu1 %vm927_vm2, %v3783_v21 }
 0x22d   : > { %v16632_v46 = vpop.f32.mrf.mxu0  ;;  %v16635_v30 = vadd.f32 %v13929_v7, %v1800_v4  ;;  %14190 = vmatprep.mubr.msk.f32.mxu1 %vm927_vm2, %v3784_v45  ;;  %v2162_v4 = vadd.f32 %v16171_v28, %v16405_v23  ;;  %v2166_v28 = vadd.f32 %v16209_v63, %v16437_v51  ;;  %v2168_v63 = vadd.f32 %v16224_v9, %v16453_v32  ;;  %v12645_v32 = vld [vmem:[%s18632_s5 + $0x8] sm:$0xff]  }
 0x22e   : > { %v16638_v11 = vpop.f32.mrf.mxu1  ;;  %v2172_v9 = vadd.f32 %v16255_v12, %v16481_v49  ;;  %v11995_v12 = vunpack.c.l.bf16 %v12645_v32 }
 0x22f   : > { %18734 = vst [vmem:[#allocation64_spill] sm:$0xff] %v16638_v11  ;;  %v16640_v36 = vpop.f32.mrf.mxu0 }
 0x230   : > { %18735 = vst [vmem:[#allocation65_spill] sm:$0xff] %v16640_v36  ;;  %v13932_v27 = vpop.f32.mrf.mxu1  ;;  %14191 = vmatmul.mubr.msk.f32.gmra.mxu1 %vm927_vm2, %v3785_v47  ;;  %v2164_v36 = vadd.f32 %v16193_v50, %v16421_v60  ;;  %v18740_v50 = vmov 0.0  }
 0x231   : > { %v16642_v54 = vpop.f32.mrf.mxu0  ;;  %v16645_v19 = vadd.f32 %v13932_v27, %v1802_v48  ;;  %4570 = vst.msk [vmem:[#allocation3 + $0x10] sm:$0xff] %vm4566_vm4, %v18740_v50  ;;  %4567 = vst.msk [vmem:[#allocation3] sm:$0xff] %vm4566_vm4, %v18740_v50 }
 0x232   : > { %18736 = vst [vmem:[#allocation66_spill] sm:$0xff] %v16642_v54  ;;  %v16647_v8 = vpop.f32.mrf.mxu1  ;;  %4571 = vst.msk [vmem:[#allocation3 + $0x18] sm:$0x3] %vm4568_vm5, %v18740_v50 }
 0x233   : > { %18737 = vst [vmem:[#allocation67_spill] sm:$0xff] %v16647_v8  ;;  %v16651_v7 = vpop.f32.mrf.mxu0  ;;  %4569 = vst.msk [vmem:[#allocation3 + $0x8] sm:$0x3] %vm4568_vm5, %v18740_v50 }
 0x234   : > { %18738 = vst [vmem:[#allocation68_spill] sm:$0xff] %v16651_v7  ;;  %v13939_v45 = vpop.f32.mrf.mxu1  ;;  %4572 = vst.msk [vmem:[#allocation3 + $0x20] sm:$0xff] %vm4566_vm4, %v18740_v50 }
 0x235   : > { %v16653_v21 = vadd.f32 %v13939_v45, %v2162_v4  ;;  %v16659_v54 = vpop.f32.mrf.mxu0  ;;  %4573 = vst.msk [vmem:[#allocation3 + $0x28] sm:$0x3] %vm4568_vm5, %v18740_v50  ;;  %4575 = vst.msk [vmem:[#allocation3 + $0x38] sm:$0x3] %vm4568_vm5, %v18740_v50 }
 0x236   : > { %v16655_v11 = vpop.f32.mrf.mxu1  ;;  %4574 = vst.msk [vmem:[#allocation3 + $0x30] sm:$0xff] %vm4566_vm4, %v18740_v50  ;;  %4576 = vst.msk [vmem:[#allocation3 + $0x40] sm:$0xff] %vm4566_vm4, %v18740_v50 }
 0x237   : > { %v16667_v23 = vpop.f32.mrf.mxu0  ;;  %4577 = vst.msk [vmem:[#allocation3 + $0x48] sm:$0x3] %vm4568_vm5, %v18740_v50  ;;  %4579 = vst.msk [vmem:[#allocation3 + $0x58] sm:$0x3] %vm4568_vm5, %v18740_v50 }
 0x238   : > { %v13942_v47 = vpop.f32.mrf.mxu1  ;;  %18739 = vst [vmem:[#allocation69_spill] sm:$0xff] %v16667_v23  ;;  %4578 = vst.msk [vmem:[#allocation3 + $0x50] sm:$0xff] %vm4566_vm4, %v18740_v50 }
 0x239   : > { %v16661_v48 = vadd.f32 %v13942_v47, %v2164_v36  ;;  %4580 = vst.msk [vmem:[#allocation3 + $0x60] sm:$0xff] %vm4566_vm4, %v18740_v50  ;;  %4582 = vst.msk [vmem:[#allocation3 + $0x70] sm:$0xff] %vm4566_vm4, %v18740_v50  ;;  %v16715_v60 = vpop.f32.mrf.mxu0  ;;  %v2170_v47 = vadd.f32 %v16239_v35, %v16467_v55  ;;  %v11996_v55 = vunpack.c.h.bf16 %v12645_v32 }
 0x23a   : > { %v16663_v27 = vpop.f32.mrf.mxu1  ;;  %4581 = vst.msk [vmem:[#allocation3 + $0x68] sm:$0x3] %vm4568_vm5, %v18740_v50  ;;  %4583 = vst.msk [vmem:[#allocation3 + $0x78] sm:$0x3] %vm4568_vm5, %v18740_v50 }
 0x23b   : > { %4584 = vst.msk [vmem:[#allocation3 + $0x80] sm:$0xff] %vm4566_vm4, %v18740_v50  ;;  %4586 = vst.msk [vmem:[#allocation3 + $0x90] sm:$0xff] %vm4566_vm4, %v18740_v50  ;;  %14245 = vmatprep.subr.mxu1 %v11996_v55 }
 0x23c   : > { %v13945_v8 = vpop.f32.mrf.mxu1  ;;  %4585 = vst.msk [vmem:[#allocation3 + $0x88] sm:$0x3] %vm4568_vm5, %v18740_v50  ;;  %4587 = vst.msk [vmem:[#allocation3 + $0x98] sm:$0x3] %vm4568_vm5, %v18740_v50  ;;  %14246 = vmatpush3.msra.mxu1 %v11996_v55  ;;  %v2176_v55 = vadd.f32 %v16283_v25, %v16509_v33  ;;  %v2178_v25 = vadd.f32 %v16297_v58, %v16523_v41  ;;  %v2182_v58 = vadd.f32 %v16329_v61, %v16551_v10 }
 0x23d   : > { %v16669_v4 = vadd.f32 %v13945_v8, %v2166_v28  ;;  %18741 = vst [vmem:[#allocation70_spill] sm:$0xff] %v16715_v60  ;;  %v16723_v28 = vpop.f32.mrf.mxu0  ;;  %v11990_v60 = vld [vmem:[%s18632_s5] sm:$0xff]   ;;  %14247 = vmatprep.subr.mxu1 %v11995_v12 }
 0x23e   : > { %v16671_v45 = vpop.f32.mrf.mxu1  ;;  %18743 = vst [vmem:[#allocation72_spill] sm:$0xff] %v16723_v28  ;;  %v2174_v28 = vadd.f32 %v16269_v2, %v16495_v43  ;;  %v11992_v32 = vunpack.c.h.bf16 %v11990_v60  ;;  %14248 = vmatpush3.msra.mxu1 %v11995_v12  ;;  %v11991_v43 = vunpack.c.l.bf16 %v11990_v60 }
 0x240   : > { %v13948_v51 = vpop.f32.mrf.mxu1  ;;  %14249 = vmatprep.subr.mxu1 %v11992_v32 }
 0x241   : > { %v16717_v8 = vadd.f32 %v13948_v51, %v2168_v63  ;;  %v12647_v63 = vld [vmem:[%s18632_s5 + $0x18] sm:$0xff]   ;;  %v16737_v51 = vpop.f32.mrf.mxu0  ;;  %14250 = vmatpush3.msra.mxu1 %v11992_v32 }
 0x242   : > { %v16719_v36 = vpop.f32.mrf.mxu1  ;;  %v12004_v50 = vunpack.c.h.bf16 %v12647_v63  ;;  %v12003_v49 = vunpack.c.l.bf16 %v12647_v63  ;;  %14251 = vmatprep.subr.mxu1 %v11991_v43 }
 0x243   : > { %18742 = vst [vmem:[#allocation71_spill] sm:$0xff] %v16717_v8  ;;  %14252 = vmatpush3.msra.mxu1 %v11991_v43 }
 0x244   : > { %v13951_v23 = vpop.f32.mrf.mxu1  ;;  %14265 = vmatprep.subr.mxu0 %v12004_v50 }
 0x245   : > { %v16725_v7 = vadd.f32 %v13951_v23, %v2170_v47  ;;  %14266 = vmatpush3.msra.mxu0 %v12004_v50 }
 0x246   : > { %v16727_v56 = vpop.f32.mrf.mxu1  ;;  %14267 = vmatprep.subr.mxu0 %v12003_v49 }
 0x247   : > { %14268 = vmatpush3.msra.mxu0 %v12003_v49 }
 0x248   : > { %v13954_v35 = vpop.f32.mrf.mxu1 }
 0x249   : > { %v16739_v23 = vadd.f32 %v13954_v35, %v2172_v9  ;;  %v12646_v9 = vld [vmem:[%s18632_s5 + $0x10] sm:$0xff]   ;;  %v16751_v35 = vpop.f32.mrf.mxu0 }
 0x24a   : > { %v16741_v47 = vpop.f32.mrf.mxu1  ;;  %18746 = vst [vmem:[#allocation75_spill] sm:$0xff] %v16751_v35  ;;  %v12000_v63 = vunpack.c.h.bf16 %v12646_v9  ;;  %v11999_v50 = vunpack.c.l.bf16 %v12646_v9 }
 0x24b   : > { %18744 = vst [vmem:[#allocation73_spill] sm:$0xff] %v16739_v23  ;;  %18745 = vst [vmem:[#allocation74_spill] sm:$0xff] %v16741_v47  ;;  %v16759_v35 = vpop.f32.mrf.mxu0 }
 0x24c   : > { %v13957_v23 = vpop.f32.mrf.mxu1  ;;  %14269 = vmatprep.subr.mxu0 %v12000_v63  ;;  %18747 = vst [vmem:[#allocation76_spill] sm:$0xff] %v16759_v35 }
 0x24d   : > { %v16753_v47 = vadd.f32 %v13957_v23, %v2174_v28  ;;  %14270 = vmatpush3.msra.mxu0 %v12000_v63  ;;  %v4752_v28 = vld [vmem:[#allocation3] sm:$0xff]  ;;  %v16769_v33 = vpop.f32.mrf.mxu0 }
 0x24e   : > { %v16755_v2 = vpop.f32.mrf.mxu1  ;;  %14271 = vmatprep.subr.mxu0 %v11999_v50  ;;  %v4905_v23 = vld [vmem:[#allocation3 + $0x1] sm:$0xff]  ;;  %14253 = vmatprep.mubr.msk.f32.mxu1 %vm4566_vm4, %v4752_v28  ;;  %18749 = vst [vmem:[#allocation78_spill] sm:$0xff] %v16769_v33 }
 0x24f   : > { %14272 = vmatpush3.msra.mxu0 %v11999_v50  ;;  %14273 = vmatprep.mubr.msk.f32.mxu0 %vm4566_vm4, %v4905_v23  ;;  %v16777_v63 = vpop.f32.mrf.mxu0 }
 0x250   : > { %v13960_v8 = vpop.f32.mrf.mxu1 }
 0x251   : > { %v16761_v12 = vadd.f32 %v13960_v8, %v2176_v55  ;;  %v2180_v8 = vadd.f32 %v16311_v29, %v16537_v14  ;;  %v16785_v41 = vpop.f32.mrf.mxu0  ;;  %v2184_v29 = vadd.f32 %v16342_v59, %v16565_v42 }
 0x252   : > { %v16764_v49 = vpop.f32.mrf.mxu1  ;;  %18752 = vst [vmem:[#allocation81_spill] sm:$0xff] %v16785_v41 }
 0x253   : > { %18748 = vst [vmem:[#allocation77_spill] sm:$0xff] %v16761_v12  ;;  %v16793_v14 = vpop.f32.mrf.mxu0 }
 0x254   : > { %v13963_v60 = vpop.f32.mrf.mxu1  ;;  %18754 = vst [vmem:[#allocation83_spill] sm:$0xff] %v16793_v14 }
 0x255   : > { %v16771_v9 = vadd.f32 %v13963_v60, %v2178_v25  ;;  %v16799_v33 = vpop.f32.mrf.mxu0 }
 0x256   : > { %v16773_v32 = vpop.f32.mrf.mxu1  ;;  %18757 = vst [vmem:[#allocation86_spill] sm:$0xff] %v16799_v33 }
 0x258   : > { %v13966_v43 = vpop.f32.mrf.mxu1 }
 0x259   : > { %v16779_v55 = vadd.f32 %v13966_v43, %v2180_v8 }
 0x25a   : > { %v16781_v50 = vpop.f32.mrf.mxu1 }
 0x25b   : > { %18750 = vst [vmem:[#allocation79_spill] sm:$0xff] %v16779_v55  ;;  %18751 = vst [vmem:[#allocation80_spill] sm:$0xff] %v16781_v50  ;;  %v2958_v50 = vadd.f32 %v16462_v16, %v16771_v9 }
 0x25c   : > { %v13969_v28 = vpop.f32.mrf.mxu1 }
 0x25d   : > { %v16787_v23 = vadd.f32 %v13969_v28, %v2182_v58  ;;  %v16806_v28 = vpop.f32.mrf.mxu0 }
 0x25e   : > { %v16789_v25 = vpop.f32.mrf.mxu1 }
 0x25f   : > { %18753 = vst [vmem:[#allocation82_spill] sm:$0xff] %v16789_v25 }
 0x260   : > { %v13972_v60 = vpop.f32.mrf.mxu1 }
 0x261   : > { %v16795_v8 = vadd.f32 %v13972_v60, %v2184_v29  ;;  %v16813_v29 = vpop.f32.mrf.mxu0 }
 0x262   : > { %v16797_v43 = vpop.f32.mrf.mxu1  ;;  %18761 = vst [vmem:[#allocation90_spill] sm:$0xff] %v16813_v29 }
 0x263   : > { %18755 = vst [vmem:[#allocation84_spill] sm:$0xff] %v16795_v8  ;;  %18756 = vst [vmem:[#allocation85_spill] sm:$0xff] %v16797_v43 }
 0x264   : > { %v13975_v61 = vpop.f32.mrf.mxu1 }
 0x265   : > { %v16802_v10 = vadd.f32 %v13975_v61, %v16615_v3  ;;  %v16820_v3 = vpop.f32.mrf.mxu0 }
 0x266   : > { %v16804_v58 = vpop.f32.mrf.mxu1  ;;  %18763 = vst [vmem:[#allocation92_spill] sm:$0xff] %v16820_v3 }
 0x267   : > { %18758 = vst [vmem:[#allocation87_spill] sm:$0xff] %v16804_v58 }
 0x268   : > { %v13978_v41 = vpop.f32.mrf.mxu1 }
 0x269   : > { %v16809_v59 = vadd.f32 %v13978_v41, %v16625_v44  ;;  %v2942_v44 = vadd.f32 %v16353_v15, %v16653_v21  ;;  %v16829_v41 = vpop.f32.mrf.mxu0  ;;  %v16847_v15 = vld [vmem:[%s18632_s5 + $0x28] sm:$0xff]   ;;  %v16852_v21 = vld [vmem:[%s18632_s5 + $0x38] sm:$0xff]  }
 0x26a   : > { %v16811_v42 = vpop.f32.mrf.mxu1  ;;  %18766 = vst [vmem:[#allocation95_spill] sm:$0xff] %v16829_v41  ;;  %18767 = vst [vmem:[#allocation96_spill] sm:$0xff] %v16847_v15 }
 0x26b   : > { %18759 = vst [vmem:[#allocation88_spill] sm:$0xff] %v16809_v59  ;;  %18760 = vst [vmem:[#allocation89_spill] sm:$0xff] %v16811_v42 }
 0x26c   : > { %v13981_v60 = vpop.f32.mrf.mxu1  ;;  %18768 = vst [vmem:[#allocation97_spill] sm:$0xff] %v16852_v21 }
 0x26d   : > { %v16816_v14 = vadd.f32 %v13981_v60, %v16635_v30  ;;  %v16836_v60 = vpop.f32.mrf.mxu0 }
 0x26e   : > { %v16818_v33 = vpop.f32.mrf.mxu1 }
 0x26f   : > { %18762 = vst [vmem:[#allocation91_spill] sm:$0xff] %v16818_v33 }
 0x270   : > { %v13984_v61 = vpop.f32.mrf.mxu1 }
 0x271   : > { %v16823_v35 = vadd.f32 %v13984_v61, %v16645_v19  ;;  %v2946_v61 = vadd.f32 %v16373_v6, %v16669_v4 }
 0x272   : > { %v16825_v58 = vpop.f32.mrf.mxu1 }
 0x273   : > { %18764 = vst [vmem:[#allocation93_spill] sm:$0xff] %v16823_v35  ;;  %18765 = vst [vmem:[#allocation94_spill] sm:$0xff] %v16825_v58 }
 0x274   : > { %v14043_v29 = vpop.f32.mrf.mxu1 }
 0x275   : > { %v3332_v59 = vadd.f32 %v14043_v29, %v2942_v44  ;;  %v18653_v29 = vunpack.c.h.bf16 %v16847_v15  ;;  %v18654_v44 = vunpack.c.h.bf16 %v16852_v21  ;;  %v2954_v21 = vadd.f32 %v16431_v24, %v16753_v47 }
 0x276   : > { %v16831_v42 = vpop.f32.mrf.mxu1 }
 0x277   : > { %v16834_v30 = vadd.f32 %v16574_v26, %v3332_v59  ;;  %v16854_v26 = vpop.f32.mrf.mxu0  ;;  %14285 = vmatprep.subr.mxu1 %v18653_v29  ;;  %14305 = vmatprep.subr.mxu0 %v18654_v44 }
 0x278   : > { %v16838_v3 = vpop.f32.mrf.mxu1 }
 0x279   : > { %v16867_v4 = vpop.f32.mrf.mxu0 }
 0x27a   : > { %v16840_v19 = vpop.f32.mrf.mxu1 }
 0x27c   : > { %v14049_v59 = vpop.f32.mrf.mxu1 }
 0x27d   : > { %v3336_v41 = vadd.f32 %v14049_v59, %v2946_v61  ;;  %v2950_v61 = vadd.f32 %v16401_v57, %v16725_v7  ;;  %v16875_v59 = vpop.f32.mrf.mxu0 }
 0x27e   : > { %v16858_v35 = vpop.f32.mrf.mxu1 }
 0x27f   : > { %v16865_v6 = vadd.f32 %v16594_v13, %v3336_v41  ;;  %v16882_v13 = vpop.f32.mrf.mxu0 }
 0x280   : > { %v16869_v58 = vpop.f32.mrf.mxu1 }
 0x281   : > { %v16890_v15 = vpop.f32.mrf.mxu0 }
 0x282   : > { %v16871_v33 = vpop.f32.mrf.mxu1 }
 0x284   : > { %v14055_v8 = vpop.f32.mrf.mxu1 }
 0x285   : > { %v3340_v43 = vadd.f32 %v14055_v8, %v2950_v61 }
 0x286   : > { %v16877_v29 = vpop.f32.mrf.mxu1 }
 0x287   : > { %v16880_v44 = vadd.f32 %v16612_v62, %v3340_v43  ;;  %v16897_v62 = vpop.f32.mrf.mxu0 }
 0x288   : > { %v16884_v41 = vpop.f32.mrf.mxu1 }
 0x289   : > { %18769 = vst [vmem:[#allocation98_spill] sm:$0xff] %v16880_v44  ;;  %v16905_v12 = vpop.f32.mrf.mxu0 }
 0x28a   : > { %v16886_v25 = vpop.f32.mrf.mxu1 }
 0x28c   : > { %v14061_v57 = vpop.f32.mrf.mxu1 }
 0x28d   : > { %v3344_v7 = vadd.f32 %v14061_v57, %v2954_v21 }
 0x28e   : > { %v16892_v55 = vpop.f32.mrf.mxu1 }
 0x28f   : > { %v16895_v8 = vadd.f32 %v16632_v46, %v3344_v7  ;;  %v16912_v46 = vpop.f32.mrf.mxu0 }
 0x290   : > { %v16899_v43 = vpop.f32.mrf.mxu1 }
 0x291   : > { %18770 = vst [vmem:[#allocation99_spill] sm:$0xff] %v16895_v8  ;;  %18771 = vst [vmem:[#allocation100_spill] sm:$0xff] %v16899_v43  ;;  %v2962_v8 = vadd.f32 %v16490_v31, %v16787_v23  ;;  %v2966_v31 = vadd.f32 %v16518_v34, %v16802_v10  ;;  %v2970_v10 = vadd.f32 %v16546_v40, %v16816_v14 }
 0x292   : > { %v16901_v61 = vpop.f32.mrf.mxu1 }
 0x293   : > { %18772 = vst [vmem:[#allocation101_spill] sm:$0xff] %v16901_v61  ;;  %v16920_v61 = vpop.f32.mrf.mxu0 }
 0x294   : > { %v14067_v24 = vpop.f32.mrf.mxu1 }
 0x295   : > { %v3348_v47 = vadd.f32 %v14067_v24, %v2958_v50 }
 0x296   : > { %v16907_v44 = vpop.f32.mrf.mxu1 }
 0x297   : > { %v16910_v21 = vadd.f32 %v16659_v54, %v3348_v47  ;;  %v16927_v54 = vpop.f32.mrf.mxu0 }
 0x298   : > { %v16914_v57 = vpop.f32.mrf.mxu1 }
 0x299   : > { %18773 = vst [vmem:[#allocation102_spill] sm:$0xff] %v16910_v21  ;;  %v1381_v21 = vadd.f32 %v16385_v37, %v16189_v39  ;;  %v16937_v23 = vpop.f32.mrf.mxu0 }
 0x29a   : > { %v16916_v7 = vpop.f32.mrf.mxu1 }
 0x29c   : > { %v14073_v16 = vpop.f32.mrf.mxu1 }
 0x29d   : > { %v3352_v9 = vadd.f32 %v14073_v16, %v2962_v8  ;;  %v1771_v16 = vadd.f32 %v16409_v18, %v1381_v21 }
 0x29e   : > { %v16922_v43 = vpop.f32.mrf.mxu1 }
 0x29f   : > { %18774 = vst [vmem:[#allocation103_spill] sm:$0xff] %v16922_v43  ;;  %v16925_v50 = vadd.f32 %v16737_v51, %v3352_v9  ;;  %v2161_v39 = vadd.f32 %v16183_v38, %v1771_v16 }
 0x2a0   : > { %v16929_v24 = vpop.f32.mrf.mxu1 }
 0x2a1   : > { %18775 = vst [vmem:[#allocation104_spill] sm:$0xff] %v16925_v50  ;;  %18776 = vst [vmem:[#allocation105_spill] sm:$0xff] %v16929_v24  ;;  %v16945_v50 = vpop.f32.mrf.mxu0  ;;  %v2551_v34 = vadd.f32 %v16655_v11, %v2161_v39  ;;  %v2165_v11 = vadd.f32 %v16220_v1, %v16445_v5  ;;  %v18788_v1 = vld [vmem:[#allocation19_spill] sm:$0xff] }
 0x2a2   : > { %v16931_v47 = vpop.f32.mrf.mxu1  ;;  %v16984_v5 = vadd.f32 %v16385_v37, %v18788_v1 }
 0x2a3   : > { %18777 = vst [vmem:[#allocation106_spill] sm:$0xff] %v16931_v47  ;;  %v16955_v18 = vpop.f32.mrf.mxu0  ;;  %v2941_v38 = vadd.f32 %v16359_v22, %v2551_v34  ;;  %v2555_v22 = vadd.f32 %v16671_v45, %v2165_v11 }
 0x2a4   : > { %v14079_v8 = vpop.f32.mrf.mxu1 }
 0x2a5   : > { %v3356_v43 = vadd.f32 %v14079_v8, %v2966_v31  ;;  %v16968_v40 = vpop.f32.mrf.mxu0  ;;  %v3331_v39 = vadd.f32 %v16831_v42, %v2941_v38  ;;  %v18790_v42 = vld [vmem:[#allocation18_spill] sm:$0xff]  ;;  %v18794_v38 = vld [vmem:[#allocation8_spill] sm:$0xff] }
 0x2a6   : > { %v16940_v51 = vpop.f32.mrf.mxu1  ;;  %v2169_v11 = vadd.f32 %v18794_v38, %v16474_v0  ;;  %v18803_v0 = vld [vmem:[#allocation12_spill] sm:$0xff] }
 0x2a7   : > { %18778 = vst [vmem:[#allocation107_spill] sm:$0xff] %v16940_v51  ;;  %v16943_v9 = vadd.f32 %v16777_v63, %v3356_v43  ;;  %v2163_v63 = vadd.f32 %v16205_v52, %v16429_v53  ;;  %v2944_v52 = vadd.f32 %v16363_v17, %v16661_v48  ;;  %v18785_v53 = vld [vmem:[#allocation16_spill] sm:$0xff]  ;;  %v18793_v48 = vld [vmem:[#allocation7_spill] sm:$0xff] }
 0x2a8   : > { %v16947_v47 = vpop.f32.mrf.mxu1  ;;  %v2167_v45 = vadd.f32 %v18793_v48, %v16460_v20  ;;  %v18801_v20 = vld [vmem:[#allocation11_spill] sm:$0xff] }
 0x2a9   : > { %18779 = vst [vmem:[#allocation108_spill] sm:$0xff] %v16943_v9  ;;  %18780 = vst [vmem:[#allocation109_spill] sm:$0xff] %v16947_v47  ;;  %v2553_v8 = vadd.f32 %v16663_v27, %v2163_v63  ;;  %v1405_v27 = vadd.f32 %v16385_v37, %v18785_v53  ;;  %v18795_v53 = vld [vmem:[#allocation33_spill] sm:$0xff]  ;;  %v18802_v9 = vld [vmem:[#allocation40_spill] sm:$0xff] }
 0x2aa   : > { %v16950_v24 = vpop.f32.mrf.mxu1  ;;  %v17009_v38 = vadd.f32 %v18803_v0, %v18802_v9  ;;  %v18806_v47 = vld [vmem:[#allocation20_spill] sm:$0xff] }
 0x2ab   : > { %18781 = vst [vmem:[#allocation110_spill] sm:$0xff] %v16950_v24  ;;  %v2943_v63 = vadd.f32 %v18790_v42, %v2553_v8  ;;  %v18799_v42 = vld [vmem:[#allocation50_spill] sm:$0xff]  ;;  %v2945_v51 = vadd.f32 %v18806_v47, %v2555_v22  ;;  %v18812_v0 = vld [vmem:[#allocation48_spill] sm:$0xff]  ;;  %v18814_v22 = vld [vmem:[#allocation59_spill] sm:$0xff] }
 0x2ac   : > { %v14085_v21 = vpop.f32.mrf.mxu1 }
 0x2ad   : > { %v3360_v43 = vadd.f32 %v14085_v21, %v2970_v10  ;;  %v3334_v21 = vadd.f32 %v16838_v3, %v2944_v52  ;;  %v18798_v3 = vld [vmem:[#allocation10_spill] sm:$0xff]  ;;  %v3333_v8 = vadd.f32 %v16840_v19, %v2943_v63  ;;  %v3335_v47 = vadd.f32 %v16858_v35, %v2945_v51  ;;  %v18819_v35 = vld [vmem:[#allocation23_spill] sm:$0xff] }
 0x2ae   : > { %v16959_v31 = vpop.f32.mrf.mxu1 }
 0x2af   : > { %18782 = vst [vmem:[#allocation111_spill] sm:$0xff] %v16959_v31  ;;  %v16964_v16 = vadd.f32 %v16806_v28, %v3360_v43  ;;  %v18787_v28 = vld [vmem:[#allocation17_spill] sm:$0xff]  ;;  %v18791_v43 = vld [vmem:[#allocation22_spill] sm:$0xff] }
 0x2b0   : > { %v16970_v14 = vpop.f32.mrf.mxu1  ;;  %v1407_v10 = vadd.f32 %v16385_v37, %v18787_v28  ;;  %18789 = vst [vmem:[#allocation17_spill] sm:$0xff] %v16984_v5  ;;  %v16990_v17 = vadd.f32 %v16385_v37, %v18791_v43  ;;  %v18796_v28 = vld [vmem:[#allocation9_spill] sm:$0xff]  ;;  %v3722_v43 = vadd.f32 %v18799_v42, %v3331_v39  ;;  %v18800_v31 = vld [vmem:[#allocation38_spill] sm:$0xff]  ;;  %v18808_v39 = vld [vmem:[#allocation51_spill] sm:$0xff] }
 0x2b1   : > { %18783 = vst [vmem:[#allocation112_spill] sm:$0xff] %v16964_v16  ;;  %18784 = vst [vmem:[#allocation113_spill] sm:$0xff] %v16970_v14  ;;  %v2171_v16 = vadd.f32 %v18796_v28, %v18795_v53  ;;  %v18797_v14 = vld [vmem:[#allocation35_spill] sm:$0xff]  ;;  %v2175_v48 = vadd.f32 %v18801_v20, %v18800_v31  ;;  %v18805_v28 = vld [vmem:[#allocation13_spill] sm:$0xff] }
 0x2b2   : > { %v16978_v34 = vpop.f32.mrf.mxu1  ;;  %18792 = vst [vmem:[#allocation19_spill] sm:$0xff] %v16990_v17  ;;  %v2173_v52 = vadd.f32 %v18798_v3, %v18797_v14  ;;  %v18804_v53 = vld [vmem:[#allocation43_spill] sm:$0xff]  ;;  %v18807_v3 = vld [vmem:[#allocation49_spill] sm:$0xff]  ;;  %v18809_v42 = vld [vmem:[#allocation52_spill] sm:$0xff] }
 0x2b3   : > { %18786 = vst [vmem:[#allocation16_spill] sm:$0xff] %v16978_v34  ;;  %v16998_v34 = vpop.f32.mrf.mxu0  ;;  %v17013_v24 = vadd.f32 %v18805_v28, %v18804_v53  ;;  %v1795_v19 = vadd.f32 %v18807_v3, %v1405_v27  ;;  %v1797_v31 = vadd.f32 %v18809_v42, %v1407_v10  ;;  %v18810_v20 = vld [vmem:[#allocation45_spill] sm:$0xff]  ;;  %v18811_v17 = vld [vmem:[#allocation14_spill] sm:$0xff]  ;;  %v18813_v5 = vld [vmem:[#allocation15_spill] sm:$0xff]  ;;  %v2559_v3 = vadd.f32 %v16727_v56, %v2169_v11 }
 0x2b4   : > { %v14147_v1 = vpop.f32.mrf.mxu1  ;;  %v17022_v9 = vadd.f32 %v18811_v17, %v18810_v20  ;;  %v17026_v53 = vadd.f32 %v18813_v5, %v18812_v0  ;;  %v18815_v10 = vld [vmem:[#allocation53_spill] sm:$0xff]  ;;  %v18817_v5 = vld [vmem:[#allocation71_spill] sm:$0xff] }
 0x2b5   : > { %v4113_v37 = vadd.f32 %v14147_v1, %v16834_v30  ;;  %v2557_v30 = vadd.f32 %v16719_v36, %v2167_v45  ;;  %v3725_v1 = vadd.f32 %v18808_v39, %v3334_v21  ;;  %v17028_v28 = vpop.f32.mrf.mxu0  ;;  %v17032_v36 = vadd.f32 %v18814_v22, %v1795_v19  ;;  %v18818_v39 = vld [vmem:[#allocation21_spill] sm:$0xff]  ;;  %v18821_v11 = vld [vmem:[#allocation55_spill] sm:$0xff] }
 0x2b6   : > { %v3953_v14 = vpop.f32.mrf.mxu1  ;;  %v2948_v42 = vadd.f32 %v18818_v39, %v18817_v5  ;;  %v2563_v39 = vadd.f32 %v16755_v2, %v2173_v52 }
 0x2b7   : > { %v4112_v63 = vadd.f32 %v3953_v14, %v3722_v43  ;;  %v4503_v21 = vadd.f32 %v16836_v60, %v4113_v37  ;;  %v3724_v43 = vadd.f32 %v18815_v10, %v3333_v8  ;;  %v18816_v14 = vld [vmem:[#allocation62_spill] sm:$0xff]  ;;  %v2947_v51 = vadd.f32 %v18819_v35, %v2557_v30  ;;  %v17046_v8 = vpop.f32.mrf.mxu0 }
 0x2b8   : > { %v14150_v27 = vpop.f32.mrf.mxu1  ;;  %v17037_v17 = vadd.f32 %v18816_v14, %v1797_v31  ;;  %v18820_v37 = vld [vmem:[#allocation74_spill] sm:$0xff]  ;;  %v3338_v31 = vadd.f32 %v16869_v58, %v2948_v42  ;;  %v18824_v42 = vld [vmem:[#allocation25_spill] sm:$0xff] }
 0x2b9   : > { %v4115_v45 = vadd.f32 %v14150_v27, %v3725_v1  ;;  %v4502_v19 = vadd.f32 %v16854_v26, %v4112_v63  ;;  %v2561_v1 = vadd.f32 %v18820_v37, %v2171_v16  ;;  %v3726_v27 = vadd.f32 %v18821_v11, %v3335_v47  ;;  %v18822_v26 = vld [vmem:[#allocation24_spill] sm:$0xff]  ;;  %v17055_v47 = vpop.f32.mrf.mxu0 }
 0x2ba   : > { %v3963_v20 = vpop.f32.mrf.mxu1  ;;  %v3337_v22 = vadd.f32 %v16871_v33, %v2947_v51  ;;  %v4535_v10 = vmax.f32 %v4503_v21, 0.0  ;;  %v2949_v63 = vadd.f32 %v18822_v26, %v2559_v3  ;;  %v18823_v21 = vld [vmem:[#allocation73_spill] sm:$0xff]  ;;  %v18826_v51 = vld [vmem:[#allocation26_spill] sm:$0xff]  ;;  %v18828_v26 = vld [vmem:[#allocation27_spill] sm:$0xff] }
 0x2bb   : > { %v4505_v0 = vadd.f32 %v16867_v4, %v4115_v45  ;;  %v4114_v60 = vadd.f32 %v3963_v20, %v3724_v43  ;;  %v4534_v45 = vmax.f32 %v4502_v19, 0.0  ;;  %v18825_v20 = vld [vmem:[#allocation56_spill] sm:$0xff]  ;;  %v18827_v19 = vld [vmem:[#allocation58_spill] sm:$0xff] }
 0x2bc   : > { %v14153_v56 = vpop.f32.mrf.mxu1  ;;  %v3339_v33 = vadd.f32 %v16877_v29, %v2949_v63  ;;  %v3729_v3 = vadd.f32 %v18825_v20, %v3338_v31  ;;  %v3728_v37 = vadd.f32 %v18827_v19, %v3337_v22  ;;  %v2953_v22 = vadd.f32 %v18828_v26, %v2563_v39  ;;  %v18835_v20 = vld [vmem:[#allocation80_spill] sm:$0xff] }
 0x2bd   : > { %v4537_v14 = vmax.f32 %v4505_v0, 0.0  ;;  %v4504_v30 = vadd.f32 %v16875_v59, %v4114_v60  ;;  %v4117_v4 = vadd.f32 %v14153_v56, %v16865_v6  ;;  %v2952_v59 = vadd.f32 %v18824_v42, %v18823_v21  ;;  %v18834_v42 = vld [vmem:[#allocation61_spill] sm:$0xff] }
 0x2be   : > { %v3973_v16 = vpop.f32.mrf.mxu1  ;;  %v2951_v0 = vadd.f32 %v18826_v51, %v2561_v1  ;;  %v2565_v56 = vadd.f32 %v16764_v49, %v2175_v48  ;;  %v2567_v1 = vadd.f32 %v16773_v32, %v17009_v38  ;;  %v18830_v38 = vld [vmem:[#allocation98_spill] sm:$0xff]  ;;  %v3343_v51 = vadd.f32 %v16892_v55, %v2953_v22 }
 0x2bf   : > { %v4589_v43 = vmax.f32 %v4535_v10, %v4537_v14  ;;  %v4536_v58 = vmax.f32 %v4504_v30, 0.0  ;;  %v4116_v5 = vadd.f32 %v3973_v16, %v3726_v27  ;;  %v3342_v2 = vadd.f32 %v16884_v41, %v2952_v59  ;;  %v17069_v30 = vpop.f32.mrf.mxu0  ;;  %v18829_v41 = vld [vmem:[#allocation60_spill] sm:$0xff]  ;;  %v18831_v16 = vld [vmem:[#allocation77_spill] sm:$0xff] }
 0x2c0   : > { %v14156_v35 = vpop.f32.mrf.mxu1  ;;  %v4507_v52 = vadd.f32 %v16882_v13, %v4117_v4  ;;  %v3730_v63 = vadd.f32 %v18829_v41, %v3339_v33  ;;  %v3341_v13 = vadd.f32 %v16886_v25, %v2951_v0  ;;  %v18836_v0 = vld [vmem:[#allocation30_spill] sm:$0xff] }
 0x2c1   : > { %v4604_v6 = vrot.slane %v4589_v43, 1  ;;  %v4588_v60 = vmax.f32 %v4534_v45, %v4536_v58  ;;  %v4119_v11 = vadd.f32 %v14156_v35, %v3729_v3  ;;  %v4506_v14 = vadd.f32 %v16890_v15, %v4116_v5  ;;  %v17091_v35 = vpop.f32.mrf.mxu0 }
 0x2c2   : > { %v3983_v29 = vpop.f32.mrf.mxu1  ;;  %v4539_v5 = vmax.f32 %v4507_v52, 0.0  ;;  %v3733_v59 = vadd.f32 %v18834_v42, %v3342_v2  ;;  %v2569_v3 = vadd.f32 %v18835_v20, %v17013_v24  ;;  %v18840_v24 = vld [vmem:[#allocation96_spill] sm:$0xff] }
 0x2c3   : > { %v4606_v27 = vmax.f32 %v4589_v43, %v4604_v6  ;;  %v4591_v10 = vrot.slane %v4588_v60, 1  ;;  %v4118_v31 = vadd.f32 %v3983_v29, %v3728_v37  ;;  %v4509_v49 = vadd.f32 %v16897_v62, %v4119_v11  ;;  %v18832_v62 = vld [vmem:[#allocation28_spill] sm:$0xff]  ;;  %v18833_v43 = vld [vmem:[#allocation29_spill] sm:$0xff]  ;;  %v18837_v11 = vld [vmem:[#allocation63_spill] sm:$0xff] }
 0x2c4   : > { %v14159_v48 = vpop.f32.mrf.mxu1  ;;  %v2956_v45 = vadd.f32 %v18832_v62, %v18831_v16  ;;  %v2955_v58 = vadd.f32 %v18833_v43, %v2565_v56  ;;  %v4538_v33 = vmax.f32 %v4506_v14, 0.0  ;;  %v2957_v6 = vadd.f32 %v18836_v0, %v2567_v1 }
 0x2c5   : > { %4607 = vst.msk [vmem:[#allocation3 + $0x15] sm:$0x1] %vm4595_vm6, %v4606_v27  ;;  %v4593_v32 = vmax.f32 %v4588_v60, %v4591_v10  ;;  %v4508_v15 = vadd.f32 %v16905_v12, %v4118_v31  ;;  %v4121_v4 = vadd.f32 %v14159_v48, %v18830_v38  ;;  %v4541_v25 = vmax.f32 %v4509_v49, 0.0  ;;  %v18839_v10 = vld [vmem:[#allocation31_spill] sm:$0xff]  ;;  %v18841_v49 = vld [vmem:[#allocation97_spill] sm:$0xff] }
 0x2c6   : > { %4608 = vst.msk [vmem:[#allocation3 + $0x14] sm:$0x4] %vm4597_vm7, %v4606_v27  ;;  %v3993_v39 = vpop.f32.mrf.mxu1  ;;  %v3732_v29 = vadd.f32 %v18837_v11, %v3341_v13  ;;  %v12011_v26 = vunpack.c.l.bf16 %v18840_v24  ;;  %v12019_v48 = vunpack.c.l.bf16 %v18841_v49  ;;  %v17113_v13 = vpop.f32.mrf.mxu0  ;;  %v18843_v38 = vld [vmem:[#allocation101_spill] sm:$0xff]  ;;  %v3347_v11 = vadd.f32 %v16907_v44, %v2957_v6 }
 0x2c7   : > { %4609 = vst.msk [vmem:[#allocation3 + $0x13] sm:$0x10] %vm4599_vm8, %v4606_v27  ;;  %4600 = vst.msk [vmem:[#allocation3 + $0xf] sm:$0x10] %vm4599_vm8, %v4593_v32  ;;  %v4540_v12 = vmax.f32 %v4508_v15, 0.0  ;;  %v4120_v21 = vadd.f32 %v3993_v39, %v3730_v63  ;;  %v4612_v60 = vmax.f32 %v4539_v5, %v4541_v25  ;;  %v4511_v56 = vadd.f32 %v16912_v46, %v4121_v4  ;;  %v17106_v46 = vld [vmem:[%s18632_s5 + $0x20] sm:$0xff]  }
 0x2c8   : > { %4610 = vst.msk [vmem:[#allocation3 + $0x12] sm:$0x40] %vm4601_vm9, %v4606_v27  ;;  %4602 = vst.msk [vmem:[#allocation3 + $0xe] sm:$0x40] %vm4601_vm9, %v4593_v32  ;;  %v14162_v19 = vpop.f32.mrf.mxu1  ;;  %v18838_v27 = vld [vmem:[#allocation79_spill] sm:$0xff]  ;;  %v17111_v63 = vld [vmem:[%s18632_s5 + $0x30] sm:$0xff]   ;;  %v3345_v4 = vadd.f32 %v18843_v38, %v2955_v58  ;;  %v12008_v20 = vunpack.c.h.bf16 %v17106_v46 }
 0x2c9   : > { %4596 = vst.msk [vmem:[#allocation3 + $0x11] sm:$0x1] %vm4595_vm6, %v4593_v32  ;;  %v4611_v37 = vmax.f32 %v4538_v33, %v4540_v12  ;;  %v4123_v52 = vadd.f32 %v14162_v19, %v3733_v59  ;;  %v2960_v2 = vadd.f32 %v18839_v10, %v18838_v27  ;;  %v4623_v14 = vrot.slane %v4612_v60, 1  ;;  %v18845_v33 = vld [vmem:[#allocation32_spill] sm:$0xff]  ;;  %v17160_v44 = vld [vmem:[%s18632_s5 + $0x58] sm:$0xff]  }
 0x2ca   : > { %4598 = vst.msk [vmem:[#allocation3 + $0x10] sm:$0x4] %vm4597_vm7, %v4593_v32  ;;  %v4003_v31 = vpop.f32.mrf.mxu1  ;;  %v4510_v1 = vadd.f32 %v16920_v61, %v4120_v21  ;;  %v18842_v32 = vld [vmem:[#allocation100_spill] sm:$0xff]  ;;  %v4543_v5 = vmax.f32 %v4511_v56, 0.0  ;;  %v2959_v12 = vadd.f32 %v18845_v33, %v2569_v3 }
 0x2cb   : > { %v4614_v55 = vrot.slane %v4611_v37, 1  ;;  %v4513_v22 = vadd.f32 %v16927_v54, %v4123_v52  ;;  %v4122_v41 = vadd.f32 %v4003_v31, %v3732_v29  ;;  %v3346_v15 = vadd.f32 %v18842_v32, %v2956_v45  ;;  %v18844_v54 = vld [vmem:[#allocation65_spill] sm:$0xff]  ;;  %v18846_v45 = vld [vmem:[#allocation99_spill] sm:$0xff]  ;;  %v17146_v52 = vpop.f32.mrf.mxu0  ;;  %v18848_v29 = vld [vmem:[#allocation66_spill] sm:$0xff] }
 0x2cc   : > { %v4625_v61 = vmax.f32 %v4612_v60, %v4623_v14  ;;  %v14165_v16 = vpop.f32.mrf.mxu1  ;;  %v3734_v62 = vadd.f32 %v18844_v54, %v3343_v51  ;;  %v4542_v3 = vmax.f32 %v4510_v1, 0.0  ;;  %v17142_v19 = vld [vmem:[%s18632_s5 + $0x48] sm:$0xff]   ;;  %v18849_v14 = vunpack.c.h.bf16 %v18840_v24 }
 0x2cd   : > { %v4616_v43 = vmax.f32 %v4611_v37, %v4614_v55  ;;  %v4545_v25 = vmax.f32 %v4513_v22, 0.0  ;;  %v4512_v39 = vadd.f32 %v16937_v23, %v4122_v41  ;;  %v4125_v58 = vadd.f32 %v14165_v16, %v18846_v45  ;;  %v18847_v37 = vld [vmem:[#allocation82_spill] sm:$0xff]  ;;  %v18851_v41 = vld [vmem:[#allocation68_spill] sm:$0xff]  ;;  %v17166_v16 = vpop.f32.mrf.mxu0 }
 0x2ce   : > { %4626 = vst.msk [vmem:[#allocation3 + $0x25] sm:$0x1] %vm4595_vm6, %v4625_v61  ;;  %v4013_v21 = vpop.f32.mrf.mxu1  ;;  %v12016_v23 = vunpack.c.h.bf16 %v17111_v63  ;;  %v2571_v56 = vadd.f32 %v18847_v37, %v17022_v9  ;;  %v3737_v27 = vadd.f32 %v18848_v29, %v3346_v15  ;;  %v18850_v31 = vunpack.c.h.bf16 %v18841_v49  ;;  %v18858_v37 = vld [vmem:[#allocation84_spill] sm:$0xff] }
 0x2cf   : > { %4627 = vst.msk [vmem:[#allocation3 + $0x24] sm:$0x4] %vm4597_vm7, %v4625_v61  ;;  %4619 = vst.msk [vmem:[#allocation3 + $0x20] sm:$0x4] %vm4597_vm7, %v4616_v43  ;;  %v4631_v51 = vmax.f32 %v4543_v5, %v4545_v25  ;;  %v4544_v0 = vmax.f32 %v4512_v39, 0.0  ;;  %v4124_v60 = vadd.f32 %v4013_v21, %v3734_v62  ;;  %v12007_v55 = vunpack.c.l.bf16 %v17106_v46  ;;  %v18855_v25 = vld [vmem:[#allocation34_spill] sm:$0xff] }
 0x2d0   : > { %4628 = vst.msk [vmem:[#allocation3 + $0x23] sm:$0x10] %vm4599_vm8, %v4625_v61  ;;  %4620 = vst.msk [vmem:[#allocation3 + $0x1f] sm:$0x10] %vm4599_vm8, %v4616_v43  ;;  %v14168_v10 = vpop.f32.mrf.mxu1  ;;  %v3736_v32 = vadd.f32 %v18851_v41, %v3345_v4  ;;  %v12015_v9 = vunpack.c.l.bf16 %v17111_v63  ;;  %v3350_v6 = vadd.f32 %v16914_v57, %v2960_v2  ;;  %v4515_v24 = vadd.f32 %v16945_v50, %v4125_v58  ;;  %v18852_v2 = vld [vmem:[#allocation69_spill] sm:$0xff] }
 0x2d1   : > { %4629 = vst.msk [vmem:[#allocation3 + $0x22] sm:$0x40] %vm4601_vm9, %v4625_v61  ;;  %v17125_v42 = vld [vmem:[#allocation3 + $0x10] sm:$0xff]  ;;  %4621 = vst.msk [vmem:[#allocation3 + $0x1e] sm:$0x40] %vm4601_vm9, %v4616_v43  ;;  %v4642_v1 = vrot.slane %v4631_v51, 1  ;;  %v4630_v22 = vmax.f32 %v4542_v3, %v4544_v0  ;;  %v4127_v49 = vadd.f32 %v14168_v10, %v3737_v27  ;;  %v12028_v46 = vunpack.c.h.bf16 %v17142_v19 }
 0x2d2   : > { %v17127_v59 = vld [vmem:[#allocation3 + $0x11] sm:$0xff]  ;;  %4618 = vst.msk [vmem:[#allocation3 + $0x21] sm:$0x1] %vm4595_vm6, %v4616_v43  ;;  %14254 = vmatmul.mubr.msk.f32.vlgmr.msra.gmra.mxu1 %vm4566_vm4, %v17125_v42  ;;  %v4023_v15 = vpop.f32.mrf.mxu1  ;;  %v4514_v61 = vadd.f32 %v16955_v18, %v4124_v60  ;;  %v3349_v54 = vadd.f32 %v16916_v7, %v2959_v12  ;;  %v3738_v62 = vadd.f32 %v18852_v2, %v3347_v11  ;;  %v18854_v43 = vld [vmem:[#allocation85_spill] sm:$0xff]  ;;  %v4547_v33 = vmax.f32 %v4515_v24, 0.0 }
 0x2d3   : > { %14274 = vmatmul.mubr.msk.f32.vlgmr.msra.gmra.mxu0 %vm4566_vm4, %v17127_v59  ;;  %14286 = vmatpush3.msra.mxu1 %v18849_v14  ;;  %v4644_v38 = vmax.f32 %v4631_v51, %v4642_v1  ;;  %v4633_v4 = vrot.slane %v4630_v22, 1  ;;  %v4126_v63 = vadd.f32 %v4023_v15, %v3736_v32  ;;  %v4517_v57 = vadd.f32 %v16968_v40, %v4127_v49  ;;  %v17194_v51 = vpop.f32.mrf.mxu0  ;;  %v18857_v0 = vld [vmem:[#allocation103_spill] sm:$0xff]  ;;  %v18862_v32 = vld [vmem:[#allocation89_spill] sm:$0xff] }
 0x2d4   : > { %14306 = vmatpush3.msra.mxu0 %v18850_v31  ;;  %14287 = vmatprep.subr.mxu1 %v12011_v26  ;;  %v14171_v50 = vpop.f32.mrf.mxu1  ;;  %v2573_v5 = vadd.f32 %v18854_v43, %v17026_v53  ;;  %v2961_v39 = vadd.f32 %v18855_v25, %v2571_v56  ;;  %v18859_v56 = vld [vmem:[#allocation36_spill] sm:$0xff] }
 0x2d5   : > { %14307 = vmatprep.subr.mxu0 %v12019_v48  ;;  %14288 = vmatpush3.msra.mxu1 %v12011_v26  ;;  %v12036_v26 = vunpack.c.h.bf16 %v17160_v44  ;;  %4645 = vst.msk [vmem:[#allocation3 + $0x35] sm:$0x1] %vm4595_vm6, %v4644_v38  ;;  %v4635_v18 = vmax.f32 %v4630_v22, %v4633_v4  ;;  %v4516_v7 = vadd.f32 %v16998_v34, %v4126_v63  ;;  %v4549_v12 = vmax.f32 %v4517_v57, 0.0  ;;  %v18861_v22 = vld [vmem:[#allocation87_spill] sm:$0xff]  ;;  %v18864_v57 = vld [vmem:[#allocation105_spill] sm:$0xff] }
 0x2d6   : > { %14308 = vmatpush3.msra.mxu0 %v12019_v48  ;;  %14289 = vmatprep.subr.mxu1 %v12008_v20  ;;  %4646 = vst.msk [vmem:[#allocation3 + $0x34] sm:$0x4] %vm4597_vm7, %v4644_v38  ;;  %v18853_v48 = vld [vmem:[#allocation102_spill] sm:$0xff]  ;;  %v4033_v45 = vpop.f32.mrf.mxu1  ;;  %v4546_v34 = vmax.f32 %v4514_v61, 0.0  ;;  %v3351_v60 = vadd.f32 %v18857_v0, %v2961_v39  ;;  %v2964_v11 = vadd.f32 %v18859_v56, %v18858_v37  ;;  %v18870_v39 = vld [vmem:[#allocation57_spill] sm:$0xff]  ;;  %v18873_v56 = vld [vmem:[#allocation64_spill] sm:$0xff] }
 0x2d7   : > { %14309 = vmatprep.subr.mxu0 %v12016_v23  ;;  %14290 = vmatpush3.msra.mxu1 %v12008_v20  ;;  %4647 = vst.msk [vmem:[#allocation3 + $0x33] sm:$0x10] %vm4599_vm8, %v4644_v38  ;;  %v4129_v40 = vadd.f32 %v14171_v50, %v18853_v48  ;;  %4639 = vst.msk [vmem:[#allocation3 + $0x2f] sm:$0x10] %vm4599_vm8, %v4635_v18  ;;  %v4548_v53 = vmax.f32 %v4516_v7, 0.0  ;;  %v4128_v20 = vadd.f32 %v4033_v45, %v3738_v62  ;;  %v18865_v50 = vld [vmem:[#allocation106_spill] sm:$0xff] }
 0x2d8   : > { %14310 = vmatpush3.msra.mxu0 %v12016_v23  ;;  %4648 = vst.msk [vmem:[#allocation3 + $0x32] sm:$0x40] %vm4601_vm9, %v4644_v38  ;;  %14291 = vmatprep.subr.mxu1 %v12007_v55  ;;  %4640 = vst.msk [vmem:[#allocation3 + $0x2e] sm:$0x40] %vm4601_vm9, %v4635_v18  ;;  %v18856_v23 = vld [vmem:[#allocation70_spill] sm:$0xff]  ;;  %v4650_v29 = vmax.f32 %v4547_v33, %v4549_v12  ;;  %v14174_v27 = vpop.f32.mrf.mxu1  ;;  %v2575_v41 = vadd.f32 %v18861_v22, %v17032_v36  ;;  %v18871_v12 = vld [vmem:[#allocation39_spill] sm:$0xff] }
 0x2d9   : > { %14311 = vmatprep.subr.mxu0 %v12015_v9  ;;  %v17181_v58 = vld [vmem:[#allocation3 + $0x20] sm:$0xff]  ;;  %14292 = vmatpush3.msra.mxu1 %v12007_v55  ;;  %4637 = vst.msk [vmem:[#allocation3 + $0x31] sm:$0x1] %vm4595_vm6, %v4635_v18  ;;  %v3741_v3 = vadd.f32 %v18856_v23, %v3350_v6  ;;  %v4649_v10 = vmax.f32 %v4546_v34, %v4548_v53 }
 0x2da   : > { %v17183_v21 = vld [vmem:[#allocation3 + $0x21] sm:$0xff]  ;;  %14312 = vmatpush3.msra.mxu0 %v12015_v9  ;;  %4638 = vst.msk [vmem:[#allocation3 + $0x30] sm:$0x4] %vm4597_vm7, %v4635_v18  ;;  %14256 = vmatprep.mubr.msk.f32.mxu1 %vm4566_vm4, %v17181_v58  ;;  %v4519_v14 = vadd.f32 %v17028_v28, %v4129_v40  ;;  %v18860_v55 = vld [vmem:[#allocation72_spill] sm:$0xff]  ;;  %v2577_v9 = vadd.f32 %v18862_v32, %v17037_v17  ;;  %v4661_v49 = vrot.slane %v4650_v29, 1  ;;  %v4043_v15 = vpop.f32.mrf.mxu1  ;;  %v17212_v28 = vpop.f32.mrf.mxu0  ;;  %v18866_v18 = vld [vmem:[#allocation75_spill] sm:$0xff] }
 0x2db   : > { %14276 = vmatprep.mubr.msk.f32.mxu0 %vm4566_vm4, %v17183_v21  ;;  %14325 = vmatprep.subr.mxu1 %v12028_v46  ;;  %v4131_v31 = vadd.f32 %v14174_v27, %v3741_v3  ;;  %v3740_v1 = vadd.f32 %v18860_v55, %v3349_v54  ;;  %v18863_v6 = vld [vmem:[#allocation37_spill] sm:$0xff]  ;;  %v4652_v38 = vrot.slane %v4649_v10, 1  ;;  %v4518_v4 = vadd.f32 %v17046_v8, %v4128_v20  ;;  %v18868_v8 = vld [vmem:[#allocation54_spill] sm:$0xff]  ;;  %v18872_v34 = vld [vmem:[#allocation104_spill] sm:$0xff] }
 0x2dc   : > { %14345 = vmatprep.subr.mxu0 %v12036_v26  ;;  %v2963_v24 = vadd.f32 %v18863_v6, %v2573_v5  ;;  %v3354_v54 = vadd.f32 %v18864_v57, %v2964_v11  ;;  %v4663_v36 = vmax.f32 %v4650_v29, %v4661_v49  ;;  %v14177_v62 = vpop.f32.mrf.mxu1  ;;  %v3742_v17 = vadd.f32 %v18866_v18, %v3351_v60  ;;  %v18867_v5 = vld [vmem:[#allocation17_spill] sm:$0xff]  ;;  %v14238_v29 = vpop.f32.mrf.mxu0  ;;  %v18874_v27 = vld [vmem:[#allocation107_spill] sm:$0xff]  ;;  %v18878_v32 = vld [vmem:[#allocation42_spill] sm:$0xff] }
 0x2dd   : > { %v4521_v61 = vadd.f32 %v17055_v47, %v4131_v31  ;;  %v4130_v63 = vadd.f32 %v4043_v15, %v3740_v1  ;;  %v4654_v7 = vmax.f32 %v4649_v10, %v4652_v38  ;;  %v4551_v48 = vmax.f32 %v4519_v14, 0.0  ;;  %v18869_v47 = vld [vmem:[#allocation19_spill] sm:$0xff]  ;;  %v18875_v14 = vld [vmem:[#allocation88_spill] sm:$0xff]  ;;  %v18876_v31 = vld [vmem:[#allocation41_spill] sm:$0xff] }
 0x2de   : > { %v3353_v2 = vadd.f32 %v18865_v50, %v2963_v24  ;;  %v1799_v25 = vadd.f32 %v18868_v8, %v18867_v5  ;;  %v1801_v33 = vadd.f32 %v18870_v39, %v18869_v47  ;;  %v2965_v45 = vadd.f32 %v18871_v12, %v2575_v41  ;;  %4664 = vst.msk [vmem:[#allocation3 + $0x45] sm:$0x1] %vm4595_vm6, %v4663_v36  ;;  %v4053_v20 = vpop.f32.mrf.mxu1  ;;  %v18877_v1 = vld [vmem:[#allocation76_spill] sm:$0xff]  ;;  %v18879_v15 = vld [vmem:[#allocation78_spill] sm:$0xff] }
 0x2df   : > { %v4553_v40 = vmax.f32 %v4521_v61, 0.0  ;;  %v4520_v43 = vadd.f32 %v17069_v30, %v4130_v63  ;;  %4665 = vst.msk [vmem:[#allocation3 + $0x44] sm:$0x4] %vm4597_vm7, %v4663_v36  ;;  %v4133_v53 = vadd.f32 %v14177_v62, %v18872_v34  ;;  %4657 = vst.msk [vmem:[#allocation3 + $0x40] sm:$0x4] %vm4597_vm7, %v4654_v7  ;;  %v4550_v3 = vmax.f32 %v4518_v4, 0.0 }
 0x2e0   : > { %4666 = vst.msk [vmem:[#allocation3 + $0x43] sm:$0x10] %vm4599_vm8, %v4663_v36  ;;  %4658 = vst.msk [vmem:[#allocation3 + $0x3f] sm:$0x10] %vm4599_vm8, %v4654_v7  ;;  %v4132_v37 = vadd.f32 %v4053_v20, %v3742_v17  ;;  %v2189_v11 = vadd.f32 %v18873_v56, %v1799_v25  ;;  %v3355_v10 = vadd.f32 %v18874_v27, %v2965_v45  ;;  %v14180_v41 = vpop.f32.mrf.mxu1  ;;  %v18880_v4 = vld [vmem:[#allocation91_spill] sm:$0xff]  ;;  %v18881_v63 = vld [vmem:[#allocation109_spill] sm:$0xff] }
 0x2e1   : > { %4667 = vst.msk [vmem:[#allocation3 + $0x42] sm:$0x40] %vm4601_vm9, %v4663_v36  ;;  %v17228_v30 = vld [vmem:[#allocation3 + $0x30] sm:$0xff]  ;;  %4659 = vst.msk [vmem:[#allocation3 + $0x3e] sm:$0x40] %vm4601_vm9, %v4654_v7  ;;  %v4669_v0 = vmax.f32 %v4551_v48, %v4553_v40  ;;  %v4552_v60 = vmax.f32 %v4520_v43, 0.0  ;;  %v2968_v55 = vadd.f32 %v18876_v31, %v18875_v14  ;;  %v3745_v22 = vadd.f32 %v18877_v1, %v3354_v54 }
 0x2e2   : > { %v17230_v23 = vld [vmem:[#allocation3 + $0x31] sm:$0xff]  ;;  %4656 = vst.msk [vmem:[#allocation3 + $0x41] sm:$0x1] %vm4595_vm6, %v4654_v7  ;;  %14257 = vmatmul.mubr.msk.f32.gmra.mxu1 %vm4566_vm4, %v17228_v30  ;;  %v2967_v6 = vadd.f32 %v18878_v32, %v2577_v9  ;;  %v3744_v38 = vadd.f32 %v18879_v15, %v3353_v2  ;;  %v2579_v61 = vadd.f32 %v18880_v4, %v2189_v11  ;;  %v4063_v62 = vpop.f32.mrf.mxu1  ;;  %v4473_v9 = vpop.f32.mrf.mxu0  ;;  %v18883_v2 = vld [vmem:[#allocation81_spill] sm:$0xff]  ;;  %v18884_v25 = vld [vmem:[#allocation110_spill] sm:$0xff] }
 0x2e3   : > { %14277 = vmatmul.mubr.msk.f32.gmra.mxu0 %vm4566_vm4, %v17230_v23  ;;  %v4680_v24 = vrot.slane %v4669_v0, 1  ;;  %v4668_v49 = vmax.f32 %v4550_v3, %v4552_v60  ;;  %v3358_v57 = vadd.f32 %v18881_v63, %v2968_v55  ;;  %v4523_v50 = vadd.f32 %v17091_v35, %v4133_v53  ;;  %v18882_v48 = vld [vmem:[#allocation67_spill] sm:$0xff]  ;;  %v18885_v39 = vld [vmem:[#allocation108_spill] sm:$0xff]  ;;  %v18886_v12 = vld [vmem:[#allocation94_spill] sm:$0xff] }
 0x2e4   : > { %v4135_v36 = vadd.f32 %v14180_v41, %v3745_v22  ;;  %v4522_v7 = vadd.f32 %v17113_v13, %v4132_v37  ;;  %v4134_v54 = vadd.f32 %v4063_v62, %v3744_v38  ;;  %v2191_v40 = vadd.f32 %v18882_v48, %v1801_v33  ;;  %v14183_v5 = vpop.f32.mrf.mxu1  ;;  %v18887_v45 = vld [vmem:[#allocation44_spill] sm:$0xff]  ;;  %v18888_v11 = vld [vmem:[#allocation83_spill] sm:$0xff]  ;;  %v18892_v15 = vld [vmem:[#allocation46_spill] sm:$0xff] }
 0x2e5   : > { %v4682_v18 = vmax.f32 %v4669_v0, %v4680_v24  ;;  %v4671_v17 = vrot.slane %v4668_v49, 1  ;;  %v3746_v8 = vadd.f32 %v18883_v2, %v3355_v10  ;;  %v3357_v47 = vadd.f32 %v18884_v25, %v2967_v6  ;;  %v14241_v10 = vpop.f32.mrf.mxu0  ;;  %v18889_v14 = vld [vmem:[#allocation111_spill] sm:$0xff]  ;;  %v18890_v6 = vld [vmem:[#allocation86_spill] sm:$0xff]  ;;  %v18895_v48 = vld [vmem:[#allocation16_spill] sm:$0xff] }
 0x2e6   : > { %v4525_v43 = vadd.f32 %v17146_v52, %v4135_v36  ;;  %v4524_v13 = vadd.f32 %v17166_v16, %v4134_v54  ;;  %v4137_v33 = vadd.f32 %v14183_v5, %v18885_v39  ;;  %v2581_v52 = vadd.f32 %v18886_v12, %v2191_v40  ;;  %v4073_v3 = vpop.f32.mrf.mxu1  ;;  %v18893_v4 = vld [vmem:[#allocation47_spill] sm:$0xff]  ;;  %v18896_v5 = vld [vmem:[#allocation90_spill] sm:$0xff] }
 0x2e7   : > { %4683 = vst.msk [vmem:[#allocation3 + $0x55] sm:$0x1] %vm4595_vm6, %v4682_v18  ;;  %v4673_v35 = vmax.f32 %v4668_v49, %v4671_v17  ;;  %v2969_v34 = vadd.f32 %v18887_v45, %v2579_v61  ;;  %v4555_v53 = vmax.f32 %v4523_v50, 0.0  ;;  %v4554_v16 = vmax.f32 %v4522_v7, 0.0  ;;  %v18891_v49 = vld [vmem:[#allocation93_spill] sm:$0xff]  ;;  %v4483_v17 = vpop.f32.mrf.mxu0 }
 0x2e8   : > { %4684 = vst.msk [vmem:[#allocation3 + $0x54] sm:$0x4] %vm4597_vm7, %v4682_v18  ;;  %v4557_v20 = vmax.f32 %v4525_v43, 0.0  ;;  %v4556_v37 = vmax.f32 %v4524_v13, 0.0  ;;  %v4136_v56 = vadd.f32 %v4073_v3, %v3746_v8  ;;  %v3749_v27 = vadd.f32 %v18888_v11, %v3358_v57  ;;  %v14186_v1 = vpop.f32.mrf.mxu1  ;;  %v18894_v7 = vld [vmem:[#allocation113_spill] sm:$0xff] }
 0x2e9   : > { %4685 = vst.msk [vmem:[#allocation3 + $0x53] sm:$0x10] %vm4599_vm8, %v4682_v18  ;;  %v17263_v0 = vld [vmem:[#allocation3 + $0x40] sm:$0xff]  ;;  %4677 = vst.msk [vmem:[#allocation3 + $0x4f] sm:$0x10] %vm4599_vm8, %v4673_v35  ;;  %v3359_v31 = vadd.f32 %v18889_v14, %v2969_v34  ;;  %v4527_v41 = vadd.f32 %v17194_v51, %v4137_v33  ;;  %v3748_v24 = vadd.f32 %v18890_v6, %v3357_v47  ;;  %v14244_v12 = vpop.f32.mrf.mxu0 }
 0x2ea   : > { %4686 = vst.msk [vmem:[#allocation3 + $0x52] sm:$0x40] %vm4601_vm9, %v4682_v18  ;;  %v17265_v60 = vld [vmem:[#allocation3 + $0x41] sm:$0xff]  ;;  %4678 = vst.msk [vmem:[#allocation3 + $0x4e] sm:$0x40] %vm4601_vm9, %v4673_v35  ;;  %14259 = vmatprep.mubr.msk.f32.mxu1 %vm4566_vm4, %v17263_v0  ;;  %v4688_v55 = vmax.f32 %v4555_v53, %v4557_v20  ;;  %v4687_v22 = vmax.f32 %v4554_v16, %v4556_v37  ;;  %v4139_v32 = vadd.f32 %v14186_v1, %v3749_v27  ;;  %v4083_v50 = vpop.f32.mrf.mxu1  ;;  %v18898_v53 = vld [vmem:[#allocation92_spill] sm:$0xff] }
 0x2eb   : > { %4675 = vst.msk [vmem:[#allocation3 + $0x51] sm:$0x1] %vm4595_vm6, %v4673_v35  ;;  %14279 = vmatprep.mubr.msk.f32.mxu0 %vm4566_vm4, %v17265_v60  ;;  %v2972_v38 = vadd.f32 %v18892_v15, %v18891_v49  ;;  %v2971_v61 = vadd.f32 %v18893_v4, %v2581_v52  ;;  %v4526_v57 = vadd.f32 %v17212_v28, %v4136_v56  ;;  %v4559_v25 = vmax.f32 %v4527_v41, 0.0  ;;  %v18897_v28 = vld [vmem:[#allocation112_spill] sm:$0xff]  ;;  %v18899_v56 = vld [vmem:[#allocation95_spill] sm:$0xff] }
 0x2ec   : > { %4676 = vst.msk [vmem:[#allocation3 + $0x50] sm:$0x4] %vm4597_vm7, %v4673_v35  ;;  %v4699_v63 = vrot.slane %v4688_v55, 1  ;;  %v4690_v36 = vrot.slane %v4687_v22, 1  ;;  %v4529_v62 = vadd.f32 %v14238_v29, %v4139_v32  ;;  %v4138_v18 = vadd.f32 %v4083_v50, %v3748_v24  ;;  %v14189_v43 = vpop.f32.mrf.mxu1 }
 0x2ed   : > { %v3362_v54 = vadd.f32 %v18894_v7, %v2972_v38  ;;  %v3361_v51 = vadd.f32 %v18895_v48, %v2971_v61  ;;  %v3750_v2 = vadd.f32 %v18896_v5, %v3359_v31  ;;  %v4141_v29 = vadd.f32 %v14189_v43, %v18897_v28  ;;  %v5059_v7 = vld [vmem:[#allocation3 + $0x2] sm:$0xff]  ;;  %v12657_v28 = vld [vmem:[%s18632_s5 + $0x68] sm:$0xff]  }
 0x2ee   : > { %v4701_v40 = vmax.f32 %v4688_v55, %v4699_v63  ;;  %v4692_v8 = vmax.f32 %v4687_v22, %v4690_v36  ;;  %v4561_v47 = vmax.f32 %v4529_v62, 0.0  ;;  %v4528_v35 = vadd.f32 %v4473_v9, %v4138_v18  ;;  %v4093_v13 = vpop.f32.mrf.mxu1  ;;  %v4493_v55 = vpop.f32.mrf.mxu0  ;;  %v17345_v5 = vld [vmem:[#allocation3 + $0x22] sm:$0xff] }
 0x2ef   : > { %v4558_v9 = vmax.f32 %v4526_v57, 0.0  ;;  %v4140_v34 = vadd.f32 %v4093_v13, %v3750_v2  ;;  %v3753_v20 = vadd.f32 %v18898_v53, %v3362_v54  ;;  %v3752_v11 = vadd.f32 %v18899_v56, %v3361_v51  ;;  %v5060_v51 = vld [vmem:[#allocation3 + $0x12] sm:$0xff] }
 0x2f0   : > { %4702 = vst.msk [vmem:[#allocation3 + $0x65] sm:$0x1] %vm4595_vm6, %v4701_v40  ;;  %4694 = vst.msk [vmem:[#allocation3 + $0x61] sm:$0x1] %vm4595_vm6, %v4692_v8  ;;  %v4707_v52 = vmax.f32 %v4559_v25, %v4561_v47  ;;  %v4560_v45 = vmax.f32 %v4528_v35, 0.0  ;;  %v14192_v3 = vpop.f32.mrf.mxu1  ;;  %v4531_v27 = vadd.f32 %v14241_v10, %v4141_v29  ;;  %v12035_v43 = vunpack.c.l.bf16 %v17160_v44  ;;  %v12652_v2 = vld [vmem:[%s18632_s5 + $0x40] sm:$0xff]  }
 0x2f1   : > { %4703 = vst.msk [vmem:[#allocation3 + $0x64] sm:$0x4] %vm4597_vm7, %v4701_v40  ;;  %4695 = vst.msk [vmem:[#allocation3 + $0x60] sm:$0x4] %vm4597_vm7, %v4692_v8  ;;  %v4143_v14 = vadd.f32 %v14192_v3, %v3753_v20  ;;  %v4530_v41 = vadd.f32 %v4483_v17, %v4140_v34  ;;  %v12024_v25 = vunpack.c.h.bf16 %v12652_v2  ;;  %v17367_v35 = vld [vmem:[#allocation3 + $0x42] sm:$0xff]  ;;  %v12023_v44 = vunpack.c.l.bf16 %v12652_v2  ;;  %v12656_v53 = vld [vmem:[%s18632_s5 + $0x60] sm:$0xff]  }
 0x2f2   : > { %4704 = vst.msk [vmem:[#allocation3 + $0x63] sm:$0x10] %vm4599_vm8, %v4701_v40  ;;  %4696 = vst.msk [vmem:[#allocation3 + $0x5f] sm:$0x10] %vm4599_vm8, %v4692_v8  ;;  %v4718_v16 = vrot.slane %v4707_v52, 1  ;;  %v4706_v37 = vmax.f32 %v4558_v9, %v4560_v45  ;;  %v4103_v31 = vpop.f32.mrf.mxu1  ;;  %v4563_v15 = vmax.f32 %v4531_v27, 0.0  ;;  %v12044_v9 = vunpack.c.h.bf16 %v12657_v28 }
 0x2f3   : > { %4705 = vst.msk [vmem:[#allocation3 + $0x62] sm:$0x40] %vm4601_vm9, %v4701_v40  ;;  %v17291_v39 = vld [vmem:[#allocation3 + $0x50] sm:$0xff]  ;;  %4697 = vst.msk [vmem:[#allocation3 + $0x5e] sm:$0x40] %vm4601_vm9, %v4692_v8  ;;  %v4142_v32 = vadd.f32 %v4103_v31, %v3752_v11  ;;  %v4533_v6 = vadd.f32 %v14244_v12, %v4143_v14  ;;  %v4562_v61 = vmax.f32 %v4530_v41, 0.0  ;;  %v12027_v40 = vunpack.c.l.bf16 %v17142_v19 }
 0x2f4   : > { %v17293_v33 = vld [vmem:[#allocation3 + $0x51] sm:$0xff]  ;;  %14260 = vmatmul.mubr.msk.f32.gmra.mxu1 %vm4566_vm4, %v17291_v39  ;;  %v4720_v1 = vmax.f32 %v4707_v52, %v4718_v16  ;;  %v4709_v22 = vrot.slane %v4706_v37, 1  ;;  %v12659_v29 = vld [vmem:[%s18632_s5 + $0x78] sm:$0xff]   ;;  %v12043_v45 = vunpack.c.l.bf16 %v12657_v28  ;;  %v12040_v20 = vunpack.c.h.bf16 %v12656_v53 }
 0x2f5   : > { %14280 = vmatmul.mubr.msk.f32.gmra.mxu0 %vm4566_vm4, %v17293_v33  ;;  %v4532_v49 = vadd.f32 %v4493_v55, %v4142_v32  ;;  %v4565_v10 = vmax.f32 %v4533_v6, 0.0  ;;  %v17361_v8 = vld [vmem:[#allocation3 + $0x32] sm:$0xff]  ;;  %v12052_v52 = vunpack.c.h.bf16 %v12659_v29  ;;  %v12051_v34 = vunpack.c.l.bf16 %v12659_v29  ;;  %v12663_v32 = vld [vmem:[%s18634_s7 + $0x10] sm:$0xff]  }
 0x2f6   : > { %4721 = vst.msk [vmem:[#allocation3 + $0x75] sm:$0x1] %vm4595_vm6, %v4720_v1  ;;  %v4711_v24 = vmax.f32 %v4706_v37, %v4709_v22  ;;  %v17373_v19 = vld [vmem:[#allocation3 + $0x52] sm:$0xff]  ;;  %v12039_v16 = vunpack.c.l.bf16 %v12656_v53  ;;  %v12667_v6 = vld [vmem:[%s18634_s7 + $0x30] sm:$0xff]  }
 0x2f7   : > { %4722 = vst.msk [vmem:[#allocation3 + $0x74] sm:$0x4] %vm4597_vm7, %v4720_v1  ;;  %v4564_v63 = vmax.f32 %v4532_v49, 0.0  ;;  %v4726_v50 = vmax.f32 %v4563_v15, %v4565_v10  ;;  %v12661_v56 = vld [vmem:[%s18632_s5 + $0x88] sm:$0xff]   ;;  %v12660_v55 = vld [vmem:[%s18632_s5 + $0x80] sm:$0xff]   ;;  %v12072_v49 = vunpack.c.h.bf16 %v12663_v32  ;;  %v12088_v15 = vunpack.c.h.bf16 %v12667_v6 }
 0x2f8   : > { %4723 = vst.msk [vmem:[#allocation3 + $0x73] sm:$0x10] %vm4599_vm8, %v4720_v1  ;;  %4715 = vst.msk [vmem:[#allocation3 + $0x6f] sm:$0x10] %vm4599_vm8, %v4711_v24  ;;  %v12060_v14 = vunpack.c.h.bf16 %v12661_v56  ;;  %v12059_v31 = vunpack.c.l.bf16 %v12661_v56  ;;  %v12071_v10 = vunpack.c.l.bf16 %v12663_v32 }
 0x2f9   : > { %4724 = vst.msk [vmem:[#allocation3 + $0x72] sm:$0x40] %vm4601_vm9, %v4720_v1  ;;  %4716 = vst.msk [vmem:[#allocation3 + $0x6e] sm:$0x40] %vm4601_vm9, %v4711_v24  ;;  %v4725_v36 = vmax.f32 %v4562_v61, %v4564_v63  ;;  %v4737_v57 = vrot.slane %v4726_v50, 1  ;;  %v12666_v61 = vld [vmem:[%s18634_s7 + $0x28] sm:$0xff]  }
 0x2fa   : > { %v17309_v38 = vld [vmem:[#allocation3 + $0x60] sm:$0xff]  ;;  %4713 = vst.msk [vmem:[#allocation3 + $0x71] sm:$0x1] %vm4595_vm6, %v4711_v24 }
 0x2fb   : > { %v17311_v4 = vld [vmem:[#allocation3 + $0x61] sm:$0xff]  ;;  %4714 = vst.msk [vmem:[#allocation3 + $0x70] sm:$0x4] %vm4597_vm7, %v4711_v24  ;;  %14262 = vmatprep.mubr.msk.f32.mxu1 %vm4566_vm4, %v17309_v38  ;;  %v4728_v62 = vrot.slane %v4725_v36, 1  ;;  %v4739_v18 = vmax.f32 %v4726_v50, %v4737_v57  ;;  %v18900_v24 = vmov 0.0   ;;  %v12084_v50 = vunpack.c.h.bf16 %v12666_v61 }
 0x2fc   : > { %14282 = vmatprep.mubr.msk.f32.mxu0 %vm4566_vm4, %v17311_v4  ;;  %6151 = vst.msk [vmem:[#allocation4 + $0x20] sm:$0xff] %vm6145_vm10, %v18900_v24  ;;  %6146 = vst.msk [vmem:[#allocation4] sm:$0xff] %vm6145_vm10, %v18900_v24  ;;  %v12083_v57 = vunpack.c.l.bf16 %v12666_v61 }
 0x2fd   : > { %v4730_v17 = vmax.f32 %v4725_v36, %v4728_v62  ;;  %4740 = vst.msk [vmem:[#allocation3 + $0x85] sm:$0x1] %vm4595_vm6, %v4739_v18  ;;  %v12062_v62 = vld [vmem:[%s18634_s7] sm:$0xff]  }
 0x2fe   : > { %4741 = vst.msk [vmem:[#allocation3 + $0x84] sm:$0x4] %vm4597_vm7, %v4739_v18 }
 0x2ff   : > { %4742 = vst.msk [vmem:[#allocation3 + $0x83] sm:$0x10] %vm4599_vm8, %v4739_v18  ;;  %4734 = vst.msk [vmem:[#allocation3 + $0x7f] sm:$0x10] %vm4599_vm8, %v4730_v17 }
 0x300   : > { %4743 = vst.msk [vmem:[#allocation3 + $0x82] sm:$0x40] %vm4601_vm9, %v4739_v18  ;;  %4735 = vst.msk [vmem:[#allocation3 + $0x7e] sm:$0x40] %vm4601_vm9, %v4730_v17  ;;  %v12665_v18 = vld [vmem:[%s18634_s7 + $0x20] sm:$0xff]  }
 0x301   : > { %4732 = vst.msk [vmem:[#allocation3 + $0x81] sm:$0x1] %vm4595_vm6, %v4730_v17 }
 0x302   : > { %v17325_v54 = vld [vmem:[#allocation3 + $0x70] sm:$0xff]  ;;  %4733 = vst.msk [vmem:[#allocation3 + $0x80] sm:$0x4] %vm4597_vm7, %v4730_v17  ;;  %v12064_v17 = vunpack.c.h.bf16 %v12062_v62 }
 0x303   : > { %v17327_v48 = vld [vmem:[#allocation3 + $0x71] sm:$0xff]  ;;  %14263 = vmatmul.mubr.msk.f32.gmra.mxu1 %vm4566_vm4, %v17325_v54  ;;  %6152 = vst.msk [vmem:[#allocation4 + $0x28] sm:$0x3] %vm6147_vm11, %v18900_v24  ;;  %6148 = vst.msk [vmem:[#allocation4 + $0x8] sm:$0x3] %vm6147_vm11, %v18900_v24 }
 0x304   : > { %14283 = vmatmul.mubr.msk.f32.gmra.mxu0 %vm4566_vm4, %v17327_v48  ;;  %14293 = vmatprep.mubr.msk.f32.mxu1 %vm4566_vm4, %v5059_v7  ;;  %v17391_v13 = vld [vmem:[#allocation3 + $0x72] sm:$0xff]  ;;  %6149 = vst.msk [vmem:[#allocation4 + $0x10] sm:$0xff] %vm6145_vm10, %v18900_v24  ;;  %6153 = vst.msk [vmem:[#allocation4 + $0x30] sm:$0xff] %vm6145_vm10, %v18900_v24  ;;  %v12080_v7 = vunpack.c.h.bf16 %v12665_v18 }
 0x305   : > { %14313 = vmatprep.mubr.msk.f32.mxu0 %vm4566_vm4, %v17125_v42  ;;  %v12654_v42 = vld [vmem:[%s18632_s5 + $0x50] sm:$0xff]   ;;  %6150 = vst.msk [vmem:[#allocation4 + $0x18] sm:$0x3] %vm6147_vm11, %v18900_v24  ;;  %6154 = vst.msk [vmem:[#allocation4 + $0x38] sm:$0x3] %vm6147_vm11, %v18900_v24 }
 0x306   : > { %v12032_v47 = vunpack.c.h.bf16 %v12654_v42  ;;  %6155 = vst.msk [vmem:[#allocation4 + $0x40] sm:$0xff] %vm6145_vm10, %v18900_v24  ;;  %6157 = vst.msk [vmem:[#allocation4 + $0x50] sm:$0xff] %vm6145_vm10, %v18900_v24 }
 0x307   : > { %14294 = vmatmul.mubr.msk.f32.vlgmr.msra.gmra.mxu1 %vm4566_vm4, %v5060_v51  ;;  %6156 = vst.msk [vmem:[#allocation4 + $0x48] sm:$0x3] %vm6147_vm11, %v18900_v24  ;;  %6158 = vst.msk [vmem:[#allocation4 + $0x58] sm:$0x3] %vm6147_vm11, %v18900_v24 }
 0x308   : > { %14314 = vmatmul.mubr.msk.f32.vlgmr.msra.gmra.mxu0 %vm4566_vm4, %v17181_v58  ;;  %14296 = vmatprep.mubr.msk.f32.mxu1 %vm4566_vm4, %v17345_v5  ;;  %6159 = vst.msk [vmem:[#allocation4 + $0x60] sm:$0xff] %vm6145_vm10, %v18900_v24  ;;  %6161 = vst.msk [vmem:[#allocation4 + $0x70] sm:$0xff] %vm6145_vm10, %v18900_v24 }
 0x309   : > { %14316 = vmatprep.mubr.msk.f32.mxu0 %vm4566_vm4, %v17228_v30  ;;  %14326 = vmatpush3.msra.mxu1 %v12028_v46  ;;  %v12031_v46 = vunpack.c.l.bf16 %v12654_v42  ;;  %v17393_v12 = vld [vmem:[#allocation3 + $0x80] sm:$0xff]  ;;  %6160 = vst.msk [vmem:[#allocation4 + $0x68] sm:$0x3] %vm6147_vm11, %v18900_v24  ;;  %6162 = vst.msk [vmem:[#allocation4 + $0x78] sm:$0x3] %vm6147_vm11, %v18900_v24 }
 0x30a   : > { %14346 = vmatpush3.msra.mxu0 %v12036_v26  ;;  %14327 = vmatprep.subr.mxu1 %v12027_v40  ;;  %v17379_v26 = vld [vmem:[#allocation3 + $0x62] sm:$0xff]  ;;  %6163 = vst.msk [vmem:[#allocation4 + $0x80] sm:$0xff] %vm6145_vm10, %v18900_v24  ;;  %6165 = vst.msk [vmem:[#allocation4 + $0x90] sm:$0xff] %vm6145_vm10, %v18900_v24 }
 0x30b   : > { %14347 = vmatprep.subr.mxu0 %v12035_v43  ;;  %14297 = vmatmul.mubr.msk.f32.gmra.mxu1 %vm4566_vm4, %v17361_v8  ;;  %v5374_v11 = vld [vmem:[#allocation3 + $0x81] sm:$0xff]  ;;  %6164 = vst.msk [vmem:[#allocation4 + $0x88] sm:$0x3] %vm6147_vm11, %v18900_v24  ;;  %6166 = vst.msk [vmem:[#allocation4 + $0x98] sm:$0x3] %vm6147_vm11, %v18900_v24 }
 0x30c   : > { %14317 = vmatmul.mubr.msk.f32.gmra.mxu0 %vm4566_vm4, %v17263_v0  ;;  %14299 = vmatprep.mubr.msk.f32.mxu1 %vm4566_vm4, %v17367_v35  ;;  %v5528_v27 = vld [vmem:[#allocation3 + $0x82] sm:$0xff] }
 0x30d   : > { %14319 = vmatprep.mubr.msk.f32.mxu0 %vm4566_vm4, %v17291_v39  ;;  %14328 = vmatpush3.msra.mxu1 %v12027_v40  ;;  %v17555_v40 = vld [vmem:[%s18634_s7 + $0x78] sm:$0xff]  }
 0x30e   : > { %14348 = vmatpush3.msra.mxu0 %v12035_v43  ;;  %14329 = vmatprep.subr.mxu1 %v12024_v25  ;;  %18902 = vst [vmem:[#allocation22_spill] sm:$0xff] %v17555_v40  ;;  %v6184_v43 = vld [vmem:[#allocation4] sm:$0xff]  ;;  %v18659_v42 = vunpack.c.h.bf16 %v17555_v40 }
 0x30f   : > { %14349 = vmatprep.subr.mxu0 %v12032_v47  ;;  %14300 = vmatmul.mubr.msk.f32.gmra.mxu1 %vm4566_vm4, %v17373_v19 }
 0x310   : > { %14320 = vmatmul.mubr.msk.f32.gmra.mxu0 %vm4566_vm4, %v17309_v38  ;;  %14302 = vmatprep.mubr.msk.f32.mxu1 %vm4566_vm4, %v17379_v26 }
 0x311   : > { %14322 = vmatprep.mubr.msk.f32.mxu0 %vm4566_vm4, %v17325_v54  ;;  %14330 = vmatpush3.msra.mxu1 %v12024_v25 }
 0x312   : > { %14350 = vmatpush3.msra.mxu0 %v12032_v47  ;;  %14331 = vmatprep.subr.mxu1 %v12023_v44 }
 0x313   : > { %14351 = vmatprep.subr.mxu0 %v12031_v46  ;;  %14303 = vmatmul.mubr.msk.f32.gmra.mxu1 %vm4566_vm4, %v17391_v13 }
 0x314   : > { %14323 = vmatmul.mubr.msk.f32.gmra.mxu0 %vm4566_vm4, %v17393_v12  ;;  %14333 = vmatprep.mubr.msk.f32.mxu1 %vm4566_vm4, %v17127_v59  ;;  %v12658_v59 = vld [vmem:[%s18632_s5 + $0x70] sm:$0xff]  }
 0x315   : > { %14353 = vmatprep.mubr.msk.f32.mxu0 %vm4566_vm4, %v5060_v51  ;;  %14332 = vmatpush3.msra.mxu1 %v12023_v44  ;;  %v12048_v3 = vunpack.c.h.bf16 %v12658_v59  ;;  %v12047_v37 = vunpack.c.l.bf16 %v12658_v59  ;;  %v17550_v51 = vld [vmem:[%s18634_s7 + $0x58] sm:$0xff]  }
 0x316   : > { %14352 = vmatpush3.msra.mxu0 %v12031_v46  ;;  %14365 = vmatprep.subr.mxu1 %v12044_v9  ;;  %18901 = vst [vmem:[#allocation18_spill] sm:$0xff] %v17550_v51  ;;  %v18660_v2 = vunpack.c.h.bf16 %v17550_v51 }
 0x317   : > { %14385 = vmatprep.subr.mxu0 %v12052_v52  ;;  %14334 = vmatmul.mubr.msk.f32.vlgmr.msra.gmra.mxu1 %vm4566_vm4, %v17183_v21 }
 0x318   : > { %14354 = vmatmul.mubr.msk.f32.vlgmr.msra.gmra.mxu0 %vm4566_vm4, %v17345_v5  ;;  %14336 = vmatprep.mubr.msk.f32.mxu1 %vm4566_vm4, %v17230_v23 }
 0x319   : > { %14356 = vmatprep.mubr.msk.f32.mxu0 %vm4566_vm4, %v17361_v8  ;;  %14366 = vmatpush3.msra.mxu1 %v12044_v9 }
 0x31a   : > { %14386 = vmatpush3.msra.mxu0 %v12052_v52  ;;  %14367 = vmatprep.subr.mxu1 %v12043_v45 }
 0x31b   : > { %14387 = vmatprep.subr.mxu0 %v12051_v34  ;;  %14337 = vmatmul.mubr.msk.f32.gmra.mxu1 %vm4566_vm4, %v17265_v60 }
 0x31c   : > { %14357 = vmatmul.mubr.msk.f32.gmra.mxu0 %vm4566_vm4, %v17367_v35  ;;  %14339 = vmatprep.mubr.msk.f32.mxu1 %vm4566_vm4, %v17293_v33 }
 0x31d   : > { %14359 = vmatprep.mubr.msk.f32.mxu0 %vm4566_vm4, %v17373_v19  ;;  %14368 = vmatpush3.msra.mxu1 %v12043_v45 }
 0x31e   : > { %14388 = vmatpush3.msra.mxu0 %v12051_v34  ;;  %14369 = vmatprep.subr.mxu1 %v12040_v20 }
 0x31f   : > { %14389 = vmatprep.subr.mxu0 %v12048_v3  ;;  %14340 = vmatmul.mubr.msk.f32.gmra.mxu1 %vm4566_vm4, %v17311_v4 }
 0x320   : > { %14360 = vmatmul.mubr.msk.f32.gmra.mxu0 %vm4566_vm4, %v17379_v26  ;;  %14342 = vmatprep.mubr.msk.f32.mxu1 %vm4566_vm4, %v17327_v48 }
 0x321   : > { %14362 = vmatprep.mubr.msk.f32.mxu0 %vm4566_vm4, %v17391_v13  ;;  %14370 = vmatpush3.msra.mxu1 %v12040_v20 }
 0x322   : > { %14390 = vmatpush3.msra.mxu0 %v12048_v3  ;;  %14371 = vmatprep.subr.mxu1 %v12039_v16 }
 0x323   : > { %14391 = vmatprep.subr.mxu0 %v12047_v37  ;;  %14343 = vmatmul.mubr.msk.f32.gmra.mxu1 %vm4566_vm4, %v5374_v11 }
 0x324   : > { %14363 = vmatmul.mubr.msk.f32.gmra.mxu0 %vm4566_vm4, %v5528_v27  ;;  %14373 = vmatprep.mubr.msk.f32.mxu1 %vm4566_vm4, %v17181_v58  ;;  %v12056_v58 = vunpack.c.h.bf16 %v12660_v55 }
 0x325   : > { %14393 = vmatprep.mubr.msk.f32.mxu0 %vm4566_vm4, %v17183_v21  ;;  %14372 = vmatpush3.msra.mxu1 %v12039_v16  ;;  %v12055_v21 = vunpack.c.l.bf16 %v12660_v55 }
 0x326   : > { %14392 = vmatpush3.msra.mxu0 %v12047_v37  ;;  %14405 = vmatprep.subr.mxu1 %v12060_v14 }
 0x327   : > { %14374 = vmatmul.mubr.msk.f32.vlgmr.msra.gmra.mxu1 %vm4566_vm4, %v17228_v30  ;;  %v5682_v30 = vld [vmem:[#allocation3 + $0x90] sm:$0xff] }
 0x328   : > { %14394 = vmatmul.mubr.msk.f32.vlgmr.msra.gmra.mxu0 %vm4566_vm4, %v17230_v23  ;;  %14376 = vmatprep.mubr.msk.f32.mxu1 %vm4566_vm4, %v17263_v0  ;;  %v5836_v23 = vld [vmem:[#allocation3 + $0x91] sm:$0xff] }
 0x329   : > { %14396 = vmatprep.mubr.msk.f32.mxu0 %vm4566_vm4, %v17265_v60  ;;  %14406 = vmatpush3.msra.mxu1 %v12060_v14  ;;  %v5990_v0 = vld [vmem:[#allocation3 + $0x92] sm:$0xff]  ;;  %v12664_v60 = vld [vmem:[%s18634_s7 + $0x18] sm:$0xff]  }
 0x32a   : > { %14407 = vmatprep.subr.mxu1 %v12059_v31  ;;  %v12075_v22 = vunpack.c.l.bf16 %v12664_v60 }
 0x32b   : > { %14377 = vmatmul.mubr.msk.f32.gmra.mxu1 %vm4566_vm4, %v17291_v39  ;;  %v12668_v39 = vld [vmem:[%s18634_s7 + $0x38] sm:$0xff]  }
 0x32c   : > { %14397 = vmatmul.mubr.msk.f32.gmra.mxu0 %vm4566_vm4, %v17293_v33  ;;  %14379 = vmatprep.mubr.msk.f32.mxu1 %vm4566_vm4, %v17309_v38  ;;  %v12076_v33 = vunpack.c.h.bf16 %v12664_v60  ;;  %v12092_v1 = vunpack.c.h.bf16 %v12668_v39  ;;  %v12091_v41 = vunpack.c.l.bf16 %v12668_v39  ;;  %v12087_v38 = vunpack.c.l.bf16 %v12667_v6 }
 0x32d   : > { %14399 = vmatprep.mubr.msk.f32.mxu0 %vm4566_vm4, %v17311_v4  ;;  %14408 = vmatpush3.msra.mxu1 %v12059_v31  ;;  %v12662_v4 = vld [vmem:[%s18634_s7 + $0x8] sm:$0xff]  }
 0x32e   : > { %14409 = vmatprep.subr.mxu1 %v12056_v58  ;;  %14425 = vmatprep.subr.mxu0 %v12076_v33  ;;  %v12068_v63 = vunpack.c.h.bf16 %v12662_v4  ;;  %v12067_v36 = vunpack.c.l.bf16 %v12662_v4 }
 0x32f   : > { %14380 = vmatmul.mubr.msk.f32.gmra.mxu1 %vm4566_vm4, %v17325_v54  ;;  %14426 = vmatpush3.msra.mxu0 %v12076_v33  ;;  %v12063_v54 = vunpack.c.l.bf16 %v12062_v62 }
 0x330   : > { %14400 = vmatmul.mubr.msk.f32.gmra.mxu0 %vm4566_vm4, %v17327_v48  ;;  %14382 = vmatprep.mubr.msk.f32.mxu1 %vm4566_vm4, %v17393_v12  ;;  %v12079_v48 = vunpack.c.l.bf16 %v12665_v18 }
 0x331   : > { %14402 = vmatprep.mubr.msk.f32.mxu0 %vm4566_vm4, %v5374_v11  ;;  %14410 = vmatpush3.msra.mxu1 %v12056_v58 }
 0x332   : > { %14411 = vmatprep.subr.mxu1 %v12055_v21  ;;  %14427 = vmatprep.subr.mxu0 %v12075_v22 }
 0x333   : > { %14383 = vmatmul.mubr.msk.f32.gmra.mxu1 %vm4566_vm4, %v5682_v30  ;;  %14428 = vmatpush3.msra.mxu0 %v12075_v22 }
 0x334   : > { %14403 = vmatmul.mubr.msk.f32.gmra.mxu0 %vm4566_vm4, %v5836_v23  ;;  %14413 = vmatprep.mubr.msk.f32.mxu1 %vm4566_vm4, %v17345_v5  ;;  %v6345_v5 = vld [vmem:[#allocation4 + $0x1] sm:$0xff] }
 0x335   : > { %14412 = vmatpush3.msra.mxu1 %v12055_v21  ;;  %14429 = vmatprep.subr.mxu0 %v12072_v49 }
 0x336   : > { %14453 = vmatprep.subr.mxu1 %v12092_v1  ;;  %14430 = vmatpush3.msra.mxu0 %v12072_v49 }
 0x337   : > { %14414 = vmatmul.mubr.msk.f32.vlgmr.msra.gmra.mxu1 %vm4566_vm4, %v17361_v8  ;;  %14431 = vmatprep.subr.mxu0 %v12071_v10 }
 0x338   : > { %14416 = vmatprep.mubr.msk.f32.mxu1 %vm4566_vm4, %v17367_v35  ;;  %14454 = vmatpush3.msra.mxu1 %v12092_v1 }
 0x339   : > { %14455 = vmatprep.subr.mxu1 %v12091_v41  ;;  %14432 = vmatpush3.msra.mxu0 %v12071_v10 }
 0x33a   : > { %14456 = vmatpush3.msra.mxu1 %v12091_v41  ;;  %14433 = vmatprep.subr.mxu0 %v12068_v63  ;;  %v11441_v41 = vld [vmem:[%s18633_s6] ss:$0 sm:$0xff] }
 0x33b   : > { %14417 = vmatmul.mubr.msk.f32.gmra.mxu1 %vm4566_vm4, %v17373_v19  ;;  %14457 = vmatprep.subr.mxu1 %v12088_v15 }
 0x33c   : > { %14419 = vmatprep.mubr.msk.f32.mxu1 %vm4566_vm4, %v17379_v26  ;;  %14458 = vmatpush3.msra.mxu1 %v12088_v15 }
 0x33d   : > { %14459 = vmatprep.subr.mxu1 %v12087_v38  ;;  %14434 = vmatpush3.msra.mxu0 %v12068_v63 }
 0x33e   : > { %14460 = vmatpush3.msra.mxu1 %v12087_v38  ;;  %14435 = vmatprep.subr.mxu0 %v12067_v36 }
 0x33f   : > { %14420 = vmatmul.mubr.msk.f32.gmra.mxu1 %vm4566_vm4, %v17391_v13  ;;  %14461 = vmatprep.subr.mxu1 %v12084_v50 }
 0x340   : > { %14422 = vmatprep.mubr.msk.f32.mxu1 %vm4566_vm4, %v5528_v27  ;;  %14462 = vmatpush3.msra.mxu1 %v12084_v50 }
 0x341   : > { %14463 = vmatprep.subr.mxu1 %v12083_v57  ;;  %14436 = vmatpush3.msra.mxu0 %v12067_v36 }
 0x342   : > { %14464 = vmatpush3.msra.mxu1 %v12083_v57  ;;  %14437 = vmatprep.subr.mxu0 %v12064_v17 }
 0x343   : > { %14423 = vmatmul.mubr.msk.f32.gmra.mxu1 %vm4566_vm4, %v5990_v0  ;;  %14465 = vmatprep.subr.mxu1 %v12080_v7 }
 0x344   : > { %14438 = vmatpush3.msra.mxu0 %v12064_v17  ;;  %14466 = vmatpush3.msra.mxu1 %v12080_v7 }
 0x345   : > { %14439 = vmatprep.subr.mxu0 %v12063_v54  ;;  %14467 = vmatprep.subr.mxu1 %v12079_v48 }
 0x346   : > { %14440 = vmatpush3.msra.mxu0 %v12063_v54  ;;  %14441 = vmatprep.mubr.msk.f32.mxu0 %vm6145_vm10, %v6184_v43 }
 0x347   : > { %14468 = vmatpush3.msra.mxu1 %v12079_v48  ;;  %14469 = vmatprep.mubr.msk.f32.mxu1 %vm6145_vm10, %v6345_v5 }
 0x348   : > { %14481 = vmatprep.subr.mxu0 %v18660_v2  ;;  %14509 = vmatprep.subr.mxu1 %v18659_v42 }
 0x392   : > { %v14255_v8 = vpop.f32.mrf.mxu1 }
 0x393   : > { %v14275_v25 = vpop.f32.mrf.mxu0  ;;  %v4898_v15 = vadd.f32 %v14255_v8, %v11441_v41 }
 0x394   : > { %v4858_v47 = vpop.f32.mrf.mxu1 }
 0x395   : > { %v5012_v35 = vpop.f32.mrf.mxu0  ;;  %v4897_v4 = vadd.f32 %v11441_v41, %v4858_v47  ;;  %v5052_v50 = vadd.f32 %v14275_v25, %v4898_v15 }
 0x397   : > { %v5051_v18 = vadd.f32 %v5012_v35, %v4897_v4 }
 0x3a2   : > { %v14258_v19 = vpop.f32.mrf.mxu1 }
 0x3a3   : > { %v14278_v44 = vpop.f32.mrf.mxu0  ;;  %v4900_v36 = vadd.f32 %v14258_v19, %v11441_v41 }
 0x3a4   : > { %v4868_v46 = vpop.f32.mrf.mxu1 }
 0x3a5   : > { %v5022_v26 = vpop.f32.mrf.mxu0  ;;  %v4899_v17 = vadd.f32 %v11441_v41, %v4868_v46  ;;  %v5054_v43 = vadd.f32 %v14278_v44, %v4900_v36 }
 0x3a7   : > { %v5053_v47 = vadd.f32 %v5022_v26, %v4899_v17 }
 0x3b4   : > { %v14261_v28 = vpop.f32.mrf.mxu1 }
 0x3b5   : > { %v14281_v29 = vpop.f32.mrf.mxu0  ;;  %v4902_v5 = vadd.f32 %v14261_v28, %v11441_v41 }
 0x3b6   : > { %v4878_v13 = vpop.f32.mrf.mxu1 }
 0x3b7   : > { %v5032_v12 = vpop.f32.mrf.mxu0  ;;  %v4901_v42 = vadd.f32 %v11441_v41, %v4878_v13  ;;  %v5056_v15 = vadd.f32 %v14281_v29, %v4902_v5 }
 0x3b9   : > { %v5055_v35 = vadd.f32 %v5032_v12, %v4901_v42 }
 0x3c3   : > { %v14264_v9 = vpop.f32.mrf.mxu1 }
 0x3c4   : > { %v17565_v52 = vpop.f32.mrf.mxu0 }
 0x3c5   : > { %v4888_v45 = vpop.f32.mrf.mxu1 }
 0x3c6   : > { %v17567_v34 = vpop.f32.mrf.mxu0  ;;  %v4903_v46 = vadd.f32 %v11441_v41, %v4888_v45 }
 0x3c7   : > { %v14295_v53 = vpop.f32.mrf.mxu1 }
 0x3c8   : > { %v14315_v59 = vpop.f32.mrf.mxu0  ;;  %v5206_v7 = vadd.f32 %v14295_v53, %v5052_v50  ;;  %v5057_v36 = vadd.f32 %v17567_v34, %v4903_v46 }
 0x3c9   : > { %v5166_v20 = vpop.f32.mrf.mxu1 }
 0x3ca   : > { %v5320_v3 = vpop.f32.mrf.mxu0  ;;  %v5205_v8 = vadd.f32 %v5166_v20, %v5051_v18  ;;  %v5360_v40 = vadd.f32 %v14315_v59, %v5206_v7 }
 0x3cb   : > { %v14298_v16 = vpop.f32.mrf.mxu1 }
 0x3cc   : > { %v14318_v37 = vpop.f32.mrf.mxu0  ;;  %v5208_v51 = vadd.f32 %v14298_v16, %v5054_v43 }
 0x3cd   : > { %v5176_v56 = vpop.f32.mrf.mxu1 }
 0x3ce   : > { %v5330_v11 = vpop.f32.mrf.mxu0  ;;  %v5362_v4 = vadd.f32 %v14318_v37, %v5208_v51 }
 0x3cf   : > { %v14301_v27 = vpop.f32.mrf.mxu1 }
 0x3d0   : > { %v17569_v14 = vpop.f32.mrf.mxu0  ;;  %v5210_v50 = vadd.f32 %v14301_v27, %v5056_v15 }
 0x3d1   : > { %v5186_v31 = vpop.f32.mrf.mxu1 }
 0x3d2   : > { %v17571_v55 = vpop.f32.mrf.mxu0  ;;  %v5209_v13 = vadd.f32 %v5186_v31, %v5055_v35 }
 0x3d3   : > { %v14304_v58 = vpop.f32.mrf.mxu1 }
 0x3d4   : > { %v17573_v21 = vpop.f32.mrf.mxu0  ;;  %v5363_v51 = vadd.f32 %v17571_v55, %v5209_v13 }
 0x3d5   : > { %v17575_v30 = vpop.f32.mrf.mxu1 }
 0x3d6   : > { %v17577_v23 = vpop.f32.mrf.mxu0  ;;  %v5211_v37 = vadd.f32 %v17575_v30, %v5057_v36 }
 0x3d7   : > { %v14335_v0 = vpop.f32.mrf.mxu1 }
 0x3d8   : > { %v14355_v60 = vpop.f32.mrf.mxu0 }
 0x3d9   : > { %v5474_v39 = vpop.f32.mrf.mxu1 }
 0x3da   : > { %v5628_v33 = vpop.f32.mrf.mxu0 }
 0x3db   : > { %v14338_v1 = vpop.f32.mrf.mxu1 }
 0x3dc   : > { %v14358_v22 = vpop.f32.mrf.mxu0 }
 0x3dd   : > { %v5484_v32 = vpop.f32.mrf.mxu1 }
 0x3de   : > { %v17582_v6 = vpop.f32.mrf.mxu0 }
 0x3df   : > { %v14341_v24 = vpop.f32.mrf.mxu1 }
 0x3e0   : > { %v17584_v49 = vpop.f32.mrf.mxu0 }
 0x3e1   : > { %v5494_v10 = vpop.f32.mrf.mxu1 }
 0x3e2   : > { %v17586_v38 = vpop.f32.mrf.mxu0 }
 0x3e3   : > { %18903 = vst [vmem:[#allocation7_spill] sm:$0xff] %v17586_v38  ;;  %v14344_v61 = vpop.f32.mrf.mxu1  ;;  %v5207_v38 = vadd.f32 %v5176_v56, %v5053_v47 }
 0x3e4   : > { %v17588_v63 = vpop.f32.mrf.mxu0 }
 0x3e5   : > { %18904 = vst [vmem:[#allocation8_spill] sm:$0xff] %v17588_v63  ;;  %v17590_v57 = vpop.f32.mrf.mxu1  ;;  %v4904_v63 = vadd.f32 %v14264_v9, %v11441_v41  ;;  %v5361_v59 = vadd.f32 %v5330_v11, %v5207_v38  ;;  %v5516_v9 = vadd.f32 %v14338_v1, %v5362_v4 }
 0x3e6   : > { %18905 = vst [vmem:[#allocation33_spill] sm:$0xff] %v17590_v57  ;;  %v17592_v62 = vpop.f32.mrf.mxu0  ;;  %v5359_v57 = vadd.f32 %v5320_v3, %v5205_v8 }
 0x3e7   : > { %18906 = vst [vmem:[#allocation9_spill] sm:$0xff] %v17592_v62  ;;  %v14375_v54 = vpop.f32.mrf.mxu1  ;;  %v5514_v62 = vadd.f32 %v14335_v0, %v5360_v40  ;;  %v5058_v28 = vadd.f32 %v17565_v52, %v4904_v63  ;;  %v5364_v40 = vadd.f32 %v17569_v14, %v5210_v50  ;;  %v5515_v12 = vadd.f32 %v5484_v32, %v5361_v59 }
 0x3e8   : > { %v14395_v48 = vpop.f32.mrf.mxu0  ;;  %v5513_v44 = vadd.f32 %v5474_v39, %v5359_v57  ;;  %v5670_v27 = vadd.f32 %v14358_v22, %v5516_v9 }
 0x3e9   : > { %v5782_v2 = vpop.f32.mrf.mxu1  ;;  %v5668_v16 = vadd.f32 %v14355_v60, %v5514_v62  ;;  %v5212_v29 = vadd.f32 %v14304_v58, %v5058_v28  ;;  %v5518_v31 = vadd.f32 %v14341_v24, %v5364_v40  ;;  %v5517_v60 = vadd.f32 %v5494_v10, %v5363_v51  ;;  %v12671_v40 = vld [vmem:[%s18634_s7 + $0x50] sm:$0xff]   ;;  %v18911_v51 = vld [vmem:[#allocation18_spill] sm:$0xff] }
 0x3ea   : > { %v5936_v25 = vpop.f32.mrf.mxu0  ;;  %v5667_v42 = vadd.f32 %v5628_v33, %v5513_v44  ;;  %v5669_v58 = vadd.f32 %v17582_v6, %v5515_v12  ;;  %v5365_v33 = vadd.f32 %v17577_v23, %v5211_v37  ;;  %v18907_v24 = vld [vmem:[#allocation7_spill] sm:$0xff]  ;;  %v12107_v37 = vunpack.c.l.bf16 %v18911_v51 }
 0x3eb   : > { %v14378_v19 = vpop.f32.mrf.mxu1  ;;  %v5822_v45 = vadd.f32 %v14375_v54, %v5668_v16  ;;  %v5366_v0 = vadd.f32 %v17573_v21, %v5212_v29  ;;  %v5672_v30 = vadd.f32 %v17584_v49, %v5518_v31 }
 0x3ec   : > { %v14398_v20 = vpop.f32.mrf.mxu0  ;;  %v5821_v11 = vadd.f32 %v5782_v2, %v5667_v42  ;;  %v5824_v14 = vadd.f32 %v14378_v19, %v5670_v27  ;;  %v5671_v2 = vadd.f32 %v18907_v24, %v5517_v60  ;;  %v18909_v17 = vld [vmem:[#allocation8_spill] sm:$0xff] }
 0x3ed   : > { %v5792_v53 = vpop.f32.mrf.mxu1  ;;  %v5976_v39 = vadd.f32 %v14395_v48, %v5822_v45  ;;  %v5520_v1 = vadd.f32 %v14344_v61, %v5366_v0  ;;  %v18908_v63 = vld [vmem:[#allocation33_spill] sm:$0xff] }
 0x3ee   : > { %v5946_v52 = vpop.f32.mrf.mxu0  ;;  %v5975_v32 = vadd.f32 %v5936_v25, %v5821_v11  ;;  %v5823_v38 = vadd.f32 %v5792_v53, %v5669_v58  ;;  %v5519_v21 = vadd.f32 %v18908_v63, %v5365_v33  ;;  %v5978_v57 = vadd.f32 %v14398_v20, %v5824_v14  ;;  %v18910_v5 = vld [vmem:[#allocation9_spill] sm:$0xff] }
 0x3ef   : > { %v14381_v26 = vpop.f32.mrf.mxu1  ;;  %v5674_v7 = vadd.f32 %v18909_v17, %v5520_v1  ;;  %v12675_v27 = vld [vmem:[%s18634_s7 + $0x70] sm:$0xff]   ;;  %v18913_v58 = vunpack.c.h.bf16 %v18911_v51  ;;  %v12104_v14 = vunpack.c.h.bf16 %v12671_v40  ;;  %v12681_v51 = vld [vmem:[%s18634_s7 + $0xa0] sm:$0xff]  }
 0x3f0   : > { %v14401_v41 = vpop.f32.mrf.mxu0  ;;  %v5826_v62 = vadd.f32 %v14381_v26, %v5672_v30  ;;  %v5977_v54 = vadd.f32 %v5946_v52, %v5823_v38  ;;  %v5673_v8 = vadd.f32 %v18910_v5, %v5519_v21  ;;  %v18912_v52 = vld [vmem:[#allocation22_spill] sm:$0xff]  ;;  %v12120_v33 = vunpack.c.h.bf16 %v12675_v27  ;;  %v12674_v38 = vld [vmem:[%s18634_s7 + $0x68] sm:$0xff]  }
 0x3f1   : > { %v5802_v3 = vpop.f32.mrf.mxu1  ;;  %v12119_v30 = vunpack.c.l.bf16 %v12675_v27  ;;  %v12680_v5 = vld [vmem:[%s18634_s7 + $0x98] sm:$0xff]  }
 0x3f2   : > { %v5956_v23 = vpop.f32.mrf.mxu0  ;;  %v5825_v48 = vadd.f32 %v5802_v3, %v5671_v2  ;;  %v5980_v19 = vadd.f32 %v14401_v41, %v5826_v62  ;;  %v12115_v62 = vunpack.c.l.bf16 %v12674_v38 }
 0x3f3   : > { %v14384_v56 = vpop.f32.mrf.mxu1 }
 0x3f4   : > { %v14404_v47 = vpop.f32.mrf.mxu0  ;;  %v5828_v15 = vadd.f32 %v14384_v56, %v5674_v7  ;;  %v5979_v4 = vadd.f32 %v5956_v23, %v5825_v48  ;;  %v12123_v56 = vunpack.c.l.bf16 %v18912_v52 }
 0x3f5   : > { %v5812_v34 = vpop.f32.mrf.mxu1 }
 0x3f6   : > { %v5827_v50 = vadd.f32 %v5812_v34, %v5673_v8  ;;  %v5966_v13 = vpop.f32.mrf.mxu0  ;;  %v5982_v26 = vadd.f32 %v14404_v47, %v5828_v15  ;;  %v12684_v8 = vld [vmem:[%s18634_s7 + $0xb8] sm:$0xff]  }
 0x3f7   : > { %v14415_v55 = vpop.f32.mrf.mxu1  ;;  %v6507_v47 = vld [vmem:[#allocation4 + $0x2] sm:$0xff] }
 0x3f8   : > { %v6130_v22 = vadd.f32 %v14415_v55, %v5976_v39  ;;  %v5981_v36 = vadd.f32 %v5966_v13, %v5827_v50  ;;  %v18914_v39 = vunpack.c.h.bf16 %v18912_v52  ;;  %v12103_v55 = vunpack.c.l.bf16 %v12671_v40 }
 0x3f9   : > { %v6090_v10 = vpop.f32.mrf.mxu1 }
 0x3fa   : > { %v6138_v6 = vmax.f32 %v6130_v22, 0.0  ;;  %v6129_v18 = vadd.f32 %v6090_v10, %v5975_v32  ;;  %v12670_v32 = vld [vmem:[%s18634_s7 + $0x48] sm:$0xff]   ;;  %v12116_v10 = vunpack.c.h.bf16 %v12674_v38 }
 0x3fb   : > { %v14418_v61 = vpop.f32.mrf.mxu1  ;;  %v12100_v21 = vunpack.c.h.bf16 %v12670_v32 }
 0x3fc   : > { %6169 = vst.msk [vmem:[#allocation4 + $0x21] sm:$0xff] %vm6145_vm10, %v6138_v6  ;;  %v6137_v49 = vmax.f32 %v6129_v18, 0.0  ;;  %v6132_v43 = vadd.f32 %v14418_v61, %v5978_v57  ;;  %v12099_v57 = vunpack.c.l.bf16 %v12670_v32  ;;  %v12669_v6 = vld [vmem:[%s18634_s7 + $0x40] sm:$0xff]   ;;  %v12691_v32 = vld [vmem:[%s18634_s7 + $0xf0] sm:$0xff]  }
 0x3fd   : > { %v6100_v25 = vpop.f32.mrf.mxu1  ;;  %v12673_v18 = vld [vmem:[%s18634_s7 + $0x60] sm:$0xff]  }
 0x3fe   : > { %6168 = vst.msk [vmem:[#allocation4 + $0x11] sm:$0xff] %vm6145_vm10, %v6137_v49  ;;  %v6140_v35 = vmax.f32 %v6132_v43, 0.0  ;;  %v6131_v46 = vadd.f32 %v6100_v25, %v5977_v54  ;;  %v12096_v54 = vunpack.c.h.bf16 %v12669_v6  ;;  %v12112_v48 = vunpack.c.h.bf16 %v12673_v18 }
 0x3ff   : > { %v14421_v53 = vpop.f32.mrf.mxu1  ;;  %v12095_v49 = vunpack.c.l.bf16 %v12669_v6  ;;  %v12111_v43 = vunpack.c.l.bf16 %v12673_v18  ;;  %v12140_v25 = vunpack.c.h.bf16 %v12680_v5  ;;  %v12690_v6 = vld [vmem:[%s18634_s7 + $0xe8] sm:$0xff]  }
 0x400   : > { %6171 = vst.msk [vmem:[#allocation4 + $0x41] sm:$0xff] %vm6145_vm10, %v6140_v35  ;;  %v6139_v44 = vmax.f32 %v6131_v46, 0.0  ;;  %v6134_v28 = vadd.f32 %v14421_v53, %v5980_v19  ;;  %v12156_v19 = vunpack.c.h.bf16 %v12684_v8  ;;  %v12139_v35 = vunpack.c.l.bf16 %v12680_v5  ;;  %v12679_v53 = vld [vmem:[%s18634_s7 + $0x90] sm:$0xff]   ;;  %v12689_v5 = vld [vmem:[%s18634_s7 + $0xe0] sm:$0xff]  }
 0x401   : > { %v6110_v20 = vpop.f32.mrf.mxu1  ;;  %v12155_v46 = vunpack.c.l.bf16 %v12684_v8 }
 0x402   : > { %6170 = vst.msk [vmem:[#allocation4 + $0x31] sm:$0xff] %vm6145_vm10, %v6139_v44  ;;  %v6142_v59 = vmax.f32 %v6134_v28, 0.0  ;;  %v6133_v16 = vadd.f32 %v6110_v20, %v5979_v4  ;;  %v12683_v4 = vld [vmem:[%s18634_s7 + $0xb0] sm:$0xff]   ;;  %v12136_v44 = vunpack.c.h.bf16 %v12679_v53  ;;  %v12135_v20 = vunpack.c.l.bf16 %v12679_v53 }
 0x403   : > { %v14424_v9 = vpop.f32.mrf.mxu1  ;;  %v17629_v0 = vld [vmem:[#allocation4 + $0x20] sm:$0xff]  ;;  %v12152_v28 = vunpack.c.h.bf16 %v12683_v4 }
 0x404   : > { %6173 = vst.msk [vmem:[#allocation4 + $0x61] sm:$0xff] %vm6145_vm10, %v6142_v59  ;;  %v6141_v29 = vmax.f32 %v6133_v16, 0.0  ;;  %v6136_v3 = vadd.f32 %v14424_v9, %v5982_v26  ;;  %v17631_v60 = vld [vmem:[#allocation4 + $0x21] sm:$0xff]  ;;  %v12151_v26 = vunpack.c.l.bf16 %v12683_v4  ;;  %v12678_v59 = vld [vmem:[%s18634_s7 + $0x88] sm:$0xff]  }
 0x405   : > { %v6120_v42 = vpop.f32.mrf.mxu1  ;;  %v17615_v12 = vld [vmem:[#allocation4 + $0x10] sm:$0xff]  ;;  %v17716_v50 = vld [vmem:[#allocation4 + $0x22] sm:$0xff]  ;;  %v12682_v16 = vld [vmem:[%s18634_s7 + $0xa8] sm:$0xff]   ;;  %v12131_v40 = vunpack.c.l.bf16 %v12678_v59 }
 0x406   : > { %v17617_v45 = vld [vmem:[#allocation4 + $0x11] sm:$0xff]  ;;  %6172 = vst.msk [vmem:[#allocation4 + $0x51] sm:$0xff] %vm6145_vm10, %v6141_v29  ;;  %v6144_v31 = vmax.f32 %v6136_v3, 0.0  ;;  %v6135_v11 = vadd.f32 %v6120_v42, %v5981_v36  ;;  %14442 = vmatmul.mubr.msk.f32.vlgmr.msra.gmra.mxu0 %vm6145_vm10, %v17615_v12  ;;  %v12132_v36 = vunpack.c.h.bf16 %v12678_v59  ;;  %v12148_v29 = vunpack.c.h.bf16 %v12682_v16  ;;  %v12695_v4 = vld [vmem:[%s18634_s7 + $0x110] sm:$0xff]  }
 0x407   : > { %14470 = vmatmul.mubr.msk.f32.vlgmr.msra.gmra.mxu1 %vm6145_vm10, %v17617_v45  ;;  %14444 = vmatprep.mubr.msk.f32.mxu0 %vm6145_vm10, %v17629_v0  ;;  %v17657_v22 = vld [vmem:[#allocation4 + $0x40] sm:$0xff]  ;;  %v17704_v15 = vld [vmem:[#allocation4 + $0x12] sm:$0xff]  ;;  %v12147_v42 = vunpack.c.l.bf16 %v12682_v16 }
 0x408   : > { %14472 = vmatprep.mubr.msk.f32.mxu1 %vm6145_vm10, %v17631_v60  ;;  %6175 = vst.msk [vmem:[#allocation4 + $0x81] sm:$0xff] %vm6145_vm10, %v6144_v31  ;;  %v6143_v34 = vmax.f32 %v6135_v11, 0.0  ;;  %14482 = vmatpush3.msra.mxu0 %v18913_v58  ;;  %v17659_v24 = vld [vmem:[#allocation4 + $0x41] sm:$0xff] }
 0x409   : > { %14510 = vmatpush3.msra.mxu1 %v18914_v39  ;;  %14483 = vmatprep.subr.mxu0 %v12107_v37  ;;  %v17642_v1 = vld [vmem:[#allocation4 + $0x30] sm:$0xff]  ;;  %v17734_v9 = vld [vmem:[#allocation4 + $0x42] sm:$0xff] }
 0x40a   : > { %14511 = vmatprep.subr.mxu1 %v12123_v56  ;;  %v17644_v41 = vld [vmem:[#allocation4 + $0x31] sm:$0xff]  ;;  %6174 = vst.msk [vmem:[#allocation4 + $0x71] sm:$0xff] %vm6145_vm10, %v6143_v34  ;;  %14484 = vmatpush3.msra.mxu0 %v12107_v37  ;;  %v12143_v34 = vunpack.c.l.bf16 %v12681_v51  ;;  %v12688_v58 = vld [vmem:[%s18634_s7 + $0xd8] sm:$0xff]  }
 0x40b   : > { %14512 = vmatpush3.msra.mxu1 %v12123_v56  ;;  %14445 = vmatmul.mubr.msk.f32.gmra.mxu0 %vm6145_vm10, %v17642_v1  ;;  %v17679_v17 = vld [vmem:[#allocation4 + $0x60] sm:$0xff]  ;;  %v17722_v13 = vld [vmem:[#allocation4 + $0x32] sm:$0xff]  ;;  %v12144_v56 = vunpack.c.h.bf16 %v12681_v51  ;;  %v12692_v39 = vld [vmem:[%s18634_s7 + $0xf8] sm:$0xff]  }
 0x40c   : > { %14473 = vmatmul.mubr.msk.f32.gmra.mxu1 %vm6145_vm10, %v17644_v41  ;;  %14485 = vmatprep.subr.mxu0 %v12104_v14  ;;  %v17681_v7 = vld [vmem:[#allocation4 + $0x61] sm:$0xff] }
 0x40d   : > { %14513 = vmatprep.subr.mxu1 %v12120_v33  ;;  %14447 = vmatprep.mubr.msk.f32.mxu0 %vm6145_vm10, %v17657_v22  ;;  %v17665_v2 = vld [vmem:[#allocation4 + $0x50] sm:$0xff]  ;;  %v17752_v37 = vld [vmem:[#allocation4 + $0x62] sm:$0xff] }
 0x40e   : > { %14475 = vmatprep.mubr.msk.f32.mxu1 %vm6145_vm10, %v17659_v24  ;;  %14486 = vmatpush3.msra.mxu0 %v12104_v14  ;;  %v17667_v63 = vld [vmem:[#allocation4 + $0x51] sm:$0xff]  ;;  %v12172_v14 = vunpack.c.h.bf16 %v12688_v58 }
 0x40f   : > { %14514 = vmatpush3.msra.mxu1 %v12120_v33  ;;  %14487 = vmatprep.subr.mxu0 %v12103_v55  ;;  %v17740_v3 = vld [vmem:[#allocation4 + $0x52] sm:$0xff]  ;;  %v17760_v31 = vld [vmem:[#allocation4 + $0x80] sm:$0xff]  ;;  %v12188_v33 = vunpack.c.h.bf16 %v12692_v39 }
 0x410   : > { %14515 = vmatprep.subr.mxu1 %v12119_v30  ;;  %14488 = vmatpush3.msra.mxu0 %v12103_v55  ;;  %v12171_v55 = vunpack.c.l.bf16 %v12688_v58 }
 0x411   : > { %14516 = vmatpush3.msra.mxu1 %v12119_v30  ;;  %14448 = vmatmul.mubr.msk.f32.gmra.mxu0 %vm6145_vm10, %v17665_v2  ;;  %v17687_v23 = vld [vmem:[#allocation4 + $0x70] sm:$0xff]  ;;  %v12187_v30 = vunpack.c.l.bf16 %v12692_v39 }
 0x412   : > { %14476 = vmatmul.mubr.msk.f32.gmra.mxu1 %vm6145_vm10, %v17667_v63  ;;  %14489 = vmatprep.subr.mxu0 %v12100_v21  ;;  %v17689_v61 = vld [vmem:[#allocation4 + $0x71] sm:$0xff] }
 0x413   : > { %14517 = vmatprep.subr.mxu1 %v12116_v10  ;;  %14450 = vmatprep.mubr.msk.f32.mxu0 %vm6145_vm10, %v17679_v17  ;;  %v17758_v27 = vld [vmem:[#allocation4 + $0x72] sm:$0xff] }
 0x414   : > { %14478 = vmatprep.mubr.msk.f32.mxu1 %vm6145_vm10, %v17681_v7  ;;  %14490 = vmatpush3.msra.mxu0 %v12100_v21  ;;  %v12184_v21 = vunpack.c.h.bf16 %v12691_v32 }
 0x415   : > { %14518 = vmatpush3.msra.mxu1 %v12116_v10  ;;  %14491 = vmatprep.subr.mxu0 %v12099_v57 }
 0x416   : > { %14519 = vmatprep.subr.mxu1 %v12115_v62  ;;  %14492 = vmatpush3.msra.mxu0 %v12099_v57  ;;  %v12183_v57 = vunpack.c.l.bf16 %v12691_v32 }
 0x417   : > { %14520 = vmatpush3.msra.mxu1 %v12115_v62  ;;  %14451 = vmatmul.mubr.msk.f32.gmra.mxu0 %vm6145_vm10, %v17687_v23  ;;  %v12686_v62 = vld [vmem:[%s18634_s7 + $0xc8] sm:$0xff]  }
 0x418   : > { %14479 = vmatmul.mubr.msk.f32.gmra.mxu1 %vm6145_vm10, %v17689_v61  ;;  %14493 = vmatprep.subr.mxu0 %v12096_v54  ;;  %v12164_v18 = vunpack.c.h.bf16 %v12686_v62 }
 0x419   : > { %14521 = vmatprep.subr.mxu1 %v12112_v48  ;;  %14494 = vmatpush3.msra.mxu0 %v12096_v54  ;;  %v12180_v54 = vunpack.c.h.bf16 %v12690_v6 }
 0x41a   : > { %14522 = vmatpush3.msra.mxu1 %v12112_v48  ;;  %14525 = vmatprep.mubr.msk.f32.mxu1 %vm6145_vm10, %v17615_v12  ;;  %v12677_v12 = vld [vmem:[%s18634_s7 + $0x80] sm:$0xff]   ;;  %v12163_v48 = vunpack.c.l.bf16 %v12686_v62 }
 0x41b   : > { %14495 = vmatprep.subr.mxu0 %v12095_v49  ;;  %14523 = vmatprep.subr.mxu1 %v12111_v43  ;;  %v12128_v52 = vunpack.c.h.bf16 %v12677_v12  ;;  %v12127_v11 = vunpack.c.l.bf16 %v12677_v12 }
 0x41c   : > { %14496 = vmatpush3.msra.mxu0 %v12095_v49  ;;  %14497 = vmatprep.mubr.msk.f32.mxu0 %vm6145_vm10, %v6507_v47  ;;  %v12179_v49 = vunpack.c.l.bf16 %v12690_v6  ;;  %v12176_v47 = vunpack.c.h.bf16 %v12689_v5 }
 0x41d   : > { %14524 = vmatpush3.msra.mxu1 %v12111_v43  ;;  %14498 = vmatmul.mubr.msk.f32.vlgmr.msra.gmra.mxu0 %vm6145_vm10, %v17704_v15  ;;  %v12685_v43 = vld [vmem:[%s18634_s7 + $0xc0] sm:$0xff]  }
 0x41e   : > { %14526 = vmatmul.mubr.msk.f32.vlgmr.msra.gmra.mxu1 %vm6145_vm10, %v17629_v0  ;;  %14537 = vmatprep.subr.mxu0 %v12140_v25  ;;  %v12160_v8 = vunpack.c.h.bf16 %v12685_v43 }
 0x41f   : > { %14565 = vmatprep.subr.mxu1 %v12156_v19  ;;  %14500 = vmatprep.mubr.msk.f32.mxu0 %vm6145_vm10, %v17716_v50 }
 0x420   : > { %14528 = vmatprep.mubr.msk.f32.mxu1 %vm6145_vm10, %v17642_v1  ;;  %14538 = vmatpush3.msra.mxu0 %v12140_v25  ;;  %v6838_v25 = vld [vmem:[#allocation4 + $0x81] sm:$0xff] }
 0x421   : > { %14566 = vmatpush3.msra.mxu1 %v12156_v19  ;;  %14539 = vmatprep.subr.mxu0 %v12139_v35  ;;  %v17818_v19 = vld [vmem:[#allocation4 + $0x82] sm:$0xff] }
 0x422   : > { %14567 = vmatprep.subr.mxu1 %v12155_v46  ;;  %14540 = vmatpush3.msra.mxu0 %v12139_v35  ;;  %v12175_v35 = vunpack.c.l.bf16 %v12689_v5 }
 0x423   : > { %14568 = vmatpush3.msra.mxu1 %v12155_v46  ;;  %14501 = vmatmul.mubr.msk.f32.gmra.mxu0 %vm6145_vm10, %v17722_v13  ;;  %v12696_v46 = vld [vmem:[%s18634_s7 + $0x118] sm:$0xff]  }
 0x424   : > { %14529 = vmatmul.mubr.msk.f32.gmra.mxu1 %vm6145_vm10, %v17657_v22  ;;  %14541 = vmatprep.subr.mxu0 %v12136_v44  ;;  %v12204_v53 = vunpack.c.h.bf16 %v12696_v46 }
 0x425   : > { %14569 = vmatprep.subr.mxu1 %v12152_v28  ;;  %14503 = vmatprep.mubr.msk.f32.mxu0 %vm6145_vm10, %v17734_v9 }
 0x426   : > { %14531 = vmatprep.mubr.msk.f32.mxu1 %vm6145_vm10, %v17665_v2  ;;  %14542 = vmatpush3.msra.mxu0 %v12136_v44  ;;  %v12203_v44 = vunpack.c.l.bf16 %v12696_v46 }
 0x427   : > { %14570 = vmatpush3.msra.mxu1 %v12152_v28  ;;  %14543 = vmatprep.subr.mxu0 %v12135_v20 }
 0x428   : > { %14571 = vmatprep.subr.mxu1 %v12151_v26  ;;  %14544 = vmatpush3.msra.mxu0 %v12135_v20 }
 0x429   : > { %14572 = vmatpush3.msra.mxu1 %v12151_v26  ;;  %14504 = vmatmul.mubr.msk.f32.gmra.mxu0 %vm6145_vm10, %v17740_v3 }
 0x42a   : > { %14532 = vmatmul.mubr.msk.f32.gmra.mxu1 %vm6145_vm10, %v17679_v17  ;;  %14545 = vmatprep.subr.mxu0 %v12132_v36 }
 0x42b   : > { %14573 = vmatprep.subr.mxu1 %v12148_v29  ;;  %14506 = vmatprep.mubr.msk.f32.mxu0 %vm6145_vm10, %v17752_v37 }
 0x42c   : > { %14534 = vmatprep.mubr.msk.f32.mxu1 %vm6145_vm10, %v17687_v23  ;;  %14546 = vmatpush3.msra.mxu0 %v12132_v36 }
 0x42d   : > { %14574 = vmatpush3.msra.mxu1 %v12148_v29  ;;  %14547 = vmatprep.subr.mxu0 %v12131_v40 }
 0x42e   : > { %14575 = vmatprep.subr.mxu1 %v12147_v42  ;;  %14548 = vmatpush3.msra.mxu0 %v12131_v40 }
 0x42f   : > { %14576 = vmatpush3.msra.mxu1 %v12147_v42  ;;  %14507 = vmatmul.mubr.msk.f32.gmra.mxu0 %vm6145_vm10, %v17758_v27 }
 0x430   : > { %14535 = vmatmul.mubr.msk.f32.gmra.mxu1 %vm6145_vm10, %v17760_v31  ;;  %14549 = vmatprep.subr.mxu0 %v12128_v52 }
 0x431   : > { %14577 = vmatprep.subr.mxu1 %v12144_v56  ;;  %14550 = vmatpush3.msra.mxu0 %v12128_v52  ;;  %v12699_v52 = vld [vmem:[%s18636_s9 + $0x18] sm:$0xff]  }
 0x432   : > { %14553 = vmatprep.mubr.msk.f32.mxu0 %vm6145_vm10, %v17617_v45  ;;  %14578 = vmatpush3.msra.mxu1 %v12144_v56  ;;  %v12687_v45 = vld [vmem:[%s18634_s7 + $0xd0] sm:$0xff]  }
 0x433   : > { %14581 = vmatprep.mubr.msk.f32.mxu1 %vm6145_vm10, %v17704_v15  ;;  %14551 = vmatprep.subr.mxu0 %v12127_v11  ;;  %v12168_v38 = vunpack.c.h.bf16 %v12687_v45  ;;  %v12167_v10 = vunpack.c.l.bf16 %v12687_v45  ;;  %v12159_v15 = vunpack.c.l.bf16 %v12685_v43  ;;  %v12698_v56 = vld [vmem:[%s18636_s9 + $0x10] sm:$0xff]  }
 0x434   : > { %14579 = vmatprep.subr.mxu1 %v12143_v34  ;;  %14552 = vmatpush3.msra.mxu0 %v12127_v11  ;;  %v12220_v11 = vunpack.c.h.bf16 %v12699_v52 }
 0x435   : > { %14580 = vmatpush3.msra.mxu1 %v12143_v34  ;;  %14554 = vmatmul.mubr.msk.f32.vlgmr.msra.gmra.mxu0 %vm6145_vm10, %v17631_v60  ;;  %v12219_v34 = vunpack.c.l.bf16 %v12699_v52 }
 0x436   : > { %14582 = vmatmul.mubr.msk.f32.vlgmr.msra.gmra.mxu1 %vm6145_vm10, %v17716_v50  ;;  %14593 = vmatprep.subr.mxu0 %v12172_v14 }
 0x437   : > { %14621 = vmatprep.subr.mxu1 %v12188_v33  ;;  %14556 = vmatprep.mubr.msk.f32.mxu0 %vm6145_vm10, %v17644_v41 }
 0x438   : > { %14584 = vmatprep.mubr.msk.f32.mxu1 %vm6145_vm10, %v17722_v13  ;;  %14594 = vmatpush3.msra.mxu0 %v12172_v14  ;;  %v12216_v14 = vunpack.c.h.bf16 %v12698_v56 }
 0x439   : > { %14622 = vmatpush3.msra.mxu1 %v12188_v33  ;;  %14595 = vmatprep.subr.mxu0 %v12171_v55  ;;  %v12697_v33 = vld [vmem:[%s18636_s9 + $0x8] sm:$0xff]  }
 0x43a   : > { %14623 = vmatprep.subr.mxu1 %v12187_v30  ;;  %14596 = vmatpush3.msra.mxu0 %v12171_v55  ;;  %v12215_v55 = vunpack.c.l.bf16 %v12698_v56  ;;  %v12212_v32 = vunpack.c.h.bf16 %v12697_v33 }
 0x43b   : > { %14624 = vmatpush3.msra.mxu1 %v12187_v30  ;;  %14557 = vmatmul.mubr.msk.f32.gmra.mxu0 %vm6145_vm10, %v17659_v24 }
 0x43c   : > { %14585 = vmatmul.mubr.msk.f32.gmra.mxu1 %vm6145_vm10, %v17734_v9  ;;  %14597 = vmatprep.subr.mxu0 %v12168_v38 }
 0x43d   : > { %14625 = vmatprep.subr.mxu1 %v12184_v21  ;;  %14559 = vmatprep.mubr.msk.f32.mxu0 %vm6145_vm10, %v17667_v63 }
 0x43e   : > { %14587 = vmatprep.mubr.msk.f32.mxu1 %vm6145_vm10, %v17740_v3  ;;  %14598 = vmatpush3.msra.mxu0 %v12168_v38  ;;  %v17937_v38 = vld [vmem:[%s18636_s9] sm:$0xff]  }
 0x43f   : > { %14626 = vmatpush3.msra.mxu1 %v12184_v21  ;;  %14599 = vmatprep.subr.mxu0 %v12167_v10  ;;  %v12208_v62 = vunpack.c.h.bf16 %v17937_v38 }
 0x440   : > { %14627 = vmatprep.subr.mxu1 %v12183_v57  ;;  %14600 = vmatpush3.msra.mxu0 %v12167_v10 }
 0x441   : > { %14628 = vmatpush3.msra.mxu1 %v12183_v57  ;;  %14560 = vmatmul.mubr.msk.f32.gmra.mxu0 %vm6145_vm10, %v17681_v7  ;;  %v12211_v57 = vunpack.c.l.bf16 %v12697_v33 }
 0x442   : > { %14588 = vmatmul.mubr.msk.f32.gmra.mxu1 %vm6145_vm10, %v17752_v37  ;;  %14601 = vmatprep.subr.mxu0 %v12164_v18 }
 0x443   : > { %14629 = vmatprep.subr.mxu1 %v12180_v54  ;;  %14562 = vmatprep.mubr.msk.f32.mxu0 %vm6145_vm10, %v17689_v61 }
 0x444   : > { %14590 = vmatprep.mubr.msk.f32.mxu1 %vm6145_vm10, %v17758_v27  ;;  %14602 = vmatpush3.msra.mxu0 %v12164_v18 }
 0x445   : > { %14630 = vmatpush3.msra.mxu1 %v12180_v54  ;;  %14603 = vmatprep.subr.mxu0 %v12163_v48 }
 0x446   : > { %14631 = vmatprep.subr.mxu1 %v12179_v49  ;;  %14604 = vmatpush3.msra.mxu0 %v12163_v48 }
 0x447   : > { %14632 = vmatpush3.msra.mxu1 %v12179_v49  ;;  %14563 = vmatmul.mubr.msk.f32.gmra.mxu0 %vm6145_vm10, %v6838_v25 }
 0x448   : > { %14591 = vmatmul.mubr.msk.f32.gmra.mxu1 %vm6145_vm10, %v17818_v19  ;;  %14605 = vmatprep.subr.mxu0 %v12160_v8 }
 0x449   : > { %14633 = vmatprep.subr.mxu1 %v12176_v47  ;;  %14606 = vmatpush3.msra.mxu0 %v12160_v8 }
 0x44a   : > { %14609 = vmatprep.mubr.msk.f32.mxu0 %vm6145_vm10, %v17629_v0  ;;  %14634 = vmatpush3.msra.mxu1 %v12176_v47  ;;  %v12200_v0 = vunpack.c.h.bf16 %v12695_v4 }
 0x44b   : > { %14637 = vmatprep.mubr.msk.f32.mxu1 %vm6145_vm10, %v17631_v60  ;;  %14607 = vmatprep.subr.mxu0 %v12159_v15  ;;  %v12694_v60 = vld [vmem:[%s18634_s7 + $0x108] sm:$0xff]  }
 0x44c   : > { %14635 = vmatprep.subr.mxu1 %v12175_v35  ;;  %14608 = vmatpush3.msra.mxu0 %v12159_v15 }
 0x44d   : > { %14636 = vmatpush3.msra.mxu1 %v12175_v35  ;;  %14610 = vmatmul.mubr.msk.f32.vlgmr.msra.gmra.mxu0 %vm6145_vm10, %v17642_v1  ;;  %v12199_v1 = vunpack.c.l.bf16 %v12695_v4 }
 0x44e   : > { %14638 = vmatmul.mubr.msk.f32.vlgmr.msra.gmra.mxu1 %vm6145_vm10, %v17644_v41  ;;  %14649 = vmatprep.subr.mxu0 %v12204_v53  ;;  %v12196_v41 = vunpack.c.h.bf16 %v12694_v60 }
 0x44f   : > { %14612 = vmatprep.mubr.msk.f32.mxu0 %vm6145_vm10, %v17657_v22  ;;  %14640 = vmatprep.mubr.msk.f32.mxu1 %vm6145_vm10, %v17659_v24  ;;  %v12693_v22 = vld [vmem:[%s18634_s7 + $0x100] sm:$0xff]   ;;  %v12195_v24 = vunpack.c.l.bf16 %v12694_v60 }
 0x450   : > { %14650 = vmatpush3.msra.mxu0 %v12204_v53 }
 0x451   : > { %14651 = vmatprep.subr.mxu0 %v12203_v44  ;;  %14613 = vmatmul.mubr.msk.f32.gmra.mxu0 %vm6145_vm10, %v17665_v2  ;;  %v7325_v2 = vld [vmem:[#allocation4 + $0x91] sm:$0xff] }
 0x452   : > { %14652 = vmatpush3.msra.mxu0 %v12203_v44  ;;  %14641 = vmatmul.mubr.msk.f32.gmra.mxu1 %vm6145_vm10, %v17667_v63  ;;  %v12192_v63 = vunpack.c.h.bf16 %v12693_v22 }
 0x453   : > { %14653 = vmatprep.subr.mxu0 %v12200_v0  ;;  %14615 = vmatprep.mubr.msk.f32.mxu0 %vm6145_vm10, %v17679_v17  ;;  %v7163_v17 = vld [vmem:[#allocation4 + $0x90] sm:$0xff] }
 0x454   : > { %14643 = vmatprep.mubr.msk.f32.mxu1 %vm6145_vm10, %v17681_v7  ;;  %14654 = vmatpush3.msra.mxu0 %v12200_v0  ;;  %v12191_v7 = vunpack.c.l.bf16 %v12693_v22 }
 0x455   : > { %14655 = vmatprep.subr.mxu0 %v12199_v1  ;;  %14616 = vmatmul.mubr.msk.f32.gmra.mxu0 %vm6145_vm10, %v17687_v23  ;;  %v7487_v23 = vld [vmem:[#allocation4 + $0x92] sm:$0xff] }
 0x456   : > { %14644 = vmatmul.mubr.msk.f32.gmra.mxu1 %vm6145_vm10, %v17689_v61  ;;  %14656 = vmatpush3.msra.mxu0 %v12199_v1  ;;  %v7700_v61 = vld [vmem:[%s18640_s13] sm:$0xff] }
 0x457   : > { %14646 = vmatprep.mubr.msk.f32.mxu1 %vm6145_vm10, %v6838_v25  ;;  %14657 = vmatprep.subr.mxu0 %v12196_v41 }
 0x458   : > { %14618 = vmatprep.mubr.msk.f32.mxu0 %vm6145_vm10, %v17760_v31  ;;  %14658 = vmatpush3.msra.mxu0 %v12196_v41  ;;  %v11546_v41 = vld [vmem:[%s18635_s8] ss:$0 sm:$0xff] }
 0x459   : > { %14659 = vmatprep.subr.mxu0 %v12195_v24  ;;  %14619 = vmatmul.mubr.msk.f32.gmra.mxu0 %vm6145_vm10, %v7163_v17 }
 0x45a   : > { %14647 = vmatmul.mubr.msk.f32.gmra.mxu1 %vm6145_vm10, %v7325_v2  ;;  %14660 = vmatpush3.msra.mxu0 %v12195_v24 }
 0x45b   : > { %14661 = vmatprep.subr.mxu0 %v12192_v63  ;;  %14665 = vmatprep.mubr.msk.f32.mxu0 %vm6145_vm10, %v17716_v50 }
 0x45c   : > { %14662 = vmatpush3.msra.mxu0 %v12192_v63  ;;  %14681 = vmatprep.mubr.msk.f32.mxu1 %vm927_vm2, %v7700_v61 }
 0x45d   : > { %14663 = vmatprep.subr.mxu0 %v12191_v7 }
 0x45e   : > { %14664 = vmatpush3.msra.mxu0 %v12191_v7 }
 0x45f   : > { %14666 = vmatmul.mubr.msk.f32.vlgmr.msra.gmra.mxu0 %vm6145_vm10, %v17722_v13  ;;  %14684 = vmatprep.subr.mxu0 %v12220_v11 }
 0x460   : > { %14668 = vmatprep.mubr.msk.f32.mxu0 %vm6145_vm10, %v17734_v9  ;;  %14685 = vmatpush3.msra.mxu0 %v12220_v11 }
 0x461   : > { %14686 = vmatprep.subr.mxu0 %v12219_v34 }
 0x462   : > { %14687 = vmatpush3.msra.mxu0 %v12219_v34 }
 0x463   : > { %14669 = vmatmul.mubr.msk.f32.gmra.mxu0 %vm6145_vm10, %v17740_v3  ;;  %14688 = vmatprep.subr.mxu0 %v12216_v14 }
 0x464   : > { %14671 = vmatprep.mubr.msk.f32.mxu0 %vm6145_vm10, %v17752_v37  ;;  %14689 = vmatpush3.msra.mxu0 %v12216_v14 }
 0x465   : > { %14690 = vmatprep.subr.mxu0 %v12215_v55 }
 0x466   : > { %14691 = vmatpush3.msra.mxu0 %v12215_v55 }
 0x467   : > { %14672 = vmatmul.mubr.msk.f32.gmra.mxu0 %vm6145_vm10, %v17758_v27  ;;  %14692 = vmatprep.subr.mxu0 %v12212_v32 }
 0x468   : > { %14674 = vmatprep.mubr.msk.f32.mxu0 %vm6145_vm10, %v17818_v19  ;;  %14693 = vmatpush3.msra.mxu0 %v12212_v32 }
 0x469   : > { %14694 = vmatprep.subr.mxu0 %v12211_v57 }
 0x46a   : > { %14695 = vmatpush3.msra.mxu0 %v12211_v57 }
 0x46b   : > { %14675 = vmatmul.mubr.msk.f32.gmra.mxu0 %vm6145_vm10, %v7487_v23  ;;  %14696 = vmatprep.subr.mxu0 %v12208_v62 }
 0x46c   : > { %14697 = vmatpush3.msra.mxu0 %v12208_v62 }
 0x4c6   : > { %v17883_v50 = vpop.f32.mrf.mxu0 }
 0x4c7   : > { %v17885_v28 = vpop.f32.mrf.mxu1  ;;  %v6338_v2 = vadd.f32 %v17883_v50, %v11546_v41 }
 0x4c8   : > { %v17887_v13 = vpop.f32.mrf.mxu0 }
 0x4c9   : > { %v17889_v20 = vpop.f32.mrf.mxu1  ;;  %v6337_v17 = vadd.f32 %v11546_v41, %v17887_v13  ;;  %v6500_v23 = vadd.f32 %v17885_v28, %v6338_v2 }
 0x4cb   : > { %v17891_v26 = vpop.f32.mrf.mxu0  ;;  %v6499_v56 = vadd.f32 %v17889_v20, %v6337_v17 }
 0x4cc   : > { %v17893_v59 = vpop.f32.mrf.mxu1  ;;  %v6340_v61 = vadd.f32 %v17891_v26, %v11546_v41 }
 0x4cd   : > { %v17895_v16 = vpop.f32.mrf.mxu0 }
 0x4ce   : > { %v17897_v9 = vpop.f32.mrf.mxu1  ;;  %v6339_v11 = vadd.f32 %v11546_v41, %v17895_v16  ;;  %v6502_v50 = vadd.f32 %v17893_v59, %v6340_v61 }
 0x4d0   : > { %v6501_v28 = vadd.f32 %v17897_v9, %v6339_v11 }
 0x4d1   : > { %v17899_v36 = vpop.f32.mrf.mxu0 }
 0x4d2   : > { %v17901_v29 = vpop.f32.mrf.mxu1  ;;  %v6342_v55 = vadd.f32 %v17899_v36, %v11546_v41 }
 0x4d3   : > { %v17903_v3 = vpop.f32.mrf.mxu0 }
 0x4d4   : > { %v17905_v40 = vpop.f32.mrf.mxu1  ;;  %v6341_v32 = vadd.f32 %v11546_v41, %v17903_v3 }
 0x4d7   : > { %v17907_v42 = vpop.f32.mrf.mxu0 }
 0x4d8   : > { %v17909_v12 = vpop.f32.mrf.mxu1  ;;  %v6344_v16 = vadd.f32 %v17907_v42, %v11546_v41 }
 0x4d9   : > { %v17911_v51 = vpop.f32.mrf.mxu0 }
 0x4da   : > { %v17913_v37 = vpop.f32.mrf.mxu1  ;;  %v6343_v3 = vadd.f32 %v11546_v41, %v17911_v51  ;;  %v6506_v61 = vadd.f32 %v17909_v12, %v6344_v16 }
 0x4dd   : > { %v17921_v27 = vpop.f32.mrf.mxu0 }
 0x4de   : > { %v17923_v31 = vpop.f32.mrf.mxu1  ;;  %v6662_v34 = vadd.f32 %v17921_v27, %v6500_v23  ;;  %v6504_v27 = vadd.f32 %v17901_v29, %v6342_v55 }
 0x4df   : > { %v17925_v58 = vpop.f32.mrf.mxu0 }
 0x4e0   : > { %v17927_v39 = vpop.f32.mrf.mxu1  ;;  %v6661_v13 = vadd.f32 %v17925_v58, %v6499_v56  ;;  %v6824_v26 = vadd.f32 %v17923_v31, %v6662_v34  ;;  %v6503_v58 = vadd.f32 %v17905_v40, %v6341_v32 }
 0x4e2   : > { %v6823_v2 = vadd.f32 %v17927_v39, %v6661_v13 }
 0x4e3   : > { %v14502_v30 = vpop.f32.mrf.mxu0 }
 0x4e4   : > { %v17932_v45 = vpop.f32.mrf.mxu1  ;;  %v6664_v57 = vadd.f32 %v14502_v30, %v6502_v50 }
 0x4e5   : > { %v6632_v21 = vpop.f32.mrf.mxu0 }
 0x4e6   : > { %v17939_v10 = vpop.f32.mrf.mxu1  ;;  %v6663_v59 = vadd.f32 %v6632_v21, %v6501_v28  ;;  %v6826_v9 = vadd.f32 %v17932_v45, %v6664_v57  ;;  %v6505_v21 = vadd.f32 %v17913_v37, %v6343_v3 }
 0x4e8   : > { %v6825_v29 = vadd.f32 %v17939_v10, %v6663_v59 }
 0x4e9   : > { %v14505_v6 = vpop.f32.mrf.mxu0 }
 0x4ea   : > { %v17942_v18 = vpop.f32.mrf.mxu1  ;;  %v6666_v23 = vadd.f32 %v14505_v6, %v6504_v27 }
 0x4eb   : > { %v6642_v54 = vpop.f32.mrf.mxu0 }
 0x4ec   : > { %v17944_v48 = vpop.f32.mrf.mxu1  ;;  %v6665_v56 = vadd.f32 %v6642_v54, %v6503_v58  ;;  %v6828_v40 = vadd.f32 %v17942_v18, %v6666_v23 }
 0x4ef   : > { %v14508_v49 = vpop.f32.mrf.mxu0 }
 0x4f0   : > { %v17946_v43 = vpop.f32.mrf.mxu1 }
 0x4f1   : > { %v17948_v5 = vpop.f32.mrf.mxu0 }
 0x4f2   : > { %v17950_v8 = vpop.f32.mrf.mxu1  ;;  %v6667_v12 = vadd.f32 %v17948_v5, %v6505_v21 }
 0x4f5   : > { %v14555_v47 = vpop.f32.mrf.mxu0 }
 0x4f6   : > { %v14583_v25 = vpop.f32.mrf.mxu1  ;;  %v6986_v17 = vadd.f32 %v14555_v47, %v6824_v26  ;;  %v6668_v47 = vadd.f32 %v14508_v49, %v6506_v61 }
 0x4f7   : > { %v6946_v19 = vpop.f32.mrf.mxu0 }
 0x4f8   : > { %v7108_v15 = vpop.f32.mrf.mxu1  ;;  %v6985_v31 = vadd.f32 %v6946_v19, %v6823_v2  ;;  %v7148_v11 = vadd.f32 %v14583_v25, %v6986_v17  ;;  %v6827_v19 = vadd.f32 %v17944_v48, %v6665_v56  ;;  %v6830_v25 = vadd.f32 %v17946_v43, %v6668_v47 }
 0x4fa   : > { %v7147_v51 = vadd.f32 %v7108_v15, %v6985_v31 }
 0x4fb   : > { %v14558_v35 = vpop.f32.mrf.mxu0 }
 0x4fc   : > { %v14586_v46 = vpop.f32.mrf.mxu1  ;;  %v6988_v39 = vadd.f32 %v14558_v35, %v6826_v9 }
 0x4fd   : > { %v6956_v53 = vpop.f32.mrf.mxu0 }
 0x4fe   : > { %v17952_v4 = vpop.f32.mrf.mxu1  ;;  %v6987_v41 = vadd.f32 %v6956_v53, %v6825_v29  ;;  %v7150_v50 = vadd.f32 %v14586_v46, %v6988_v39  ;;  %v6829_v53 = vadd.f32 %v17950_v8, %v6667_v12 }
 0x500   : > { %v7149_v49 = vadd.f32 %v17952_v4, %v6987_v41 }
 0x501   : > { %v14561_v44 = vpop.f32.mrf.mxu0 }
 0x502   : > { %v17954_v0 = vpop.f32.mrf.mxu1  ;;  %v6990_v55 = vadd.f32 %v14561_v44, %v6828_v40 }
 0x503   : > { %v6966_v60 = vpop.f32.mrf.mxu0 }
 0x504   : > { %v17956_v1 = vpop.f32.mrf.mxu1  ;;  %v6989_v35 = vadd.f32 %v6966_v60, %v6827_v19  ;;  %v7152_v5 = vadd.f32 %v17954_v0, %v6990_v55 }
 0x507   : > { %v17961_v22 = vpop.f32.mrf.mxu0 }
 0x508   : > { %v17963_v24 = vpop.f32.mrf.mxu1 }
 0x509   : > { %v17966_v63 = vpop.f32.mrf.mxu0 }
 0x50a   : > { %v17969_v7 = vpop.f32.mrf.mxu1  ;;  %v6991_v43 = vadd.f32 %v17966_v63, %v6829_v53  ;;  %v12707_v53 = vld [vmem:[%s18636_s9 + $0x58] sm:$0xff]  }
 0x50c   : > { %v7153_v2 = vadd.f32 %v17969_v7, %v6991_v43 }
 0x50d   : > { %v14611_v52 = vpop.f32.mrf.mxu0 }
 0x50e   : > { %v14639_v14 = vpop.f32.mrf.mxu1  ;;  %v7311_v45 = vadd.f32 %v14611_v52, %v7148_v11  ;;  %v6992_v52 = vadd.f32 %v17961_v22, %v6830_v25 }
 0x50f   : > { %v7271_v33 = vpop.f32.mrf.mxu0 }
 0x510   : > { %v7433_v20 = vpop.f32.mrf.mxu1  ;;  %v7310_v10 = vadd.f32 %v7271_v33, %v7147_v51  ;;  %v7473_v13 = vadd.f32 %v14639_v14, %v7311_v45  ;;  %v7151_v33 = vadd.f32 %v17956_v1, %v6989_v35  ;;  %v7154_v57 = vadd.f32 %v17963_v24, %v6992_v52  ;;  %v18055_v52 = vld [vmem:[%s18640_s13 + $0x20] sm:$0xff] }
 0x511   : > { %v14614_v62 = vpop.f32.mrf.mxu0 }
 0x512   : > { %v14642_v30 = vpop.f32.mrf.mxu1  ;;  %v7313_v18 = vadd.f32 %v14614_v62, %v7150_v50  ;;  %v7472_v32 = vadd.f32 %v7433_v20, %v7310_v10 }
 0x513   : > { %v7281_v36 = vpop.f32.mrf.mxu0 }
 0x514   : > { %v7443_v6 = vpop.f32.mrf.mxu1  ;;  %v7312_v46 = vadd.f32 %v7281_v36, %v7149_v49  ;;  %v7475_v28 = vadd.f32 %v14642_v30, %v7313_v18  ;;  %v18034_v18 = vld [vmem:[%s18640_s13 + $0x10] sm:$0xff] }
 0x515   : > { %v14617_v42 = vpop.f32.mrf.mxu0 }
 0x516   : > { %v14645_v15 = vpop.f32.mrf.mxu1  ;;  %v7315_v4 = vadd.f32 %v14617_v42, %v7152_v5  ;;  %v7474_v22 = vadd.f32 %v7443_v6, %v7312_v46  ;;  %v18067_v5 = vld [vmem:[%s18640_s13 + $0x28] sm:$0xff]  ;;  %v12251_v46 = vunpack.c.l.bf16 %v12707_v53 }
 0x517   : > { %v7291_v34 = vpop.f32.mrf.mxu0 }
 0x518   : > { %v7453_v14 = vpop.f32.mrf.mxu1  ;;  %v7314_v8 = vadd.f32 %v7291_v34, %v7151_v33  ;;  %v7477_v1 = vadd.f32 %v14645_v15, %v7315_v4  ;;  %v18046_v15 = vld [vmem:[%s18640_s13 + $0x18] sm:$0xff]  ;;  %v12705_v33 = vld [vmem:[%s18636_s9 + $0x48] sm:$0xff]  }
 0x519   : > { %v14620_v54 = vpop.f32.mrf.mxu0  ;;  %v12243_v4 = vunpack.c.l.bf16 %v12705_v33 }
 0x51a   : > { %v14648_v16 = vpop.f32.mrf.mxu1  ;;  %v7317_v17 = vadd.f32 %v14620_v54, %v7154_v57  ;;  %v7476_v58 = vadd.f32 %v7453_v14, %v7314_v8  ;;  %v12207_v57 = vunpack.c.l.bf16 %v17937_v38  ;;  %v12703_v8 = vld [vmem:[%s18636_s9 + $0x38] sm:$0xff]  }
 0x51b   : > { %v7301_v37 = vpop.f32.mrf.mxu0 }
 0x51c   : > { %v7316_v3 = vadd.f32 %v7301_v37, %v7153_v2  ;;  %v7463_v23 = vpop.f32.mrf.mxu1  ;;  %v7479_v42 = vadd.f32 %v14648_v16, %v7317_v17  ;;  %14698 = vmatprep.subr.mxu0 %v12207_v57  ;;  %v12702_v16 = vld [vmem:[%s18636_s9 + $0x30] sm:$0xff]   ;;  %v12701_v2 = vld [vmem:[%s18636_s9 + $0x28] sm:$0xff]  }
 0x51d   : > { %14699 = vmatpush3.msra.mxu0 %v12207_v57  ;;  %v11758_v57 = vld [vmem:[%s18640_s13 + $0x60] sm:$0xff] }
 0x51e   : > { %v7478_v39 = vadd.f32 %v7463_v23, %v7316_v3  ;;  %v12227_v3 = vunpack.c.l.bf16 %v12701_v2 }
 0x51f   : > { %v14667_v48 = vpop.f32.mrf.mxu0 }
 0x520   : > { %v7635_v44 = vadd.f32 %v14667_v48, %v7473_v13  ;;  %v18028_v13 = vld [vmem:[%s18640_s13 + $0x8] sm:$0xff]  ;;  %v12252_v48 = vunpack.c.h.bf16 %v12707_v53 }
 0x521   : > { %v7595_v60 = vpop.f32.mrf.mxu0 }
 0x522   : > { %v7634_v26 = vadd.f32 %v7595_v60, %v7472_v32  ;;  %v7643_v27 = vmax.f32 %v7635_v44, 0.0  ;;  %v12706_v32 = vld [vmem:[%s18636_s9 + $0x50] sm:$0xff]   ;;  %v12244_v60 = vunpack.c.h.bf16 %v12705_v33  ;;  %v11683_v33 = vld [vmem:[%s18637_s10] ss:$0 sm:$0xff] }
 0x523   : > { %v14670_v62 = vpop.f32.mrf.mxu0  ;;  %v12248_v44 = vunpack.c.h.bf16 %v12706_v32  ;;  %v12247_v43 = vunpack.c.l.bf16 %v12706_v32 }
 0x524   : > { %v7642_v0 = vmax.f32 %v7634_v26, 0.0  ;;  %v7637_v20 = vadd.f32 %v14670_v62, %v7475_v28  ;;  %v12704_v28 = vld [vmem:[%s18636_s9 + $0x40] sm:$0xff]   ;;  %v12236_v62 = vunpack.c.h.bf16 %v12703_v8 }
 0x525   : > { %v7605_v59 = vpop.f32.mrf.mxu0  ;;  %v12240_v14 = vunpack.c.h.bf16 %v12704_v28  ;;  %v12239_v26 = vunpack.c.l.bf16 %v12704_v28 }
 0x526   : > { %v7650_v63 = vmax.f32 %v7642_v0, %v7643_v27  ;;  %v7636_v36 = vadd.f32 %v7605_v59, %v7474_v22  ;;  %v7645_v24 = vmax.f32 %v7637_v20, 0.0  ;;  %14710 = vmatprep.subr.mxu0 %v12236_v62  ;;  %v12235_v0 = vunpack.c.l.bf16 %v12703_v8 }
 0x527   : > { %v14673_v9 = vpop.f32.mrf.mxu0  ;;  %v12232_v20 = vunpack.c.h.bf16 %v12702_v16 }
 0x528   : > { %v7652_v31 = vrot.slane %v7650_v63, 1  ;;  %v7644_v30 = vmax.f32 %v7636_v36, 0.0  ;;  %v7639_v61 = vadd.f32 %v14673_v9, %v7477_v1  ;;  %v12231_v1 = vunpack.c.l.bf16 %v12702_v16  ;;  %v12700_v36 = vld [vmem:[%s18636_s9 + $0x20] sm:$0xff]   ;;  %v12715_v9 = vld [vmem:[%s18636_s9 + $0x98] sm:$0xff]  }
 0x529   : > { %v7615_v56 = vpop.f32.mrf.mxu0  ;;  %v12224_v23 = vunpack.c.h.bf16 %v12700_v36 }
 0x52a   : > { %v7654_v7 = vmax.f32 %v7650_v63, %v7652_v31  ;;  %v7663_v29 = vmax.f32 %v7644_v30, %v7645_v24  ;;  %v7638_v11 = vadd.f32 %v7615_v56, %v7476_v58  ;;  %v7647_v34 = vmax.f32 %v7639_v61, 0.0  ;;  %v11730_v31 = vld [vmem:[%s18640_s13 + $0x40] sm:$0xff]  ;;  %v11731_v61 = vld [vmem:[%s18640_s13 + $0x48] sm:$0xff]  ;;  %v12714_v56 = vld [vmem:[%s18636_s9 + $0x90] sm:$0xff]  }
 0x52b   : > { %v14676_v21 = vpop.f32.mrf.mxu0  ;;  %v12228_v63 = vunpack.c.h.bf16 %v12701_v2  ;;  %v12284_v24 = vunpack.c.h.bf16 %v12715_v9  ;;  %v12223_v30 = vunpack.c.l.bf16 %v12700_v36 }
 0x52c   : > { %7656 = vst.msk [vmem:[#allocation5] sm:$0x1] %vm7655_vm12, %v7654_v7  ;;  %v7665_v47 = vrot.slane %v7663_v29, 1  ;;  %v7646_v40 = vmax.f32 %v7638_v11, 0.0  ;;  %v7641_v51 = vadd.f32 %v14676_v21, %v7479_v42  ;;  %v12283_v42 = vunpack.c.l.bf16 %v12715_v9  ;;  %v18130_v21 = vld [vmem:[%s18640_s13 + $0x30] sm:$0xff] }
 0x52d   : > { %7658 = vst.msk [vmem:[#allocation5 - $0x1] sm:$0x4] %vm7657_vm13, %v7654_v7  ;;  %v7625_v41 = vpop.f32.mrf.mxu0  ;;  %v12279_v11 = vunpack.c.l.bf16 %v12714_v56  ;;  %v18194_v9 = vld [vmem:[%s18640_s13 + $0x50] sm:$0xff] }
 0x52e   : > { %7660 = vst.msk [vmem:[#allocation5 - $0x2] sm:$0x10] %vm7659_vm14, %v7654_v7  ;;  %v7667_v45 = vmax.f32 %v7663_v29, %v7665_v47  ;;  %v7672_v6 = vmax.f32 %v7646_v40, %v7647_v34  ;;  %v7640_v19 = vadd.f32 %v7625_v41, %v7478_v39  ;;  %v7649_v54 = vmax.f32 %v7641_v51, 0.0  ;;  %v12711_v29 = vld [vmem:[%s18636_s9 + $0x78] sm:$0xff]   ;;  %v12713_v39 = vld [vmem:[%s18636_s9 + $0x88] sm:$0xff]   ;;  %v12710_v51 = vld [vmem:[%s18636_s9 + $0x70] sm:$0xff]  }
 0x52f   : > { %7662 = vst.msk [vmem:[#allocation5 - $0x3] sm:$0x40] %vm7661_vm15, %v7654_v7  ;;  %v12280_v7 = vunpack.c.h.bf16 %v12714_v56  ;;  %v12268_v47 = vunpack.c.h.bf16 %v12711_v29  ;;  %v18136_v34 = vld [vmem:[%s18640_s13 + $0x38] sm:$0xff]  ;;  %v12276_v40 = vunpack.c.h.bf16 %v12713_v39  ;;  %v12267_v41 = vunpack.c.l.bf16 %v12711_v29 }
 0x530   : > { %7668 = vst.msk [vmem:[#allocation5 + $0x4] sm:$0x1] %vm7655_vm12, %v7667_v45  ;;  %v7674_v12 = vrot.slane %v7672_v6, 1  ;;  %v7648_v50 = vmax.f32 %v7640_v19, 0.0  ;;  %v12264_v19 = vunpack.c.h.bf16 %v12710_v51 }
 0x531   : > { %7669 = vst.msk [vmem:[#allocation5 + $0x3] sm:$0x4] %vm7657_vm13, %v7667_v45 }
 0x532   : > { %7670 = vst.msk [vmem:[#allocation5 + $0x2] sm:$0x10] %vm7659_vm14, %v7667_v45  ;;  %v7676_v55 = vmax.f32 %v7672_v6, %v7674_v12  ;;  %v7681_v10 = vmax.f32 %v7648_v50, %v7649_v54  ;;  %v12275_v6 = vunpack.c.l.bf16 %v12713_v39  ;;  %v12709_v54 = vld [vmem:[%s18636_s9 + $0x68] sm:$0xff]   ;;  %v12263_v50 = vunpack.c.l.bf16 %v12710_v51  ;;  %v12716_v51 = vld [vmem:[%s18636_s9 + $0xa0] sm:$0xff]  }
 0x533   : > { %7671 = vst.msk [vmem:[#allocation5 + $0x1] sm:$0x40] %vm7661_vm15, %v7667_v45  ;;  %v12712_v45 = vld [vmem:[%s18636_s9 + $0x80] sm:$0xff]  }
 0x534   : > { %7677 = vst.msk [vmem:[#allocation5 + $0x8] sm:$0x1] %vm7655_vm12, %v7676_v55  ;;  %v7683_v25 = vrot.slane %v7681_v10, 1  ;;  %v12272_v12 = vunpack.c.h.bf16 %v12712_v45 }
 0x535   : > { %7678 = vst.msk [vmem:[#allocation5 + $0x7] sm:$0x4] %vm7657_vm13, %v7676_v55 }
 0x536   : > { %7679 = vst.msk [vmem:[#allocation5 + $0x6] sm:$0x10] %vm7659_vm14, %v7676_v55  ;;  %v7685_v35 = vmax.f32 %v7681_v10, %v7683_v25  ;;  %v12260_v10 = vunpack.c.h.bf16 %v12709_v54  ;;  %v12708_v25 = vld [vmem:[%s18636_s9 + $0x60] sm:$0xff]  }
 0x537   : > { %7680 = vst.msk [vmem:[#allocation5 + $0x5] sm:$0x40] %vm7661_vm15, %v7676_v55  ;;  %v12271_v55 = vunpack.c.l.bf16 %v12712_v45  ;;  %v12256_v53 = vunpack.c.h.bf16 %v12708_v25  ;;  %v12288_v45 = vunpack.c.h.bf16 %v12716_v51 }
 0x538   : > { %7686 = vst.msk [vmem:[#allocation5 + $0xc] sm:$0x1] %vm7655_vm12, %v7685_v35 }
 0x539   : > { %7687 = vst.msk [vmem:[#allocation5 + $0xb] sm:$0x4] %vm7657_vm13, %v7685_v35 }
 0x53a   : > { %7688 = vst.msk [vmem:[#allocation5 + $0xa] sm:$0x10] %vm7659_vm14, %v7685_v35  ;;  %v18022_v49 = vld [vmem:[#allocation5] sm:$0xff] }
 0x53b   : > { %7689 = vst.msk [vmem:[#allocation5 + $0x9] sm:$0x40] %vm7661_vm15, %v7685_v35  ;;  %v12259_v35 = vunpack.c.l.bf16 %v12709_v54 }
 0x542   : > { %v18019_v37 = vld [vmem:[#allocation5 + $0x8] sm:$0xff] }
 0x543   : > { %14677 = vmatprep.subr.mxu1 %v18019_v37 }
 0x544   : > { %14678 = vmatpush3.msra.mxu1 %v18019_v37 }
 0x545   : > { %14679 = vmatprep.subr.mxu1 %v18022_v49 }
 0x546   : > { %14680 = vmatpush3.msra.mxu1 %v18022_v49 }
 0x547   : > { %14682 = vmatmul.mubr.msk.f32.vlgmr.msra.gmra.mxu1 %vm927_vm2, %v18028_v13  ;;  %14703 = vmatprep.subr.mxu1 %v18019_v37 }
 0x548   : > { %14704 = vmatpush3.msra.mxu1 %v18019_v37  ;;  %14707 = vmatprep.mubr.msk.f32.mxu1 %vm927_vm2, %v18034_v18 }
 0x549   : > { %14705 = vmatprep.subr.mxu1 %v18022_v49 }
 0x54a   : > { %14706 = vmatpush3.msra.mxu1 %v18022_v49 }
 0x54b   : > { %14708 = vmatmul.mubr.msk.f32.vlgmr.msra.gmra.mxu1 %vm927_vm2, %v18046_v15  ;;  %14729 = vmatprep.subr.mxu1 %v18019_v37 }
 0x54c   : > { %14730 = vmatpush3.msra.mxu1 %v18019_v37  ;;  %14733 = vmatprep.mubr.msk.f32.mxu1 %vm927_vm2, %v18055_v52 }
 0x54d   : > { %14731 = vmatprep.subr.mxu1 %v18022_v49 }
 0x54e   : > { %14732 = vmatpush3.msra.mxu1 %v18022_v49 }
 0x54f   : > { %14734 = vmatmul.mubr.msk.f32.vlgmr.msra.gmra.mxu1 %vm927_vm2, %v18067_v5  ;;  %14736 = vmatprep.subr.mxu1 %v12252_v48 }
 0x550   : > { %14737 = vmatpush3.msra.mxu1 %v12252_v48  ;;  %v12255_v48 = vunpack.c.l.bf16 %v12708_v25 }
 0x551   : > { %14738 = vmatprep.subr.mxu1 %v12251_v46 }
 0x552   : > { %14739 = vmatpush3.msra.mxu1 %v12251_v46 }
 0x553   : > { %14740 = vmatprep.subr.mxu1 %v12248_v44 }
 0x554   : > { %14741 = vmatpush3.msra.mxu1 %v12248_v44 }
 0x555   : > { %14742 = vmatprep.subr.mxu1 %v12247_v43 }
 0x556   : > { %14743 = vmatpush3.msra.mxu1 %v12247_v43 }
 0x557   : > { %14744 = vmatprep.subr.mxu1 %v12244_v60 }
 0x558   : > { %14745 = vmatpush3.msra.mxu1 %v12244_v60 }
 0x559   : > { %14746 = vmatprep.subr.mxu1 %v12243_v4 }
 0x55a   : > { %14747 = vmatpush3.msra.mxu1 %v12243_v4  ;;  %v12723_v4 = vld [vmem:[%s18636_s9 + $0xd8] sm:$0xff]  }
 0x55b   : > { %14748 = vmatprep.subr.mxu1 %v12240_v14  ;;  %v12316_v16 = vunpack.c.h.bf16 %v12723_v4  ;;  %v12315_v2 = vunpack.c.l.bf16 %v12723_v4 }
 0x55c   : > { %14749 = vmatpush3.msra.mxu1 %v12240_v14 }
 0x55d   : > { %14750 = vmatprep.subr.mxu1 %v12239_v26 }
 0x55e   : > { %14751 = vmatpush3.msra.mxu1 %v12239_v26 }
 0x55f   : > { %14781 = vmatprep.subr.mxu1 %v18019_v37 }
 0x607   : > { %v14683_v22 = vpop.f32.mrf.mxu1 }
 0x609   : > { %v7774_v27 = vpop.f32.mrf.mxu1 }
 0x60a   : > { %14700 = vmatprep.mubr.msk.f32.mxu0 %vm6145_vm10, %v7774_v27 }
 0x60b   : > { %14701 = vmatmul.mubr.msk.f32.vlgmr.msra.gmra.mxu0 %vm6145_vm10, %v14683_v22  ;;  %v14709_v38 = vpop.f32.mrf.mxu1 }
 0x60c   : > { %14711 = vmatpush3.msra.mxu0 %v12236_v62 }
 0x60d   : > { %14712 = vmatprep.subr.mxu0 %v12235_v0  ;;  %v7957_v59 = vpop.f32.mrf.mxu1 }
 0x60e   : > { %14713 = vmatpush3.msra.mxu0 %v12235_v0  ;;  %14726 = vmatprep.mubr.msk.f32.mxu0 %vm6145_vm10, %v7957_v59  ;;  %v11759_v0 = vld [vmem:[%s18640_s13 + $0x68] sm:$0xff] }
 0x60f   : > { %14714 = vmatprep.subr.mxu0 %v12232_v20  ;;  %v14735_v17 = vpop.f32.mrf.mxu1 }
 0x610   : > { %14715 = vmatpush3.msra.mxu0 %v12232_v20 }
 0x611   : > { %14716 = vmatprep.subr.mxu0 %v12231_v1  ;;  %v8141_v58 = vpop.f32.mrf.mxu1 }
 0x612   : > { %14717 = vmatpush3.msra.mxu0 %v12231_v1  ;;  %14752 = vmatprep.mubr.msk.f32.mxu1 %vm6145_vm10, %v8141_v58 }
 0x613   : > { %14718 = vmatprep.subr.mxu0 %v12228_v63  ;;  %14753 = vmatmul.mubr.msk.f32.vlgmr.msra.gmra.mxu1 %vm6145_vm10, %v14735_v17 }
 0x614   : > { %14719 = vmatpush3.msra.mxu0 %v12228_v63  ;;  %14782 = vmatpush3.msra.mxu1 %v18019_v37  ;;  %v12719_v63 = vld [vmem:[%s18636_s9 + $0xb8] sm:$0xff]  }
 0x615   : > { %14720 = vmatprep.subr.mxu0 %v12227_v3  ;;  %14783 = vmatprep.subr.mxu1 %v18022_v49  ;;  %v12299_v56 = vunpack.c.l.bf16 %v12719_v63 }
 0x616   : > { %14721 = vmatpush3.msra.mxu0 %v12227_v3  ;;  %14784 = vmatpush3.msra.mxu1 %v18022_v49  ;;  %v12721_v3 = vld [vmem:[%s18636_s9 + $0xc8] sm:$0xff]  }
 0x617   : > { %14722 = vmatprep.subr.mxu0 %v12224_v23  ;;  %14785 = vmatprep.mubr.msk.f32.mxu1 %vm927_vm2, %v11730_v31  ;;  %v12308_v31 = vunpack.c.h.bf16 %v12721_v3 }
 0x618   : > { %14788 = vmatprep.subr.mxu1 %v12284_v24  ;;  %14723 = vmatpush3.msra.mxu0 %v12224_v23  ;;  %v12300_v23 = vunpack.c.h.bf16 %v12719_v63 }
 0x619   : > { %14786 = vmatmul.mubr.msk.f32.vlgmr.msra.gmra.mxu1 %vm927_vm2, %v11731_v61  ;;  %14724 = vmatprep.subr.mxu0 %v12223_v30  ;;  %v12720_v61 = vld [vmem:[%s18636_s9 + $0xc0] sm:$0xff]  }
 0x61a   : > { %14789 = vmatpush3.msra.mxu1 %v12284_v24  ;;  %14725 = vmatpush3.msra.mxu0 %v12223_v30  ;;  %v18201_v24 = vld [vmem:[%s18640_s13 + $0x58] sm:$0xff]  ;;  %v12718_v30 = vld [vmem:[%s18636_s9 + $0xb0] sm:$0xff]   ;;  %v12304_v29 = vunpack.c.h.bf16 %v12720_v61 }
 0x61b   : > { %14790 = vmatprep.subr.mxu1 %v12283_v42  ;;  %14727 = vmatmul.mubr.msk.f32.vlgmr.msra.gmra.mxu0 %vm6145_vm10, %v14709_v38  ;;  %v12722_v38 = vld [vmem:[%s18636_s9 + $0xd0] sm:$0xff]   ;;  %v12295_v39 = vunpack.c.l.bf16 %v12718_v30 }
 0x61c   : > { %14791 = vmatpush3.msra.mxu1 %v12283_v42  ;;  %14755 = vmatprep.subr.mxu0 %v18019_v37  ;;  %v12312_v17 = vunpack.c.h.bf16 %v12722_v38  ;;  %v12311_v58 = vunpack.c.l.bf16 %v12722_v38  ;;  %v12307_v42 = vunpack.c.l.bf16 %v12721_v3  ;;  %v12729_v38 = vld [vmem:[%s18636_s9 + $0x108] sm:$0xff]  }
 0x61d   : > { %14792 = vmatprep.subr.mxu1 %v12280_v7  ;;  %14756 = vmatpush3.msra.mxu0 %v18019_v37 }
 0x61e   : > { %14793 = vmatpush3.msra.mxu1 %v12280_v7  ;;  %14757 = vmatprep.subr.mxu0 %v18022_v49  ;;  %v12296_v7 = vunpack.c.h.bf16 %v12718_v30 }
 0x61f   : > { %14794 = vmatprep.subr.mxu1 %v12279_v11  ;;  %14758 = vmatpush3.msra.mxu0 %v18022_v49 }
 0x620   : > { %14759 = vmatprep.mubr.msk.f32.mxu0 %vm927_vm2, %v18130_v21  ;;  %14795 = vmatpush3.msra.mxu1 %v12279_v11  ;;  %v12717_v11 = vld [vmem:[%s18636_s9 + $0xa8] sm:$0xff]  }
 0x621   : > { %14760 = vmatmul.mubr.msk.f32.vlgmr.msra.gmra.mxu0 %vm927_vm2, %v18136_v34  ;;  %14762 = vmatprep.subr.mxu0 %v12268_v47 }
 0x622   : > { %14796 = vmatprep.subr.mxu1 %v12276_v40  ;;  %14763 = vmatpush3.msra.mxu0 %v12268_v47  ;;  %v12303_v47 = vunpack.c.l.bf16 %v12720_v61 }
 0x623   : > { %14797 = vmatpush3.msra.mxu1 %v12276_v40  ;;  %14764 = vmatprep.subr.mxu0 %v12267_v41  ;;  %v12292_v40 = vunpack.c.h.bf16 %v12717_v11 }
 0x624   : > { %14798 = vmatprep.subr.mxu1 %v12275_v6  ;;  %14765 = vmatpush3.msra.mxu0 %v12267_v41  ;;  %v12291_v41 = vunpack.c.l.bf16 %v12717_v11 }
 0x625   : > { %14799 = vmatpush3.msra.mxu1 %v12275_v6  ;;  %14766 = vmatprep.subr.mxu0 %v12264_v19  ;;  %v12287_v6 = vunpack.c.l.bf16 %v12716_v51 }
 0x626   : > { %14800 = vmatprep.subr.mxu1 %v12272_v12  ;;  %14767 = vmatpush3.msra.mxu0 %v12264_v19 }
 0x627   : > { %14801 = vmatpush3.msra.mxu1 %v12272_v12  ;;  %14768 = vmatprep.subr.mxu0 %v12263_v50 }
 0x628   : > { %14802 = vmatprep.subr.mxu1 %v12271_v55  ;;  %14769 = vmatpush3.msra.mxu0 %v12263_v50  ;;  %v12731_v50 = vld [vmem:[%s18636_s9 + $0x118] sm:$0xff]  }
 0x629   : > { %14803 = vmatpush3.msra.mxu1 %v12271_v55  ;;  %14770 = vmatprep.subr.mxu0 %v12260_v10 }
 0x62a   : > { %14833 = vmatprep.subr.mxu1 %v18019_v37  ;;  %14771 = vmatpush3.msra.mxu0 %v12260_v10  ;;  %v11786_v10 = vld [vmem:[%s18640_s13 + $0x80] sm:$0xff] }
 0x62b   : > { %14772 = vmatprep.subr.mxu0 %v12259_v35 }
 0x62c   : > { %14773 = vmatpush3.msra.mxu0 %v12259_v35  ;;  %v12348_v35 = vunpack.c.h.bf16 %v12731_v50 }
 0x62d   : > { %14774 = vmatprep.subr.mxu0 %v12256_v53 }
 0x62e   : > { %14775 = vmatpush3.msra.mxu0 %v12256_v53 }
 0x62f   : > { %14776 = vmatprep.subr.mxu0 %v12255_v48 }
 0x630   : > { %14777 = vmatpush3.msra.mxu0 %v12255_v48  ;;  %v11787_v48 = vld [vmem:[%s18640_s13 + $0x88] sm:$0xff] }
 0x631   : > { %14807 = vmatprep.subr.mxu0 %v18019_v37 }
 0x6cb   : > { %v14702_v46 = vpop.f32.mrf.mxu0 }
 0x6cc   : > { %v7881_v28 = vadd.f32 %v14702_v46, %v11683_v33 }
 0x6cd   : > { %v7871_v43 = vpop.f32.mrf.mxu0 }
 0x6ce   : > { %v7880_v8 = vadd.f32 %v11683_v33, %v7871_v43 }
 0x6d3   : > { %v14754_v32 = vpop.f32.mrf.mxu1 }
 0x6d5   : > { %v8239_v44 = vpop.f32.mrf.mxu1 }
 0x6d9   : > { %v14787_v60 = vpop.f32.mrf.mxu1 }
 0x6db   : > { %v8509_v14 = vpop.f32.mrf.mxu1  ;;  %v14728_v26 = vpop.f32.mrf.mxu0 }
 0x6dc   : > { %v8065_v62 = vadd.f32 %v14728_v26, %v7881_v28  ;;  %14804 = vmatprep.mubr.msk.f32.mxu1 %vm6145_vm10, %v8509_v14  ;;  %v12727_v14 = vld [vmem:[%s18636_s9 + $0xf8] sm:$0xff]  }
 0x6dd   : > { %14805 = vmatmul.mubr.msk.f32.vlgmr.msra.gmra.mxu1 %vm6145_vm10, %v14787_v60  ;;  %v8055_v22 = vpop.f32.mrf.mxu0 }
 0x6de   : > { %14834 = vmatpush3.msra.mxu1 %v18019_v37  ;;  %v8064_v27 = vadd.f32 %v8055_v22, %v7880_v8  ;;  %14837 = vmatprep.mubr.msk.f32.mxu1 %vm927_vm2, %v11758_v57  ;;  %v18176_v20 = vadd.f32 %v14754_v32, %v8065_v62  ;;  %v12730_v32 = vld [vmem:[%s18636_s9 + $0x110] sm:$0xff]   ;;  %v12332_v8 = vunpack.c.h.bf16 %v12727_v14  ;;  %v18260_v62 = vld [vmem:[%s18640_s13 + $0x78] sm:$0xff] }
 0x6df   : > { %14835 = vmatprep.subr.mxu1 %v18022_v49  ;;  %v12344_v60 = vunpack.c.h.bf16 %v12730_v32  ;;  %v11772_v57 = vld [vmem:[%s18640_s13 + $0x70] sm:$0xff] }
 0x6e0   : > { %14836 = vmatpush3.msra.mxu1 %v18022_v49  ;;  %v18180_v59 = vadd.f32 %v8239_v44, %v8064_v27  ;;  %v12347_v44 = vunpack.c.l.bf16 %v12731_v50  ;;  %v12726_v22 = vld [vmem:[%s18636_s9 + $0xf0] sm:$0xff]  }
 0x6e1   : > { %v14761_v1 = vpop.f32.mrf.mxu0  ;;  %14840 = vmatprep.subr.mxu1 %v12316_v16  ;;  %14838 = vmatmul.mubr.msk.f32.vlgmr.msra.gmra.mxu1 %vm927_vm2, %v11759_v0  ;;  %v12327_v27 = vunpack.c.l.bf16 %v12726_v22  ;;  %v12343_v0 = vunpack.c.l.bf16 %v12730_v32 }
 0x6e2   : > { %14841 = vmatpush3.msra.mxu1 %v12316_v16  ;;  %v12331_v16 = vunpack.c.l.bf16 %v12727_v14  ;;  %v12744_v14 = vld [vmem:[%s18638_s11 + $0x68] sm:$0xff]  }
 0x6e3   : > { %v8325_v36 = vpop.f32.mrf.mxu0  ;;  %14842 = vmatprep.subr.mxu1 %v12315_v2 }
 0x6e4   : > { %14778 = vmatprep.mubr.msk.f32.mxu0 %vm6145_vm10, %v8325_v36  ;;  %14843 = vmatpush3.msra.mxu1 %v12315_v2  ;;  %v12339_v2 = vunpack.c.l.bf16 %v12729_v38  ;;  %v12724_v36 = vld [vmem:[%s18636_s9 + $0xe0] sm:$0xff]  }
 0x6e5   : > { %14779 = vmatmul.mubr.msk.f32.vlgmr.msra.gmra.mxu0 %vm6145_vm10, %v14761_v1  ;;  %14844 = vmatprep.subr.mxu1 %v12312_v17  ;;  %v12728_v1 = vld [vmem:[%s18636_s9 + $0x100] sm:$0xff]   ;;  %v12320_v3 = vunpack.c.h.bf16 %v12724_v36 }
 0x6e6   : > { %14808 = vmatpush3.msra.mxu0 %v18019_v37  ;;  %14845 = vmatpush3.msra.mxu1 %v12312_v17  ;;  %v12336_v17 = vunpack.c.h.bf16 %v12728_v1 }
 0x6e7   : > { %14809 = vmatprep.subr.mxu0 %v18022_v49  ;;  %14846 = vmatprep.subr.mxu1 %v12311_v58 }
 0x6e8   : > { %14810 = vmatpush3.msra.mxu0 %v18022_v49  ;;  %14811 = vmatprep.mubr.msk.f32.mxu0 %vm927_vm2, %v18194_v9 }
 0x6e9   : > { %14814 = vmatprep.subr.mxu0 %v12300_v23  ;;  %14847 = vmatpush3.msra.mxu1 %v12311_v58  ;;  %v12335_v58 = vunpack.c.l.bf16 %v12728_v1 }
 0x6ea   : > { %14812 = vmatmul.mubr.msk.f32.vlgmr.msra.gmra.mxu0 %vm927_vm2, %v18201_v24  ;;  %14848 = vmatprep.subr.mxu1 %v12308_v31 }
 0x6eb   : > { %14815 = vmatpush3.msra.mxu0 %v12300_v23  ;;  %14849 = vmatpush3.msra.mxu1 %v12308_v31  ;;  %v12319_v23 = vunpack.c.l.bf16 %v12724_v36 }
 0x6ec   : > { %14816 = vmatprep.subr.mxu0 %v12299_v56  ;;  %14850 = vmatprep.subr.mxu1 %v12307_v42 }
 0x6ed   : > { %14817 = vmatpush3.msra.mxu0 %v12299_v56  ;;  %14851 = vmatpush3.msra.mxu1 %v12307_v42 }
 0x6ee   : > { %14818 = vmatprep.subr.mxu0 %v12296_v7  ;;  %14852 = vmatprep.subr.mxu1 %v12304_v29 }
 0x6ef   : > { %14819 = vmatpush3.msra.mxu0 %v12296_v7  ;;  %14853 = vmatpush3.msra.mxu1 %v12304_v29 }
 0x6f0   : > { %14820 = vmatprep.subr.mxu0 %v12295_v39  ;;  %14854 = vmatprep.subr.mxu1 %v12303_v47 }
 0x6f1   : > { %14821 = vmatpush3.msra.mxu0 %v12295_v39  ;;  %14855 = vmatpush3.msra.mxu1 %v12303_v47 }
 0x6f2   : > { %14822 = vmatprep.subr.mxu0 %v12292_v40  ;;  %14885 = vmatprep.subr.mxu1 %v18019_v37 }
 0x6f3   : > { %14823 = vmatpush3.msra.mxu0 %v12292_v40 }
 0x6f4   : > { %14824 = vmatprep.subr.mxu0 %v12291_v41 }
 0x6f5   : > { %14825 = vmatpush3.msra.mxu0 %v12291_v41  ;;  %v15302_v41 = vld [vmem:[%s18640_s13] sm:$0xff] }
 0x6f6   : > { %14826 = vmatprep.subr.mxu0 %v12288_v45 }
 0x6f7   : > { %14827 = vmatpush3.msra.mxu0 %v12288_v45 }
 0x6f8   : > { %14828 = vmatprep.subr.mxu0 %v12287_v6 }
 0x6f9   : > { %14829 = vmatpush3.msra.mxu0 %v12287_v6 }
 0x6fa   : > { %14859 = vmatprep.subr.mxu0 %v18019_v37 }
 0x79d   : > { %v14806_v19 = vpop.f32.mrf.mxu1 }
 0x79f   : > { %v8607_v12 = vpop.f32.mrf.mxu1 }
 0x7a1   : > { %v14839_v54 = vpop.f32.mrf.mxu1 }
 0x7a3   : > { %v8877_v55 = vpop.f32.mrf.mxu1 }
 0x7a4   : > { %14856 = vmatprep.mubr.msk.f32.mxu1 %vm6145_vm10, %v8877_v55  ;;  %v12738_v55 = vld [vmem:[%s18638_s11 + $0x38] sm:$0xff]  }
 0x7a5   : > { %v14780_v25 = vpop.f32.mrf.mxu0  ;;  %14857 = vmatmul.mubr.msk.f32.vlgmr.msra.gmra.mxu1 %vm6145_vm10, %v14839_v54 }
 0x7a6   : > { %v8433_v53 = vadd.f32 %v14780_v25, %v18176_v20  ;;  %14886 = vmatpush3.msra.mxu1 %v18019_v37  ;;  %14889 = vmatprep.mubr.msk.f32.mxu1 %vm927_vm2, %v11786_v10  ;;  %v12725_v20 = vld [vmem:[%s18636_s9 + $0xe8] sm:$0xff]  }
 0x7a7   : > { %v8423_v46 = vpop.f32.mrf.mxu0  ;;  %14887 = vmatprep.subr.mxu1 %v18022_v49  ;;  %v12323_v63 = vunpack.c.l.bf16 %v12725_v20 }
 0x7a8   : > { %v8432_v33 = vadd.f32 %v8423_v46, %v18180_v59  ;;  %14888 = vmatpush3.msra.mxu1 %v18022_v49  ;;  %v18242_v43 = vadd.f32 %v14806_v19, %v8433_v53  ;;  %v12324_v59 = vunpack.c.h.bf16 %v12725_v20  ;;  %v12737_v46 = vld [vmem:[%s18638_s11 + $0x30] sm:$0xff]  }
 0x7a9   : > { %14890 = vmatmul.mubr.msk.f32.vlgmr.msra.gmra.mxu1 %vm927_vm2, %v11787_v48  ;;  %14892 = vmatprep.subr.mxu1 %v12348_v35  ;;  %v12380_v48 = vunpack.c.h.bf16 %v12738_v55 }
 0x7aa   : > { %v14813_v28 = vpop.f32.mrf.mxu0  ;;  %14893 = vmatpush3.msra.mxu1 %v12348_v35  ;;  %v18245_v4 = vadd.f32 %v8607_v12, %v8432_v33  ;;  %v12746_v35 = vld [vmem:[%s18638_s11 + $0x78] sm:$0xff]   ;;  %v12379_v33 = vunpack.c.l.bf16 %v12738_v55 }
 0x7ab   : > { %14894 = vmatprep.subr.mxu1 %v12347_v44  ;;  %v12412_v32 = vunpack.c.h.bf16 %v12746_v35 }
 0x7ac   : > { %v8693_v26 = vpop.f32.mrf.mxu0  ;;  %14895 = vmatpush3.msra.mxu1 %v12347_v44  ;;  %v12745_v44 = vld [vmem:[%s18638_s11 + $0x70] sm:$0xff]  }
 0x7ad   : > { %14830 = vmatprep.mubr.msk.f32.mxu0 %vm6145_vm10, %v8693_v26  ;;  %14896 = vmatprep.subr.mxu1 %v12344_v60  ;;  %v12407_v26 = vunpack.c.l.bf16 %v12745_v44 }
 0x7ae   : > { %14831 = vmatmul.mubr.msk.f32.vlgmr.msra.gmra.mxu0 %vm6145_vm10, %v14813_v28  ;;  %14897 = vmatpush3.msra.mxu1 %v12344_v60  ;;  %v12376_v60 = vunpack.c.h.bf16 %v12737_v46  ;;  %v12408_v28 = vunpack.c.h.bf16 %v12745_v44 }
 0x7af   : > { %14860 = vmatpush3.msra.mxu0 %v18019_v37  ;;  %14863 = vmatprep.mubr.msk.f32.mxu0 %vm927_vm2, %v11772_v57  ;;  %v12328_v37 = vunpack.c.h.bf16 %v12726_v22  ;;  %v12404_v57 = vunpack.c.h.bf16 %v12744_v14  ;;  %v12743_v22 = vld [vmem:[%s18638_s11 + $0x60] sm:$0xff]  }
 0x7b0   : > { %14861 = vmatprep.subr.mxu0 %v18022_v49  ;;  %14898 = vmatprep.subr.mxu1 %v12343_v0 }
 0x7b1   : > { %14862 = vmatpush3.msra.mxu0 %v18022_v49  ;;  %v12340_v49 = vunpack.c.h.bf16 %v12729_v38  ;;  %14899 = vmatpush3.msra.mxu1 %v12343_v0  ;;  %v12400_v0 = vunpack.c.h.bf16 %v12743_v22  ;;  %v12734_v38 = vld [vmem:[%s18638_s11 + $0x18] sm:$0xff]  }
 0x7b2   : > { %14864 = vmatmul.mubr.msk.f32.vlgmr.msra.gmra.mxu0 %vm927_vm2, %v18260_v62  ;;  %14866 = vmatprep.subr.mxu0 %v12332_v8  ;;  %v12363_v36 = vunpack.c.l.bf16 %v12734_v38 }
 0x7b3   : > { %14867 = vmatpush3.msra.mxu0 %v12332_v8  ;;  %14900 = vmatprep.subr.mxu1 %v12340_v49  ;;  %v12735_v8 = vld [vmem:[%s18638_s11 + $0x20] sm:$0xff]  }
 0x7b4   : > { %14868 = vmatprep.subr.mxu0 %v12331_v16  ;;  %14901 = vmatpush3.msra.mxu1 %v12340_v49  ;;  %v12742_v49 = vld [vmem:[%s18638_s11 + $0x58] sm:$0xff]   ;;  %v12367_v20 = vunpack.c.l.bf16 %v12735_v8 }
 0x7b5   : > { %14869 = vmatpush3.msra.mxu0 %v12331_v16  ;;  %14902 = vmatprep.subr.mxu1 %v12339_v2  ;;  %v12396_v1 = vunpack.c.h.bf16 %v12742_v49 }
 0x7b6   : > { %14870 = vmatprep.subr.mxu0 %v12328_v37  ;;  %14903 = vmatpush3.msra.mxu1 %v12339_v2  ;;  %v12399_v2 = vunpack.c.l.bf16 %v12743_v22  ;;  %v12758_v22 = vld [vmem:[%s18638_s11 + $0xd8] sm:$0xff]  }
 0x7b7   : > { %14871 = vmatpush3.msra.mxu0 %v12328_v37  ;;  %14904 = vmatprep.subr.mxu1 %v12336_v17  ;;  %v12403_v37 = vunpack.c.l.bf16 %v12744_v14  ;;  %v12759_v14 = vld [vmem:[%s18638_s11 + $0xe0] sm:$0xff]  }
 0x7b8   : > { %14872 = vmatprep.subr.mxu0 %v12327_v27  ;;  %14905 = vmatpush3.msra.mxu1 %v12336_v17  ;;  %v12733_v17 = vld [vmem:[%s18638_s11 + $0x10] sm:$0xff]  }
 0x7b9   : > { %14873 = vmatpush3.msra.mxu0 %v12327_v27  ;;  %14906 = vmatprep.subr.mxu1 %v12335_v58  ;;  %v12368_v27 = vunpack.c.h.bf16 %v12735_v8 }
 0x7ba   : > { %14874 = vmatprep.subr.mxu0 %v12324_v59  ;;  %14907 = vmatpush3.msra.mxu1 %v12335_v58  ;;  %v12395_v58 = vunpack.c.l.bf16 %v12742_v49  ;;  %v12757_v49 = vld [vmem:[%s18638_s11 + $0xd0] sm:$0xff]  }
 0x7bb   : > { %14875 = vmatpush3.msra.mxu0 %v12324_v59  ;;  %v12364_v59 = vunpack.c.h.bf16 %v12734_v38 }
 0x7bc   : > { %14876 = vmatprep.subr.mxu0 %v12323_v63 }
 0x7bd   : > { %14877 = vmatpush3.msra.mxu0 %v12323_v63  ;;  %v12741_v63 = vld [vmem:[%s18638_s11 + $0x50] sm:$0xff]  }
 0x7be   : > { %14878 = vmatprep.subr.mxu0 %v12320_v3 }
 0x7bf   : > { %14879 = vmatpush3.msra.mxu0 %v12320_v3  ;;  %v12360_v3 = vunpack.c.h.bf16 %v12733_v17 }
 0x7c0   : > { %14880 = vmatprep.subr.mxu0 %v12319_v23 }
 0x7c1   : > { %14881 = vmatpush3.msra.mxu0 %v12319_v23  ;;  %v12392_v23 = vunpack.c.h.bf16 %v12741_v63 }
 0x865   : > { %v14858_v31 = vpop.f32.mrf.mxu1 }
 0x867   : > { %v8975_v30 = vpop.f32.mrf.mxu1 }
 0x869   : > { %v14891_v61 = vpop.f32.mrf.mxu1 }
 0x86b   : > { %v9245_v56 = vpop.f32.mrf.mxu1 }
 0x86c   : > { %14908 = vmatprep.mubr.msk.f32.mxu1 %vm6145_vm10, %v9245_v56  ;;  %v12391_v56 = vunpack.c.l.bf16 %v12741_v63  ;;  %v12756_v63 = vld [vmem:[%s18638_s11 + $0xc8] sm:$0xff]  }
 0x86d   : > { %14909 = vmatmul.mubr.msk.f32.vlgmr.msra.gmra.mxu1 %vm6145_vm10, %v14891_v61  ;;  %v12359_v61 = vunpack.c.l.bf16 %v12733_v17 }
 0x86e   : > { %v14832_v42 = vpop.f32.mrf.mxu0  ;;  %14957 = vmatprep.mubr.msk.f32.mxu1 %vm927_vm2, %v18034_v18 }
 0x86f   : > { %v8801_v7 = vadd.f32 %v14832_v42, %v18242_v43  ;;  %v12411_v43 = vunpack.c.l.bf16 %v12746_v35  ;;  %v12753_v35 = vld [vmem:[%s18638_s11 + $0xb0] sm:$0xff]  }
 0x870   : > { %v8791_v29 = vpop.f32.mrf.mxu0  ;;  %v12440_v44 = vunpack.c.h.bf16 %v12753_v35 }
 0x871   : > { %v8800_v11 = vadd.f32 %v8791_v29, %v18245_v4  ;;  %v8985_v39 = vadd.f32 %v14858_v31, %v8801_v7  ;;  %v12736_v4 = vld [vmem:[%s18638_s11 + $0x28] sm:$0xff]   ;;  %v12350_v29 = vld [vmem:[%s18638_s11] sm:$0xff]  }
 0x872   : > { %v14865_v47 = vpop.f32.mrf.mxu0  ;;  %v12371_v16 = vunpack.c.l.bf16 %v12736_v4  ;;  %v12732_v31 = vld [vmem:[%s18638_s11 + $0x8] sm:$0xff]  }
 0x873   : > { %v8984_v40 = vadd.f32 %v8975_v30, %v8800_v11  ;;  %v12740_v30 = vld [vmem:[%s18638_s11 + $0x48] sm:$0xff]   ;;  %v12356_v42 = vunpack.c.h.bf16 %v12732_v31  ;;  %v12739_v11 = vld [vmem:[%s18638_s11 + $0x40] sm:$0xff]  }
 0x874   : > { %v9061_v51 = vpop.f32.mrf.mxu0  ;;  %v12388_v7 = vunpack.c.h.bf16 %v12740_v30 }
 0x875   : > { %14882 = vmatprep.mubr.msk.f32.mxu0 %vm6145_vm10, %v9061_v51  ;;  %v12384_v51 = vunpack.c.h.bf16 %v12739_v11 }
 0x876   : > { %14883 = vmatmul.mubr.msk.f32.vlgmr.msra.gmra.mxu0 %vm6145_vm10, %v14865_v47  ;;  %v12387_v47 = vunpack.c.l.bf16 %v12740_v30  ;;  %v12755_v30 = vld [vmem:[%s18638_s11 + $0xc0] sm:$0xff]  }
 0x877   : > { %14915 = vmatprep.mubr.msk.f32.mxu0 %vm927_vm2, %v15302_v41  ;;  %v12351_v41 = vunpack.c.l.bf16 %v12350_v29 }
 0x92d   : > { %v14910_v45 = vpop.f32.mrf.mxu1 }
 0x92f   : > { %v9343_v50 = vpop.f32.mrf.mxu1 }
 0x936   : > { %v14884_v18 = vpop.f32.mrf.mxu0 }
 0x937   : > { %v9169_v6 = vadd.f32 %v14884_v18, %v8985_v39  ;;  %v12355_v39 = vunpack.c.l.bf16 %v12732_v31  ;;  %v12383_v18 = vunpack.c.l.bf16 %v12739_v11  ;;  %v11800_v11 = vld [vmem:[%s18639_s12] ss:$0 sm:$0xff] }
 0x938   : > { %v9159_v19 = vpop.f32.mrf.mxu0 }
 0x939   : > { %v9168_v12 = vadd.f32 %v9159_v19, %v8984_v40  ;;  %v9353_v54 = vadd.f32 %v14910_v45, %v9169_v6  ;;  %v12352_v40 = vunpack.c.h.bf16 %v12350_v29  ;;  %v12447_v29 = vunpack.c.l.bf16 %v12755_v30 }
 0x93b   : > { %v18296_v10 = vmax.f32 %v9353_v54, 0.0  ;;  %v9352_v25 = vadd.f32 %v9343_v50, %v9168_v12  ;;  %v12754_v12 = vld [vmem:[%s18638_s11 + $0xb8] sm:$0xff]  }
 0x93c   : > { %v12762_v50 = vld [vmem:[%s18638_s11 + $0xf8] sm:$0xff]   ;;  %v12444_v55 = vunpack.c.h.bf16 %v12754_v12 }
 0x93d   : > { %v18301_v53 = vmax.f32 %v9352_v25, 0.0  ;;  %14911 = vmatprep.subr.mxu0 %v18296_v10  ;;  %14953 = vmatprep.subr.mxu1 %v18296_v10  ;;  %v12476_v25 = vunpack.c.h.bf16 %v12762_v50 }
 0x93e   : > { %14912 = vmatpush3.msra.mxu0 %v18296_v10  ;;  %14954 = vmatpush3.msra.mxu1 %v18296_v10 }
 0x93f   : > { %14913 = vmatprep.subr.mxu0 %v18301_v53  ;;  %14955 = vmatprep.subr.mxu1 %v18301_v53 }
 0x940   : > { %14914 = vmatpush3.msra.mxu0 %v18301_v53  ;;  %14956 = vmatpush3.msra.mxu1 %v18301_v53 }
 0x941   : > { %14916 = vmatmul.mubr.msk.f32.vlgmr.msra.gmra.mxu0 %vm927_vm2, %v18028_v13  ;;  %14918 = vmatprep.subr.mxu0 %v12380_v48  ;;  %v12375_v13 = vunpack.c.l.bf16 %v12737_v46  ;;  %v12475_v46 = vunpack.c.l.bf16 %v12762_v50  ;;  %v12770_v50 = vld [vmem:[%s18638_s11 + $0x138] sm:$0xff]  }
 0x942   : > { %14958 = vmatmul.mubr.msk.f32.vlgmr.msra.gmra.mxu1 %vm927_vm2, %v18046_v15  ;;  %14960 = vmatprep.subr.mxu1 %v12412_v32  ;;  %v12372_v15 = vunpack.c.h.bf16 %v12736_v4 }
 0x943   : > { %14919 = vmatpush3.msra.mxu0 %v12380_v48  ;;  %14961 = vmatpush3.msra.mxu1 %v12412_v32  ;;  %v12443_v48 = vunpack.c.l.bf16 %v12754_v12  ;;  %v12761_v32 = vld [vmem:[%s18638_s11 + $0xf0] sm:$0xff]  }
 0x944   : > { %14920 = vmatprep.subr.mxu0 %v12379_v33  ;;  %14962 = vmatprep.subr.mxu1 %v12411_v43 }
 0x945   : > { %14921 = vmatpush3.msra.mxu0 %v12379_v33  ;;  %14963 = vmatpush3.msra.mxu1 %v12411_v43  ;;  %v12752_v33 = vld [vmem:[%s18638_s11 + $0xa8] sm:$0xff]   ;;  %v12439_v43 = vunpack.c.l.bf16 %v12753_v35  ;;  %v12508_v35 = vunpack.c.h.bf16 %v12770_v50 }
 0x946   : > { %14922 = vmatprep.subr.mxu0 %v12376_v60  ;;  %14964 = vmatprep.subr.mxu1 %v12408_v28  ;;  %v12435_v4 = vunpack.c.l.bf16 %v12752_v33 }
 0x947   : > { %14923 = vmatpush3.msra.mxu0 %v12376_v60  ;;  %14965 = vmatpush3.msra.mxu1 %v12408_v28  ;;  %v12436_v60 = vunpack.c.h.bf16 %v12752_v33  ;;  %v12751_v28 = vld [vmem:[%s18638_s11 + $0xa0] sm:$0xff]  }
 0x948   : > { %14924 = vmatprep.subr.mxu0 %v12375_v13  ;;  %14966 = vmatprep.subr.mxu1 %v12407_v26  ;;  %v12431_v8 = vunpack.c.l.bf16 %v12751_v28 }
 0x949   : > { %14925 = vmatpush3.msra.mxu0 %v12375_v13  ;;  %14967 = vmatpush3.msra.mxu1 %v12407_v26  ;;  %v12432_v26 = vunpack.c.h.bf16 %v12751_v28 }
 0x94a   : > { %14926 = vmatprep.subr.mxu0 %v12372_v15  ;;  %14968 = vmatprep.subr.mxu1 %v12404_v57 }
 0x94b   : > { %14927 = vmatpush3.msra.mxu0 %v12372_v15  ;;  %14969 = vmatpush3.msra.mxu1 %v12404_v57  ;;  %v12464_v15 = vunpack.c.h.bf16 %v12759_v14  ;;  %v12750_v57 = vld [vmem:[%s18638_s11 + $0x98] sm:$0xff]  }
 0x94c   : > { %14928 = vmatprep.subr.mxu0 %v12371_v16  ;;  %14970 = vmatprep.subr.mxu1 %v12403_v37  ;;  %v12427_v38 = vunpack.c.l.bf16 %v12750_v57 }
 0x94d   : > { %14929 = vmatpush3.msra.mxu0 %v12371_v16  ;;  %14971 = vmatpush3.msra.mxu1 %v12403_v37  ;;  %v12463_v16 = vunpack.c.l.bf16 %v12759_v14  ;;  %v12428_v37 = vunpack.c.h.bf16 %v12750_v57  ;;  %v12767_v14 = vld [vmem:[%s18638_s11 + $0x120] sm:$0xff]  }
 0x94e   : > { %14930 = vmatprep.subr.mxu0 %v12368_v27  ;;  %14972 = vmatprep.subr.mxu1 %v12400_v0  ;;  %v12496_v57 = vunpack.c.h.bf16 %v12767_v14 }
 0x94f   : > { %14931 = vmatpush3.msra.mxu0 %v12368_v27  ;;  %14973 = vmatpush3.msra.mxu1 %v12400_v0  ;;  %v12460_v27 = vunpack.c.h.bf16 %v12758_v22  ;;  %v12749_v0 = vld [vmem:[%s18638_s11 + $0x90] sm:$0xff]  }
 0x950   : > { %14932 = vmatprep.subr.mxu0 %v12367_v20  ;;  %14974 = vmatprep.subr.mxu1 %v12399_v2  ;;  %v12423_v17 = vunpack.c.l.bf16 %v12749_v0 }
 0x951   : > { %14933 = vmatpush3.msra.mxu0 %v12367_v20  ;;  %14975 = vmatpush3.msra.mxu1 %v12399_v2  ;;  %v12459_v20 = vunpack.c.l.bf16 %v12758_v22  ;;  %v12424_v2 = vunpack.c.h.bf16 %v12749_v0  ;;  %v12766_v22 = vld [vmem:[%s18638_s11 + $0x118] sm:$0xff]  }
 0x952   : > { %14934 = vmatprep.subr.mxu0 %v12364_v59  ;;  %14976 = vmatprep.subr.mxu1 %v12396_v1  ;;  %v12492_v0 = vunpack.c.h.bf16 %v12766_v22 }
 0x953   : > { %14935 = vmatpush3.msra.mxu0 %v12364_v59  ;;  %14977 = vmatpush3.msra.mxu1 %v12396_v1  ;;  %v12456_v59 = vunpack.c.h.bf16 %v12757_v49  ;;  %v12748_v1 = vld [vmem:[%s18638_s11 + $0x88] sm:$0xff]  }
 0x954   : > { %14936 = vmatprep.subr.mxu0 %v12363_v36  ;;  %14978 = vmatprep.subr.mxu1 %v12395_v58  ;;  %v12419_v31 = vunpack.c.l.bf16 %v12748_v1 }
 0x955   : > { %14937 = vmatpush3.msra.mxu0 %v12363_v36  ;;  %14979 = vmatpush3.msra.mxu1 %v12395_v58  ;;  %v12455_v36 = vunpack.c.l.bf16 %v12757_v49  ;;  %v12420_v58 = vunpack.c.h.bf16 %v12748_v1  ;;  %v12765_v49 = vld [vmem:[%s18638_s11 + $0x110] sm:$0xff]  }
 0x956   : > { %14938 = vmatprep.subr.mxu0 %v12360_v3  ;;  %14980 = vmatprep.subr.mxu1 %v12392_v23  ;;  %v12488_v1 = vunpack.c.h.bf16 %v12765_v49 }
 0x957   : > { %14939 = vmatpush3.msra.mxu0 %v12360_v3  ;;  %14981 = vmatpush3.msra.mxu1 %v12392_v23  ;;  %v12452_v3 = vunpack.c.h.bf16 %v12756_v63  ;;  %v12747_v23 = vld [vmem:[%s18638_s11 + $0x80] sm:$0xff]  }
 0x958   : > { %14940 = vmatprep.subr.mxu0 %v12359_v61  ;;  %14982 = vmatprep.subr.mxu1 %v12391_v56 }
 0x959   : > { %14941 = vmatpush3.msra.mxu0 %v12359_v61  ;;  %14983 = vmatpush3.msra.mxu1 %v12391_v56  ;;  %v12451_v61 = vunpack.c.l.bf16 %v12756_v63  ;;  %v12416_v56 = vunpack.c.h.bf16 %v12747_v23  ;;  %v12764_v63 = vld [vmem:[%s18638_s11 + $0x108] sm:$0xff]  }
 0x95a   : > { %14942 = vmatprep.subr.mxu0 %v12356_v42  ;;  %14984 = vmatprep.subr.mxu1 %v12388_v7 }
 0x95b   : > { %14943 = vmatpush3.msra.mxu0 %v12356_v42  ;;  %14985 = vmatpush3.msra.mxu1 %v12388_v7  ;;  %v12448_v42 = vunpack.c.h.bf16 %v12755_v30  ;;  %v12415_v7 = vunpack.c.l.bf16 %v12747_v23  ;;  %v12484_v23 = vunpack.c.h.bf16 %v12764_v63  ;;  %v12763_v30 = vld [vmem:[%s18638_s11 + $0x100] sm:$0xff]  }
 0x95c   : > { %14944 = vmatprep.subr.mxu0 %v12355_v39  ;;  %14986 = vmatprep.subr.mxu1 %v12387_v47 }
 0x95d   : > { %14945 = vmatpush3.msra.mxu0 %v12355_v39  ;;  %14987 = vmatpush3.msra.mxu1 %v12387_v47 }
 0x95e   : > { %14946 = vmatprep.subr.mxu0 %v12352_v40  ;;  %14988 = vmatprep.subr.mxu1 %v12384_v51 }
 0x95f   : > { %14947 = vmatpush3.msra.mxu0 %v12352_v40  ;;  %14989 = vmatpush3.msra.mxu1 %v12384_v51 }
 0x960   : > { %14948 = vmatprep.subr.mxu0 %v12351_v41  ;;  %14990 = vmatprep.subr.mxu1 %v12383_v18 }
 0x961   : > { %14949 = vmatpush3.msra.mxu0 %v12351_v41  ;;  %14991 = vmatpush3.msra.mxu1 %v12383_v18 }
 0x962   : > { %14995 = vmatprep.subr.mxu0 %v18296_v10  ;;  %15037 = vmatprep.subr.mxu1 %v18296_v10 }
 0xa01   : > { %v14917_v45 = vpop.f32.mrf.mxu0 }
 0xa02   : > { %v14959_v6 = vpop.f32.mrf.mxu1 }
 0xa03   : > { %v9430_v19 = vpop.f32.mrf.mxu0 }
 0xa04   : > { %v9614_v54 = vpop.f32.mrf.mxu1  ;;  %14950 = vmatprep.mubr.f32.mxu0 %v9430_v19 }
 0xa05   : > { %14992 = vmatprep.mubr.f32.mxu1 %v9614_v54  ;;  %14951 = vmatmul.mubr.f32.vlgmr.msra.gmra.mxu0 %v14917_v45 }
 0xa06   : > { %14993 = vmatmul.mubr.f32.vlgmr.msra.gmra.mxu1 %v14959_v6  ;;  %14996 = vmatpush3.msra.mxu0 %v18296_v10 }
 0xa07   : > { %15038 = vmatpush3.msra.mxu1 %v18296_v10  ;;  %14997 = vmatprep.subr.mxu0 %v18301_v53 }
 0xa08   : > { %15039 = vmatprep.subr.mxu1 %v18301_v53  ;;  %14998 = vmatpush3.msra.mxu0 %v18301_v53 }
 0xa09   : > { %15040 = vmatpush3.msra.mxu1 %v18301_v53  ;;  %14999 = vmatprep.mubr.msk.f32.mxu0 %vm927_vm2, %v18055_v52  ;;  %v12472_v52 = vunpack.c.h.bf16 %v12761_v32 }
 0xa0a   : > { %15002 = vmatprep.subr.mxu0 %v12444_v55  ;;  %15041 = vmatprep.mubr.msk.f32.mxu1 %vm927_vm2, %v18130_v21  ;;  %v12760_v21 = vld [vmem:[%s18638_s11 + $0xe8] sm:$0xff]  }
 0xa0b   : > { %15044 = vmatprep.subr.mxu1 %v12476_v25  ;;  %15000 = vmatmul.mubr.msk.f32.vlgmr.msra.gmra.mxu0 %vm927_vm2, %v18067_v5  ;;  %v12471_v5 = vunpack.c.l.bf16 %v12761_v32  ;;  %v12467_v13 = vunpack.c.l.bf16 %v12760_v21  ;;  %v12769_v32 = vld [vmem:[%s18638_s11 + $0x130] sm:$0xff]  }
 0xa0c   : > { %15003 = vmatpush3.msra.mxu0 %v12444_v55  ;;  %15042 = vmatmul.mubr.msk.f32.vlgmr.msra.gmra.mxu1 %vm927_vm2, %v18136_v34  ;;  %v12468_v34 = vunpack.c.h.bf16 %v12760_v21  ;;  %v12504_v21 = vunpack.c.h.bf16 %v12769_v32 }
 0xa0d   : > { %15045 = vmatpush3.msra.mxu1 %v12476_v25  ;;  %15004 = vmatprep.subr.mxu0 %v12443_v48  ;;  %v12778_v25 = vld [vmem:[%s18638_s11 + $0x178] sm:$0xff]  }
 0xa0e   : > { %15046 = vmatprep.subr.mxu1 %v12475_v46  ;;  %15005 = vmatpush3.msra.mxu0 %v12443_v48  ;;  %v12540_v48 = vunpack.c.h.bf16 %v12778_v25  ;;  %v12539_v33 = vunpack.c.l.bf16 %v12778_v25 }
 0xa0f   : > { %15047 = vmatpush3.msra.mxu1 %v12475_v46  ;;  %15006 = vmatprep.subr.mxu0 %v12440_v44  ;;  %v15303_v46 = vld [vmem:[%s18640_s13 + $0x40] sm:$0xff] }
 0xa10   : > { %15048 = vmatprep.subr.mxu1 %v12472_v52  ;;  %15007 = vmatpush3.msra.mxu0 %v12440_v44  ;;  %v12507_v44 = vunpack.c.l.bf16 %v12770_v50 }
 0xa11   : > { %15049 = vmatpush3.msra.mxu1 %v12472_v52  ;;  %15008 = vmatprep.subr.mxu0 %v12439_v43  ;;  %v12777_v52 = vld [vmem:[%s18638_s11 + $0x170] sm:$0xff]  }
 0xa12   : > { %15050 = vmatprep.subr.mxu1 %v12471_v5  ;;  %15009 = vmatpush3.msra.mxu0 %v12439_v43  ;;  %v15304_v43 = vld [vmem:[%s18640_s13 + $0x48] sm:$0xff]  ;;  %v12535_v28 = vunpack.c.l.bf16 %v12777_v52 }
 0xa13   : > { %15051 = vmatpush3.msra.mxu1 %v12471_v5  ;;  %15010 = vmatprep.subr.mxu0 %v12436_v60  ;;  %v12536_v5 = vunpack.c.h.bf16 %v12777_v52 }
 0xa14   : > { %15052 = vmatprep.subr.mxu1 %v12468_v34  ;;  %15011 = vmatpush3.msra.mxu0 %v12436_v60  ;;  %v12768_v60 = vld [vmem:[%s18638_s11 + $0x128] sm:$0xff]  }
 0xa15   : > { %15053 = vmatpush3.msra.mxu1 %v12468_v34  ;;  %15012 = vmatprep.subr.mxu0 %v12435_v4  ;;  %v12776_v34 = vld [vmem:[%s18638_s11 + $0x168] sm:$0xff]  }
 0xa16   : > { %15054 = vmatprep.subr.mxu1 %v12467_v13  ;;  %15013 = vmatpush3.msra.mxu0 %v12435_v4  ;;  %v12500_v4 = vunpack.c.h.bf16 %v12768_v60 }
 0xa17   : > { %15055 = vmatpush3.msra.mxu1 %v12467_v13  ;;  %15014 = vmatprep.subr.mxu0 %v12432_v26  ;;  %v12499_v13 = vunpack.c.l.bf16 %v12768_v60  ;;  %v12784_v60 = vld [vmem:[%s18638_s11 + $0x1a8] sm:$0xff]  }
 0xa18   : > { %15056 = vmatprep.subr.mxu1 %v12464_v15  ;;  %15015 = vmatpush3.msra.mxu0 %v12432_v26  ;;  %v12775_v26 = vld [vmem:[%s18638_s11 + $0x160] sm:$0xff]  }
 0xa19   : > { %15057 = vmatpush3.msra.mxu1 %v12464_v15  ;;  %15016 = vmatprep.subr.mxu0 %v12431_v8  ;;  %v12531_v15 = vunpack.c.l.bf16 %v12776_v34 }
 0xa1a   : > { %15058 = vmatprep.subr.mxu1 %v12463_v16  ;;  %15017 = vmatpush3.msra.mxu0 %v12431_v8  ;;  %v12528_v8 = vunpack.c.h.bf16 %v12775_v26 }
 0xa1b   : > { %15059 = vmatpush3.msra.mxu1 %v12463_v16  ;;  %15018 = vmatprep.subr.mxu0 %v12428_v37  ;;  %v12495_v16 = vunpack.c.l.bf16 %v12767_v14  ;;  %v12783_v14 = vld [vmem:[%s18638_s11 + $0x1a0] sm:$0xff]  }
 0xa1c   : > { %15060 = vmatprep.subr.mxu1 %v12460_v27  ;;  %15019 = vmatpush3.msra.mxu0 %v12428_v37  ;;  %v12774_v37 = vld [vmem:[%s18638_s11 + $0x158] sm:$0xff]  }
 0xa1d   : > { %15061 = vmatpush3.msra.mxu1 %v12460_v27  ;;  %15020 = vmatprep.subr.mxu0 %v12427_v38  ;;  %v12527_v27 = vunpack.c.l.bf16 %v12775_v26 }
 0xa1e   : > { %15062 = vmatprep.subr.mxu1 %v12459_v20  ;;  %15021 = vmatpush3.msra.mxu0 %v12427_v38  ;;  %v12524_v38 = vunpack.c.h.bf16 %v12774_v37 }
 0xa1f   : > { %15063 = vmatpush3.msra.mxu1 %v12459_v20  ;;  %15022 = vmatprep.subr.mxu0 %v12424_v2  ;;  %v12491_v20 = vunpack.c.l.bf16 %v12766_v22 }
 0xa20   : > { %15064 = vmatprep.subr.mxu1 %v12456_v59  ;;  %15023 = vmatpush3.msra.mxu0 %v12424_v2  ;;  %v12773_v2 = vld [vmem:[%s18638_s11 + $0x150] sm:$0xff]  }
 0xa21   : > { %15065 = vmatpush3.msra.mxu1 %v12456_v59  ;;  %15024 = vmatprep.subr.mxu0 %v12423_v17  ;;  %v12523_v59 = vunpack.c.l.bf16 %v12774_v37 }
 0xa22   : > { %15066 = vmatprep.subr.mxu1 %v12455_v36  ;;  %15025 = vmatpush3.msra.mxu0 %v12423_v17  ;;  %v12520_v17 = vunpack.c.h.bf16 %v12773_v2 }
 0xa23   : > { %15067 = vmatpush3.msra.mxu1 %v12455_v36  ;;  %15026 = vmatprep.subr.mxu0 %v12420_v58  ;;  %v12487_v36 = vunpack.c.l.bf16 %v12765_v49 }
 0xa24   : > { %15068 = vmatprep.subr.mxu1 %v12452_v3  ;;  %15027 = vmatpush3.msra.mxu0 %v12420_v58  ;;  %v12772_v58 = vld [vmem:[%s18638_s11 + $0x148] sm:$0xff]  }
 0xa25   : > { %15069 = vmatpush3.msra.mxu1 %v12452_v3  ;;  %15028 = vmatprep.subr.mxu0 %v12419_v31  ;;  %v12519_v3 = vunpack.c.l.bf16 %v12773_v2 }
 0xa26   : > { %15070 = vmatprep.subr.mxu1 %v12451_v61  ;;  %15029 = vmatpush3.msra.mxu0 %v12419_v31  ;;  %v12516_v31 = vunpack.c.h.bf16 %v12772_v58 }
 0xa27   : > { %15071 = vmatpush3.msra.mxu1 %v12451_v61  ;;  %15030 = vmatprep.subr.mxu0 %v12416_v56  ;;  %v12483_v61 = vunpack.c.l.bf16 %v12764_v63 }
 0xa28   : > { %15072 = vmatprep.subr.mxu1 %v12448_v42  ;;  %15031 = vmatpush3.msra.mxu0 %v12416_v56  ;;  %v12771_v56 = vld [vmem:[%s18638_s11 + $0x140] sm:$0xff]  }
 0xa29   : > { %15073 = vmatpush3.msra.mxu1 %v12448_v42  ;;  %15032 = vmatprep.subr.mxu0 %v12415_v7  ;;  %v12515_v42 = vunpack.c.l.bf16 %v12772_v58 }
 0xa2a   : > { %15074 = vmatprep.subr.mxu1 %v12447_v29  ;;  %15033 = vmatpush3.msra.mxu0 %v12415_v7  ;;  %v12480_v7 = vunpack.c.h.bf16 %v12763_v30 }
 0xa2b   : > { %15075 = vmatpush3.msra.mxu1 %v12447_v29  ;;  %15079 = vmatprep.subr.mxu0 %v18296_v10  ;;  %v12512_v29 = vunpack.c.h.bf16 %v12771_v56 }
 0xa2c   : > { %15121 = vmatprep.subr.mxu1 %v18296_v10 }
 0xac5   : > { %v14952_v39 = vpop.f32.mrf.mxu0 }
 0xac6   : > { %v9547_v47 = vadd.f32 %v14952_v39, %v11800_v11  ;;  %v14994_v40 = vpop.f32.mrf.mxu1  ;;  %v12511_v39 = vunpack.c.l.bf16 %v12771_v56 }
 0xac7   : > { %v9537_v51 = vpop.f32.mrf.mxu0 }
 0xac8   : > { %v18426_v41 = vadd.f32 %v14994_v40, %v9547_v47  ;;  %v9546_v18 = vadd.f32 %v11800_v11, %v9537_v51  ;;  %v9722_v45 = vpop.f32.mrf.mxu1  ;;  %v12479_v11 = vunpack.c.l.bf16 %v12763_v30 }
 0xaca   : > { %v18428_v6 = vadd.f32 %v9722_v45, %v9546_v18 }
 0xacb   : > { %v15001_v19 = vpop.f32.mrf.mxu0 }
 0xacc   : > { %v15043_v12 = vpop.f32.mrf.mxu1 }
 0xacd   : > { %v9799_v54 = vpop.f32.mrf.mxu0 }
 0xace   : > { %v9984_v55 = vpop.f32.mrf.mxu1  ;;  %15034 = vmatprep.mubr.f32.mxu0 %v9799_v54 }
 0xacf   : > { %15076 = vmatprep.mubr.f32.mxu1 %v9984_v55  ;;  %15035 = vmatmul.mubr.f32.vlgmr.msra.gmra.mxu0 %v15001_v19 }
 0xad0   : > { %15077 = vmatmul.mubr.f32.vlgmr.msra.gmra.mxu1 %v15043_v12  ;;  %15080 = vmatpush3.msra.mxu0 %v18296_v10 }
 0xad1   : > { %15122 = vmatpush3.msra.mxu1 %v18296_v10  ;;  %15081 = vmatprep.subr.mxu0 %v18301_v53 }
 0xad2   : > { %15123 = vmatprep.subr.mxu1 %v18301_v53  ;;  %15082 = vmatpush3.msra.mxu0 %v18301_v53 }
 0xad3   : > { %15124 = vmatpush3.msra.mxu1 %v18301_v53  ;;  %15083 = vmatprep.mubr.msk.f32.mxu0 %vm927_vm2, %v15303_v46 }
 0xad4   : > { %15086 = vmatprep.subr.mxu0 %v12508_v35  ;;  %15125 = vmatprep.mubr.msk.f32.mxu1 %vm927_vm2, %v18194_v9  ;;  %v12503_v9 = vunpack.c.l.bf16 %v12769_v32  ;;  %v12785_v32 = vld [vmem:[%s18638_s11 + $0x1b0] sm:$0xff]  }
 0xad5   : > { %15128 = vmatprep.subr.mxu1 %v12540_v48  ;;  %15084 = vmatmul.mubr.msk.f32.vlgmr.msra.gmra.mxu0 %vm927_vm2, %v15304_v43  ;;  %v12568_v43 = vunpack.c.h.bf16 %v12785_v32 }
 0xad6   : > { %15087 = vmatpush3.msra.mxu0 %v12508_v35  ;;  %15126 = vmatmul.mubr.msk.f32.vlgmr.msra.gmra.mxu1 %vm927_vm2, %v18201_v24  ;;  %v12532_v24 = vunpack.c.h.bf16 %v12776_v34  ;;  %v12786_v35 = vld [vmem:[%s18638_s11 + $0x1b8] sm:$0xff]   ;;  %v12567_v34 = vunpack.c.l.bf16 %v12785_v32 }
 0xad7   : > { %15129 = vmatpush3.msra.mxu1 %v12540_v48  ;;  %15088 = vmatprep.subr.mxu0 %v12507_v44  ;;  %v12571_v46 = vunpack.c.l.bf16 %v12786_v35 }
 0xad8   : > { %15130 = vmatprep.subr.mxu1 %v12539_v33  ;;  %15089 = vmatpush3.msra.mxu0 %v12507_v44  ;;  %v15305_v44 = vld [vmem:[%s18640_s13 + $0x60] sm:$0xff] }
 0xad9   : > { %15131 = vmatpush3.msra.mxu1 %v12539_v33  ;;  %15090 = vmatprep.subr.mxu0 %v12504_v21  ;;  %v15306_v33 = vld [vmem:[%s18640_s13 + $0x68] sm:$0xff] }
 0xada   : > { %15132 = vmatprep.subr.mxu1 %v12536_v5  ;;  %15091 = vmatpush3.msra.mxu0 %v12504_v21  ;;  %v12793_v21 = vld [vmem:[%s18638_s11 + $0x1f0] sm:$0xff]  }
 0xadb   : > { %15133 = vmatpush3.msra.mxu1 %v12536_v5  ;;  %15092 = vmatprep.subr.mxu0 %v12503_v9  ;;  %v15307_v5 = vld [vmem:[%s18640_s13 + $0x70] sm:$0xff] }
 0xadc   : > { %15134 = vmatprep.subr.mxu1 %v12535_v28  ;;  %15093 = vmatpush3.msra.mxu0 %v12503_v9 }
 0xadd   : > { %15135 = vmatpush3.msra.mxu1 %v12535_v28  ;;  %15094 = vmatprep.subr.mxu0 %v12500_v4  ;;  %v12600_v28 = vunpack.c.h.bf16 %v12793_v21 }
 0xade   : > { %15136 = vmatprep.subr.mxu1 %v12532_v24  ;;  %15095 = vmatpush3.msra.mxu0 %v12500_v4  ;;  %v12564_v4 = vunpack.c.h.bf16 %v12784_v60 }
 0xadf   : > { %15137 = vmatpush3.msra.mxu1 %v12532_v24  ;;  %15096 = vmatprep.subr.mxu0 %v12499_v13  ;;  %v12792_v24 = vld [vmem:[%s18638_s11 + $0x1e8] sm:$0xff]  }
 0xae0   : > { %15138 = vmatprep.subr.mxu1 %v12531_v15  ;;  %15097 = vmatpush3.msra.mxu0 %v12499_v13  ;;  %v12599_v13 = vunpack.c.l.bf16 %v12793_v21  ;;  %v12596_v26 = vunpack.c.h.bf16 %v12792_v24  ;;  %v12595_v22 = vunpack.c.l.bf16 %v12792_v24  ;;  %v12799_v21 = vld [vmem:[%s18638_s11 + $0x220] sm:$0xff]  }
 0xae1   : > { %15139 = vmatpush3.msra.mxu1 %v12531_v15  ;;  %15098 = vmatprep.subr.mxu0 %v12496_v57  ;;  %v12560_v15 = vunpack.c.h.bf16 %v12783_v14 }
 0xae2   : > { %15140 = vmatprep.subr.mxu1 %v12528_v8  ;;  %15099 = vmatpush3.msra.mxu0 %v12496_v57  ;;  %v12791_v57 = vld [vmem:[%s18638_s11 + $0x1e0] sm:$0xff]  }
 0xae3   : > { %15141 = vmatpush3.msra.mxu1 %v12528_v8  ;;  %15100 = vmatprep.subr.mxu0 %v12495_v16  ;;  %v12782_v8 = vld [vmem:[%s18638_s11 + $0x198] sm:$0xff]   ;;  %v12592_v37 = vunpack.c.h.bf16 %v12791_v57  ;;  %v12591_v49 = vunpack.c.l.bf16 %v12791_v57  ;;  %v12795_v57 = vld [vmem:[%s18638_s11 + $0x200] sm:$0xff]  }
 0xae4   : > { %15142 = vmatprep.subr.mxu1 %v12527_v27  ;;  %15101 = vmatpush3.msra.mxu0 %v12495_v16  ;;  %v12559_v16 = vunpack.c.l.bf16 %v12783_v14 }
 0xae5   : > { %15143 = vmatpush3.msra.mxu1 %v12527_v27  ;;  %15102 = vmatprep.subr.mxu0 %v12492_v0  ;;  %v12556_v27 = vunpack.c.h.bf16 %v12782_v8 }
 0xae6   : > { %15144 = vmatprep.subr.mxu1 %v12524_v38  ;;  %15103 = vmatpush3.msra.mxu0 %v12492_v0  ;;  %v12790_v0 = vld [vmem:[%s18638_s11 + $0x1d8] sm:$0xff]  }
 0xae7   : > { %15145 = vmatpush3.msra.mxu1 %v12524_v38  ;;  %15104 = vmatprep.subr.mxu0 %v12491_v20  ;;  %v12781_v38 = vld [vmem:[%s18638_s11 + $0x190] sm:$0xff]   ;;  %v12588_v2 = vunpack.c.h.bf16 %v12790_v0  ;;  %v12587_v63 = vunpack.c.l.bf16 %v12790_v0 }
 0xae8   : > { %15146 = vmatprep.subr.mxu1 %v12523_v59  ;;  %15105 = vmatpush3.msra.mxu0 %v12491_v20  ;;  %v12555_v20 = vunpack.c.l.bf16 %v12782_v8  ;;  %v12608_v8 = vunpack.c.h.bf16 %v12795_v57 }
 0xae9   : > { %15147 = vmatpush3.msra.mxu1 %v12523_v59  ;;  %15106 = vmatprep.subr.mxu0 %v12488_v1  ;;  %v12552_v59 = vunpack.c.h.bf16 %v12781_v38 }
 0xaea   : > { %15148 = vmatprep.subr.mxu1 %v12520_v17  ;;  %15107 = vmatpush3.msra.mxu0 %v12488_v1  ;;  %v12789_v1 = vld [vmem:[%s18638_s11 + $0x1d0] sm:$0xff]  }
 0xaeb   : > { %15149 = vmatpush3.msra.mxu1 %v12520_v17  ;;  %15108 = vmatprep.subr.mxu0 %v12487_v36  ;;  %v12780_v17 = vld [vmem:[%s18638_s11 + $0x188] sm:$0xff]   ;;  %v12584_v58 = vunpack.c.h.bf16 %v12789_v1  ;;  %v12583_v56 = vunpack.c.l.bf16 %v12789_v1 }
 0xaec   : > { %15150 = vmatprep.subr.mxu1 %v12519_v3  ;;  %15109 = vmatpush3.msra.mxu0 %v12487_v36  ;;  %v12551_v36 = vunpack.c.l.bf16 %v12781_v38 }
 0xaed   : > { %15151 = vmatpush3.msra.mxu1 %v12519_v3  ;;  %15110 = vmatprep.subr.mxu0 %v12484_v23  ;;  %v12548_v3 = vunpack.c.h.bf16 %v12780_v17 }
 0xaee   : > { %15152 = vmatprep.subr.mxu1 %v12516_v31  ;;  %15111 = vmatpush3.msra.mxu0 %v12484_v23  ;;  %v12779_v23 = vld [vmem:[%s18638_s11 + $0x180] sm:$0xff]  }
 0xaef   : > { %15153 = vmatpush3.msra.mxu1 %v12516_v31  ;;  %15112 = vmatprep.subr.mxu0 %v12483_v61  ;;  %v12547_v31 = vunpack.c.l.bf16 %v12780_v17  ;;  %v12544_v30 = vunpack.c.h.bf16 %v12779_v23 }
 0xaf0   : > { %15154 = vmatprep.subr.mxu1 %v12515_v42  ;;  %15113 = vmatpush3.msra.mxu0 %v12483_v61  ;;  %v12543_v61 = vunpack.c.l.bf16 %v12779_v23 }
 0xaf1   : > { %15155 = vmatpush3.msra.mxu1 %v12515_v42  ;;  %15114 = vmatprep.subr.mxu0 %v12480_v7  ;;  %v12788_v42 = vld [vmem:[%s18638_s11 + $0x1c8] sm:$0xff]  }
 0xaf2   : > { %15156 = vmatprep.subr.mxu1 %v12512_v29  ;;  %15115 = vmatpush3.msra.mxu0 %v12480_v7  ;;  %v12580_v7 = vunpack.c.h.bf16 %v12788_v42 }
 0xaf3   : > { %15157 = vmatpush3.msra.mxu1 %v12512_v29  ;;  %15116 = vmatprep.subr.mxu0 %v12479_v11  ;;  %v12579_v29 = vunpack.c.l.bf16 %v12788_v42 }
 0xaf4   : > { %15158 = vmatprep.subr.mxu1 %v12511_v39  ;;  %15117 = vmatpush3.msra.mxu0 %v12479_v11  ;;  %v12787_v11 = vld [vmem:[%s18638_s11 + $0x1c0] sm:$0xff]  }
 0xaf5   : > { %15159 = vmatpush3.msra.mxu1 %v12511_v39  ;;  %15163 = vmatprep.subr.mxu0 %v18296_v10  ;;  %v12576_v39 = vunpack.c.h.bf16 %v12787_v11 }
 0xaf6   : > { %15205 = vmatprep.subr.mxu1 %v18296_v10 }
 0xb8f   : > { %v15036_v47 = vpop.f32.mrf.mxu0 }
 0xb90   : > { %v9917_v40 = vadd.f32 %v15036_v47, %v18426_v41  ;;  %v15078_v51 = vpop.f32.mrf.mxu1  ;;  %v12572_v41 = vunpack.c.h.bf16 %v12786_v35  ;;  %v12575_v47 = vunpack.c.l.bf16 %v12787_v11  ;;  %v11038_v11 = vld [vmem:[%s18641_s14] sm:$0x1] }
 0xb91   : > { %v9907_v18 = vpop.f32.mrf.mxu0 }
 0xb92   : > { %v18499_v45 = vadd.f32 %v15078_v51, %v9917_v40  ;;  %v9916_v19 = vadd.f32 %v9907_v18, %v18428_v6  ;;  %v10092_v12 = vpop.f32.mrf.mxu1  ;;  %v12794_v6 = vld [vmem:[%s18638_s11 + $0x1f8] sm:$0xff]  }
 0xb93   : > { %v12604_v52 = vunpack.c.h.bf16 %v12794_v6  ;;  %v12603_v9 = vunpack.c.l.bf16 %v12794_v6 }
 0xb94   : > { %v18502_v54 = vadd.f32 %v10092_v12, %v9916_v19 }
 0xb95   : > { %v15085_v50 = vpop.f32.mrf.mxu0 }
 0xb96   : > { %v15127_v55 = vpop.f32.mrf.mxu1 }
 0xb97   : > { %v10169_v25 = vpop.f32.mrf.mxu0 }
 0xb98   : > { %v10354_v48 = vpop.f32.mrf.mxu1  ;;  %15118 = vmatprep.mubr.f32.mxu0 %v10169_v25 }
 0xb99   : > { %15160 = vmatprep.mubr.f32.mxu1 %v10354_v48  ;;  %15119 = vmatmul.mubr.f32.vlgmr.msra.gmra.mxu0 %v15085_v50  ;;  %v12802_v48 = vld [vmem:[%s18638_s11 + $0x238] sm:$0xff]  }
 0xb9a   : > { %15161 = vmatmul.mubr.f32.vlgmr.msra.gmra.mxu1 %v15127_v55  ;;  %15164 = vmatpush3.msra.mxu0 %v18296_v10 }
 0xb9b   : > { %15206 = vmatpush3.msra.mxu1 %v18296_v10  ;;  %15165 = vmatprep.subr.mxu0 %v18301_v53 }
 0xb9c   : > { %15207 = vmatprep.subr.mxu1 %v18301_v53  ;;  %15166 = vmatpush3.msra.mxu0 %v18301_v53 }
 0xb9d   : > { %15208 = vmatpush3.msra.mxu1 %v18301_v53  ;;  %15167 = vmatprep.mubr.msk.f32.mxu0 %vm927_vm2, %v15305_v44  ;;  %v15308_v44 = vld [vmem:[%s18640_s13 + $0x80] sm:$0xff] }
 0xb9e   : > { %15170 = vmatprep.subr.mxu0 %v12572_v41  ;;  %15168 = vmatmul.mubr.msk.f32.vlgmr.msra.gmra.mxu0 %vm927_vm2, %v15306_v33  ;;  %v12800_v33 = vld [vmem:[%s18638_s11 + $0x228] sm:$0xff]  }
 0xb9f   : > { %15171 = vmatpush3.msra.mxu0 %v12572_v41  ;;  %15209 = vmatprep.mubr.msk.f32.mxu1 %vm927_vm2, %v15307_v5  ;;  %v12627_v5 = vunpack.c.l.bf16 %v12800_v33 }
 0xba0   : > { %15172 = vmatprep.subr.mxu0 %v12571_v46  ;;  %15210 = vmatmul.mubr.msk.f32.vlgmr.msra.gmra.mxu1 %vm927_vm2, %v18260_v62  ;;  %v12563_v62 = vunpack.c.l.bf16 %v12784_v60  ;;  %v12624_v60 = vunpack.c.h.bf16 %v12799_v21 }
 0xba1   : > { %15173 = vmatpush3.msra.mxu0 %v12571_v46  ;;  %15212 = vmatprep.subr.mxu1 %v12604_v52  ;;  %v12635_v46 = vunpack.c.l.bf16 %v12802_v48 }
 0xba2   : > { %15174 = vmatprep.subr.mxu0 %v12568_v43  ;;  %15213 = vmatpush3.msra.mxu1 %v12604_v52 }
 0xba3   : > { %15175 = vmatpush3.msra.mxu0 %v12568_v43  ;;  %15214 = vmatprep.subr.mxu1 %v12603_v9  ;;  %v12628_v43 = vunpack.c.h.bf16 %v12800_v33 }
 0xba4   : > { %15176 = vmatprep.subr.mxu0 %v12567_v34  ;;  %15215 = vmatpush3.msra.mxu1 %v12603_v9  ;;  %v12798_v9 = vld [vmem:[%s18638_s11 + $0x218] sm:$0xff]  }
 0xba5   : > { %15177 = vmatpush3.msra.mxu0 %v12567_v34  ;;  %15216 = vmatprep.subr.mxu1 %v12600_v28  ;;  %v12623_v34 = vunpack.c.l.bf16 %v12799_v21  ;;  %v12619_v24 = vunpack.c.l.bf16 %v12798_v9 }
 0xba6   : > { %15178 = vmatprep.subr.mxu0 %v12564_v4  ;;  %15217 = vmatpush3.msra.mxu1 %v12600_v28  ;;  %v12620_v28 = vunpack.c.h.bf16 %v12798_v9 }
 0xba7   : > { %15179 = vmatpush3.msra.mxu0 %v12564_v4  ;;  %15218 = vmatprep.subr.mxu1 %v12599_v13  ;;  %v12797_v4 = vld [vmem:[%s18638_s11 + $0x210] sm:$0xff]  }
 0xba8   : > { %15180 = vmatprep.subr.mxu0 %v12563_v62  ;;  %15219 = vmatpush3.msra.mxu1 %v12599_v13  ;;  %v12616_v14 = vunpack.c.h.bf16 %v12797_v4  ;;  %v12615_v13 = vunpack.c.l.bf16 %v12797_v4 }
 0xba9   : > { %15181 = vmatpush3.msra.mxu0 %v12563_v62  ;;  %15220 = vmatprep.subr.mxu1 %v12596_v26  ;;  %v12796_v62 = vld [vmem:[%s18638_s11 + $0x208] sm:$0xff]  }
 0xbaa   : > { %15182 = vmatprep.subr.mxu0 %v12560_v15  ;;  %15221 = vmatpush3.msra.mxu1 %v12596_v26  ;;  %v12612_v26 = vunpack.c.h.bf16 %v12796_v62 }
 0xbab   : > { %15183 = vmatpush3.msra.mxu0 %v12560_v15  ;;  %15222 = vmatprep.subr.mxu1 %v12595_v22  ;;  %v12611_v15 = vunpack.c.l.bf16 %v12796_v62 }
 0xbac   : > { %15184 = vmatprep.subr.mxu0 %v12559_v16  ;;  %15223 = vmatpush3.msra.mxu1 %v12595_v22  ;;  %v12607_v22 = vunpack.c.l.bf16 %v12795_v57 }
 0xbad   : > { %15185 = vmatpush3.msra.mxu0 %v12559_v16  ;;  %15224 = vmatprep.subr.mxu1 %v12592_v37 }
 0xbae   : > { %15186 = vmatprep.subr.mxu0 %v12556_v27  ;;  %15225 = vmatpush3.msra.mxu1 %v12592_v37 }
 0xbaf   : > { %15187 = vmatpush3.msra.mxu0 %v12556_v27  ;;  %15226 = vmatprep.subr.mxu1 %v12591_v49 }
 0xbb0   : > { %15188 = vmatprep.subr.mxu0 %v12555_v20  ;;  %15227 = vmatpush3.msra.mxu1 %v12591_v49 }
 0xbb1   : > { %15189 = vmatpush3.msra.mxu0 %v12555_v20  ;;  %15228 = vmatprep.subr.mxu1 %v12588_v2 }
 0xbb2   : > { %15190 = vmatprep.subr.mxu0 %v12552_v59  ;;  %15229 = vmatpush3.msra.mxu1 %v12588_v2 }
 0xbb3   : > { %15191 = vmatpush3.msra.mxu0 %v12552_v59  ;;  %15230 = vmatprep.subr.mxu1 %v12587_v63 }
 0xbb4   : > { %15192 = vmatprep.subr.mxu0 %v12551_v36  ;;  %15231 = vmatpush3.msra.mxu1 %v12587_v63 }
 0xbb5   : > { %15193 = vmatpush3.msra.mxu0 %v12551_v36  ;;  %15232 = vmatprep.subr.mxu1 %v12584_v58 }
 0xbb6   : > { %15194 = vmatprep.subr.mxu0 %v12548_v3  ;;  %15233 = vmatpush3.msra.mxu1 %v12584_v58 }
 0xbb7   : > { %15195 = vmatpush3.msra.mxu0 %v12548_v3  ;;  %15234 = vmatprep.subr.mxu1 %v12583_v56 }
 0xbb8   : > { %15196 = vmatprep.subr.mxu0 %v12547_v31  ;;  %15235 = vmatpush3.msra.mxu1 %v12583_v56 }
 0xbb9   : > { %15197 = vmatpush3.msra.mxu0 %v12547_v31  ;;  %15236 = vmatprep.subr.mxu1 %v12580_v7 }
 0xbba   : > { %15198 = vmatprep.subr.mxu0 %v12544_v30  ;;  %15237 = vmatpush3.msra.mxu1 %v12580_v7 }
 0xbbb   : > { %15199 = vmatpush3.msra.mxu0 %v12544_v30  ;;  %15238 = vmatprep.subr.mxu1 %v12579_v29 }
 0xbbc   : > { %15200 = vmatprep.subr.mxu0 %v12543_v61  ;;  %15239 = vmatpush3.msra.mxu1 %v12579_v29 }
 0xbbd   : > { %15201 = vmatpush3.msra.mxu0 %v12543_v61  ;;  %15240 = vmatprep.subr.mxu1 %v12576_v39 }
 0xbbe   : > { %15247 = vmatprep.subr.mxu0 %v18296_v10  ;;  %15241 = vmatpush3.msra.mxu1 %v12576_v39 }
 0xbbf   : > { %15242 = vmatprep.subr.mxu1 %v12575_v47 }
 0xbc0   : > { %15243 = vmatpush3.msra.mxu1 %v12575_v47 }
 0xc59   : > { %v15120_v40 = vpop.f32.mrf.mxu0 }
 0xc5a   : > { %v10287_v51 = vadd.f32 %v15120_v40, %v18499_v45  ;;  %v15162_v18 = vpop.f32.mrf.mxu1  ;;  %v12636_v45 = vunpack.c.h.bf16 %v12802_v48 }
 0xc5b   : > { %v10277_v19 = vpop.f32.mrf.mxu0 }
 0xc5c   : > { %v10286_v12 = vadd.f32 %v10277_v19, %v18502_v54  ;;  %v18575_v50 = vadd.f32 %v15162_v18, %v10287_v51  ;;  %v10462_v55 = vpop.f32.mrf.mxu1  ;;  %v12801_v54 = vld [vmem:[%s18638_s11 + $0x230] sm:$0xff]   ;;  %v11044_v51 = vld [vmem:[#allocation6] sm:$0x1] }
 0xc5d   : > { %v12632_v52 = vunpack.c.h.bf16 %v12801_v54 }
 0xc5e   : > { %v18577_v25 = vadd.f32 %v10462_v55, %v10286_v12  ;;  %v15169_v35 = vpop.f32.mrf.mxu0 }
 0xc60   : > { %v10539_v41 = vpop.f32.mrf.mxu0  ;;  %v15211_v6 = vpop.f32.mrf.mxu1 }
 0xc61   : > { %15202 = vmatprep.mubr.f32.mxu0 %v10539_v41 }
 0xc62   : > { %15203 = vmatmul.mubr.f32.vlgmr.msra.gmra.mxu0 %v15169_v35  ;;  %v10724_v32 = vpop.f32.mrf.mxu1 }
 0xc63   : > { %15248 = vmatpush3.msra.mxu0 %v18296_v10  ;;  %15244 = vmatprep.mubr.f32.mxu1 %v10724_v32  ;;  %v15309_v10 = vld [vmem:[%s18640_s13 + $0x88] sm:$0xff] }
 0xc64   : > { %15249 = vmatprep.subr.mxu0 %v18301_v53  ;;  %15245 = vmatmul.mubr.f32.vlgmr.msra.gmra.mxu1 %v15211_v6 }
 0xc65   : > { %15250 = vmatpush3.msra.mxu0 %v18301_v53  ;;  %15251 = vmatprep.mubr.msk.f32.mxu0 %vm927_vm2, %v15308_v44  ;;  %v12631_v53 = vunpack.c.l.bf16 %v12801_v54 }
 0xc66   : > { %15252 = vmatmul.mubr.msk.f32.vlgmr.msra.gmra.mxu0 %vm927_vm2, %v15309_v10  ;;  %15254 = vmatprep.subr.mxu0 %v12636_v45 }
 0xc67   : > { %15255 = vmatpush3.msra.mxu0 %v12636_v45 }
 0xc68   : > { %15256 = vmatprep.subr.mxu0 %v12635_v46 }
 0xc69   : > { %15257 = vmatpush3.msra.mxu0 %v12635_v46 }
 0xc6a   : > { %15258 = vmatprep.subr.mxu0 %v12632_v52 }
 0xc6b   : > { %15259 = vmatpush3.msra.mxu0 %v12632_v52 }
 0xc6c   : > { %15260 = vmatprep.subr.mxu0 %v12631_v53 }
 0xc6d   : > { %15261 = vmatpush3.msra.mxu0 %v12631_v53 }
 0xc6e   : > { %15262 = vmatprep.subr.mxu0 %v12628_v43 }
 0xc6f   : > { %15263 = vmatpush3.msra.mxu0 %v12628_v43 }
 0xc70   : > { %15264 = vmatprep.subr.mxu0 %v12627_v5 }
 0xc71   : > { %15265 = vmatpush3.msra.mxu0 %v12627_v5 }
 0xc72   : > { %15266 = vmatprep.subr.mxu0 %v12624_v60 }
 0xc73   : > { %15267 = vmatpush3.msra.mxu0 %v12624_v60 }
 0xc74   : > { %15268 = vmatprep.subr.mxu0 %v12623_v34 }
 0xc75   : > { %15269 = vmatpush3.msra.mxu0 %v12623_v34 }
 0xc76   : > { %15270 = vmatprep.subr.mxu0 %v12620_v28 }
 0xc77   : > { %15271 = vmatpush3.msra.mxu0 %v12620_v28 }
 0xc78   : > { %15272 = vmatprep.subr.mxu0 %v12619_v24 }
 0xc79   : > { %15273 = vmatpush3.msra.mxu0 %v12619_v24 }
 0xc7a   : > { %15274 = vmatprep.subr.mxu0 %v12616_v14 }
 0xc7b   : > { %15275 = vmatpush3.msra.mxu0 %v12616_v14 }
 0xc7c   : > { %15276 = vmatprep.subr.mxu0 %v12615_v13 }
 0xc7d   : > { %15277 = vmatpush3.msra.mxu0 %v12615_v13 }
 0xc7e   : > { %15278 = vmatprep.subr.mxu0 %v12612_v26 }
 0xc7f   : > { %15279 = vmatpush3.msra.mxu0 %v12612_v26 }
 0xc80   : > { %15280 = vmatprep.subr.mxu0 %v12611_v15 }
 0xc81   : > { %15281 = vmatpush3.msra.mxu0 %v12611_v15 }
 0xc82   : > { %15282 = vmatprep.subr.mxu0 %v12608_v8 }
 0xc83   : > { %15283 = vmatpush3.msra.mxu0 %v12608_v8 }
 0xc84   : > { %15284 = vmatprep.subr.mxu0 %v12607_v22 }
 0xc85   : > { %15285 = vmatpush3.msra.mxu0 %v12607_v22 }
 0xd22   : > { %v15204_v16 = vpop.f32.mrf.mxu0 }
 0xd23   : > { %v10657_v37 = vadd.f32 %v15204_v16, %v18575_v50 }
 0xd24   : > { %v10647_v27 = vpop.f32.mrf.mxu0  ;;  %v15246_v20 = vpop.f32.mrf.mxu1 }
 0xd25   : > { %v10656_v0 = vadd.f32 %v10647_v27, %v18577_v25  ;;  %v10842_v59 = vadd.f32 %v15246_v20, %v10657_v37 }
 0xd26   : > { %v15253_v38 = vpop.f32.mrf.mxu0  ;;  %v10832_v2 = vpop.f32.mrf.mxu1 }
 0xd27   : > { %v10841_v17 = vadd.f32 %v10832_v2, %v10656_v0 }
 0xd28   : > { %v10909_v49 = vpop.f32.mrf.mxu0 }
 0xd29   : > { %15286 = vmatprep.mubr.f32.mxu0 %v10909_v49 }
 0xd2a   : > { %15287 = vmatmul.mubr.f32.vlgmr.msra.gmra.mxu0 %v15253_v38 }
 0xdea   : > { %v15288_v1 = vpop.f32.mrf.mxu0 }
 0xdeb   : > { %v11027_v63 = vadd.f32 %v15288_v1, %v10842_v59 }
 0xdec   : > { %v11017_v36 = vpop.f32.mrf.mxu0 }
 0xded   : > { %v11026_v58 = vadd.f32 %v11017_v36, %v10841_v17  ;;  %v11029_v3 = vmax.f32 %v11027_v63, 0.0 }
 0xdef   : > { %v11028_v23 = vmax.f32 %v11026_v58, 0.0 }
 0xdf1   : > { %v11030_v31 = vadd.f32 %v11029_v3, %v11028_v23 }
 0xdf3   : > { %v11031_v30 = vrot.slane %v11030_v31, 4 }
 0xdf5   : > { %v11032_v61 = vadd.f32 %v11031_v30, %v11030_v31 }
 0xdf7   : > { %v11033_v56 = vrot.slane %v11032_v61, 2 }
 0xdf9   : > { %v11034_v42 = vadd.f32 %v11033_v56, %v11032_v61 }
 0xdfb   : > { %v11035_v7 = vrot.slane %v11034_v42, 1 }
 0xdfd   : > { %v11036_v29 = vadd.f32 %v11035_v7, %v11034_v42 }
 0xdff   : > { %v11037_v39 = vmul.f32 0.0625, %v11036_v29 }
 0xe01   : > { %v11039_v47 = vmul.f32 %v11038_v11, %v11037_v39 }
 0xe03   : > { %v11041_v40 = vsel %vm11040_vm0, %v11039_v47, 0.0 }
 0xe04   : > { %11042 = vadd.xlane.f32.xlu0 %v11041_v40 }
 0xe8d   : > { %v11043_v18 = vpop.xlane.xlu0 %11042 }
 0xe8e   : > { %v11045_v19 = vadd.f32 %v11044_v51, %v11043_v18 }
 0xe90   : > { %11047 = vst.msk [vmem:[%s521_s15] sm:$0x1] %vm11046_vm1, %v11045_v19 }
 0xe91 PF: > { %s28_s23 = sadd.s32 1, %s15316_s23  }
 0xe92   : > { %p25_p5 = scmp.ge.s32.totalorder %s28_s23, 4  }
 0xe94   :  { %27 = sbr.rel (!%p25_p5) target bundleno = 3 (0x3), region = 174 }

</bundles_post_ra>
